<compile_context>
chip_gen: v7x
topology: tpu7x:2x2x1
jax: 0.10.0
libtpu: 0.0.40
codegen_flags: <defaults>
</compile_context>

<pallas_src>
import functools

import jax
import jax.numpy as jnp
import numpy as np
from jax.experimental import pallas as pl
from jax.experimental.pallas import tpu as pltpu


def _round_up(x, m):
    return ((x + m - 1) // m) * m


def _tile_pad(n, cap):
    """Tile size (multiple of 16, ~<= cap) and the padded extent it divides evenly."""
    nt = max(1, -(-n // cap))
    t = _round_up(-(-n // nt), 16)
    return t, t * nt


def _pick_div(n, cap):
    """Largest divisor of n that is <= cap."""
    for t in range(min(n, cap), 0, -1):
        if n % t == 0:
            return t
    return n


# -----------------------------------------------------------------------------
# Pre-pass: style projections (G = mvn(style) @ wg + bg, Hm = style @ wh + bh),
# computed once per (batch, k-tile) instead of once per (q, k) grid step.
# -----------------------------------------------------------------------------
def _style_proj_kernel(s_ref, st_ref, w_ref, b_ref, g_ref, h_ref):
    s = s_ref[0].astype(jnp.float32)                        # (TK, Cp)
    st = st_ref[0]                                          # (2, Cp): [mean, rstd]
    sn = (s - st[0:1]) * st[1:2]
    g = jnp.dot(sn.astype(jnp.bfloat16), w_ref[0],
                preferred_element_type=jnp.float32) + b_ref[0]
    h = jnp.dot(s.astype(jnp.bfloat16), w_ref[1],
                preferred_element_type=jnp.float32) + b_ref[1]
    g_ref[0] = g.astype(g_ref.dtype)
    h_ref[0] = h.astype(h_ref.dtype)


# -----------------------------------------------------------------------------
# SANet flash-attention kernel (online softmax over key tiles).
# -----------------------------------------------------------------------------
def _sanet_attn_kernel(c_ref, g_ref, h_ref, st_ref, w_ref, b_ref, o_ref,
                       f_scr, acc_scr, m_scr, l_scr, *, hws, tk, needs_mask):
    ki = pl.program_id(2)
    nk = pl.num_programs(2)

    @pl.when(ki == 0)
    def _init():
        m_scr[...] = jnp.full(m_scr.shape, -jnp.inf, jnp.float32)
        l_scr[...] = jnp.zeros(l_scr.shape, jnp.float32)
        acc_scr[...] = jnp.zeros(acc_scr.shape, jnp.float32)
        c = c_ref[0].astype(jnp.float32)
        st = st_ref[0]                                      # (2, Cp)
        cn = (c - st[0:1]) * st[1:2]                        # mean-variance norm (f32)
        f = jnp.dot(cn.astype(jnp.bfloat16), w_ref[0],
                    preferred_element_type=jnp.float32) + b_ref[0]
        f_scr[...] = f.astype(jnp.bfloat16)                 # cached over the k loop

    # scores[q, k] = <F[q, :], G[k, :]>
    scores = jax.lax.dot_general(
        f_scr[...], g_ref[0], (((1,), (1,)), ((), ())),
        preferred_element_type=jnp.float32)                 # (TQ, TK)

    if needs_mask:
        col = ki * tk + jax.lax.broadcasted_iota(jnp.int32, scores.shape, 1)
        valid = col < hws
        scores = jnp.where(valid, scores, -1e30)

    m_prev = m_scr[...]
    m_new = jnp.maximum(m_prev, jnp.max(scores, axis=-1, keepdims=True))
    alpha = jnp.exp(m_prev - m_new)
    p = jnp.exp(scores - m_new)
    if needs_mask:
        p = jnp.where(valid, p, 0.0)
    l_scr[...] = alpha * l_scr[...] + jnp.sum(p, axis=-1, keepdims=True)
    acc_scr[...] = alpha * acc_scr[...] + jnp.dot(
        p.astype(jnp.bfloat16), h_ref[0], preferred_element_type=jnp.float32)
    m_scr[...] = m_new

    @pl.when(ki == nk - 1)
    def _finalize():
        o = acc_scr[...] * pl.reciprocal(l_scr[...], approx=True)
        out = jnp.dot(o.astype(jnp.bfloat16), w_ref[1],
                      preferred_element_type=jnp.float32) + b_ref[1]
        o_ref[0] = (out + c_ref[0].astype(jnp.float32)).astype(o_ref.dtype)


def sanet_pallas(content, style, stats_c, stats_s, w_fo, b_fo, w_gh, b_gh,
                 *, tq_cap=256, tk_cap=256):
    """content/style: (B, HW, Cp) bf16; stats_*: (B, 2, Cp) f32; weights bf16, biases f32."""
    B, hwc, Cp = content.shape
    _, hws, _ = style.shape
    tq, hwc_p = _tile_pad(hwc, tq_cap)
    tk, hws_p = _tile_pad(hws, tk_cap)
    if hwc_p != hwc:
        content = jnp.pad(content, ((0, 0), (0, hwc_p - hwc), (0, 0)))
    if hws_p != hws:
        style = jnp.pad(style, ((0, 0), (0, hws_p - hws), (0, 0)))

    # Pre-pass over style tiles (grid (B, k)).
    g, hm = pl.pallas_call(
        _style_proj_kernel,
        out_shape=(jax.ShapeDtypeStruct((B, hws_p, Cp), jnp.bfloat16),
                   jax.ShapeDtypeStruct((B, hws_p, Cp), jnp.bfloat16)),
        grid=(B, hws_p // tk),
        in_specs=[
            pl.BlockSpec((1, tk, Cp), lambda b, k: (b, k, 0)),
            pl.BlockSpec((1, 2, Cp), lambda b, k: (b, 0, 0)),
            pl.BlockSpec((2, Cp, Cp), lambda b, k: (0, 0, 0)),
            pl.BlockSpec((2, 1, Cp), lambda b, k: (0, 0, 0)),
        ],
        out_specs=(pl.BlockSpec((1, tk, Cp), lambda b, k: (b, k, 0)),
                   pl.BlockSpec((1, tk, Cp), lambda b, k: (b, k, 0))),
        compiler_params=pltpu.CompilerParams(
            dimension_semantics=("parallel", "parallel"),
            vmem_limit_bytes=32 * 1024 * 1024),
    )(style, stats_s, w_gh, b_gh)

    kernel = functools.partial(_sanet_attn_kernel, hws=hws, tk=tk,
                               needs_mask=(hws_p != hws))
    out = pl.pallas_call(
        kernel,
        out_shape=jax.ShapeDtypeStruct((B, hwc_p, Cp), jnp.bfloat16),
        grid=(B, hwc_p // tq, hws_p // tk),
        in_specs=[
            pl.BlockSpec((1, tq, Cp), lambda b, q, k: (b, q, 0)),   # content (queries)
            pl.BlockSpec((1, tk, Cp), lambda b, q, k: (b, k, 0)),   # G (pre-projected)
            pl.BlockSpec((1, tk, Cp), lambda b, q, k: (b, k, 0)),   # Hm (pre-projected)
            pl.BlockSpec((1, 2, Cp), lambda b, q, k: (b, 0, 0)),    # content [mean, rstd]
            pl.BlockSpec((2, Cp, Cp), lambda b, q, k: (0, 0, 0)),   # [wf, wo]
            pl.BlockSpec((2, 1, Cp), lambda b, q, k: (0, 0, 0)),    # [bf, bo]
        ],
        out_specs=pl.BlockSpec((1, tq, Cp), lambda b, q, k: (b, q, 0)),
        scratch_shapes=[
            pltpu.VMEM((tq, Cp), jnp.bfloat16),   # F (query projection)
            pltpu.VMEM((tq, Cp), jnp.float32),    # output accumulator
            pltpu.VMEM((tq, 1), jnp.float32),     # running row max
            pltpu.VMEM((tq, 1), jnp.float32),     # running row sum
        ],
        compiler_params=pltpu.CompilerParams(
            dimension_semantics=("parallel", "parallel", "arbitrary"),
            vmem_limit_bytes=32 * 1024 * 1024),
    )(content, g, hm, stats_c, w_fo, b_fo)

    if hwc_p != hwc:
        out = out[:, :hwc]
    return out


# -----------------------------------------------------------------------------
# Merge kernel: row-tiled (o4 + row-upsampled o5) add, reflection pad and 3x3 conv.
# Halo rows arrive through reflection-aware index maps; the H-upsample of o5 is a
# one-hot row-selection matmul; the 9 taps are flat row-slices of one padded slab.
# -----------------------------------------------------------------------------
def _merge_kernel(o4m_ref, o4t_ref, o4b_ref, o5_ref, w_ref, b_ref, out_ref,
                  *, H, W, Cp, TH, H5):
    r = pl.program_id(1)

    top = o4t_ref[0].astype(jnp.float32)                    # (1, W, Cp) reflected halo
    mid = o4m_ref[0].astype(jnp.float32)                    # (TH, W, Cp)
    bot = o4b_ref[0].astype(jnp.float32)                    # (1, W, Cp) reflected halo
    # TH+3 rows: top halo, TH body rows, bottom halo, plus one junk row (reused `bot`)
    # that only ever feeds discarded pad columns of the flat-slab trick below.
    x4 = jnp.concatenate([top, mid, bot, bot], axis=0)      # (TH+3, W, Cp)

    # Fused nearest-neighbour row upsample of the 5_1 branch: one-hot row selection.
    rows = jax.lax.broadcasted_iota(jnp.int32, (TH + 3, H5), 0)
    cols = jax.lax.broadcasted_iota(jnp.int32, (TH + 3, H5), 1)
    grow = r * TH + rows - 1                                 # padded-image row index - 1
    grow = jnp.where(grow < 0, 1, jnp.where(grow > H - 1, H - 2, grow))
    # sel[i, h5] = 1  iff  h5 == floor(grow[i] * H5 / H)   (no integer division)
    prod = grow * H5
    sel = jnp.logical_and(cols * H <= prod, prod < (cols + 1) * H).astype(jnp.bfloat16)
    o5rows = jnp.dot(sel, o5_ref[0], preferred_element_type=jnp.float32)  # (TH+3, W*Cp)

    x = x4 + o5rows.reshape(TH + 3, W, Cp)
    # ReflectionPad2d((1,1,1,1)): width reflection here, height handled by halo maps.
    xp = jnp.concatenate([x[:, 1:2], x, x[:, W - 2:W - 1]], axis=1)   # (TH+3, W+2, Cp)
    gf = xp.reshape((TH + 3) * (W + 2), Cp).astype(jnp.bfloat16)

    L = TH * (W + 2)
    acc = jnp.zeros((L, Cp), jnp.float32)
    for t in range(9):
        kh, kw = divmod(t, 3)
        st = kh * (W + 2) + kw
        acc = acc + jnp.dot(gf[st:st + L], w_ref[t],
                            preferred_element_type=jnp.float32)
    acc = acc + b_ref[...]
    out = acc.reshape(TH, W + 2, Cp)[:, :W, :]               # drop pad columns
    out_ref[0] = out.astype(out_ref.dtype)


def merge_conv_pallas(o4_img, o5w, w_pack, b_pack, *, th_cap=16):
    """o4_img: (B, H, W, Cp) bf16; o5w: (B, H5, W, Cp) bf16 (already W-upsampled);
    w_pack: (9, Cp, Cp) bf16; b_pack: (1, Cp) f32."""
    B, H, W, Cp = o4_img.shape
    H5 = o5w.shape[1]
    TH = _pick_div(H, th_cap)
    R = H // TH
    o5w_flat = o5w.reshape(B, H5, W * Cp)

    kernel = functools.partial(_merge_kernel, H=H, W=W, Cp=Cp, TH=TH, H5=H5)
    top_map = lambda b, r: (b, jnp.abs(r * TH - 1), 0, 0)                     # reflect -1 -> 1
    bot_map = lambda b, r: (b, (H - 1) - jnp.abs((H - 1) - (r * TH + TH)), 0, 0)  # reflect H -> H-2

    return pl.pallas_call(
        kernel,
        out_shape=jax.ShapeDtypeStruct((B, H, W, Cp), jnp.float32),
        grid=(B, R),
        in_specs=[
            pl.BlockSpec((1, TH, W, Cp), lambda b, r: (b, r, 0, 0)),   # body rows
            pl.BlockSpec((1, 1, W, Cp), top_map),                      # top halo row
            pl.BlockSpec((1, 1, W, Cp), bot_map),                      # bottom halo row
            pl.BlockSpec((1, H5, W * Cp), lambda b, r: (b, 0, 0)),     # small o5 map
            pl.BlockSpec((9, Cp, Cp), lambda b, r: (0, 0, 0)),         # conv weights
            pl.BlockSpec((1, Cp), lambda b, r: (0, 0)),                # conv bias
        ],
        out_specs=pl.BlockSpec((1, TH, W, Cp), lambda b, r: (b, r, 0, 0)),
        compiler_params=pltpu.CompilerParams(
            dimension_semantics=("parallel", "parallel"),
            vmem_limit_bytes=48 * 1024 * 1024),
    )(o4_img, o4_img, o4_img, o5w_flat, w_pack, b_pack)


# -----------------------------------------------------------------------------
# Transform forward wrapper (inputs / outputs are NCHW like the PyTorch module)
# -----------------------------------------------------------------------------
def _nchw_to_flat(x):
    B, C, H, W = x.shape
    return x.transpose(0, 2, 3, 1).reshape(B, H * W, C)


def _pad_last(x, cp):
    c = x.shape[-1]
    if c == cp:
        return x
    return jnp.pad(x, [(0, 0)] * (x.ndim - 1) + [(0, cp - c)])


def _mvn_stats(x_flat, cp):
    """Per-batch, per-channel [mean, 1/std] (unbiased var, matches torch.var)."""
    mean = jnp.mean(x_flat, axis=1, keepdims=True)
    var = jnp.var(x_flat, axis=1, keepdims=True, ddof=1) + 1e-5
    rstd = jax.lax.rsqrt(var)
    return _pad_last(jnp.concatenate([mean, rstd], axis=1), cp)   # (B, 2, cp)


def _pack_sanet_params(p, C, cp):
    # NOTE: 1x1 weights are stored (Cin, Cout); real PyTorch checkpoints need a transpose.
    padw = lambda w: jnp.pad(w, ((0, cp - C), (0, cp - C))).astype(jnp.bfloat16)
    padb = lambda b: jnp.pad(b.reshape(1, C), ((0, 0), (0, cp - C))).astype(jnp.float32)
    w_fo = jnp.stack([padw(p["wf"]), padw(p["wo"])])
    b_fo = jnp.stack([padb(p["bf"]), padb(p["bo"])])
    w_gh = jnp.stack([padw(p["wg"]), padw(p["wh"])])
    b_gh = jnp.stack([padb(p["bg"]), padb(p["bh"])])
    return w_fo, b_fo, w_gh, b_gh


def _pack_merge_params(w, b, C, cp):
    # merge_w stored as (kh, kw, Cin, Cout); PyTorch Conv2d is (Cout, Cin, kh, kw).
    wp = jnp.pad(w, ((0, 0), (0, 0), (0, cp - C), (0, cp - C)))
    wp = wp.reshape(9, cp, cp).astype(jnp.bfloat16)
    bp = jnp.pad(b, ((0, 0), (0, cp - C))).astype(jnp.float32)
    return wp, bp


def transform_forward(params, content4, style4, content5, style5,
                      *, tq_cap=256, tk_cap=256, merge_row_cap=16):
    B, C, H4, W4 = content4.shape
    _, _, H5, W5 = content5.shape
    cp = max(128, _round_up(C, 128))          # lane-dense channel width

    c4, s4 = _nchw_to_flat(content4), _nchw_to_flat(style4)
    c5, s5 = _nchw_to_flat(content5), _nchw_to_flat(style5)

    # mvn statistics in f32 from the full-precision inputs.
    stats_c4, stats_s4 = _mvn_stats(c4, cp), _mvn_stats(s4, cp)
    stats_c5, stats_s5 = _mvn_stats(c5, cp), _mvn_stats(s5, cp)

    p4 = _pack_sanet_params(params["sanet4_1"], C, cp)
    p5 = _pack_sanet_params(params["sanet5_1"], C, cp)
    wm, bm = _pack_merge_params(params["merge_w"], params["merge_b"], C, cp)

    # bf16 activation I/O through HBM.
    c4b = _pad_last(c4, cp).astype(jnp.bfloat16)
    s4b = _pad_last(s4, cp).astype(jnp.bfloat16)
    c5b = _pad_last(c5, cp).astype(jnp.bfloat16)
    s5b = _pad_last(s5, cp).astype(jnp.bfloat16)

    o4 = sanet_pallas(c4b, s4b, stats_c4, stats_s4, *p4,
                      tq_cap=tq_cap, tk_cap=tk_cap)
    o5 = sanet_pallas(c5b, s5b, stats_c5, stats_s5, *p5,
                      tq_cap=tq_cap, tk_cap=tk_cap)

    o4_img = o4.reshape(B, H4, W4, cp)
    # Column (W) nearest upsample of the small 5_1 map here (cheap, stays small);
    # the row (H) upsample is fused into the merge kernel's row-selection matmul.
    idx_w = (np.arange(W4) * W5) // W4
    o5w = o5.reshape(B, H5, W5, cp)[:, :, idx_w, :]

    out = merge_conv_pallas(o4_img, o5w, wm, bm, th_cap=merge_row_cap)
    return out[..., :C].transpose(0, 3, 1, 2)        # NCHW, drop channel padding


# -----------------------------------------------------------------------------
# Pure-JAX f32 reference (correctness check)
# -----------------------------------------------------------------------------
def _mvn_ref(x):
    mean = x.mean(axis=1, keepdims=True)
    var = x.var(axis=1, keepdims=True, ddof=1) + 1e-5
    return (x - mean) / jnp.sqrt(var)


def _sanet_ref(p, c, s):
    F = _mvn_ref(c) @ p["wf"] + p["bf"]
    G = _mvn_ref(s) @ p["wg"] + p["bg"]
    Hm = s @ p["wh"] + p["bh"]
    S = jax.nn.softmax(jnp.einsum("bqc,bkc->bqk", F, G), axis=-1)
    O = jnp.einsum("bqk,bkc->bqc", S, Hm) @ p["wo"] + p["bo"]
    return O + c


def transform_ref(params, content4, style4, content5, style5):
    B, C, H4, W4 = content4.shape
    _, _, H5, W5 = content5.shape
    o4 = _sanet_ref(params["sanet4_1"], _nchw_to_flat(content4), _nchw_to_flat(style4))
    o5 = _sanet_ref(params["sanet5_1"], _nchw_to_flat(content5), _nchw_to_flat(style5))
    o5_img = o5.reshape(B, H5, W5, C)
    idx_h = (jnp.arange(H4) * H5) // H4
    idx_w = (jnp.arange(W4) * W5) // W4
    o5_up = jnp.take(jnp.take(o5_img, idx_h, axis=1), idx_w, axis=2)
    merged = o4.reshape(B, H4, W4, C) + o5_up
    xpad = jnp.pad(merged, ((0, 0), (1, 1), (1, 1), (0, 0)), mode="reflect")
    patches = jnp.concatenate(
        [xpad[:, dh:dh + H4, dw:dw + W4, :] for dh in range(3) for dw in range(3)], axis=-1)
    out = patches.reshape(B, H4 * W4, 9 * C) @ params["merge_w"].reshape(9 * C, C) \
        + params["merge_b"]
    return out.reshape(B, H4, W4, C).transpose(0, 3, 1, 2)


# -----------------------------------------------------------------------------
# Deterministic parameter init (PyTorch-like uniform(-1/sqrt(fan_in), 1/sqrt(fan_in)))
# -----------------------------------------------------------------------------
def init_params(key, C):
    def sanet(k):
        ks = jax.random.split(k, 8)
        bound = 1.0 / np.sqrt(C)
        u = lambda kk, shape: jax.random.uniform(kk, shape, jnp.float32, -bound, bound)
        return {"wf": u(ks[0], (C, C)), "bf": u(ks[1], (1, C)),
                "wg": u(ks[2], (C, C)), "bg": u(ks[3], (1, C)),
                "wh": u(ks[4], (C, C)), "bh": u(ks[5], (1, C)),
                "wo": u(ks[6], (C, C)), "bo": u(ks[7], (1, C))}

    k1, k2, k3, k4 = jax.random.split(key, 4)
    bound3 = 1.0 / np.sqrt(9 * C)
    return {
        "sanet4_1": sanet(k1),
        "sanet5_1": sanet(k2),
        "merge_w": jax.random.uniform(k3, (3, 3, C, C), jnp.float32, -bound3, bound3),
        "merge_b": jax.random.uniform(k4, (1, C), jnp.float32, -bound3, bound3),
    }


if __name__ == "__main__":
    key = jax.random.PRNGKey(0)
    kp, k1, k2, k3, k4 = jax.random.split(key, 5)

    B, C = 2, 32
    H4 = W4 = 16
    H5 = W5 = 8

    params = init_params(kp, C)
    content4 = jax.random.normal(k1, (B, C, H4, W4), jnp.float32)
    style4 = jax.random.normal(k2, (B, C, H4, W4), jnp.float32)
    content5 = jax.random.normal(k3, (B, C, H5, W5), jnp.float32)
    style5 = jax.random.normal(k4, (B, C, H5, W5), jnp.float32)

    # Small tile caps so the toy shapes exercise the multi-q-tile / multi-k-tile flash
    # loop, the padded-key masking path (256 keys -> 3 tiles of 96) and multi-row-tile
    # merge (4 row tiles: top boundary, interior, bottom boundary).
    fwd = jax.jit(functools.partial(transform_forward, params,
                                    tq_cap=128, tk_cap=96, merge_row_cap=4))
    out = jax.block_until_ready(fwd(content4, style4, content5, style5))

    ref = jax.block_until_ready(
        transform_ref(params, content4, style4, content5, style5))

    # Tolerance reflects bf16 activation I/O + bf16 MXU operands (f32 accumulation).
    np.testing.assert_allclose(np.asarray(out), np.asarray(ref), rtol=3e-2, atol=3e-2)
    assert out.shape == (B, C, H4, W4)
    print("KERNEL_OK")
</pallas_src>

<mosaic_0001>
module attributes {stable_mosaic.version = 11 : i64} {
  func.func @_style_proj_kernel(%arg0: i32, %arg1: i32, %arg2: memref<1x96x128xbf16, #tpu.memory_space<vmem>>, %arg3: memref<1x2x128xf32, #tpu.memory_space<vmem>>, %arg4: memref<2x128x128xbf16, #tpu.memory_space<vmem>>, %arg5: memref<2x1x128xf32, #tpu.memory_space<vmem>>, %arg6: memref<1x96x128xbf16, #tpu.memory_space<vmem>>, %arg7: memref<1x96x128xbf16, #tpu.memory_space<vmem>>) attributes {dimension_semantics = [#tpu.dimension_semantics<parallel>, #tpu.dimension_semantics<parallel>], iteration_bounds = array<i64: 2, 3>, scalar_prefetch = 0 : i64, scratch_operands = 0 : i64, tpu.core_type = #tpu.core_type<tc>, window_params = [{transform_indices = @transform_0, window_bounds = array<i64: 1, 96, 128>}, {transform_indices = @transform_1, window_bounds = array<i64: 1, 2, 128>}, {pipeline_mode = #tpu.pipeline_mode<synchronous>, transform_indices = @transform_2, window_bounds = array<i64: 2, 128, 128>}, {pipeline_mode = #tpu.pipeline_mode<synchronous>, transform_indices = @transform_3, window_bounds = array<i64: 2, 1, 128>}, {transform_indices = @transform_4, window_bounds = array<i64: 1, 96, 128>}, {transform_indices = @transform_5, window_bounds = array<i64: 1, 96, 128>}]} {
    %c0 = arith.constant 0 : index
    %c0_0 = arith.constant 0 : index
    %c0_1 = arith.constant 0 : index
    %0 = vector.load %arg2[%c0, %c0_0, %c0_1] : memref<1x96x128xbf16, #tpu.memory_space<vmem>>, vector<1x96x128xbf16>
    %1 = vector.shape_cast %0 : vector<1x96x128xbf16> to vector<96x128xbf16>
    %2 = arith.extf %1 : vector<96x128xbf16> to vector<96x128xf32>
    %c0_2 = arith.constant 0 : index
    %c0_3 = arith.constant 0 : index
    %c0_4 = arith.constant 0 : index
    %3 = vector.load %arg3[%c0_2, %c0_3, %c0_4] : memref<1x2x128xf32, #tpu.memory_space<vmem>>, vector<1x2x128xf32>
    %4 = vector.shape_cast %3 : vector<1x2x128xf32> to vector<2x128xf32>
    %5 = vector.extract_strided_slice %4 {offsets = [0, 0], sizes = [1, 128], strides = [1, 1]} : vector<2x128xf32> to vector<1x128xf32>
    %6 = vector.broadcast %5 : vector<1x128xf32> to vector<96x128xf32>
    %7 = arith.subf %2, %6 : vector<96x128xf32>
    %8 = vector.extract_strided_slice %4 {offsets = [1, 0], sizes = [1, 128], strides = [1, 1]} : vector<2x128xf32> to vector<1x128xf32>
    %9 = vector.broadcast %8 : vector<1x128xf32> to vector<96x128xf32>
    %10 = arith.mulf %7, %9 : vector<96x128xf32>
    %11 = arith.truncf %10 : vector<96x128xf32> to vector<96x128xbf16>
    %c0_5 = arith.constant 0 : index
    %c0_6 = arith.constant 0 : index
    %c0_7 = arith.constant 0 : index
    %12 = vector.load %arg4[%c0_5, %c0_6, %c0_7] : memref<2x128x128xbf16, #tpu.memory_space<vmem>>, vector<1x128x128xbf16>
    %13 = vector.shape_cast %12 : vector<1x128x128xbf16> to vector<128x128xbf16>
    %cst = arith.constant dense<0.000000e+00> : vector<96x128xf32>
    %14 = tpu.matmul %11, %13, %cst {dimension_numbers = #tpu.dot_dimension_numbers<[1], [0], [0], [1], [0, 0, 1, 1], [], []>} : vector<96x128xbf16>, vector<128x128xbf16>, vector<96x128xf32> -> vector<96x128xf32>
    %c0_8 = arith.constant 0 : index
    %c0_9 = arith.constant 0 : index
    %c0_10 = arith.constant 0 : index
    %15 = vector.load %arg5[%c0_8, %c0_9, %c0_10] : memref<2x1x128xf32, #tpu.memory_space<vmem>>, vector<1x1x128xf32>
    %16 = vector.shape_cast %15 : vector<1x1x128xf32> to vector<1x128xf32>
    %17 = vector.broadcast %16 : vector<1x128xf32> to vector<96x128xf32>
    %18 = arith.addf %14, %17 : vector<96x128xf32>
    %19 = arith.truncf %2 : vector<96x128xf32> to vector<96x128xbf16>
    %c1 = arith.constant 1 : index
    %c0_11 = arith.constant 0 : index
    %c0_12 = arith.constant 0 : index
    %20 = vector.load %arg4[%c1, %c0_11, %c0_12] : memref<2x128x128xbf16, #tpu.memory_space<vmem>>, vector<1x128x128xbf16>
    %21 = vector.shape_cast %20 : vector<1x128x128xbf16> to vector<128x128xbf16>
    %cst_13 = arith.constant dense<0.000000e+00> : vector<96x128xf32>
    %22 = tpu.matmul %19, %21, %cst_13 {dimension_numbers = #tpu.dot_dimension_numbers<[1], [0], [0], [1], [0, 0, 1, 1], [], []>} : vector<96x128xbf16>, vector<128x128xbf16>, vector<96x128xf32> -> vector<96x128xf32>
    %c1_14 = arith.constant 1 : index
    %c0_15 = arith.constant 0 : index
    %c0_16 = arith.constant 0 : index
    %23 = vector.load %arg5[%c1_14, %c0_15, %c0_16] : memref<2x1x128xf32, #tpu.memory_space<vmem>>, vector<1x1x128xf32>
    %24 = vector.shape_cast %23 : vector<1x1x128xf32> to vector<1x128xf32>
    %25 = vector.broadcast %24 : vector<1x128xf32> to vector<96x128xf32>
    %26 = arith.addf %22, %25 : vector<96x128xf32>
    %27 = arith.truncf %18 : vector<96x128xf32> to vector<96x128xbf16>
    %c0_17 = arith.constant 0 : index
    %c0_18 = arith.constant 0 : index
    %c0_19 = arith.constant 0 : index
    %28 = vector.load %arg6[%c0_17, %c0_18, %c0_19] : memref<1x96x128xbf16, #tpu.memory_space<vmem>>, vector<1x96x128xbf16>
    %29 = vector.shape_cast %28 : vector<1x96x128xbf16> to vector<96x128xbf16>
    %30 = vector.shape_cast %27 : vector<96x128xbf16> to vector<1x96x128xbf16>
    tpu.vector_store %arg6[%c0_17, %c0_18, %c0_19], %30 {strides = array<i32>} : memref<1x96x128xbf16, #tpu.memory_space<vmem>>, vector<1x96x128xbf16>,
    %31 = arith.truncf %26 : vector<96x128xf32> to vector<96x128xbf16>
    %c0_20 = arith.constant 0 : index
    %c0_21 = arith.constant 0 : index
    %c0_22 = arith.constant 0 : index
    %32 = vector.load %arg7[%c0_20, %c0_21, %c0_22] : memref<1x96x128xbf16, #tpu.memory_space<vmem>>, vector<1x96x128xbf16>
    %33 = vector.shape_cast %32 : vector<1x96x128xbf16> to vector<96x128xbf16>
    %34 = vector.shape_cast %31 : vector<96x128xbf16> to vector<1x96x128xbf16>
    tpu.vector_store %arg7[%c0_20, %c0_21, %c0_22], %34 {strides = array<i32>} : memref<1x96x128xbf16, #tpu.memory_space<vmem>>, vector<1x96x128xbf16>,
    return
  }
  func.func @transform_0(%arg0: i32, %arg1: i32) -> (i32, i32, i32) {
    %c0_i32 = arith.constant 0 : i32
    %c0_i32_0 = arith.constant 0 : i32
    return %arg0, %arg1, %c0_i32 : i32, i32, i32
  }
  func.func @transform_1(%arg0: i32, %arg1: i32) -> (i32, i32, i32) {
    %c0_i32 = arith.constant 0 : i32
    %c0_i32_0 = arith.constant 0 : i32
    %c0_i32_1 = arith.constant 0 : i32
    return %arg0, %c0_i32, %c0_i32_0 : i32, i32, i32
  }
  func.func @transform_2(%arg0: i32, %arg1: i32) -> (i32, i32, i32) {
    %c0_i32 = arith.constant 0 : i32
    %c0_i32_0 = arith.constant 0 : i32
    %c0_i32_1 = arith.constant 0 : i32
    %c0_i32_2 = arith.constant 0 : i32
    return %c0_i32, %c0_i32_0, %c0_i32_1 : i32, i32, i32
  }
  func.func @transform_3(%arg0: i32, %arg1: i32) -> (i32, i32, i32) {
    %c0_i32 = arith.constant 0 : i32
    %c0_i32_0 = arith.constant 0 : i32
    %c0_i32_1 = arith.constant 0 : i32
    %c0_i32_2 = arith.constant 0 : i32
    return %c0_i32, %c0_i32_0, %c0_i32_1 : i32, i32, i32
  }
  func.func @transform_4(%arg0: i32, %arg1: i32) -> (i32, i32, i32) {
    %c0_i32 = arith.constant 0 : i32
    %c0_i32_0 = arith.constant 0 : i32
    return %arg0, %arg1, %c0_i32 : i32, i32, i32
  }
  func.func @transform_5(%arg0: i32, %arg1: i32) -> (i32, i32, i32) {
    %c0_i32 = arith.constant 0 : i32
    %c0_i32_0 = arith.constant 0 : i32
    return %arg0, %arg1, %c0_i32 : i32, i32, i32
  }
}

module attributes {stable_mosaic.version = 11 : i64} {
  func.func @_style_proj_kernel(%arg0: i32, %arg1: i32, %arg2: memref<1x64x128xbf16, #tpu.memory_space<vmem>>, %arg3: memref<1x2x128xf32, #tpu.memory_space<vmem>>, %arg4: memref<2x128x128xbf16, #tpu.memory_space<vmem>>, %arg5: memref<2x1x128xf32, #tpu.memory_space<vmem>>, %arg6: memref<1x64x128xbf16, #tpu.memory_space<vmem>>, %arg7: memref<1x64x128xbf16, #tpu.memory_space<vmem>>) attributes {dimension_semantics = [#tpu.dimension_semantics<parallel>, #tpu.dimension_semantics<parallel>], iteration_bounds = array<i64: 2, 1>, scalar_prefetch = 0 : i64, scratch_operands = 0 : i64, tpu.core_type = #tpu.core_type<tc>, window_params = [{transform_indices = @transform_0, window_bounds = array<i64: 1, 64, 128>}, {transform_indices = @transform_1, window_bounds = array<i64: 1, 2, 128>}, {pipeline_mode = #tpu.pipeline_mode<synchronous>, transform_indices = @transform_2, window_bounds = array<i64: 2, 128, 128>}, {pipeline_mode = #tpu.pipeline_mode<synchronous>, transform_indices = @transform_3, window_bounds = array<i64: 2, 1, 128>}, {transform_indices = @transform_4, window_bounds = array<i64: 1, 64, 128>}, {transform_indices = @transform_5, window_bounds = array<i64: 1, 64, 128>}]} {
    %c0 = arith.constant 0 : index
    %c0_0 = arith.constant 0 : index
    %c0_1 = arith.constant 0 : index
    %0 = vector.load %arg2[%c0, %c0_0, %c0_1] : memref<1x64x128xbf16, #tpu.memory_space<vmem>>, vector<1x64x128xbf16>
    %1 = vector.shape_cast %0 : vector<1x64x128xbf16> to vector<64x128xbf16>
    %2 = arith.extf %1 : vector<64x128xbf16> to vector<64x128xf32>
    %c0_2 = arith.constant 0 : index
    %c0_3 = arith.constant 0 : index
    %c0_4 = arith.constant 0 : index
    %3 = vector.load %arg3[%c0_2, %c0_3, %c0_4] : memref<1x2x128xf32, #tpu.memory_space<vmem>>, vector<1x2x128xf32>
    %4 = vector.shape_cast %3 : vector<1x2x128xf32> to vector<2x128xf32>
    %5 = vector.extract_strided_slice %4 {offsets = [0, 0], sizes = [1, 128], strides = [1, 1]} : vector<2x128xf32> to vector<1x128xf32>
    %6 = vector.broadcast %5 : vector<1x128xf32> to vector<64x128xf32>
    %7 = arith.subf %2, %6 : vector<64x128xf32>
    %8 = vector.extract_strided_slice %4 {offsets = [1, 0], sizes = [1, 128], strides = [1, 1]} : vector<2x128xf32> to vector<1x128xf32>
    %9 = vector.broadcast %8 : vector<1x128xf32> to vector<64x128xf32>
    %10 = arith.mulf %7, %9 : vector<64x128xf32>
    %11 = arith.truncf %10 : vector<64x128xf32> to vector<64x128xbf16>
    %c0_5 = arith.constant 0 : index
    %c0_6 = arith.constant 0 : index
    %c0_7 = arith.constant 0 : index
    %12 = vector.load %arg4[%c0_5, %c0_6, %c0_7] : memref<2x128x128xbf16, #tpu.memory_space<vmem>>, vector<1x128x128xbf16>
    %13 = vector.shape_cast %12 : vector<1x128x128xbf16> to vector<128x128xbf16>
    %cst = arith.constant dense<0.000000e+00> : vector<64x128xf32>
    %14 = tpu.matmul %11, %13, %cst {dimension_numbers = #tpu.dot_dimension_numbers<[1], [0], [0], [1], [0, 0, 1, 1], [], []>} : vector<64x128xbf16>, vector<128x128xbf16>, vector<64x128xf32> -> vector<64x128xf32>
    %c0_8 = arith.constant 0 : index
    %c0_9 = arith.constant 0 : index
    %c0_10 = arith.constant 0 : index
    %15 = vector.load %arg5[%c0_8, %c0_9, %c0_10] : memref<2x1x128xf32, #tpu.memory_space<vmem>>, vector<1x1x128xf32>
    %16 = vector.shape_cast %15 : vector<1x1x128xf32> to vector<1x128xf32>
    %17 = vector.broadcast %16 : vector<1x128xf32> to vector<64x128xf32>
    %18 = arith.addf %14, %17 : vector<64x128xf32>
    %19 = arith.truncf %2 : vector<64x128xf32> to vector<64x128xbf16>
    %c1 = arith.constant 1 : index
    %c0_11 = arith.constant 0 : index
    %c0_12 = arith.constant 0 : index
    %20 = vector.load %arg4[%c1, %c0_11, %c0_12] : memref<2x128x128xbf16, #tpu.memory_space<vmem>>, vector<1x128x128xbf16>
    %21 = vector.shape_cast %20 : vector<1x128x128xbf16> to vector<128x128xbf16>
    %cst_13 = arith.constant dense<0.000000e+00> : vector<64x128xf32>
    %22 = tpu.matmul %19, %21, %cst_13 {dimension_numbers = #tpu.dot_dimension_numbers<[1], [0], [0], [1], [0, 0, 1, 1], [], []>} : vector<64x128xbf16>, vector<128x128xbf16>, vector<64x128xf32> -> vector<64x128xf32>
    %c1_14 = arith.constant 1 : index
    %c0_15 = arith.constant 0 : index
    %c0_16 = arith.constant 0 : index
    %23 = vector.load %arg5[%c1_14, %c0_15, %c0_16] : memref<2x1x128xf32, #tpu.memory_space<vmem>>, vector<1x1x128xf32>
    %24 = vector.shape_cast %23 : vector<1x1x128xf32> to vector<1x128xf32>
    %25 = vector.broadcast %24 : vector<1x128xf32> to vector<64x128xf32>
    %26 = arith.addf %22, %25 : vector<64x128xf32>
    %27 = arith.truncf %18 : vector<64x128xf32> to vector<64x128xbf16>
    %c0_17 = arith.constant 0 : index
    %c0_18 = arith.constant 0 : index
    %c0_19 = arith.constant 0 : index
    %28 = vector.load %arg6[%c0_17, %c0_18, %c0_19] : memref<1x64x128xbf16, #tpu.memory_space<vmem>>, vector<1x64x128xbf16>
    %29 = vector.shape_cast %28 : vector<1x64x128xbf16> to vector<64x128xbf16>
    %30 = vector.shape_cast %27 : vector<64x128xbf16> to vector<1x64x128xbf16>
    tpu.vector_store %arg6[%c0_17, %c0_18, %c0_19], %30 {strides = array<i32>} : memref<1x64x128xbf16, #tpu.memory_space<vmem>>, vector<1x64x128xbf16>,
    %31 = arith.truncf %26 : vector<64x128xf32> to vector<64x128xbf16>
    %c0_20 = arith.constant 0 : index
    %c0_21 = arith.constant 0 : index
    %c0_22 = arith.constant 0 : index
    %32 = vector.load %arg7[%c0_20, %c0_21, %c0_22] : memref<1x64x128xbf16, #tpu.memory_space<vmem>>, vector<1x64x128xbf16>
    %33 = vector.shape_cast %32 : vector<1x64x128xbf16> to vector<64x128xbf16>
    %34 = vector.shape_cast %31 : vector<64x128xbf16> to vector<1x64x128xbf16>
    tpu.vector_store %arg7[%c0_20, %c0_21, %c0_22], %34 {strides = array<i32>} : memref<1x64x128xbf16, #tpu.memory_space<vmem>>, vector<1x64x128xbf16>,
    return
  }
  func.func @transform_0(%arg0: i32, %arg1: i32) -> (i32, i32, i32) {
    %c0_i32 = arith.constant 0 : i32
    %c0_i32_0 = arith.constant 0 : i32
    return %arg0, %arg1, %c0_i32 : i32, i32, i32
  }
  func.func @transform_1(%arg0: i32, %arg1: i32) -> (i32, i32, i32) {
    %c0_i32 = arith.constant 0 : i32
    %c0_i32_0 = arith.constant 0 : i32
    %c0_i32_1 = arith.constant 0 : i32
    return %arg0, %c0_i32, %c0_i32_0 : i32, i32, i32
  }
  func.func @transform_2(%arg0: i32, %arg1: i32) -> (i32, i32, i32) {
    %c0_i32 = arith.constant 0 : i32
    %c0_i32_0 = arith.constant 0 : i32
    %c0_i32_1 = arith.constant 0 : i32
    %c0_i32_2 = arith.constant 0 : i32
    return %c0_i32, %c0_i32_0, %c0_i32_1 : i32, i32, i32
  }
  func.func @transform_3(%arg0: i32, %arg1: i32) -> (i32, i32, i32) {
    %c0_i32 = arith.constant 0 : i32
    %c0_i32_0 = arith.constant 0 : i32
    %c0_i32_1 = arith.constant 0 : i32
    %c0_i32_2 = arith.constant 0 : i32
    return %c0_i32, %c0_i32_0, %c0_i32_1 : i32, i32, i32
  }
  func.func @transform_4(%arg0: i32, %arg1: i32) -> (i32, i32, i32) {
    %c0_i32 = arith.constant 0 : i32
    %c0_i32_0 = arith.constant 0 : i32
    return %arg0, %arg1, %c0_i32 : i32, i32, i32
  }
  func.func @transform_5(%arg0: i32, %arg1: i32) -> (i32, i32, i32) {
    %c0_i32 = arith.constant 0 : i32
    %c0_i32_0 = arith.constant 0 : i32
    return %arg0, %arg1, %c0_i32 : i32, i32, i32
  }
}

module attributes {stable_mosaic.version = 11 : i64} {
  func.func @_sanet_attn_kernel(%arg0: i32, %arg1: i32, %arg2: i32, %arg3: memref<1x128x128xbf16, #tpu.memory_space<vmem>>, %arg4: memref<1x96x128xbf16, #tpu.memory_space<vmem>>, %arg5: memref<1x96x128xbf16, #tpu.memory_space<vmem>>, %arg6: memref<1x2x128xf32, #tpu.memory_space<vmem>>, %arg7: memref<2x128x128xbf16, #tpu.memory_space<vmem>>, %arg8: memref<2x1x128xf32, #tpu.memory_space<vmem>>, %arg9: memref<1x128x128xbf16, #tpu.memory_space<vmem>>, %arg10: memref<128x128xbf16, #tpu.memory_space<vmem>>, %arg11: memref<128x128xf32, #tpu.memory_space<vmem>>, %arg12: memref<128x1xf32, #tpu.memory_space<vmem>>, %arg13: memref<128x1xf32, #tpu.memory_space<vmem>>) attributes {dimension_semantics = [#tpu.dimension_semantics<parallel>, #tpu.dimension_semantics<parallel>, #tpu.dimension_semantics<arbitrary>], iteration_bounds = array<i64: 2, 2, 3>, scalar_prefetch = 0 : i64, scratch_operands = 4 : i64, tpu.core_type = #tpu.core_type<tc>, window_params = [{transform_indices = @transform_0, window_bounds = array<i64: 1, 128, 128>}, {transform_indices = @transform_1, window_bounds = array<i64: 1, 96, 128>}, {transform_indices = @transform_2, window_bounds = array<i64: 1, 96, 128>}, {transform_indices = @transform_3, window_bounds = array<i64: 1, 2, 128>}, {pipeline_mode = #tpu.pipeline_mode<synchronous>, transform_indices = @transform_4, window_bounds = array<i64: 2, 128, 128>}, {pipeline_mode = #tpu.pipeline_mode<synchronous>, transform_indices = @transform_5, window_bounds = array<i64: 2, 1, 128>}, {transform_indices = @transform_6, window_bounds = array<i64: 1, 128, 128>}]} {
    %c0_i32 = arith.constant 0 : i32
    %0 = arith.cmpi eq, %arg2, %c0_i32 : i32
    %1 = arith.extui %0 : i1 to i32
    %c0_i32_0 = arith.constant 0 : i32
    %2 = arith.cmpi ne, %1, %c0_i32_0 : i32
    scf.if %2 {
      %cst_26 = arith.constant 0xFF800000 : f32
      %45 = vector.broadcast %cst_26 : f32 to vector<128x1xf32>
      %c0_27 = arith.constant 0 : index
      %c0_28 = arith.constant 0 : index
      %46 = vector.load %arg12[%c0_27, %c0_28] : memref<128x1xf32, #tpu.memory_space<vmem>>, vector<128x1xf32>
      tpu.vector_store %arg12[%c0_27, %c0_28], %45 {strides = array<i32>} : memref<128x1xf32, #tpu.memory_space<vmem>>, vector<128x1xf32>,
      %cst_29 = arith.constant 0.000000e+00 : f32
      %47 = vector.broadcast %cst_29 : f32 to vector<128x1xf32>
      %c0_30 = arith.constant 0 : index
      %c0_31 = arith.constant 0 : index
      %48 = vector.load %arg13[%c0_30, %c0_31] : memref<128x1xf32, #tpu.memory_space<vmem>>, vector<128x1xf32>
      tpu.vector_store %arg13[%c0_30, %c0_31], %47 {strides = array<i32>} : memref<128x1xf32, #tpu.memory_space<vmem>>, vector<128x1xf32>,
      %cst_32 = arith.constant 0.000000e+00 : f32
      %49 = vector.broadcast %cst_32 : f32 to vector<128x128xf32>
      %c0_33 = arith.constant 0 : index
      %c0_34 = arith.constant 0 : index
      %50 = vector.load %arg11[%c0_33, %c0_34] : memref<128x128xf32, #tpu.memory_space<vmem>>, vector<128x128xf32>
      tpu.vector_store %arg11[%c0_33, %c0_34], %49 {strides = array<i32>} : memref<128x128xf32, #tpu.memory_space<vmem>>, vector<128x128xf32>,
      %c0_35 = arith.constant 0 : index
      %c0_36 = arith.constant 0 : index
      %c0_37 = arith.constant 0 : index
      %51 = vector.load %arg3[%c0_35, %c0_36, %c0_37] : memref<1x128x128xbf16, #tpu.memory_space<vmem>>, vector<1x128x128xbf16>
      %52 = vector.shape_cast %51 : vector<1x128x128xbf16> to vector<128x128xbf16>
      %53 = arith.extf %52 : vector<128x128xbf16> to vector<128x128xf32>
      %c0_38 = arith.constant 0 : index
      %c0_39 = arith.constant 0 : index
      %c0_40 = arith.constant 0 : index
      %54 = vector.load %arg6[%c0_38, %c0_39, %c0_40] : memref<1x2x128xf32, #tpu.memory_space<vmem>>, vector<1x2x128xf32>
      %55 = vector.shape_cast %54 : vector<1x2x128xf32> to vector<2x128xf32>
      %56 = vector.extract_strided_slice %55 {offsets = [0, 0], sizes = [1, 128], strides = [1, 1]} : vector<2x128xf32> to vector<1x128xf32>
      %57 = vector.broadcast %56 : vector<1x128xf32> to vector<128x128xf32>
      %58 = arith.subf %53, %57 : vector<128x128xf32>
      %59 = vector.extract_strided_slice %55 {offsets = [1, 0], sizes = [1, 128], strides = [1, 1]} : vector<2x128xf32> to vector<1x128xf32>
      %60 = vector.broadcast %59 : vector<1x128xf32> to vector<128x128xf32>
      %61 = arith.mulf %58, %60 : vector<128x128xf32>
      %62 = arith.truncf %61 : vector<128x128xf32> to vector<128x128xbf16>
      %c0_41 = arith.constant 0 : index
      %c0_42 = arith.constant 0 : index
      %c0_43 = arith.constant 0 : index
      %63 = vector.load %arg7[%c0_41, %c0_42, %c0_43] : memref<2x128x128xbf16, #tpu.memory_space<vmem>>, vector<1x128x128xbf16>
      %64 = vector.shape_cast %63 : vector<1x128x128xbf16> to vector<128x128xbf16>
      %cst_44 = arith.constant dense<0.000000e+00> : vector<128x128xf32>
      %65 = tpu.matmul %62, %64, %cst_44 {dimension_numbers = #tpu.dot_dimension_numbers<[1], [0], [0], [1], [0, 0, 1, 1], [], []>} : vector<128x128xbf16>, vector<128x128xbf16>, vector<128x128xf32> -> vector<128x128xf32>
      %c0_45 = arith.constant 0 : index
      %c0_46 = arith.constant 0 : index
      %c0_47 = arith.constant 0 : index
      %66 = vector.load %arg8[%c0_45, %c0_46, %c0_47] : memref<2x1x128xf32, #tpu.memory_space<vmem>>, vector<1x1x128xf32>
      %67 = vector.shape_cast %66 : vector<1x1x128xf32> to vector<1x128xf32>
      %68 = vector.broadcast %67 : vector<1x128xf32> to vector<128x128xf32>
      %69 = arith.addf %65, %68 : vector<128x128xf32>
      %70 = arith.truncf %69 : vector<128x128xf32> to vector<128x128xbf16>
      %c0_48 = arith.constant 0 : index
      %c0_49 = arith.constant 0 : index
      %71 = vector.load %arg10[%c0_48, %c0_49] : memref<128x128xbf16, #tpu.memory_space<vmem>>, vector<128x128xbf16>
      tpu.vector_store %arg10[%c0_48, %c0_49], %70 {strides = array<i32>} : memref<128x128xbf16, #tpu.memory_space<vmem>>, vector<128x128xbf16>,
    } else {
    }
    %c0 = arith.constant 0 : index
    %c0_1 = arith.constant 0 : index
    %3 = vector.load %arg10[%c0, %c0_1] : memref<128x128xbf16, #tpu.memory_space<vmem>>, vector<128x128xbf16>
    %c0_2 = arith.constant 0 : index
    %c0_3 = arith.constant 0 : index
    %c0_4 = arith.constant 0 : index
    %4 = vector.load %arg4[%c0_2, %c0_3, %c0_4] : memref<1x96x128xbf16, #tpu.memory_space<vmem>>, vector<1x96x128xbf16>
    %5 = vector.shape_cast %4 : vector<1x96x128xbf16> to vector<96x128xbf16>
    %cst = arith.constant dense<0.000000e+00> : vector<128x96xf32>
    %6 = tpu.matmul %3, %5, %cst {dimension_numbers = #tpu.dot_dimension_numbers<[1], [1], [0], [0], [0, 0, 1, 0], [], []>} : vector<128x128xbf16>, vector<96x128xbf16>, vector<128x96xf32> -> vector<128x96xf32>
    %c96_i32 = arith.constant 96 : i32
    %7 = arith.muli %arg2, %c96_i32 : i32
    %8 = tpu.iota {dimensions = array<i32: 1>} : vector<128x96xi32>
    %9 = vector.broadcast %7 : i32 to vector<128x96xi32>
    %10 = arith.addi %9, %8 : vector<128x96xi32>
    %c256_i32 = arith.constant 256 : i32
    %11 = vector.broadcast %c256_i32 : i32 to vector<128x96xi32>
    %12 = arith.cmpi slt, %10, %11 : vector<128x96xi32>
    %cst_5 = arith.constant -1.000000e+30 : f32
    %13 = vector.broadcast %cst_5 : f32 to vector<128x96xf32>
    %14 = arith.select %12, %6, %13 : vector<128x96xi1>, vector<128x96xf32>
    %c0_6 = arith.constant 0 : index
    %c0_7 = arith.constant 0 : index
    %15 = vector.load %arg12[%c0_6, %c0_7] : memref<128x1xf32, #tpu.memory_space<vmem>>, vector<128x1xf32>
    %cst_8 = arith.constant dense<0xFF800000> : vector<128xf32>
    %16 = vector.multi_reduction <maximumf>, %14, %cst_8 [1] : vector<128x96xf32> to vector<128xf32>
    %17 = vector.shape_cast %16 : vector<128xf32> to vector<128x1xf32>
    %18 = arith.maximumf %15, %17 : vector<128x1xf32>
    %19 = arith.subf %15, %18 : vector<128x1xf32>
    %20 = math.exp %19 : vector<128x1xf32>
    %21 = vector.broadcast %18 : vector<128x1xf32> to vector<128x96xf32>
    %22 = arith.subf %14, %21 : vector<128x96xf32>
    %23 = math.exp %22 : vector<128x96xf32>
    %cst_9 = arith.constant 0.000000e+00 : f32
    %24 = vector.broadcast %cst_9 : f32 to vector<128x96xf32>
    %25 = arith.select %12, %23, %24 : vector<128x96xi1>, vector<128x96xf32>
    %c0_10 = arith.constant 0 : index
    %c0_11 = arith.constant 0 : index
    %26 = vector.load %arg13[%c0_10, %c0_11] : memref<128x1xf32, #tpu.memory_space<vmem>>, vector<128x1xf32>
    %27 = arith.mulf %20, %26 : vector<128x1xf32>
    %cst_12 = arith.constant dense<0.000000e+00> : vector<128xf32>
    %28 = vector.multi_reduction <add>, %25, %cst_12 [1] : vector<128x96xf32> to vector<128xf32>
    %29 = vector.shape_cast %28 : vector<128xf32> to vector<128x1xf32>
    %30 = arith.addf %27, %29 : vector<128x1xf32>
    %c0_13 = arith.constant 0 : index
    %c0_14 = arith.constant 0 : index
    %31 = vector.load %arg13[%c0_13, %c0_14] : memref<128x1xf32, #tpu.memory_space<vmem>>, vector<128x1xf32>
    tpu.vector_store %arg13[%c0_13, %c0_14], %30 {strides = array<i32>} : memref<128x1xf32, #tpu.memory_space<vmem>>, vector<128x1xf32>,
    %c0_15 = arith.constant 0 : index
    %c0_16 = arith.constant 0 : index
    %32 = vector.load %arg11[%c0_15, %c0_16] : memref<128x128xf32, #tpu.memory_space<vmem>>, vector<128x128xf32>
    %33 = vector.broadcast %20 : vector<128x1xf32> to vector<128x128xf32>
    %34 = arith.mulf %33, %32 : vector<128x128xf32>
    %35 = arith.truncf %25 : vector<128x96xf32> to vector<128x96xbf16>
    %c0_17 = arith.constant 0 : index
    %c0_18 = arith.constant 0 : index
    %c0_19 = arith.constant 0 : index
    %36 = vector.load %arg5[%c0_17, %c0_18, %c0_19] : memref<1x96x128xbf16, #tpu.memory_space<vmem>>, vector<1x96x128xbf16>
    %37 = vector.shape_cast %36 : vector<1x96x128xbf16> to vector<96x128xbf16>
    %cst_20 = arith.constant dense<0.000000e+00> : vector<128x128xf32>
    %38 = tpu.matmul %35, %37, %cst_20 {dimension_numbers = #tpu.dot_dimension_numbers<[1], [0], [0], [1], [0, 0, 1, 1], [], []>} : vector<128x96xbf16>, vector<96x128xbf16>, vector<128x128xf32> -> vector<128x128xf32>
    %39 = arith.addf %34, %38 : vector<128x128xf32>
    %c0_21 = arith.constant 0 : index
    %c0_22 = arith.constant 0 : index
    %40 = vector.load %arg11[%c0_21, %c0_22] : memref<128x128xf32, #tpu.memory_space<vmem>>, vector<128x128xf32>
    tpu.vector_store %arg11[%c0_21, %c0_22], %39 {strides = array<i32>} : memref<128x128xf32, #tpu.memory_space<vmem>>, vector<128x128xf32>,
    %c0_23 = arith.constant 0 : index
    %c0_24 = arith.constant 0 : index
    %41 = vector.load %arg12[%c0_23, %c0_24] : memref<128x1xf32, #tpu.memory_space<vmem>>, vector<128x1xf32>
    tpu.vector_store %arg12[%c0_23, %c0_24], %18 {strides = array<i32>} : memref<128x1xf32, #tpu.memory_space<vmem>>, vector<128x1xf32>,
    %c2_i32 = arith.constant 2 : i32
    %42 = arith.cmpi eq, %arg2, %c2_i32 : i32
    %43 = arith.extui %42 : i1 to i32
    %c0_i32_25 = arith.constant 0 : i32
    %44 = arith.cmpi ne, %43, %c0_i32_25 : i32
    scf.if %44 {
      %c0_26 = arith.constant 0 : index
      %c0_27 = arith.constant 0 : index
      %45 = vector.load %arg11[%c0_26, %c0_27] : memref<128x128xf32, #tpu.memory_space<vmem>>, vector<128x128xf32>
      %c0_28 = arith.constant 0 : index
      %c0_29 = arith.constant 0 : index
      %46 = vector.load %arg13[%c0_28, %c0_29] : memref<128x1xf32, #tpu.memory_space<vmem>>, vector<128x1xf32>
      %47 = tpu.reciprocal %46 {approx = true} : vector<128x1xf32> -> vector<128x1xf32>
      %48 = vector.broadcast %47 : vector<128x1xf32> to vector<128x128xf32>
      %49 = arith.mulf %45, %48 : vector<128x128xf32>
      %50 = arith.truncf %49 : vector<128x128xf32> to vector<128x128xbf16>
      %c1 = arith.constant 1 : index
      %c0_30 = arith.constant 0 : index
      %c0_31 = arith.constant 0 : index
      %51 = vector.load %arg7[%c1, %c0_30, %c0_31] : memref<2x128x128xbf16, #tpu.memory_space<vmem>>, vector<1x128x128xbf16>
      %52 = vector.shape_cast %51 : vector<1x128x128xbf16> to vector<128x128xbf16>
      %cst_32 = arith.constant dense<0.000000e+00> : vector<128x128xf32>
      %53 = tpu.matmul %50, %52, %cst_32 {dimension_numbers = #tpu.dot_dimension_numbers<[1], [0], [0], [1], [0, 0, 1, 1], [], []>} : vector<128x128xbf16>, vector<128x128xbf16>, vector<128x128xf32> -> vector<128x128xf32>
      %c1_33 = arith.constant 1 : index
      %c0_34 = arith.constant 0 : index
      %c0_35 = arith.constant 0 : index
      %54 = vector.load %arg8[%c1_33, %c0_34, %c0_35] : memref<2x1x128xf32, #tpu.memory_space<vmem>>, vector<1x1x128xf32>
      %55 = vector.shape_cast %54 : vector<1x1x128xf32> to vector<1x128xf32>
      %56 = vector.broadcast %55 : vector<1x128xf32> to vector<128x128xf32>
      %57 = arith.addf %53, %56 : vector<128x128xf32>
      %c0_36 = arith.constant 0 : index
      %c0_37 = arith.constant 0 : index
      %c0_38 = arith.constant 0 : index
      %58 = vector.load %arg3[%c0_36, %c0_37, %c0_38] : memref<1x128x128xbf16, #tpu.memory_space<vmem>>, vector<1x128x128xbf16>
      %59 = vector.shape_cast %58 : vector<1x128x128xbf16> to vector<128x128xbf16>
      %60 = arith.extf %59 : vector<128x128xbf16> to vector<128x128xf32>
      %61 = arith.addf %57, %60 : vector<128x128xf32>
      %62 = arith.truncf %61 : vector<128x128xf32> to vector<128x128xbf16>
      %c0_39 = arith.constant 0 : index
      %c0_40 = arith.constant 0 : index
      %c0_41 = arith.constant 0 : index
      %63 = vector.load %arg9[%c0_39, %c0_40, %c0_41] : memref<1x128x128xbf16, #tpu.memory_space<vmem>>, vector<1x128x128xbf16>
      %64 = vector.shape_cast %63 : vector<1x128x128xbf16> to vector<128x128xbf16>
      %65 = vector.shape_cast %62 : vector<128x128xbf16> to vector<1x128x128xbf16>
      tpu.vector_store %arg9[%c0_39, %c0_40, %c0_41], %65 {strides = array<i32>} : memref<1x128x128xbf16, #tpu.memory_space<vmem>>, vector<1x128x128xbf16>,
    } else {
    }
    return
  }
  func.func @transform_0(%arg0: i32, %arg1: i32, %arg2: i32) -> (i32, i32, i32) {
    %c0_i32 = arith.constant 0 : i32
    %c0_i32_0 = arith.constant 0 : i32
    return %arg0, %arg1, %c0_i32 : i32, i32, i32
  }
  func.func @transform_1(%arg0: i32, %arg1: i32, %arg2: i32) -> (i32, i32, i32) {
    %c0_i32 = arith.constant 0 : i32
    %c0_i32_0 = arith.constant 0 : i32
    return %arg0, %arg2, %c0_i32 : i32, i32, i32
  }
  func.func @transform_2(%arg0: i32, %arg1: i32, %arg2: i32) -> (i32, i32, i32) {
    %c0_i32 = arith.constant 0 : i32
    %c0_i32_0 = arith.constant 0 : i32
    return %arg0, %arg2, %c0_i32 : i32, i32, i32
  }
  func.func @transform_3(%arg0: i32, %arg1: i32, %arg2: i32) -> (i32, i32, i32) {
    %c0_i32 = arith.constant 0 : i32
    %c0_i32_0 = arith.constant 0 : i32
    %c0_i32_1 = arith.constant 0 : i32
    return %arg0, %c0_i32, %c0_i32_0 : i32, i32, i32
  }
  func.func @transform_4(%arg0: i32, %arg1: i32, %arg2: i32) -> (i32, i32, i32) {
    %c0_i32 = arith.constant 0 : i32
    %c0_i32_0 = arith.constant 0 : i32
    %c0_i32_1 = arith.constant 0 : i32
    %c0_i32_2 = arith.constant 0 : i32
    return %c0_i32, %c0_i32_0, %c0_i32_1 : i32, i32, i32
  }
  func.func @transform_5(%arg0: i32, %arg1: i32, %arg2: i32) -> (i32, i32, i32) {
    %c0_i32 = arith.constant 0 : i32
    %c0_i32_0 = arith.constant 0 : i32
    %c0_i32_1 = arith.constant 0 : i32
    %c0_i32_2 = arith.constant 0 : i32
    return %c0_i32, %c0_i32_0, %c0_i32_1 : i32, i32, i32
  }
  func.func @transform_6(%arg0: i32, %arg1: i32, %arg2: i32) -> (i32, i32, i32) {
    %c0_i32 = arith.constant 0 : i32
    %c0_i32_0 = arith.constant 0 : i32
    return %arg0, %arg1, %c0_i32 : i32, i32, i32
  }
}

module attributes {stable_mosaic.version = 11 : i64} {
  func.func @_sanet_attn_kernel(%arg0: i32, %arg1: i32, %arg2: i32, %arg3: memref<1x64x128xbf16, #tpu.memory_space<vmem>>, %arg4: memref<1x64x128xbf16, #tpu.memory_space<vmem>>, %arg5: memref<1x64x128xbf16, #tpu.memory_space<vmem>>, %arg6: memref<1x2x128xf32, #tpu.memory_space<vmem>>, %arg7: memref<2x128x128xbf16, #tpu.memory_space<vmem>>, %arg8: memref<2x1x128xf32, #tpu.memory_space<vmem>>, %arg9: memref<1x64x128xbf16, #tpu.memory_space<vmem>>, %arg10: memref<64x128xbf16, #tpu.memory_space<vmem>>, %arg11: memref<64x128xf32, #tpu.memory_space<vmem>>, %arg12: memref<64x1xf32, #tpu.memory_space<vmem>>, %arg13: memref<64x1xf32, #tpu.memory_space<vmem>>) attributes {dimension_semantics = [#tpu.dimension_semantics<parallel>, #tpu.dimension_semantics<parallel>, #tpu.dimension_semantics<arbitrary>], iteration_bounds = array<i64: 2, 1, 1>, scalar_prefetch = 0 : i64, scratch_operands = 4 : i64, tpu.core_type = #tpu.core_type<tc>, window_params = [{transform_indices = @transform_0, window_bounds = array<i64: 1, 64, 128>}, {transform_indices = @transform_1, window_bounds = array<i64: 1, 64, 128>}, {transform_indices = @transform_2, window_bounds = array<i64: 1, 64, 128>}, {transform_indices = @transform_3, window_bounds = array<i64: 1, 2, 128>}, {pipeline_mode = #tpu.pipeline_mode<synchronous>, transform_indices = @transform_4, window_bounds = array<i64: 2, 128, 128>}, {pipeline_mode = #tpu.pipeline_mode<synchronous>, transform_indices = @transform_5, window_bounds = array<i64: 2, 1, 128>}, {transform_indices = @transform_6, window_bounds = array<i64: 1, 64, 128>}]} {
    %c0_i32 = arith.constant 0 : i32
    %0 = arith.cmpi eq, %arg2, %c0_i32 : i32
    %1 = arith.extui %0 : i1 to i32
    %c0_i32_0 = arith.constant 0 : i32
    %2 = arith.cmpi ne, %1, %c0_i32_0 : i32
    scf.if %2 {
      %cst_25 = arith.constant 0xFF800000 : f32
      %35 = vector.broadcast %cst_25 : f32 to vector<64x1xf32>
      %c0_26 = arith.constant 0 : index
      %c0_27 = arith.constant 0 : index
      %36 = vector.load %arg12[%c0_26, %c0_27] : memref<64x1xf32, #tpu.memory_space<vmem>>, vector<64x1xf32>
      tpu.vector_store %arg12[%c0_26, %c0_27], %35 {strides = array<i32>} : memref<64x1xf32, #tpu.memory_space<vmem>>, vector<64x1xf32>,
      %cst_28 = arith.constant 0.000000e+00 : f32
      %37 = vector.broadcast %cst_28 : f32 to vector<64x1xf32>
      %c0_29 = arith.constant 0 : index
      %c0_30 = arith.constant 0 : index
      %38 = vector.load %arg13[%c0_29, %c0_30] : memref<64x1xf32, #tpu.memory_space<vmem>>, vector<64x1xf32>
      tpu.vector_store %arg13[%c0_29, %c0_30], %37 {strides = array<i32>} : memref<64x1xf32, #tpu.memory_space<vmem>>, vector<64x1xf32>,
      %cst_31 = arith.constant 0.000000e+00 : f32
      %39 = vector.broadcast %cst_31 : f32 to vector<64x128xf32>
      %c0_32 = arith.constant 0 : index
      %c0_33 = arith.constant 0 : index
      %40 = vector.load %arg11[%c0_32, %c0_33] : memref<64x128xf32, #tpu.memory_space<vmem>>, vector<64x128xf32>
      tpu.vector_store %arg11[%c0_32, %c0_33], %39 {strides = array<i32>} : memref<64x128xf32, #tpu.memory_space<vmem>>, vector<64x128xf32>,
      %c0_34 = arith.constant 0 : index
      %c0_35 = arith.constant 0 : index
      %c0_36 = arith.constant 0 : index
      %41 = vector.load %arg3[%c0_34, %c0_35, %c0_36] : memref<1x64x128xbf16, #tpu.memory_space<vmem>>, vector<1x64x128xbf16>
      %42 = vector.shape_cast %41 : vector<1x64x128xbf16> to vector<64x128xbf16>
      %43 = arith.extf %42 : vector<64x128xbf16> to vector<64x128xf32>
      %c0_37 = arith.constant 0 : index
      %c0_38 = arith.constant 0 : index
      %c0_39 = arith.constant 0 : index
      %44 = vector.load %arg6[%c0_37, %c0_38, %c0_39] : memref<1x2x128xf32, #tpu.memory_space<vmem>>, vector<1x2x128xf32>
      %45 = vector.shape_cast %44 : vector<1x2x128xf32> to vector<2x128xf32>
      %46 = vector.extract_strided_slice %45 {offsets = [0, 0], sizes = [1, 128], strides = [1, 1]} : vector<2x128xf32> to vector<1x128xf32>
      %47 = vector.broadcast %46 : vector<1x128xf32> to vector<64x128xf32>
      %48 = arith.subf %43, %47 : vector<64x128xf32>
      %49 = vector.extract_strided_slice %45 {offsets = [1, 0], sizes = [1, 128], strides = [1, 1]} : vector<2x128xf32> to vector<1x128xf32>
      %50 = vector.broadcast %49 : vector<1x128xf32> to vector<64x128xf32>
      %51 = arith.mulf %48, %50 : vector<64x128xf32>
      %52 = arith.truncf %51 : vector<64x128xf32> to vector<64x128xbf16>
      %c0_40 = arith.constant 0 : index
      %c0_41 = arith.constant 0 : index
      %c0_42 = arith.constant 0 : index
      %53 = vector.load %arg7[%c0_40, %c0_41, %c0_42] : memref<2x128x128xbf16, #tpu.memory_space<vmem>>, vector<1x128x128xbf16>
      %54 = vector.shape_cast %53 : vector<1x128x128xbf16> to vector<128x128xbf16>
      %cst_43 = arith.constant dense<0.000000e+00> : vector<64x128xf32>
      %55 = tpu.matmul %52, %54, %cst_43 {dimension_numbers = #tpu.dot_dimension_numbers<[1], [0], [0], [1], [0, 0, 1, 1], [], []>} : vector<64x128xbf16>, vector<128x128xbf16>, vector<64x128xf32> -> vector<64x128xf32>
      %c0_44 = arith.constant 0 : index
      %c0_45 = arith.constant 0 : index
      %c0_46 = arith.constant 0 : index
      %56 = vector.load %arg8[%c0_44, %c0_45, %c0_46] : memref<2x1x128xf32, #tpu.memory_space<vmem>>, vector<1x1x128xf32>
      %57 = vector.shape_cast %56 : vector<1x1x128xf32> to vector<1x128xf32>
      %58 = vector.broadcast %57 : vector<1x128xf32> to vector<64x128xf32>
      %59 = arith.addf %55, %58 : vector<64x128xf32>
      %60 = arith.truncf %59 : vector<64x128xf32> to vector<64x128xbf16>
      %c0_47 = arith.constant 0 : index
      %c0_48 = arith.constant 0 : index
      %61 = vector.load %arg10[%c0_47, %c0_48] : memref<64x128xbf16, #tpu.memory_space<vmem>>, vector<64x128xbf16>
      tpu.vector_store %arg10[%c0_47, %c0_48], %60 {strides = array<i32>} : memref<64x128xbf16, #tpu.memory_space<vmem>>, vector<64x128xbf16>,
    } else {
    }
    %c0 = arith.constant 0 : index
    %c0_1 = arith.constant 0 : index
    %3 = vector.load %arg10[%c0, %c0_1] : memref<64x128xbf16, #tpu.memory_space<vmem>>, vector<64x128xbf16>
    %c0_2 = arith.constant 0 : index
    %c0_3 = arith.constant 0 : index
    %c0_4 = arith.constant 0 : index
    %4 = vector.load %arg4[%c0_2, %c0_3, %c0_4] : memref<1x64x128xbf16, #tpu.memory_space<vmem>>, vector<1x64x128xbf16>
    %5 = vector.shape_cast %4 : vector<1x64x128xbf16> to vector<64x128xbf16>
    %cst = arith.constant dense<0.000000e+00> : vector<64x64xf32>
    %6 = tpu.matmul %3, %5, %cst {dimension_numbers = #tpu.dot_dimension_numbers<[1], [1], [0], [0], [0, 0, 1, 0], [], []>} : vector<64x128xbf16>, vector<64x128xbf16>, vector<64x64xf32> -> vector<64x64xf32>
    %c0_5 = arith.constant 0 : index
    %c0_6 = arith.constant 0 : index
    %7 = vector.load %arg12[%c0_5, %c0_6] : memref<64x1xf32, #tpu.memory_space<vmem>>, vector<64x1xf32>
    %cst_7 = arith.constant dense<0xFF800000> : vector<64xf32>
    %8 = vector.multi_reduction <maximumf>, %6, %cst_7 [1] : vector<64x64xf32> to vector<64xf32>
    %9 = vector.shape_cast %8 : vector<64xf32> to vector<64x1xf32>
    %10 = arith.maximumf %7, %9 : vector<64x1xf32>
    %11 = arith.subf %7, %10 : vector<64x1xf32>
    %12 = math.exp %11 : vector<64x1xf32>
    %13 = vector.broadcast %10 : vector<64x1xf32> to vector<64x64xf32>
    %14 = arith.subf %6, %13 : vector<64x64xf32>
    %15 = math.exp %14 : vector<64x64xf32>
    %c0_8 = arith.constant 0 : index
    %c0_9 = arith.constant 0 : index
    %16 = vector.load %arg13[%c0_8, %c0_9] : memref<64x1xf32, #tpu.memory_space<vmem>>, vector<64x1xf32>
    %17 = arith.mulf %12, %16 : vector<64x1xf32>
    %cst_10 = arith.constant dense<0.000000e+00> : vector<64xf32>
    %18 = vector.multi_reduction <add>, %15, %cst_10 [1] : vector<64x64xf32> to vector<64xf32>
    %19 = vector.shape_cast %18 : vector<64xf32> to vector<64x1xf32>
    %20 = arith.addf %17, %19 : vector<64x1xf32>
    %c0_11 = arith.constant 0 : index
    %c0_12 = arith.constant 0 : index
    %21 = vector.load %arg13[%c0_11, %c0_12] : memref<64x1xf32, #tpu.memory_space<vmem>>, vector<64x1xf32>
    tpu.vector_store %arg13[%c0_11, %c0_12], %20 {strides = array<i32>} : memref<64x1xf32, #tpu.memory_space<vmem>>, vector<64x1xf32>,
    %c0_13 = arith.constant 0 : index
    %c0_14 = arith.constant 0 : index
    %22 = vector.load %arg11[%c0_13, %c0_14] : memref<64x128xf32, #tpu.memory_space<vmem>>, vector<64x128xf32>
    %23 = vector.broadcast %12 : vector<64x1xf32> to vector<64x128xf32>
    %24 = arith.mulf %23, %22 : vector<64x128xf32>
    %25 = arith.truncf %15 : vector<64x64xf32> to vector<64x64xbf16>
    %c0_15 = arith.constant 0 : index
    %c0_16 = arith.constant 0 : index
    %c0_17 = arith.constant 0 : index
    %26 = vector.load %arg5[%c0_15, %c0_16, %c0_17] : memref<1x64x128xbf16, #tpu.memory_space<vmem>>, vector<1x64x128xbf16>
    %27 = vector.shape_cast %26 : vector<1x64x128xbf16> to vector<64x128xbf16>
    %cst_18 = arith.constant dense<0.000000e+00> : vector<64x128xf32>
    %28 = tpu.matmul %25, %27, %cst_18 {dimension_numbers = #tpu.dot_dimension_numbers<[1], [0], [0], [1], [0, 0, 1, 1], [], []>} : vector<64x64xbf16>, vector<64x128xbf16>, vector<64x128xf32> -> vector<64x128xf32>
    %29 = arith.addf %24, %28 : vector<64x128xf32>
    %c0_19 = arith.constant 0 : index
    %c0_20 = arith.constant 0 : index
    %30 = vector.load %arg11[%c0_19, %c0_20] : memref<64x128xf32, #tpu.memory_space<vmem>>, vector<64x128xf32>
    tpu.vector_store %arg11[%c0_19, %c0_20], %29 {strides = array<i32>} : memref<64x128xf32, #tpu.memory_space<vmem>>, vector<64x128xf32>,
    %c0_21 = arith.constant 0 : index
    %c0_22 = arith.constant 0 : index
    %31 = vector.load %arg12[%c0_21, %c0_22] : memref<64x1xf32, #tpu.memory_space<vmem>>, vector<64x1xf32>
    tpu.vector_store %arg12[%c0_21, %c0_22], %10 {strides = array<i32>} : memref<64x1xf32, #tpu.memory_space<vmem>>, vector<64x1xf32>,
    %c0_i32_23 = arith.constant 0 : i32
    %32 = arith.cmpi eq, %arg2, %c0_i32_23 : i32
    %33 = arith.extui %32 : i1 to i32
    %c0_i32_24 = arith.constant 0 : i32
    %34 = arith.cmpi ne, %33, %c0_i32_24 : i32
    scf.if %34 {
      %c0_25 = arith.constant 0 : index
      %c0_26 = arith.constant 0 : index
      %35 = vector.load %arg11[%c0_25, %c0_26] : memref<64x128xf32, #tpu.memory_space<vmem>>, vector<64x128xf32>
      %c0_27 = arith.constant 0 : index
      %c0_28 = arith.constant 0 : index
      %36 = vector.load %arg13[%c0_27, %c0_28] : memref<64x1xf32, #tpu.memory_space<vmem>>, vector<64x1xf32>
      %37 = tpu.reciprocal %36 {approx = true} : vector<64x1xf32> -> vector<64x1xf32>
      %38 = vector.broadcast %37 : vector<64x1xf32> to vector<64x128xf32>
      %39 = arith.mulf %35, %38 : vector<64x128xf32>
      %40 = arith.truncf %39 : vector<64x128xf32> to vector<64x128xbf16>
      %c1 = arith.constant 1 : index
      %c0_29 = arith.constant 0 : index
      %c0_30 = arith.constant 0 : index
      %41 = vector.load %arg7[%c1, %c0_29, %c0_30] : memref<2x128x128xbf16, #tpu.memory_space<vmem>>, vector<1x128x128xbf16>
      %42 = vector.shape_cast %41 : vector<1x128x128xbf16> to vector<128x128xbf16>
      %cst_31 = arith.constant dense<0.000000e+00> : vector<64x128xf32>
      %43 = tpu.matmul %40, %42, %cst_31 {dimension_numbers = #tpu.dot_dimension_numbers<[1], [0], [0], [1], [0, 0, 1, 1], [], []>} : vector<64x128xbf16>, vector<128x128xbf16>, vector<64x128xf32> -> vector<64x128xf32>
      %c1_32 = arith.constant 1 : index
      %c0_33 = arith.constant 0 : index
      %c0_34 = arith.constant 0 : index
      %44 = vector.load %arg8[%c1_32, %c0_33, %c0_34] : memref<2x1x128xf32, #tpu.memory_space<vmem>>, vector<1x1x128xf32>
      %45 = vector.shape_cast %44 : vector<1x1x128xf32> to vector<1x128xf32>
      %46 = vector.broadcast %45 : vector<1x128xf32> to vector<64x128xf32>
      %47 = arith.addf %43, %46 : vector<64x128xf32>
      %c0_35 = arith.constant 0 : index
      %c0_36 = arith.constant 0 : index
      %c0_37 = arith.constant 0 : index
      %48 = vector.load %arg3[%c0_35, %c0_36, %c0_37] : memref<1x64x128xbf16, #tpu.memory_space<vmem>>, vector<1x64x128xbf16>
      %49 = vector.shape_cast %48 : vector<1x64x128xbf16> to vector<64x128xbf16>
      %50 = arith.extf %49 : vector<64x128xbf16> to vector<64x128xf32>
      %51 = arith.addf %47, %50 : vector<64x128xf32>
      %52 = arith.truncf %51 : vector<64x128xf32> to vector<64x128xbf16>
      %c0_38 = arith.constant 0 : index
      %c0_39 = arith.constant 0 : index
      %c0_40 = arith.constant 0 : index
      %53 = vector.load %arg9[%c0_38, %c0_39, %c0_40] : memref<1x64x128xbf16, #tpu.memory_space<vmem>>, vector<1x64x128xbf16>
      %54 = vector.shape_cast %53 : vector<1x64x128xbf16> to vector<64x128xbf16>
      %55 = vector.shape_cast %52 : vector<64x128xbf16> to vector<1x64x128xbf16>
      tpu.vector_store %arg9[%c0_38, %c0_39, %c0_40], %55 {strides = array<i32>} : memref<1x64x128xbf16, #tpu.memory_space<vmem>>, vector<1x64x128xbf16>,
    } else {
    }
    return
  }
  func.func @transform_0(%arg0: i32, %arg1: i32, %arg2: i32) -> (i32, i32, i32) {
    %c0_i32 = arith.constant 0 : i32
    %c0_i32_0 = arith.constant 0 : i32
    return %arg0, %arg1, %c0_i32 : i32, i32, i32
  }
  func.func @transform_1(%arg0: i32, %arg1: i32, %arg2: i32) -> (i32, i32, i32) {
    %c0_i32 = arith.constant 0 : i32
    %c0_i32_0 = arith.constant 0 : i32
    return %arg0, %arg2, %c0_i32 : i32, i32, i32
  }
  func.func @transform_2(%arg0: i32, %arg1: i32, %arg2: i32) -> (i32, i32, i32) {
    %c0_i32 = arith.constant 0 : i32
    %c0_i32_0 = arith.constant 0 : i32
    return %arg0, %arg2, %c0_i32 : i32, i32, i32
  }
  func.func @transform_3(%arg0: i32, %arg1: i32, %arg2: i32) -> (i32, i32, i32) {
    %c0_i32 = arith.constant 0 : i32
    %c0_i32_0 = arith.constant 0 : i32
    %c0_i32_1 = arith.constant 0 : i32
    return %arg0, %c0_i32, %c0_i32_0 : i32, i32, i32
  }
  func.func @transform_4(%arg0: i32, %arg1: i32, %arg2: i32) -> (i32, i32, i32) {
    %c0_i32 = arith.constant 0 : i32
    %c0_i32_0 = arith.constant 0 : i32
    %c0_i32_1 = arith.constant 0 : i32
    %c0_i32_2 = arith.constant 0 : i32
    return %c0_i32, %c0_i32_0, %c0_i32_1 : i32, i32, i32
  }
  func.func @transform_5(%arg0: i32, %arg1: i32, %arg2: i32) -> (i32, i32, i32) {
    %c0_i32 = arith.constant 0 : i32
    %c0_i32_0 = arith.constant 0 : i32
    %c0_i32_1 = arith.constant 0 : i32
    %c0_i32_2 = arith.constant 0 : i32
    return %c0_i32, %c0_i32_0, %c0_i32_1 : i32, i32, i32
  }
  func.func @transform_6(%arg0: i32, %arg1: i32, %arg2: i32) -> (i32, i32, i32) {
    %c0_i32 = arith.constant 0 : i32
    %c0_i32_0 = arith.constant 0 : i32
    return %arg0, %arg1, %c0_i32 : i32, i32, i32
  }
}

module attributes {stable_mosaic.version = 11 : i64} {
  func.func @_merge_kernel(%arg0: i32, %arg1: i32, %arg2: memref<1x4x16x128xbf16, #tpu.memory_space<vmem>>, %arg3: memref<1x1x16x128xbf16, #tpu.memory_space<vmem>>, %arg4: memref<1x1x16x128xbf16, #tpu.memory_space<vmem>>, %arg5: memref<1x8x2048xbf16, #tpu.memory_space<vmem>>, %arg6: memref<9x128x128xbf16, #tpu.memory_space<vmem>>, %arg7: memref<1x128xf32, #tpu.memory_space<vmem>>, %arg8: memref<1x4x16x128xf32, #tpu.memory_space<vmem>>) attributes {dimension_semantics = [#tpu.dimension_semantics<parallel>, #tpu.dimension_semantics<parallel>], iteration_bounds = array<i64: 2, 4>, scalar_prefetch = 0 : i64, scratch_operands = 0 : i64, tpu.core_type = #tpu.core_type<tc>, window_params = [{transform_indices = @transform_0, window_bounds = array<i64: 1, 4, 16, 128>}, {transform_indices = @transform_1, window_bounds = array<i64: 1, 1, 16, 128>}, {transform_indices = @transform_2, window_bounds = array<i64: 1, 1, 16, 128>}, {transform_indices = @transform_3, window_bounds = array<i64: 1, 8, 2048>}, {pipeline_mode = #tpu.pipeline_mode<synchronous>, transform_indices = @transform_4, window_bounds = array<i64: 9, 128, 128>}, {pipeline_mode = #tpu.pipeline_mode<synchronous>, transform_indices = @transform_5, window_bounds = array<i64: 1, 128>}, {transform_indices = @transform_6, window_bounds = array<i64: 1, 4, 16, 128>}]} {
    %c0 = arith.constant 0 : index
    %c0_0 = arith.constant 0 : index
    %c0_1 = arith.constant 0 : index
    %c0_2 = arith.constant 0 : index
    %0 = vector.load %arg3[%c0, %c0_0, %c0_1, %c0_2] : memref<1x1x16x128xbf16, #tpu.memory_space<vmem>>, vector<1x1x16x128xbf16>
    %1 = vector.shape_cast %0 : vector<1x1x16x128xbf16> to vector<1x16x128xbf16>
    %2 = arith.extf %1 : vector<1x16x128xbf16> to vector<1x16x128xf32>
    %c0_3 = arith.constant 0 : index
    %c0_4 = arith.constant 0 : index
    %c0_5 = arith.constant 0 : index
    %c0_6 = arith.constant 0 : index
    %3 = vector.load %arg2[%c0_3, %c0_4, %c0_5, %c0_6] : memref<1x4x16x128xbf16, #tpu.memory_space<vmem>>, vector<1x4x16x128xbf16>
    %4 = vector.shape_cast %3 : vector<1x4x16x128xbf16> to vector<4x16x128xbf16>
    %5 = arith.extf %4 : vector<4x16x128xbf16> to vector<4x16x128xf32>
    %c0_7 = arith.constant 0 : index
    %c0_8 = arith.constant 0 : index
    %c0_9 = arith.constant 0 : index
    %c0_10 = arith.constant 0 : index
    %6 = vector.load %arg4[%c0_7, %c0_8, %c0_9, %c0_10] : memref<1x1x16x128xbf16, #tpu.memory_space<vmem>>, vector<1x1x16x128xbf16>
    %7 = vector.shape_cast %6 : vector<1x1x16x128xbf16> to vector<1x16x128xbf16>
    %8 = arith.extf %7 : vector<1x16x128xbf16> to vector<1x16x128xf32>
    %9 = tpu.concatenate %2, %5, %8, %8 in 0 : vector<1x16x128xf32>, vector<4x16x128xf32>, vector<1x16x128xf32>, vector<1x16x128xf32> -> vector<7x16x128xf32>
    %10 = tpu.iota {dimensions = array<i32: 0>} : vector<7x8xi32>
    %11 = tpu.iota {dimensions = array<i32: 1>} : vector<7x8xi32>
    %c4_i32 = arith.constant 4 : i32
    %12 = arith.muli %arg1, %c4_i32 : i32
    %13 = vector.broadcast %12 : i32 to vector<7x8xi32>
    %14 = arith.addi %13, %10 : vector<7x8xi32>
    %c1_i32 = arith.constant 1 : i32
    %15 = vector.broadcast %c1_i32 : i32 to vector<7x8xi32>
    %16 = arith.subi %14, %15 : vector<7x8xi32>
    %c0_i32 = arith.constant 0 : i32
    %17 = vector.broadcast %c0_i32 : i32 to vector<7x8xi32>
    %18 = arith.cmpi slt, %16, %17 : vector<7x8xi32>
    %c15_i32 = arith.constant 15 : i32
    %19 = vector.broadcast %c15_i32 : i32 to vector<7x8xi32>
    %20 = arith.cmpi sgt, %16, %19 : vector<7x8xi32>
    %c14_i32 = arith.constant 14 : i32
    %21 = vector.broadcast %c14_i32 : i32 to vector<7x8xi32>
    %22 = arith.select %20, %21, %16 : vector<7x8xi1>, vector<7x8xi32>
    %c1_i32_11 = arith.constant 1 : i32
    %23 = vector.broadcast %c1_i32_11 : i32 to vector<7x8xi32>
    %24 = arith.select %18, %23, %22 : vector<7x8xi1>, vector<7x8xi32>
    %c8_i32 = arith.constant 8 : i32
    %25 = vector.broadcast %c8_i32 : i32 to vector<7x8xi32>
    %26 = arith.muli %24, %25 : vector<7x8xi32>
    %c16_i32 = arith.constant 16 : i32
    %27 = vector.broadcast %c16_i32 : i32 to vector<7x8xi32>
    %28 = arith.muli %11, %27 : vector<7x8xi32>
    %29 = arith.cmpi sle, %28, %26 : vector<7x8xi32>
    %c1_i32_12 = arith.constant 1 : i32
    %30 = vector.broadcast %c1_i32_12 : i32 to vector<7x8xi32>
    %31 = arith.addi %11, %30 : vector<7x8xi32>
    %c16_i32_13 = arith.constant 16 : i32
    %32 = vector.broadcast %c16_i32_13 : i32 to vector<7x8xi32>
    %33 = arith.muli %31, %32 : vector<7x8xi32>
    %34 = arith.cmpi slt, %26, %33 : vector<7x8xi32>
    %35 = arith.andi %29, %34 : vector<7x8xi1>
    %36 = arith.extui %35 : vector<7x8xi1> to vector<7x8xi32>
    %37 = arith.sitofp %36 : vector<7x8xi32> to vector<7x8xf32>
    %38 = arith.truncf %37 : vector<7x8xf32> to vector<7x8xbf16>
    %c0_14 = arith.constant 0 : index
    %c0_15 = arith.constant 0 : index
    %c0_16 = arith.constant 0 : index
    %39 = vector.load %arg5[%c0_14, %c0_15, %c0_16] : memref<1x8x2048xbf16, #tpu.memory_space<vmem>>, vector<1x8x2048xbf16>
    %40 = vector.shape_cast %39 : vector<1x8x2048xbf16> to vector<8x2048xbf16>
    %cst = arith.constant dense<0.000000e+00> : vector<7x2048xf32>
    %41 = tpu.matmul %38, %40, %cst {dimension_numbers = #tpu.dot_dimension_numbers<[1], [0], [0], [1], [0, 0, 1, 1], [], []>} : vector<7x8xbf16>, vector<8x2048xbf16>, vector<7x2048xf32> -> vector<7x2048xf32>
    %42 = vector.shape_cast %41 : vector<7x2048xf32> to vector<7x16x128xf32>
    %43 = arith.addf %9, %42 : vector<7x16x128xf32>
    %44 = vector.extract_strided_slice %43 {offsets = [0, 1, 0], sizes = [7, 1, 128], strides = [1, 1, 1]} : vector<7x16x128xf32> to vector<7x1x128xf32>
    %45 = vector.extract_strided_slice %43 {offsets = [0, 14, 0], sizes = [7, 1, 128], strides = [1, 1, 1]} : vector<7x16x128xf32> to vector<7x1x128xf32>
    %46 = tpu.concatenate %44, %43, %45 in 1 : vector<7x1x128xf32>, vector<7x16x128xf32>, vector<7x1x128xf32> -> vector<7x18x128xf32>
    %47 = vector.shape_cast %46 : vector<7x18x128xf32> to vector<126x128xf32>
    %48 = arith.truncf %47 : vector<126x128xf32> to vector<126x128xbf16>
    %cst_17 = arith.constant 0.000000e+00 : f32
    %49 = vector.broadcast %cst_17 : f32 to vector<72x128xf32>
    %50 = vector.extract_strided_slice %48 {offsets = [0, 0], sizes = [72, 128], strides = [1, 1]} : vector<126x128xbf16> to vector<72x128xbf16>
    %c0_18 = arith.constant 0 : index
    %c0_19 = arith.constant 0 : index
    %c0_20 = arith.constant 0 : index
    %51 = vector.load %arg6[%c0_18, %c0_19, %c0_20] : memref<9x128x128xbf16, #tpu.memory_space<vmem>>, vector<1x128x128xbf16>
    %52 = vector.shape_cast %51 : vector<1x128x128xbf16> to vector<128x128xbf16>
    %cst_21 = arith.constant dense<0.000000e+00> : vector<72x128xf32>
    %53 = tpu.matmul %50, %52, %cst_21 {dimension_numbers = #tpu.dot_dimension_numbers<[1], [0], [0], [1], [0, 0, 1, 1], [], []>} : vector<72x128xbf16>, vector<128x128xbf16>, vector<72x128xf32> -> vector<72x128xf32>
    %54 = arith.addf %49, %53 : vector<72x128xf32>
    %55 = vector.extract_strided_slice %48 {offsets = [1, 0], sizes = [72, 128], strides = [1, 1]} : vector<126x128xbf16> to vector<72x128xbf16>
    %c1 = arith.constant 1 : index
    %c0_22 = arith.constant 0 : index
    %c0_23 = arith.constant 0 : index
    %56 = vector.load %arg6[%c1, %c0_22, %c0_23] : memref<9x128x128xbf16, #tpu.memory_space<vmem>>, vector<1x128x128xbf16>
    %57 = vector.shape_cast %56 : vector<1x128x128xbf16> to vector<128x128xbf16>
    %cst_24 = arith.constant dense<0.000000e+00> : vector<72x128xf32>
    %58 = tpu.matmul %55, %57, %cst_24 {dimension_numbers = #tpu.dot_dimension_numbers<[1], [0], [0], [1], [0, 0, 1, 1], [], []>} : vector<72x128xbf16>, vector<128x128xbf16>, vector<72x128xf32> -> vector<72x128xf32>
    %59 = arith.addf %54, %58 : vector<72x128xf32>
    %60 = vector.extract_strided_slice %48 {offsets = [2, 0], sizes = [72, 128], strides = [1, 1]} : vector<126x128xbf16> to vector<72x128xbf16>
    %c2 = arith.constant 2 : index
    %c0_25 = arith.constant 0 : index
    %c0_26 = arith.constant 0 : index
    %61 = vector.load %arg6[%c2, %c0_25, %c0_26] : memref<9x128x128xbf16, #tpu.memory_space<vmem>>, vector<1x128x128xbf16>
    %62 = vector.shape_cast %61 : vector<1x128x128xbf16> to vector<128x128xbf16>
    %cst_27 = arith.constant dense<0.000000e+00> : vector<72x128xf32>
    %63 = tpu.matmul %60, %62, %cst_27 {dimension_numbers = #tpu.dot_dimension_numbers<[1], [0], [0], [1], [0, 0, 1, 1], [], []>} : vector<72x128xbf16>, vector<128x128xbf16>, vector<72x128xf32> -> vector<72x128xf32>
    %64 = arith.addf %59, %63 : vector<72x128xf32>
    %65 = vector.extract_strided_slice %48 {offsets = [18, 0], sizes = [72, 128], strides = [1, 1]} : vector<126x128xbf16> to vector<72x128xbf16>
    %c3 = arith.constant 3 : index
    %c0_28 = arith.constant 0 : index
    %c0_29 = arith.constant 0 : index
    %66 = vector.load %arg6[%c3, %c0_28, %c0_29] : memref<9x128x128xbf16, #tpu.memory_space<vmem>>, vector<1x128x128xbf16>
    %67 = vector.shape_cast %66 : vector<1x128x128xbf16> to vector<128x128xbf16>
    %cst_30 = arith.constant dense<0.000000e+00> : vector<72x128xf32>
    %68 = tpu.matmul %65, %67, %cst_30 {dimension_numbers = #tpu.dot_dimension_numbers<[1], [0], [0], [1], [0, 0, 1, 1], [], []>} : vector<72x128xbf16>, vector<128x128xbf16>, vector<72x128xf32> -> vector<72x128xf32>
    %69 = arith.addf %64, %68 : vector<72x128xf32>
    %70 = vector.extract_strided_slice %48 {offsets = [19, 0], sizes = [72, 128], strides = [1, 1]} : vector<126x128xbf16> to vector<72x128xbf16>
    %c4 = arith.constant 4 : index
    %c0_31 = arith.constant 0 : index
    %c0_32 = arith.constant 0 : index
    %71 = vector.load %arg6[%c4, %c0_31, %c0_32] : memref<9x128x128xbf16, #tpu.memory_space<vmem>>, vector<1x128x128xbf16>
    %72 = vector.shape_cast %71 : vector<1x128x128xbf16> to vector<128x128xbf16>
    %cst_33 = arith.constant dense<0.000000e+00> : vector<72x128xf32>
    %73 = tpu.matmul %70, %72, %cst_33 {dimension_numbers = #tpu.dot_dimension_numbers<[1], [0], [0], [1], [0, 0, 1, 1], [], []>} : vector<72x128xbf16>, vector<128x128xbf16>, vector<72x128xf32> -> vector<72x128xf32>
    %74 = arith.addf %69, %73 : vector<72x128xf32>
    %75 = vector.extract_strided_slice %48 {offsets = [20, 0], sizes = [72, 128], strides = [1, 1]} : vector<126x128xbf16> to vector<72x128xbf16>
    %c5 = arith.constant 5 : index
    %c0_34 = arith.constant 0 : index
    %c0_35 = arith.constant 0 : index
    %76 = vector.load %arg6[%c5, %c0_34, %c0_35] : memref<9x128x128xbf16, #tpu.memory_space<vmem>>, vector<1x128x128xbf16>
    %77 = vector.shape_cast %76 : vector<1x128x128xbf16> to vector<128x128xbf16>
    %cst_36 = arith.constant dense<0.000000e+00> : vector<72x128xf32>
    %78 = tpu.matmul %75, %77, %cst_36 {dimension_numbers = #tpu.dot_dimension_numbers<[1], [0], [0], [1], [0, 0, 1, 1], [], []>} : vector<72x128xbf16>, vector<128x128xbf16>, vector<72x128xf32> -> vector<72x128xf32>
    %79 = arith.addf %74, %78 : vector<72x128xf32>
    %80 = vector.extract_strided_slice %48 {offsets = [36, 0], sizes = [72, 128], strides = [1, 1]} : vector<126x128xbf16> to vector<72x128xbf16>
    %c6 = arith.constant 6 : index
    %c0_37 = arith.constant 0 : index
    %c0_38 = arith.constant 0 : index
    %81 = vector.load %arg6[%c6, %c0_37, %c0_38] : memref<9x128x128xbf16, #tpu.memory_space<vmem>>, vector<1x128x128xbf16>
    %82 = vector.shape_cast %81 : vector<1x128x128xbf16> to vector<128x128xbf16>
    %cst_39 = arith.constant dense<0.000000e+00> : vector<72x128xf32>
    %83 = tpu.matmul %80, %82, %cst_39 {dimension_numbers = #tpu.dot_dimension_numbers<[1], [0], [0], [1], [0, 0, 1, 1], [], []>} : vector<72x128xbf16>, vector<128x128xbf16>, vector<72x128xf32> -> vector<72x128xf32>
    %84 = arith.addf %79, %83 : vector<72x128xf32>
    %85 = vector.extract_strided_slice %48 {offsets = [37, 0], sizes = [72, 128], strides = [1, 1]} : vector<126x128xbf16> to vector<72x128xbf16>
    %c7 = arith.constant 7 : index
    %c0_40 = arith.constant 0 : index
    %c0_41 = arith.constant 0 : index
    %86 = vector.load %arg6[%c7, %c0_40, %c0_41] : memref<9x128x128xbf16, #tpu.memory_space<vmem>>, vector<1x128x128xbf16>
    %87 = vector.shape_cast %86 : vector<1x128x128xbf16> to vector<128x128xbf16>
    %cst_42 = arith.constant dense<0.000000e+00> : vector<72x128xf32>
    %88 = tpu.matmul %85, %87, %cst_42 {dimension_numbers = #tpu.dot_dimension_numbers<[1], [0], [0], [1], [0, 0, 1, 1], [], []>} : vector<72x128xbf16>, vector<128x128xbf16>, vector<72x128xf32> -> vector<72x128xf32>
    %89 = arith.addf %84, %88 : vector<72x128xf32>
    %90 = vector.extract_strided_slice %48 {offsets = [38, 0], sizes = [72, 128], strides = [1, 1]} : vector<126x128xbf16> to vector<72x128xbf16>
    %c8 = arith.constant 8 : index
    %c0_43 = arith.constant 0 : index
    %c0_44 = arith.constant 0 : index
    %91 = vector.load %arg6[%c8, %c0_43, %c0_44] : memref<9x128x128xbf16, #tpu.memory_space<vmem>>, vector<1x128x128xbf16>
    %92 = vector.shape_cast %91 : vector<1x128x128xbf16> to vector<128x128xbf16>
    %cst_45 = arith.constant dense<0.000000e+00> : vector<72x128xf32>
    %93 = tpu.matmul %90, %92, %cst_45 {dimension_numbers = #tpu.dot_dimension_numbers<[1], [0], [0], [1], [0, 0, 1, 1], [], []>} : vector<72x128xbf16>, vector<128x128xbf16>, vector<72x128xf32> -> vector<72x128xf32>
    %94 = arith.addf %89, %93 : vector<72x128xf32>
    %c0_46 = arith.constant 0 : index
    %c0_47 = arith.constant 0 : index
    %95 = vector.load %arg7[%c0_46, %c0_47] : memref<1x128xf32, #tpu.memory_space<vmem>>, vector<1x128xf32>
    %96 = vector.broadcast %95 : vector<1x128xf32> to vector<72x128xf32>
    %97 = arith.addf %94, %96 : vector<72x128xf32>
    %98 = vector.shape_cast %97 : vector<72x128xf32> to vector<4x18x128xf32>
    %99 = vector.extract_strided_slice %98 {offsets = [0, 0, 0], sizes = [4, 16, 128], strides = [1, 1, 1]} : vector<4x18x128xf32> to vector<4x16x128xf32>
    %c0_48 = arith.constant 0 : index
    %c0_49 = arith.constant 0 : index
    %c0_50 = arith.constant 0 : index
    %c0_51 = arith.constant 0 : index
    %100 = vector.load %arg8[%c0_48, %c0_49, %c0_50, %c0_51] : memref<1x4x16x128xf32, #tpu.memory_space<vmem>>, vector<1x4x16x128xf32>
    %101 = vector.shape_cast %100 : vector<1x4x16x128xf32> to vector<4x16x128xf32>
    %102 = vector.shape_cast %99 : vector<4x16x128xf32> to vector<1x4x16x128xf32>
    tpu.vector_store %arg8[%c0_48, %c0_49, %c0_50, %c0_51], %102 {strides = array<i32>} : memref<1x4x16x128xf32, #tpu.memory_space<vmem>>, vector<1x4x16x128xf32>,
    return
  }
  func.func @transform_0(%arg0: i32, %arg1: i32) -> (i32, i32, i32, i32) {
    %c0_i32 = arith.constant 0 : i32
    %c0_i32_0 = arith.constant 0 : i32
    %c0_i32_1 = arith.constant 0 : i32
    return %arg0, %arg1, %c0_i32, %c0_i32_0 : i32, i32, i32, i32
  }
  func.func @transform_1(%arg0: i32, %arg1: i32) -> (i32, i32, i32, i32) {
    %c4_i32 = arith.constant 4 : i32
    %0 = arith.muli %arg1, %c4_i32 : i32
    %c1_i32 = arith.constant 1 : i32
    %1 = arith.subi %0, %c1_i32 : i32
    %2 = math.absi %1 : i32
    %c0_i32 = arith.constant 0 : i32
    %c0_i32_0 = arith.constant 0 : i32
    %c0_i32_1 = arith.constant 0 : i32
    return %arg0, %2, %c0_i32, %c0_i32_0 : i32, i32, i32, i32
  }
  func.func @transform_2(%arg0: i32, %arg1: i32) -> (i32, i32, i32, i32) {
    %c4_i32 = arith.constant 4 : i32
    %0 = arith.muli %arg1, %c4_i32 : i32
    %c4_i32_0 = arith.constant 4 : i32
    %1 = arith.addi %0, %c4_i32_0 : i32
    %c15_i32 = arith.constant 15 : i32
    %2 = arith.subi %c15_i32, %1 : i32
    %3 = math.absi %2 : i32
    %c15_i32_1 = arith.constant 15 : i32
    %4 = arith.subi %c15_i32_1, %3 : i32
    %c0_i32 = arith.constant 0 : i32
    %c0_i32_2 = arith.constant 0 : i32
    %c0_i32_3 = arith.constant 0 : i32
    return %arg0, %4, %c0_i32, %c0_i32_2 : i32, i32, i32, i32
  }
  func.func @transform_3(%arg0: i32, %arg1: i32) -> (i32, i32, i32) {
    %c0_i32 = arith.constant 0 : i32
    %c0_i32_0 = arith.constant 0 : i32
    %c0_i32_1 = arith.constant 0 : i32
    return %arg0, %c0_i32, %c0_i32_0 : i32, i32, i32
  }
  func.func @transform_4(%arg0: i32, %arg1: i32) -> (i32, i32, i32) {
    %c0_i32 = arith.constant 0 : i32
    %c0_i32_0 = arith.constant 0 : i32
    %c0_i32_1 = arith.constant 0 : i32
    %c0_i32_2 = arith.constant 0 : i32
    return %c0_i32, %c0_i32_0, %c0_i32_1 : i32, i32, i32
  }
  func.func @transform_5(%arg0: i32, %arg1: i32) -> (i32, i32) {
    %c0_i32 = arith.constant 0 : i32
    %c0_i32_0 = arith.constant 0 : i32
    %c0_i32_1 = arith.constant 0 : i32
    return %c0_i32, %c0_i32_0 : i32, i32
  }
  func.func @transform_6(%arg0: i32, %arg1: i32) -> (i32, i32, i32, i32) {
    %c0_i32 = arith.constant 0 : i32
    %c0_i32_0 = arith.constant 0 : i32
    %c0_i32_1 = arith.constant 0 : i32
    return %arg0, %arg1, %c0_i32, %c0_i32_0 : i32, i32, i32, i32
  }
}

</mosaic_0001>

<bundles_post_ra>
// kernel: transform_forward.7
= control target key start
LH: loop header
LB: loop body
LE: loop exit
PB: predicated region body
PF: predicated region fallthrough
CT: control target
= control target key end

     0   :  { %s1186_s18 = smov 0   ;;  %s1188_s19 = smov 0   ;;  %s1302_s0 = inlined_call_operand.vmem [shape: bf16[2,64,128], index: 0, kind: input, shape index: {}]   ;;  %s1303_s1 = inlined_call_operand.vmem [shape: f32[2,2,128], index: 1, kind: input, shape index: {}]   ;;  %s1304_s2 = inlined_call_operand.vmem [shape: bf16[2,128,128], index: 2, kind: input, shape index: {}]   ;;  %s1305_s3 = inlined_call_operand.vmem [shape: f32[2,1,128], index: 3, kind: input, shape index: {}]   ;;  %s1306_s4 = inlined_call_operand.vmem [shape: bf16[2,64,128], index: 4, kind: output, shape index: {0}]   ;;  %s1307_s5 = inlined_call_operand.vmem [shape: bf16[2,64,128], index: 5, kind: output, shape index: {1}]  }
   0x1   :  { %s1190_s20 = smov 0  }
   0x2 LB: > { %s28_s21 = sadd.s32 1, %s1150_s19  ;;  %p882_p0 = scmp.ge.s32.totalorder %s1154_s20, 1  ;;  %s1154_s20 = sphi %s1190_s20, %s16_s20   ;;  %s1150_s19 = sphi %s1188_s19, %s1309_s19   ;;  %s1146_s18 = sphi %s1186_s18, %s1308_s18  }
   0x3   : > { %p30_p1 = scmp.ge.s32.totalorder %s28_s21, 2  ;;  %p222_p2 = scmp.lt.s32.totalorder %s1154_s20, 3 }
   0x5   : > { %s1311_s21 = smov (%p30_p1, %s28_s21), 0  ;;  %p223_p3 = pnand %p882_p0, %p222_p2 }
   0x6   : > { %v1108_v0 = vld [vmem:[%s1304_s2] sm:$0xff] (!%p223_p3)   ;;  %v1110_v2 = vld [vmem:[%s1304_s2 + $0x8] sm:$0xff] (!%p223_p3)   ;;  %p272_p4 = scmp.lt.s32.totalorder (!%p223_p3), %s1146_s18, 1  ;;  %v1112_v4 = vld [vmem:[%s1304_s2 + $0x10] sm:$0xff] (!%p223_p3)   ;;  %v323_v5 = vlaneseq (!%p223_p3) }
   0x7   : > { %226 = sbr.rel (%p223_p3) target bundleno = 268 (0x10c), region = 36  ;;  %v1109_v1 = vld [vmem:[%s1304_s2 + $0x40] sm:$0xff] (!%p223_p3)   ;;  %1036 = vmatprep.subr.bf16.mxu0 (!%p223_p3), %v1108_v0  ;;  %v1111_v3 = vld [vmem:[%s1304_s2 + $0x48] sm:$0xff] (!%p223_p3)   ;;  %v1113_v6 = vld [vmem:[%s1304_s2 + $0x50] sm:$0xff] (!%p223_p3)  }
   0x8   : > { %1060 = vmatprep.subr.bf16.mxu1 (!%p223_p3), %v1109_v1  ;;  %1037 = vmatpush3.bf16.msra.mxu0 (!%p223_p3), %v1108_v0  ;;  %v1114_v7 = vld [vmem:[%s1304_s2 + $0x18] sm:$0xff] (!%p223_p3)   ;;  %v324_v8 = vshrl.u32 (!%p223_p3), %v323_v5, 7  ;;  %v1116_v10 = vld [vmem:[%s1304_s2 + $0x20] sm:$0xff] (!%p223_p3)   ;;  %v1118_v14 = vld [vmem:[%s1304_s2 + $0x28] sm:$0xff] (!%p223_p3)  }
   0x9   : > { %1061 = vmatpush3.bf16.msra.mxu1 (!%p223_p3), %v1109_v1  ;;  %1038 = vmatprep.subr.bf16.mxu0 (!%p223_p3), %v1110_v2  ;;  %v1115_v9 = vld [vmem:[%s1304_s2 + $0x58] sm:$0xff] (!%p223_p3)   ;;  %v1117_v12 = vld [vmem:[%s1304_s2 + $0x60] sm:$0xff] (!%p223_p3)   ;;  %v1119_v18 = vld [vmem:[%s1304_s2 + $0x68] sm:$0xff] (!%p223_p3)  }
   0xa   : > { %1062 = vmatprep.subr.bf16.mxu1 (!%p223_p3), %v1111_v3  ;;  %v325_v11 = vsub.s32 (!%p223_p3), 0, %v324_v8  ;;  %v337_v13 = vsub.s32 (!%p223_p3), 1, %v324_v8  ;;  %v1120_v30 = vld [vmem:[%s1304_s2 + $0x30] sm:$0xff] (!%p223_p3)   ;;  %v1122_v40 = vld [vmem:[%s1304_s2 + $0x38] sm:$0xff] (!%p223_p3)   ;;  %v890_v56 = vld [vmem:[%s1305_s3] ss:$0 sm:$0xff] (!%p223_p3) }
   0xb   : > { %v1121_v31 = vld [vmem:[%s1304_s2 + $0x70] sm:$0xff] (!%p223_p3)   ;;  %v1123_v41 = vld [vmem:[%s1304_s2 + $0x78] sm:$0xff] (!%p223_p3)   ;;  %v916_v58 = vld [vmem:[%s1305_s3 + $0x1] ss:$0 sm:$0xff] (!%p223_p3) }
   0xc   : > { %1039 = vmatpush3.bf16.msra.mxu0 (!%p223_p3), %v1110_v2 }
   0xd   : > { %1063 = vmatpush3.bf16.msra.mxu1 (!%p223_p3), %v1111_v3  ;;  %1040 = vmatprep.subr.bf16.mxu0 (!%p223_p3), %v1112_v4 }
   0xe   : > { %s1313_s18 = smov (!%p272_p4, %s1146_s18), 1  ;;  %1064 = vmatprep.subr.bf16.mxu1 %v1113_v6 }
   0xf   : > { %s1228_s13 = sshll.u32 %s1313_s18, 5  ;;  %s885_s14 = sshll.u32 %s1313_s18, 1 }
  0x10   : > { %1041 = vmatpush3.bf16.msra.mxu0 %v1112_v4  ;;  %s1240_s25 = scalar_lea.vmem %s1302_s0, %s1228_s13  ;;  %s284_s27 = scalar_lea.vmem %s1303_s1, %s885_s14 }
  0x11   : > { %1065 = vmatpush3.bf16.msra.mxu1 %v1113_v6  ;;  %1042 = vmatprep.subr.bf16.mxu0 %v1114_v7  ;;  %v306_v15 = vld [vmem:[%s1240_s25] sm:$0xff]   ;;  %v308_v17 = vld [vmem:[%s1240_s25 + $0x8] sm:$0xff]   ;;  %v310_v23 = vld [vmem:[%s1240_s25 + $0x10] sm:$0xff]   ;;  %s1277_s26 = scalar_lea.vmem %s1306_s4, %s1228_s13  ;;  %s1283_s28 = scalar_lea.vmem %s1307_s5, %s1228_s13 }
  0x12   : > { %1066 = vmatprep.subr.bf16.mxu1 %v1115_v9  ;;  %v322_v16 = vld [vmem:[%s284_s27] sm:$0x3]  ;;  %v314_v19 = vunpack.c.l.bf16 %v306_v15  ;;  %v315_v20 = vunpack.c.h.bf16 %v306_v15  ;;  %v316_v24 = vunpack.c.l.bf16 %v308_v17  ;;  %v317_v25 = vunpack.c.h.bf16 %v308_v17  ;;  %1076 = vmatprep.mubr.bf16.mxu1 %v306_v15  ;;  %v312_v39 = vld [vmem:[%s1240_s25 + $0x18] sm:$0xff]  }
  0x13   : > { %v326_v21 = vrot.slane %v322_v16, %v325_v11  ;;  %v338_v22 = vrot.slane %v322_v16, %v337_v13  ;;  %v318_v28 = vunpack.c.l.bf16 %v310_v23  ;;  %v319_v29 = vunpack.c.h.bf16 %v310_v23 }
  0x14   : > { %1043 = vmatpush3.bf16.msra.mxu0 %v1114_v7  ;;  %v320_v44 = vunpack.c.l.bf16 %v312_v39  ;;  %v321_v45 = vunpack.c.h.bf16 %v312_v39 }
  0x15   : > { %1067 = vmatpush3.bf16.msra.mxu1 %v1115_v9  ;;  %1044 = vmatprep.subr.bf16.mxu0 %v1116_v10  ;;  %v327_v26 = vsub.f32 %v314_v19, %v326_v21  ;;  %v328_v27 = vsub.f32 %v315_v20, %v326_v21  ;;  %v329_v34 = vsub.f32 %v316_v24, %v326_v21 }
  0x16   : > { %1068 = vmatprep.subr.bf16.mxu1 %v1117_v12  ;;  %v330_v35 = vsub.f32 %v317_v25, %v326_v21  ;;  %v331_v37 = vsub.f32 %v318_v28, %v326_v21  ;;  %v332_v38 = vsub.f32 %v319_v29, %v326_v21  ;;  %v333_v49 = vsub.f32 %v320_v44, %v326_v21 }
  0x17   : > { %v339_v32 = vmul.f32 %v338_v22, %v327_v26  ;;  %v340_v33 = vmul.f32 %v338_v22, %v328_v27  ;;  %v341_v42 = vmul.f32 %v338_v22, %v329_v34  ;;  %v334_v50 = vsub.f32 %v321_v45, %v326_v21 }
  0x18   : > { %1045 = vmatpush3.bf16.msra.mxu0 %v1116_v10  ;;  %v342_v43 = vmul.f32 %v338_v22, %v330_v35  ;;  %v343_v46 = vmul.f32 %v338_v22, %v331_v37  ;;  %v344_v47 = vmul.f32 %v338_v22, %v332_v38  ;;  %v345_v52 = vmul.f32 %v338_v22, %v333_v49 }
  0x19   : > { %1069 = vmatpush3.bf16.msra.mxu1 %v1117_v12  ;;  %1046 = vmatprep.subr.bf16.mxu0 %v1118_v14  ;;  %v347_v36 = vpack.c.bf16 %v340_v33, %v339_v32  ;;  %v346_v53 = vmul.f32 %v338_v22, %v334_v50 }
  0x1a   : > { %1070 = vmatprep.subr.bf16.mxu1 %v1119_v18  ;;  %v348_v48 = vpack.c.bf16 %v342_v43, %v341_v42  ;;  %v349_v51 = vpack.c.bf16 %v344_v47, %v343_v46 }
  0x1b   : > { %1052 = vmatprep.mubr.bf16.mxu0 %v347_v36  ;;  %v350_v54 = vpack.c.bf16 %v346_v53, %v345_v52 }
  0x1c   : > { %1047 = vmatpush3.bf16.msra.mxu0 %v1118_v14 }
  0x1d   : > { %1071 = vmatpush3.bf16.msra.mxu1 %v1119_v18  ;;  %1048 = vmatprep.subr.bf16.mxu0 %v1120_v30 }
  0x1e   : > { %1072 = vmatprep.subr.bf16.mxu1 %v1121_v31 }
  0x20   : > { %1049 = vmatpush3.bf16.msra.mxu0 %v1120_v30 }
  0x21   : > { %1073 = vmatpush3.bf16.msra.mxu1 %v1121_v31  ;;  %1050 = vmatprep.subr.bf16.mxu0 %v1122_v40 }
  0x22   : > { %1074 = vmatprep.subr.bf16.mxu1 %v1123_v41 }
  0x24   : > { %1051 = vmatpush3.bf16.msra.mxu0 %v1122_v40 }
  0x25   : > { %1075 = vmatpush3.bf16.msra.mxu1 %v1123_v41 }
  0x27   : > { %1053 = vmatmul.mubr.bf16.vlgmr.msra.gmra.mrb[0].mxu0 %v348_v48 }
  0x28   : > { %1077 = vmatmul.mubr.bf16.vlgmr.msra.gmra.mrb[0].mxu1 %v308_v17  ;;  %1056 = vmatprep.mubr.bf16.mxu0 %v349_v51 }
  0x29   : > { %1080 = vmatprep.mubr.bf16.mxu1 %v310_v23 }
  0x2f   : > { %1057 = vmatmul.mubr.bf16.gmra.mrb[4].mxu0 %v350_v54 }
  0x30   : > { %1081 = vmatmul.mubr.bf16.gmra.mrb[4].mxu1 %v312_v39 }
  0xfa   : > { %v1054_v55 = vpop.f32.mrb[0].mxu0 }
  0xfb   : > { %v1078_v57 = vpop.f32.mrb[0].mxu1  ;;  %v456_v59 = vpop.f32.mrb[1].mxu0  ;;  %v465_v62 = vadd.f32 %v1054_v55, %v890_v56 }
  0xfc   : > { %v618_v60 = vpop.f32.mrb[1].mxu1  ;;  %v1055_v61 = vpop.f32.mrb[2].mxu0  ;;  %v627_v2 = vadd.f32 %v1078_v57, %v916_v58  ;;  %v457_v3 = vadd.f32 %v890_v56, %v456_v59 }
  0xfd   : > { %v468_v63 = vadd.f32 %v1055_v61, %v890_v56  ;;  %v1079_v0 = vpop.f32.mrb[2].mxu1  ;;  %v459_v1 = vpop.f32.mrb[3].mxu0  ;;  %v619_v7 = vadd.f32 %v916_v58, %v618_v60 }
  0xfe   : > { %v630_v4 = vadd.f32 %v1079_v0, %v916_v58  ;;  %v460_v5 = vadd.f32 %v890_v56, %v459_v1  ;;  %v621_v6 = vpop.f32.mrb[3].mxu1 }
  0xff   : > { %v974_v8 = vpack.c.bf16 %v468_v63, %v465_v62  ;;  %v622_v9 = vadd.f32 %v916_v58, %v621_v6 }
 0x100   : > { %v994_v10 = vpack.c.bf16 %v630_v4, %v627_v2  ;;  %v969_v11 = vpack.c.bf16 %v460_v5, %v457_v3 }
 0x101   : > { %1006 = vst [vmem:[%s1277_s26 + $0x8] sm:$0xff] %v974_v8   ;;  %v989_v12 = vpack.c.bf16 %v622_v9, %v619_v7 }
 0x102   : > { %1009 = vst [vmem:[%s1283_s28 + $0x8] sm:$0xff] %v994_v10   ;;  %970 = vst [vmem:[%s1277_s26] sm:$0xff] %v969_v11   ;;  %v1058_v13 = vpop.f32.mrb[4].mxu0 }
 0x103   : > { %990 = vst [vmem:[%s1283_s28] sm:$0xff] %v989_v12   ;;  %v1082_v14 = vpop.f32.mrb[4].mxu1  ;;  %v472_v15 = vpop.f32.mrb[5].mxu0  ;;  %v481_v18 = vadd.f32 %v1058_v13, %v890_v56 }
 0x104   : > { %v634_v16 = vpop.f32.mrb[5].mxu1  ;;  %v1059_v17 = vpop.f32.mrb[6].mxu0  ;;  %v643_v22 = vadd.f32 %v1082_v14, %v916_v58  ;;  %v473_v23 = vadd.f32 %v890_v56, %v472_v15 }
 0x105   : > { %v484_v19 = vadd.f32 %v1059_v17, %v890_v56  ;;  %v1083_v20 = vpop.f32.mrb[6].mxu1  ;;  %v475_v21 = vpop.f32.mrb[7].mxu0  ;;  %v635_v27 = vadd.f32 %v916_v58, %v634_v16 }
 0x106   : > { %v646_v24 = vadd.f32 %v1083_v20, %v916_v58  ;;  %v476_v25 = vadd.f32 %v890_v56, %v475_v21  ;;  %v637_v26 = vpop.f32.mrb[7].mxu1 }
 0x107   : > { %v984_v28 = vpack.c.bf16 %v484_v19, %v481_v18  ;;  %v638_v29 = vadd.f32 %v916_v58, %v637_v26 }
 0x108   : > { %v1004_v30 = vpack.c.bf16 %v646_v24, %v643_v22  ;;  %v979_v31 = vpack.c.bf16 %v476_v25, %v473_v23 }
 0x109   : > { %1008 = vst [vmem:[%s1277_s26 + $0x18] sm:$0xff] %v984_v28   ;;  %v999_v32 = vpack.c.bf16 %v638_v29, %v635_v27 }
 0x10a   : > { %1011 = vst [vmem:[%s1283_s28 + $0x18] sm:$0xff] %v1004_v30   ;;  %1007 = vst [vmem:[%s1277_s26 + $0x10] sm:$0xff] %v979_v31  }
 0x10b   : > { %1010 = vst [vmem:[%s1283_s28 + $0x10] sm:$0xff] %v999_v32  }
 0x10c PF: > { %s16_s20 = sadd.s32 1, %s1154_s20   ;;  %s1308_s18 = smov %s1150_s19 }
 0x10d   : > { %p13_p5 = scmp.ge.s32.totalorder %s16_s20, 4   ;;  %s1309_s19 = smov %s1311_s21 }
 0x10f   :  { %15 = sbr.rel (!%p13_p5) target bundleno = 2 (0x2), region = 83 }

// kernel: transform_forward.5
= control target key start
LH: loop header
LB: loop body
LE: loop exit
PB: predicated region body
PF: predicated region fallthrough
CT: control target
= control target key end

     0   :  { %s1376_s18 = smov 0   ;;  %s1378_s19 = smov 0   ;;  %s1575_s0 = inlined_call_operand.vmem [shape: bf16[2,288,128], index: 0, kind: input, shape index: {}]   ;;  %s1576_s1 = inlined_call_operand.vmem [shape: f32[2,2,128], index: 1, kind: input, shape index: {}]   ;;  %s1577_s2 = inlined_call_operand.vmem [shape: bf16[2,128,128], index: 2, kind: input, shape index: {}]   ;;  %s1578_s3 = inlined_call_operand.vmem [shape: f32[2,1,128], index: 3, kind: input, shape index: {}]   ;;  %s1579_s4 = inlined_call_operand.vmem [shape: bf16[2,288,128], index: 4, kind: output, shape index: {0}]   ;;  %s1580_s5 = inlined_call_operand.vmem [shape: bf16[2,288,128], index: 5, kind: output, shape index: {1}]  }
   0x1   :  { %s1380_s20 = smov 0   ;;  %s1382_s21 = smov 0  }
   0x2   :  { %s1384_s22 = smov 0  }
   0x3 LB: > { %s25_s23 = sadd.s32 1, %s1336_s20  ;;  %s28_s24 = sadd.s32 1, %s1340_s21  ;;  %s1344_s22 = sphi %s1384_s22, %s16_s22   ;;  %s1340_s21 = sphi %s1382_s21, %s1584_s21   ;;  %s1336_s20 = sphi %s1380_s20, %s1583_s20   ;;  %s1332_s19 = sphi %s1378_s19, %s1582_s19   ;;  %s1328_s18 = sphi %s1376_s18, %s1581_s18  }
   0x4   : > { %p26_p0 = scmp.ge.s32.totalorder %s25_s23, 3  ;;  %p987_p1 = scmp.ge.s32.totalorder %s1344_s22, 1 }
   0x5   : > { %p222_p2 = scmp.lt.s32.totalorder %s1344_s22, 7 }
   0x6   : > { %s1586_s23 = smov (%p26_p0, %s25_s23), 0  ;;  %s1588_s24 = smov (!%p26_p0, %s28_s24), %s1340_s21 }
   0x7   : > { %p223_p3 = pnand %p987_p1, %p222_p2  ;;  %p30_p4 = scmp.ge.s32.totalorder %s1588_s24, 2 }
   0x8   : > { %v1278_v0 = vld [vmem:[%s1577_s2] sm:$0xff] (!%p223_p3)   ;;  %s271_s27 = smul.u32 (!%p223_p3), 12, %s1328_s18  ;;  %p272_p5 = scmp.lt.s32.totalorder (!%p223_p3), %s1332_s19, 1  ;;  %v1280_v2 = vld [vmem:[%s1577_s2 + $0x8] sm:$0xff] (!%p223_p3)   ;;  %v1282_v4 = vld [vmem:[%s1577_s2 + $0x10] sm:$0xff] (!%p223_p3)   ;;  %v331_v6 = vlaneseq (!%p223_p3) }
   0x9   : > { %s1590_s24 = smov (%p30_p4, %s1588_s24), 0  ;;  %226 = sbr.rel (%p223_p3) target bundleno = 279 (0x117), region = 36 }
   0xa   : > { %v1279_v1 = vld [vmem:[%s1577_s2 + $0x40] sm:$0xff] (!%p223_p3)   ;;  %1181 = vmatprep.subr.bf16.mxu0 (!%p223_p3), %v1278_v0  ;;  %p274_p6 = scmp.lt.s32.totalorder (!%p223_p3), %s271_s27, 35  ;;  %v1281_v3 = vld [vmem:[%s1577_s2 + $0x48] sm:$0xff] (!%p223_p3)   ;;  %v1283_v5 = vld [vmem:[%s1577_s2 + $0x50] sm:$0xff] (!%p223_p3)   ;;  %v332_v9 = vshrl.u32 (!%p223_p3), %v331_v6, 7 }
   0xb   : > { %1209 = vmatprep.subr.bf16.mxu1 (!%p223_p3), %v1279_v1  ;;  %1182 = vmatpush3.bf16.msra.mxu0 (!%p223_p3), %v1278_v0  ;;  %v1284_v7 = vld [vmem:[%s1577_s2 + $0x18] sm:$0xff] (!%p223_p3)   ;;  %v1286_v10 = vld [vmem:[%s1577_s2 + $0x20] sm:$0xff] (!%p223_p3)   ;;  %v1288_v14 = vld [vmem:[%s1577_s2 + $0x28] sm:$0xff] (!%p223_p3)  }
   0xc   : > { %1210 = vmatpush3.bf16.msra.mxu1 (!%p223_p3), %v1279_v1  ;;  %1183 = vmatprep.subr.bf16.mxu0 (!%p223_p3), %v1280_v2  ;;  %v1285_v8 = vld [vmem:[%s1577_s2 + $0x58] sm:$0xff] (!%p223_p3)   ;;  %v1287_v11 = vld [vmem:[%s1577_s2 + $0x60] sm:$0xff] (!%p223_p3)   ;;  %v333_v12 = vsub.s32 (!%p223_p3), 0, %v332_v9  ;;  %v349_v13 = vsub.s32 (!%p223_p3), 1, %v332_v9  ;;  %v1289_v18 = vld [vmem:[%s1577_s2 + $0x68] sm:$0xff] (!%p223_p3)  }
   0xd   : > { %1211 = vmatprep.subr.bf16.mxu1 (!%p223_p3), %v1281_v3  ;;  %v1290_v30 = vld [vmem:[%s1577_s2 + $0x30] sm:$0xff] (!%p223_p3)   ;;  %v1292_v40 = vld [vmem:[%s1577_s2 + $0x38] sm:$0xff] (!%p223_p3)  }
   0xe   : > { %v1291_v31 = vld [vmem:[%s1577_s2 + $0x70] sm:$0xff] (!%p223_p3)   ;;  %v1293_v42 = vld [vmem:[%s1577_s2 + $0x78] sm:$0xff] (!%p223_p3)  }
   0xf   : > { %1184 = vmatpush3.bf16.msra.mxu0 (!%p223_p3), %v1280_v2 }
  0x10   : > { %s1592_s19 = smov (!%p272_p5, %s1332_s19), 1  ;;  %s1594_s27 = smov (!%p274_p6, %s271_s27), 35  ;;  %1212 = vmatpush3.bf16.msra.mxu1 %v1281_v3  ;;  %1185 = vmatprep.subr.bf16.mxu0 %v1282_v4 }
  0x11   : > { %s1237_s13 = smul.u32 36, %s1592_s19  ;;  %1213 = vmatprep.subr.bf16.mxu1 %v1283_v5  ;;  %s989_s26 = sshll.u32 %s1592_s19, 1 }
  0x12   : > { %s284_s19 = scalar_lea.vmem %s1576_s1, %s989_s26 }
  0x13   : > { %s277_s14 = sadd.s32 %s1237_s13, %s1594_s27  ;;  %1186 = vmatpush3.bf16.msra.mxu0 %v1282_v4  ;;  %v330_v16 = vld [vmem:[%s284_s19] sm:$0x3] }
  0x14   : > { %s1433_s25 = sshll.u32 %s277_s14, 2  ;;  %1214 = vmatpush3.bf16.msra.mxu1 %v1283_v5  ;;  %1187 = vmatprep.subr.bf16.mxu0 %v1284_v7  ;;  %v1458_v21 = vrot.slane %v330_v16, %v333_v12  ;;  %v1460_v22 = vrot.slane %v330_v16, %v349_v13 }
  0x15   : > { %1215 = vmatprep.subr.bf16.mxu1 %v1285_v8  ;;  %s1445_s8 = scalar_lea.vmem %s1575_s0, %s1433_s25  ;;  %s1520_s19 = scalar_lea.vmem %s1579_s4, %s1433_s25 }
  0x16   : > { %v306_v15 = vld [vmem:[%s1445_s8] sm:$0xff]   ;;  %v308_v17 = vld [vmem:[%s1445_s8 + $0x8] sm:$0xff]   ;;  %v310_v23 = vld [vmem:[%s1445_s8 + $0x10] sm:$0xff]   ;;  %s1529_s13 = scalar_lea.vmem %s1580_s5, %s1433_s25 }
  0x17   : > { %1188 = vmatpush3.bf16.msra.mxu0 %v1284_v7  ;;  %v318_v19 = vunpack.c.l.bf16 %v306_v15  ;;  %v319_v20 = vunpack.c.h.bf16 %v306_v15  ;;  %v320_v24 = vunpack.c.l.bf16 %v308_v17  ;;  %v321_v25 = vunpack.c.h.bf16 %v308_v17  ;;  %1225 = vmatprep.mubr.bf16.mxu1 %v306_v15  ;;  %v312_v39 = vld [vmem:[%s1445_s8 + $0x18] sm:$0xff]   ;;  %v314_v41 = vld [vmem:[%s1445_s8 + $0x20] sm:$0xff]   ;;  %v316_v57 = vld [vmem:[%s1445_s8 + $0x28] sm:$0xff]  }
  0x18   : > { %1216 = vmatpush3.bf16.msra.mxu1 %v1285_v8  ;;  %1189 = vmatprep.subr.bf16.mxu0 %v1286_v10  ;;  %v322_v28 = vunpack.c.l.bf16 %v310_v23  ;;  %v323_v29 = vunpack.c.h.bf16 %v310_v23  ;;  %v324_v45 = vunpack.c.l.bf16 %v312_v39  ;;  %v325_v46 = vunpack.c.h.bf16 %v312_v39  ;;  %v1505_v8 = vld [vmem:[%s1578_s3] ss:$0 sm:$0xff] }
  0x19   : > { %1217 = vmatprep.subr.bf16.mxu1 %v1287_v11  ;;  %v335_v26 = vsub.f32 %v318_v19, %v1458_v21  ;;  %v336_v27 = vsub.f32 %v319_v20, %v1458_v21  ;;  %v337_v34 = vsub.f32 %v320_v24, %v1458_v21  ;;  %v338_v35 = vsub.f32 %v321_v25, %v1458_v21 }
  0x1a   : > { %v339_v37 = vsub.f32 %v322_v28, %v1458_v21  ;;  %v340_v38 = vsub.f32 %v323_v29, %v1458_v21  ;;  %v326_v49 = vunpack.c.l.bf16 %v314_v41  ;;  %v327_v50 = vunpack.c.h.bf16 %v314_v41 }
  0x1b   : > { %1190 = vmatpush3.bf16.msra.mxu0 %v1286_v10  ;;  %v351_v32 = vmul.f32 %v1460_v22, %v335_v26  ;;  %v352_v33 = vmul.f32 %v1460_v22, %v336_v27  ;;  %v353_v43 = vmul.f32 %v1460_v22, %v337_v34  ;;  %v354_v44 = vmul.f32 %v1460_v22, %v338_v35  ;;  %v1510_v10 = vld [vmem:[%s1578_s3 + $0x1] ss:$0 sm:$0xff] }
  0x1c   : > { %1218 = vmatpush3.bf16.msra.mxu1 %v1287_v11  ;;  %1191 = vmatprep.subr.bf16.mxu0 %v1288_v14  ;;  %v355_v47 = vmul.f32 %v1460_v22, %v339_v37  ;;  %v356_v48 = vmul.f32 %v1460_v22, %v340_v38  ;;  %v341_v52 = vsub.f32 %v324_v45, %v1458_v21  ;;  %v328_v60 = vunpack.c.l.bf16 %v316_v57 }
  0x1d   : > { %1219 = vmatprep.subr.bf16.mxu1 %v1289_v18  ;;  %v363_v36 = vpack.c.bf16 %v352_v33, %v351_v32  ;;  %v364_v51 = vpack.c.bf16 %v354_v44, %v353_v43  ;;  %v342_v53 = vsub.f32 %v325_v46, %v1458_v21  ;;  %v343_v55 = vsub.f32 %v326_v49, %v1458_v21 }
  0x1e   : > { %v365_v54 = vpack.c.bf16 %v356_v48, %v355_v47  ;;  %v344_v56 = vsub.f32 %v327_v50, %v1458_v21  ;;  %v357_v58 = vmul.f32 %v1460_v22, %v341_v52  ;;  %v329_v61 = vunpack.c.h.bf16 %v316_v57 }
  0x1f   : > { %1192 = vmatpush3.bf16.msra.mxu0 %v1288_v14  ;;  %1197 = vmatprep.mubr.bf16.mxu0 %v363_v36  ;;  %v358_v59 = vmul.f32 %v1460_v22, %v342_v53  ;;  %v359_v62 = vmul.f32 %v1460_v22, %v343_v55  ;;  %v345_v1 = vsub.f32 %v328_v60, %v1458_v21 }
  0x20   : > { %1220 = vmatpush3.bf16.msra.mxu1 %v1289_v18  ;;  %1193 = vmatprep.subr.bf16.mxu0 %v1290_v30  ;;  %v360_v63 = vmul.f32 %v1460_v22, %v344_v56  ;;  %v346_v2 = vsub.f32 %v329_v61, %v1458_v21 }
  0x21   : > { %1221 = vmatprep.subr.bf16.mxu1 %v1291_v31  ;;  %v366_v0 = vpack.c.bf16 %v358_v59, %v357_v58  ;;  %v361_v4 = vmul.f32 %v1460_v22, %v345_v1 }
  0x22   : > { %v367_v3 = vpack.c.bf16 %v360_v63, %v359_v62  ;;  %v362_v5 = vmul.f32 %v1460_v22, %v346_v2 }
  0x23   : > { %1194 = vmatpush3.bf16.msra.mxu0 %v1290_v30 }
  0x24   : > { %1222 = vmatpush3.bf16.msra.mxu1 %v1291_v31  ;;  %1195 = vmatprep.subr.bf16.mxu0 %v1292_v40  ;;  %v368_v6 = vpack.c.bf16 %v362_v5, %v361_v4 }
  0x25   : > { %1223 = vmatprep.subr.bf16.mxu1 %v1293_v42 }
  0x27   : > { %1196 = vmatpush3.bf16.msra.mxu0 %v1292_v40 }
  0x28   : > { %1224 = vmatpush3.bf16.msra.mxu1 %v1293_v42 }
  0x2a   : > { %1198 = vmatmul.mubr.bf16.vlgmr.msra.gmra.mrb[0].mxu0 %v364_v51 }
  0x2b   : > { %1226 = vmatmul.mubr.bf16.vlgmr.msra.gmra.mrb[0].mxu1 %v308_v17  ;;  %1201 = vmatprep.mubr.bf16.mxu0 %v365_v54 }
  0x2c   : > { %1229 = vmatprep.mubr.bf16.mxu1 %v310_v23 }
  0x32   : > { %1202 = vmatmul.mubr.bf16.gmra.mrb[4].mxu0 %v366_v0 }
  0x33   : > { %1230 = vmatmul.mubr.bf16.gmra.mrb[4].mxu1 %v312_v39  ;;  %1205 = vmatprep.mubr.bf16.mxu0 %v367_v3 }
  0x34   : > { %1233 = vmatprep.mubr.bf16.mxu1 %v314_v41 }
  0x3a   : > { %1206 = vmatmul.mubr.bf16.gmra.mrb[8].mxu0 %v368_v6 }
  0x3b   : > { %1234 = vmatmul.mubr.bf16.gmra.mrb[8].mxu1 %v316_v57 }
  0xfd   : > { %v1199_v7 = vpop.f32.mrb[0].mxu0 }
  0xfe   : > { %v1227_v9 = vpop.f32.mrb[0].mxu1  ;;  %v474_v11 = vpop.f32.mrb[1].mxu0  ;;  %v483_v14 = vadd.f32 %v1199_v7, %v1505_v8 }
  0xff   : > { %v664_v12 = vpop.f32.mrb[1].mxu1  ;;  %v1200_v13 = vpop.f32.mrb[2].mxu0  ;;  %v673_v18 = vadd.f32 %v1227_v9, %v1510_v10  ;;  %v475_v19 = vadd.f32 %v1505_v8, %v474_v11 }
 0x100   : > { %v486_v15 = vadd.f32 %v1200_v13, %v1505_v8  ;;  %v1228_v16 = vpop.f32.mrb[2].mxu1  ;;  %v477_v17 = vpop.f32.mrb[3].mxu0  ;;  %v665_v23 = vadd.f32 %v1510_v10, %v664_v12 }
 0x101   : > { %v676_v20 = vadd.f32 %v1228_v16, %v1510_v10  ;;  %v478_v21 = vadd.f32 %v1505_v8, %v477_v17  ;;  %v667_v22 = vpop.f32.mrb[3].mxu1 }
 0x102   : > { %v1091_v24 = vpack.c.bf16 %v486_v15, %v483_v14  ;;  %v668_v25 = vadd.f32 %v1510_v10, %v667_v22 }
 0x103   : > { %v1121_v26 = vpack.c.bf16 %v676_v20, %v673_v18  ;;  %v1086_v27 = vpack.c.bf16 %v478_v21, %v475_v19 }
 0x104   : > { %1143 = vst [vmem:[%s1520_s19 + $0x8] sm:$0xff] %v1091_v24   ;;  %v1116_v28 = vpack.c.bf16 %v668_v25, %v665_v23 }
 0x105   : > { %1148 = vst [vmem:[%s1529_s13 + $0x8] sm:$0xff] %v1121_v26   ;;  %1087 = vst [vmem:[%s1520_s19] sm:$0xff] %v1086_v27   ;;  %v1203_v29 = vpop.f32.mrb[4].mxu0 }
 0x106   : > { %1117 = vst [vmem:[%s1529_s13] sm:$0xff] %v1116_v28   ;;  %v1231_v30 = vpop.f32.mrb[4].mxu1  ;;  %v490_v31 = vpop.f32.mrb[5].mxu0  ;;  %v499_v34 = vadd.f32 %v1203_v29, %v1505_v8 }
 0x107   : > { %v680_v32 = vpop.f32.mrb[5].mxu1  ;;  %v1204_v33 = vpop.f32.mrb[6].mxu0  ;;  %v689_v38 = vadd.f32 %v1231_v30, %v1510_v10  ;;  %v491_v39 = vadd.f32 %v1505_v8, %v490_v31 }
 0x108   : > { %v502_v35 = vadd.f32 %v1204_v33, %v1505_v8  ;;  %v1232_v36 = vpop.f32.mrb[6].mxu1  ;;  %v493_v37 = vpop.f32.mrb[7].mxu0  ;;  %v681_v43 = vadd.f32 %v1510_v10, %v680_v32 }
 0x109   : > { %v692_v40 = vadd.f32 %v1232_v36, %v1510_v10  ;;  %v494_v41 = vadd.f32 %v1505_v8, %v493_v37  ;;  %v683_v42 = vpop.f32.mrb[7].mxu1 }
 0x10a   : > { %v1101_v44 = vpack.c.bf16 %v502_v35, %v499_v34  ;;  %v684_v45 = vadd.f32 %v1510_v10, %v683_v42 }
 0x10b   : > { %v1131_v46 = vpack.c.bf16 %v692_v40, %v689_v38  ;;  %v1096_v47 = vpack.c.bf16 %v494_v41, %v491_v39 }
 0x10c   : > { %1145 = vst [vmem:[%s1520_s19 + $0x18] sm:$0xff] %v1101_v44   ;;  %v1126_v48 = vpack.c.bf16 %v684_v45, %v681_v43 }
 0x10d   : > { %1150 = vst [vmem:[%s1529_s13 + $0x18] sm:$0xff] %v1131_v46   ;;  %1144 = vst [vmem:[%s1520_s19 + $0x10] sm:$0xff] %v1096_v47   ;;  %v1207_v49 = vpop.f32.mrb[8].mxu0 }
 0x10e   : > { %1149 = vst [vmem:[%s1529_s13 + $0x10] sm:$0xff] %v1126_v48   ;;  %v1235_v50 = vpop.f32.mrb[8].mxu1  ;;  %v506_v51 = vpop.f32.mrb[9].mxu0  ;;  %v515_v54 = vadd.f32 %v1207_v49, %v1505_v8 }
 0x10f   : > { %v696_v52 = vpop.f32.mrb[9].mxu1  ;;  %v1208_v53 = vpop.f32.mrb[10].mxu0  ;;  %v705_v58 = vadd.f32 %v1235_v50, %v1510_v10  ;;  %v507_v59 = vadd.f32 %v1505_v8, %v506_v51 }
 0x110   : > { %v518_v55 = vadd.f32 %v1208_v53, %v1505_v8  ;;  %v1236_v56 = vpop.f32.mrb[10].mxu1  ;;  %v509_v57 = vpop.f32.mrb[11].mxu0  ;;  %v697_v63 = vadd.f32 %v1510_v10, %v696_v52 }
 0x111   : > { %v708_v60 = vadd.f32 %v1236_v56, %v1510_v10  ;;  %v510_v61 = vadd.f32 %v1505_v8, %v509_v57  ;;  %v699_v62 = vpop.f32.mrb[11].mxu1 }
 0x112   : > { %v1111_v0 = vpack.c.bf16 %v518_v55, %v515_v54  ;;  %v700_v1 = vadd.f32 %v1510_v10, %v699_v62 }
 0x113   : > { %v1141_v2 = vpack.c.bf16 %v708_v60, %v705_v58  ;;  %v1106_v3 = vpack.c.bf16 %v510_v61, %v507_v59 }
 0x114   : > { %1147 = vst [vmem:[%s1520_s19 + $0x28] sm:$0xff] %v1111_v0   ;;  %v1136_v4 = vpack.c.bf16 %v700_v1, %v697_v63 }
 0x115   : > { %1152 = vst [vmem:[%s1529_s13 + $0x28] sm:$0xff] %v1141_v2   ;;  %1146 = vst [vmem:[%s1520_s19 + $0x20] sm:$0xff] %v1106_v3  }
 0x116   : > { %1151 = vst [vmem:[%s1529_s13 + $0x20] sm:$0xff] %v1136_v4  }
 0x117 PF: > { %s16_s22 = sadd.s32 1, %s1344_s22   ;;  %s1581_s18 = smov %s1336_s20 }
 0x118   : > { %p13_p7 = scmp.ge.s32.totalorder %s16_s22, 8   ;;  %s1582_s19 = smov %s1340_s21 }
 0x119   : > { %s1583_s20 = smov %s1586_s23  ;;  %s1584_s21 = smov %s1590_s24 }
 0x11a   :  { %15 = sbr.rel (!%p13_p7) target bundleno = 3 (0x3), region = 83 }

// kernel: transform_forward.8
= control target key start
LH: loop header
LB: loop body
LE: loop exit
PB: predicated region body
PF: predicated region fallthrough
CT: control target
= control target key end

     0   :  { %s1932_s21 = smov 0   ;;  %s1934_s22 = smov 0   ;;  %s2274_s0 = inlined_call_operand.vmem [shape: bf16[2,64,128], index: 0, kind: input, shape index: {}]   ;;  %s2275_s1 = inlined_call_operand.vmem [shape: bf16[2,64,128], index: 1, kind: input, shape index: {}]   ;;  %s2276_s2 = inlined_call_operand.vmem [shape: bf16[2,64,128], index: 2, kind: input, shape index: {}]   ;;  %s2277_s3 = inlined_call_operand.vmem [shape: f32[2,2,128], index: 3, kind: input, shape index: {}]   ;;  %s2278_s4 = inlined_call_operand.vmem [shape: bf16[2,128,128], index: 4, kind: input, shape index: {}]   ;;  %s2279_s5 = inlined_call_operand.vmem [shape: f32[2,1,128], index: 5, kind: input, shape index: {}]   ;;  %s2280_s6 = inlined_call_operand.vmem [shape: bf16[2,64,128], index: 6, kind: output, shape index: {}]  }
   0x1   :  { %s1936_s23 = smov 0  }
   0x2 LB: > { %s35_s24 = sadd.s32 1, %s1888_s22  ;;  %p1509_p0 = scmp.ge.s32.totalorder %s1892_s23, 1  ;;  %s1892_s23 = sphi %s1936_s23, %s16_s23   ;;  %s1888_s22 = sphi %s1934_s22, %s2282_s22   ;;  %s1884_s21 = sphi %s1932_s21, %s2281_s21  }
   0x3   : > { %p37_p1 = scmp.ge.s32.totalorder %s35_s24, 2  ;;  %p283_p2 = scmp.lt.s32.totalorder %s1892_s23, 3 }
   0x5   : > { %s2284_s24 = smov (%p37_p1, %s35_s24), 0  ;;  %p284_p3 = pnand %p1509_p0, %p283_p2 }
   0x6   : > { %v1798_v0 = vld [vmem:[%s2278_s4] sm:$0xff] (!%p284_p3)   ;;  %p344_p4 = scmp.lt.s32.totalorder (!%p284_p3), %s1884_s21, 1  ;;  %v434_v1 = vlaneseq (!%p284_p3)  ;;  %v1799_v2 = vld [vmem:[%s2278_s4 + $0x8] sm:$0xff] (!%p284_p3)   ;;  %v1800_v4 = vld [vmem:[%s2278_s4 + $0x10] sm:$0xff] (!%p284_p3)   ;;  %vm392_vm0 = vcmask (!%p284_p3), 7168   ;;  %vm715_vm1 = vcmask (!%p284_p3), 523264  }
   0x7   : > { %287 = sbr.rel (%p284_p3) target bundleno = 1305 (0x519), region = 44  ;;  %1689 = vmatprep.subr.bf16.mxu0 (!%p284_p3), %v1798_v0  ;;  %v1801_v7 = vld [vmem:[%s2278_s4 + $0x18] sm:$0xff] (!%p284_p3)   ;;  %v1802_v18 = vld [vmem:[%s2278_s4 + $0x20] sm:$0xff] (!%p284_p3)   ;;  %v1803_v22 = vld [vmem:[%s2278_s4 + $0x28] sm:$0xff] (!%p284_p3)  }
   0x8   : > { %1690 = vmatpush3.bf16.msra.mxu0 (!%p284_p3), %v1798_v0  ;;  %v435_v3 = vshrl.u32 (!%p284_p3), %v434_v1, 7  ;;  %v1804_v30 = vld [vmem:[%s2278_s4 + $0x30] sm:$0xff] (!%p284_p3)   ;;  %v1805_v36 = vld [vmem:[%s2278_s4 + $0x38] sm:$0xff] (!%p284_p3)   ;;  %v1519_v52 = vld [vmem:[%s2279_s5] ss:$0 sm:$0xff] (!%p284_p3) }
   0x9   : > { %1691 = vmatprep.subr.bf16.mxu0 (!%p284_p3), %v1799_v2 }
   0xa   : > { %v436_v5 = vsub.s32 (!%p284_p3), 0, %v435_v3  ;;  %v448_v6 = vsub.s32 (!%p284_p3), 1, %v435_v3 }
   0xc   : > { %1692 = vmatpush3.bf16.msra.mxu0 (!%p284_p3), %v1799_v2 }
   0xd   : > { %1693 = vmatprep.subr.bf16.mxu0 (!%p284_p3), %v1800_v4 }
   0xe   : > { %s2286_s21 = smov (!%p344_p4, %s1884_s21), 1 }
   0xf   : > { %s1959_s7 = sshll.u32 %s2286_s21, 5  ;;  %s1516_s11 = sshll.u32 %s2286_s21, 1 }
  0x10   : > { %s1965_s10 = scalar_lea.vmem %s2274_s0, %s1959_s7  ;;  %s376_s14 = scalar_lea.vmem %s2277_s3, %s1516_s11  ;;  %1694 = vmatpush3.bf16.msra.mxu0 %v1800_v4 }
  0x11   : > { %s1974_s17 = scalar_lea.vmem %s2275_s1, %s1959_s7  ;;  %v1980_v8 = vld [vmem:[%s1965_s10] sm:$0xff]   ;;  %1695 = vmatprep.subr.bf16.mxu0 %v1801_v7  ;;  %v1994_v21 = vld [vmem:[%s1965_s10 + $0x8] sm:$0xff]   ;;  %v2000_v23 = vld [vmem:[%s1965_s10 + $0x10] sm:$0xff]   ;;  %s371_s12 = scalar_lea.vmem %s2276_s2, %s1959_s7 }
  0x12   : > { %v433_v9 = vld [vmem:[%s376_s14] sm:$0x3]  ;;  %v1590_v10 = vunpack.c.l.bf16 %v1980_v8  ;;  %v1591_v11 = vunpack.c.h.bf16 %v1980_v8  ;;  %v1807_v17 = vld [vmem:[%s1974_s17 + $0x8] sm:$0xff]   ;;  %v1594_v25 = vunpack.c.l.bf16 %v1994_v21  ;;  %v1595_v26 = vunpack.c.h.bf16 %v1994_v21  ;;  %v1808_v29 = vld [vmem:[%s1974_s17 + $0x10] sm:$0xff]   ;;  %s385_s13 = scalar_lea.vmem %s2280_s6, %s1959_s7 }
  0x13   : > { %v437_v12 = vrot.slane %v433_v9, %v436_v5  ;;  %v449_v13 = vrot.slane %v433_v9, %v448_v6  ;;  %v1806_v14 = vld [vmem:[%s1974_s17] sm:$0xff]   ;;  %v1598_v27 = vunpack.c.l.bf16 %v2000_v23  ;;  %v1599_v28 = vunpack.c.h.bf16 %v2000_v23  ;;  %v2019_v35 = vld [vmem:[%s1965_s10 + $0x18] sm:$0xff]  }
  0x14   : > { %1713 = vmatprep.subr.bf16.mxu1 %v1806_v14  ;;  %1696 = vmatpush3.bf16.msra.mxu0 %v1801_v7  ;;  %v1602_v39 = vunpack.c.l.bf16 %v2019_v35  ;;  %v1603_v40 = vunpack.c.h.bf16 %v2019_v35  ;;  %v1809_v50 = vld [vmem:[%s1974_s17 + $0x18] sm:$0xff]   ;;  %v1894_v9 = vmov -inf  }
  0x15   : > { %v438_v15 = vsub.f32 %v1590_v10, %v437_v12  ;;  %v439_v16 = vsub.f32 %v1591_v11, %v437_v12  ;;  %1714 = vmatpush3.bf16.xpose.msra.mxu1 %v1806_v14  ;;  %1697 = vmatprep.subr.bf16.mxu0 %v1802_v18  ;;  %v440_v31 = vsub.f32 %v1594_v25, %v437_v12 }
  0x16   : > { %1715 = vmatprep.subr.bf16.mxu1 %v1807_v17  ;;  %v441_v32 = vsub.f32 %v1595_v26, %v437_v12  ;;  %v442_v33 = vsub.f32 %v1598_v27, %v437_v12  ;;  %v443_v34 = vsub.f32 %v1599_v28, %v437_v12  ;;  %v444_v44 = vsub.f32 %v1602_v39, %v437_v12 }
  0x17   : > { %v450_v19 = vmul.f32 %v449_v13, %v438_v15  ;;  %v451_v20 = vmul.f32 %v449_v13, %v439_v16  ;;  %v452_v37 = vmul.f32 %v449_v13, %v440_v31  ;;  %v445_v45 = vsub.f32 %v1603_v40, %v437_v12  ;;  %395 = vst.msk [vmem:[#allocation4 + $0x10] sm:$0xff] %vm392_vm0, %v1894_v9 }
  0x18   : > { %1698 = vmatpush3.bf16.msra.mxu0 %v1802_v18  ;;  %v453_v38 = vmul.f32 %v449_v13, %v441_v32  ;;  %v454_v41 = vmul.f32 %v449_v13, %v442_v33  ;;  %v455_v42 = vmul.f32 %v449_v13, %v443_v34  ;;  %v456_v47 = vmul.f32 %v449_v13, %v444_v44 }
  0x19   : > { %v458_v24 = vpack.c.bf16 %v451_v20, %v450_v19  ;;  %1699 = vmatprep.subr.bf16.mxu0 %v1803_v22  ;;  %v457_v48 = vmul.f32 %v449_v13, %v445_v45  ;;  %393 = vst.msk [vmem:[#allocation4] sm:$0xff] %vm392_vm0, %v1894_v9  ;;  %394 = vst.msk [vmem:[#allocation4 + $0x8] sm:$0xff] %vm392_vm0, %v1894_v9  ;;  %v1895_v34 = vmov 0  }
  0x1a   : > { %v459_v43 = vpack.c.bf16 %v453_v38, %v452_v37  ;;  %v460_v46 = vpack.c.bf16 %v455_v42, %v454_v41  ;;  %396 = vst.msk [vmem:[#allocation4 + $0x18] sm:$0xff] %vm392_vm0, %v1894_v9  ;;  %397 = vst.msk [vmem:[#allocation4 + $0x20] sm:$0xff] %vm392_vm0, %v1894_v9  ;;  %1796 = vset.pattern.permute.xlu0 %v1895_v34  ;;  %1797 = vset.pattern.permute.xlu1 %v1895_v34 }
  0x1b   : > { %1705 = vmatprep.mubr.bf16.mxu0 %v458_v24  ;;  %v461_v49 = vpack.c.bf16 %v457_v48, %v456_v47  ;;  %398 = vst.msk [vmem:[#allocation4 + $0x28] sm:$0xff] %vm392_vm0, %v1894_v9  ;;  %399 = vst.msk [vmem:[#allocation4 + $0x30] sm:$0xff] %vm392_vm0, %v1894_v9 }
  0x1c   : > { %1700 = vmatpush3.bf16.msra.mxu0 %v1803_v22  ;;  %400 = vst.msk [vmem:[#allocation4 + $0x38] sm:$0xff] %vm392_vm0, %v1894_v9 }
  0x1d   : > { %1716 = vmatpush3.bf16.xpose.msra.mxu1 %v1807_v17  ;;  %1701 = vmatprep.subr.bf16.mxu0 %v1804_v30 }
  0x1e   : > { %1717 = vmatprep.subr.bf16.mxu1 %v1808_v29  ;;  %v2082_v37 = vld [vmem:[#allocation4 + $0x10] sm:$0xff] }
  0x20   : > { %1702 = vmatpush3.bf16.msra.mxu0 %v1804_v30  ;;  %v2084_v38 = vld [vmem:[#allocation4] sm:$0xff]  ;;  %v2099_v47 = vld [vmem:[#allocation4 + $0x8] sm:$0xff] }
  0x21   : > { %1703 = vmatprep.subr.bf16.mxu0 %v1805_v36  ;;  %v2092_v45 = vld [vmem:[#allocation4 + $0x18] sm:$0xff] }
  0x24   : > { %1704 = vmatpush3.bf16.msra.mxu0 %v1805_v36  ;;  %v1896_v36 = vmov 0.0  }
  0x25   : > { %1718 = vmatpush3.bf16.xpose.msra.mxu1 %v1808_v29  ;;  %401 = vst.msk [vmem:[#allocation5] sm:$0xff] %vm392_vm0, %v1896_v36  ;;  %402 = vst.msk [vmem:[#allocation5 + $0x8] sm:$0xff] %vm392_vm0, %v1896_v36 }
  0x26   : > { %1719 = vmatprep.subr.bf16.mxu1 %v1809_v50  ;;  %403 = vst.msk [vmem:[#allocation5 + $0x10] sm:$0xff] %vm392_vm0, %v1896_v36  ;;  %404 = vst.msk [vmem:[#allocation5 + $0x18] sm:$0xff] %vm392_vm0, %v1896_v36 }
  0x27   : > { %1706 = vmatmul.mubr.bf16.vlgmr.msra.gmra.mrb[0].mxu0 %v459_v43  ;;  %405 = vst.msk [vmem:[#allocation5 + $0x20] sm:$0xff] %vm392_vm0, %v1896_v36  ;;  %406 = vst.msk [vmem:[#allocation5 + $0x28] sm:$0xff] %vm392_vm0, %v1896_v36 }
  0x28   : > { %1709 = vmatprep.mubr.bf16.mxu0 %v460_v46  ;;  %407 = vst.msk [vmem:[#allocation5 + $0x30] sm:$0xff] %vm392_vm0, %v1896_v36  ;;  %408 = vst.msk [vmem:[#allocation5 + $0x38] sm:$0xff] %vm392_vm0, %v1896_v36 }
  0x2d   : > { %1720 = vmatpush3.bf16.xpose.msra.mxu1 %v1809_v50 }
  0x2f   : > { %1710 = vmatmul.mubr.bf16.gmra.mrb[4].mxu0 %v461_v49 }
  0xfa   : > { %v1707_v51 = vpop.f32.mrb[0].mxu0 }
  0xfb   : > { %v567_v53 = vpop.f32.mrb[1].mxu0  ;;  %v576_v55 = vadd.f32 %v1707_v51, %v1519_v52 }
  0xfc   : > { %v1708_v54 = vpop.f32.mrb[2].mxu0  ;;  %v568_v58 = vadd.f32 %v1519_v52, %v567_v53 }
  0xfd   : > { %v579_v56 = vadd.f32 %v1708_v54, %v1519_v52  ;;  %v570_v57 = vpop.f32.mrb[3].mxu0  ;;  %v2117_v54 = vld [vmem:[#allocation4 + $0x20] sm:$0xff] }
  0xfe   : > { %v571_v59 = vadd.f32 %v1519_v52, %v570_v57  ;;  %v2123_v57 = vld [vmem:[#allocation4 + $0x28] sm:$0xff] }
  0xff   : > { %v599_v60 = vpack.c.bf16 %v579_v56, %v576_v55 }
 0x100   : > { %v598_v61 = vpack.c.bf16 %v571_v59, %v568_v58  ;;  %v2128_v59 = vld [vmem:[#allocation4 + $0x30] sm:$0xff] }
 0x102   : > { %v1711_v62 = vpop.f32.mrb[4].mxu0  ;;  %1721 = vmatprep.mubr.bf16.mxu1 %v598_v61  ;;  %v2135_v61 = vld [vmem:[#allocation4 + $0x38] sm:$0xff] }
 0x103   : > { %v592_v63 = vadd.f32 %v1711_v62, %v1519_v52  ;;  %v583_v0 = vpop.f32.mrb[5].mxu0  ;;  %1722 = vmatmul.mubr.bf16.vlgmr.msra.gmra.mrb[0].mxu1 %v599_v60  ;;  %v1810_v62 = vld [vmem:[%s371_s12] sm:$0xff]  }
 0x104   : > { %v584_v1 = vadd.f32 %v1519_v52, %v583_v0  ;;  %v1712_v2 = vpop.f32.mrb[6].mxu0  ;;  %1729 = vmatprep.subr.bf16.mxu0 %v1810_v62 }
 0x105   : > { %v595_v3 = vadd.f32 %v1712_v2, %v1519_v52  ;;  %v586_v4 = vpop.f32.mrb[7].mxu0  ;;  %1730 = vmatpush3.bf16.msra.mxu0 %v1810_v62 }
 0x106   : > { %v587_v5 = vadd.f32 %v1519_v52, %v586_v4 }
 0x107   : > { %v601_v6 = vpack.c.bf16 %v595_v3, %v592_v63 }
 0x108   : > { %v600_v7 = vpack.c.bf16 %v587_v5, %v584_v1  ;;  %v1811_v5 = vld [vmem:[%s371_s12 + $0x8] sm:$0xff]  }
 0x109   : > { %1731 = vmatprep.subr.bf16.mxu0 %v1811_v5 }
 0x10a   : > { %1725 = vmatprep.mubr.bf16.mxu1 %v600_v7  ;;  %1732 = vmatpush3.bf16.msra.mxu0 %v1811_v5 }
 0x10b   : > { %1726 = vmatmul.mubr.bf16.gmra.mrb[4].mxu1 %v601_v6 }
 0x1d6   : > { %v2042_v12 = vpop.f32.mrb[0].mxu1 }
 0x1d7   : > { %v2044_v13 = vpop.f32.mrb[1].mxu1  ;;  %v722_v14 = vsel %vm715_vm1, %v2042_v12, -inf }
 0x1d8   : > { %723 = vmax.xlane.f32.xlu1 %v722_v14  ;;  %v2048_v15 = vpop.f32.mrb[2].mxu1  ;;  %v716_v16 = vsel %vm715_vm1, %v2044_v13, -inf  ;;  %v1812_v14 = vld [vmem:[%s371_s12 + $0x10] sm:$0xff]  }
 0x1d9   : > { %717 = vmax.xlane.f32.xlu0 %v716_v16  ;;  %v2052_v17 = vpop.f32.mrb[3].mxu1  ;;  %v725_v18 = vsel %vm715_vm1, %v2048_v15, -inf  ;;  %1733 = vmatprep.subr.bf16.mxu0 %v1812_v14  ;;  %v1813_v16 = vld [vmem:[%s371_s12 + $0x18] sm:$0xff]  }
 0x1da   : > { %v719_v19 = vsel %vm715_vm1, %v2052_v17, -inf  ;;  %1734 = vmatpush3.bf16.msra.mxu0 %v1812_v14 }
 0x1db   : > { %1735 = vmatprep.subr.bf16.mxu0 %v1813_v16 }
 0x1dc   : > { %726 = vmax.xlane.f32.xlu1 %v725_v18 }
 0x1dd   : > { %720 = vmax.xlane.f32.xlu0 %v719_v19 }
 0x1de   : > { %v2058_v20 = vpop.f32.mrb[4].mxu1  ;;  %1736 = vmatpush3.bf16.msra.mxu0 %v1813_v16 }
 0x1df   : > { %v2060_v22 = vpop.f32.mrb[5].mxu1  ;;  %v734_v32 = vsel %vm715_vm1, %v2058_v20, -inf }
 0x1e0   : > { %v2062_v24 = vpop.f32.mrb[6].mxu1  ;;  %v728_v29 = vsel %vm715_vm1, %v2060_v22, -inf }
 0x1e1   : > { %729 = vmax.xlane.f32.xlu0 %v728_v29  ;;  %v2066_v30 = vpop.f32.mrb[7].mxu1  ;;  %v737_v33 = vsel %vm715_vm1, %v2062_v24, -inf }
 0x1e2   : > { %v731_v31 = vsel %vm715_vm1, %v2066_v30, -inf }
 0x1e3   : > { %732 = vmax.xlane.f32.xlu1 %v731_v31 }
 0x1e5   : > { %735 = vmax.xlane.f32.xlu0 %v734_v32 }
 0x1e7   : > { %738 = vmax.xlane.f32.xlu1 %v737_v33 }
 0x265   : > { %v724_v41 = vpop.xlane.xlu1 %723 }
 0x266   : > { %v2087_v42 = vmax.f32 %v2082_v37, %v724_v41  ;;  %v718_v43 = vpop.xlane.xlu0 %717 }
 0x267   : > { %v2090_v44 = vmax.f32 %v2084_v38, %v718_v43 }
 0x268   : > { %v750_v46 = vsub.f32 %v2082_v37, %v2087_v42  ;;  %1080 = vst.msk [vmem:[#allocation4 + $0x10] sm:$0xff] %vm392_vm0, %v2087_v42  ;;  %784 = vperm.xlu1 %1797, %v2087_v42  }
 0x269   : > { %v748_v48 = vsub.f32 %v2084_v38, %v2090_v44  ;;  %1078 = vst.msk [vmem:[#allocation4] sm:$0xff] %vm392_vm0, %v2090_v44  ;;  %v727_v49 = vpop.xlane.xlu1 %726  ;;  %774 = vperm.xlu0 %1796, %v2090_v44  }
 0x26a   : > { %v2107_v50 = vmax.f32 %v2092_v45, %v727_v49  ;;  %v721_v51 = vpop.xlane.xlu0 %720 }
 0x26b   : > { %v2110_v52 = vmax.f32 %v2099_v47, %v721_v51 }
 0x26c   : > { %v751_v53 = vsub.f32 %v2092_v45, %v2107_v50  ;;  %1081 = vst.msk [vmem:[#allocation4 + $0x18] sm:$0xff] %vm392_vm0, %v2107_v50  ;;  %789 = vperm.xlu1 %1797, %v2107_v50   ;;  %v1814_v50 = vld [vmem:[%s2278_s4 + $0x40] sm:$0xff]  }
 0x26d   : > { %v749_v55 = vsub.f32 %v2099_v47, %v2110_v52  ;;  %1079 = vst.msk [vmem:[#allocation4 + $0x8] sm:$0xff] %vm392_vm0, %v2110_v52  ;;  %1745 = vmatprep.subr.bf16.mxu1 %v1814_v50 }
 0x26e   : > { %v730_v56 = vpop.xlane.xlu0 %729  ;;  %1746 = vmatpush3.bf16.msra.mxu1 %v1814_v50 }
 0x26f   : > { %v2126_v58 = vmax.f32 %v2117_v54, %v730_v56 }
 0x270   : > { %779 = vperm.xlu1 %1797, %v2110_v52   ;;  %v733_v60 = vpop.xlane.xlu1 %732  ;;  %v1815_v52 = vld [vmem:[%s2278_s4 + $0x48] sm:$0xff]  }
 0x271   : > { %v752_v63 = vsub.f32 %v2117_v54, %v2126_v58  ;;  %1082 = vst.msk [vmem:[#allocation4 + $0x20] sm:$0xff] %vm392_vm0, %v2126_v58  ;;  %v2142_v0 = vmax.f32 %v2123_v57, %v733_v60  ;;  %1747 = vmatprep.subr.bf16.mxu1 %v1815_v52  ;;  %v1817_v54 = vld [vmem:[%s2278_s4 + $0x58] sm:$0xff]  }
 0x272   : > { %v736_v1 = vpop.xlane.xlu0 %735  ;;  %1748 = vmatpush3.bf16.msra.mxu1 %v1815_v52 }
 0x273   : > { %v753_v2 = vsub.f32 %v2123_v57, %v2142_v0  ;;  %1083 = vst.msk [vmem:[#allocation4 + $0x28] sm:$0xff] %vm392_vm0, %v2142_v0  ;;  %v2149_v3 = vmax.f32 %v2128_v59, %v736_v1  ;;  %v764_v47 = vmul.f32 1.442695, %v752_v63  ;;  %v839_v63 = vld [vmem:[#allocation5 + $0x18] sm:$0xff] }
 0x274   : > { %v739_v4 = vpop.xlane.xlu1 %738 }
 0x275   : > { %v754_v6 = vsub.f32 %v2128_v59, %v2149_v3  ;;  %1084 = vst.msk [vmem:[#allocation4 + $0x30] sm:$0xff] %vm392_vm0, %v2149_v3  ;;  %v2156_v7 = vmax.f32 %v2135_v61, %v739_v4  ;;  %804 = vperm.xlu1 %1797, %v2149_v3   ;;  %v766_v38 = vmul.f32 1.442695, %v753_v2 }
 0x277   : > { %v755_v9 = vsub.f32 %v2135_v61, %v2156_v7  ;;  %1085 = vst.msk [vmem:[#allocation4 + $0x38] sm:$0xff] %vm392_vm0, %v2156_v7  ;;  %v768_v2 = vmul.f32 1.442695, %v754_v6 }
 0x279   : > { %794 = vperm.xlu1 %1797, %v2126_v58  }
 0x27d   : > { %799 = vperm.xlu1 %1797, %v2142_v0  }
 0x281   : > { %809 = vperm.xlu1 %1797, %v2156_v7  }
 0x2e7   : > { %v785_v18 = vpop.permute.xlu1 %784 }
 0x2e8   : > { %v814_v19 = vsub.f32 %v2042_v12, %v785_v18  ;;  %v775_v29 = vpop.permute.xlu0 %774 }
 0x2e9   : > { %v812_v31 = vsub.f32 %v2044_v13, %v775_v29 }
 0x2ea   : > { %v824_v32 = vmul.f32 1.442695, %v814_v19 }
 0x2eb   : > { %v820_v33 = vmul.f32 1.442695, %v812_v31  ;;  %v790_v34 = vpop.permute.xlu1 %789 }
 0x2ec   : > { %v815_v36 = vsub.f32 %v2048_v15, %v790_v34 }
 0x2ed   : > { %1822 = vpow2.f32 %v820_v33 }
 0x2ee   : > { %v826_v41 = vmul.f32 1.442695, %v815_v36  ;;  %1824 = vpow2.f32 %v824_v32 }
 0x2ef   : > { %v780_v43 = vpop.permute.xlu1 %779 }
 0x2f0   : > { %1826 = vpow2.f32 %v826_v41  ;;  %v813_v49 = vsub.f32 %v2052_v17, %v780_v43 }
 0x2f2   : > { %v822_v51 = vmul.f32 1.442695, %v813_v49 }
 0x2f4   : > { %1828 = vpow2.f32 %v822_v51  ;;  %v805_v56 = vpop.permute.xlu1 %804 }
 0x2f5   : > { %v818_v12 = vsub.f32 %v2058_v20, %v805_v56 }
 0x2f7   : > { %v1823_v60 = vpop.eup %1822  ;;  %v832_v14 = vmul.f32 1.442695, %v818_v12 }
 0x2f8   : > { %v795_v62 = vpop.permute.xlu1 %794  ;;  %v852_v13 = vsel %vm715_vm1, %v1823_v60, 0.0  ;;  %v1825_v1 = vpop.eup %1824 }
 0x2f9   : > { %v816_v4 = vsub.f32 %v2060_v22, %v795_v62  ;;  %853 = vadd.xlane.f32.xlu1 %v852_v13  ;;  %v858_v36 = vsel %vm715_vm1, %v1825_v1, 0.0  ;;  %v758_v13 = vmul.f32 1.442695, %v749_v55  ;;  %v836_v55 = vld [vmem:[#allocation5] sm:$0xff] }
 0x2fa   : > { %v1827_v15 = vpop.eup %1826 }
 0x2fb   : > { %v950_v5 = vpack.c.bf16 %v1827_v15, %v1825_v1  ;;  %v828_v16 = vmul.f32 1.442695, %v816_v4  ;;  %v861_v18 = vsel %vm715_vm1, %v1827_v15, 0.0  ;;  %v756_v1 = vmul.f32 1.442695, %v748_v48 }
 0x2fc   : > { %v800_v17 = vpop.permute.xlu1 %799  ;;  %v760_v4 = vmul.f32 1.442695, %v750_v46  ;;  %v762_v15 = vmul.f32 1.442695, %v751_v53  ;;  %v1816_v53 = vld [vmem:[%s2278_s4 + $0x50] sm:$0xff]  }
 0x2fd   : > { %1830 = vpow2.f32 %v828_v16  ;;  %v817_v19 = vsub.f32 %v2066_v30, %v800_v17  ;;  %862 = vadd.xlane.f32.xlu1 %v861_v18  ;;  %1749 = vmatprep.subr.bf16.mxu1 %v1816_v53  ;;  %v770_v17 = vmul.f32 1.442695, %v755_v9  ;;  %v842_v9 = vld [vmem:[#allocation5 + $0x30] sm:$0xff] }
 0x2fe   : > { %v1829_v29 = vpop.eup %1828  ;;  %1832 = vpow2.f32 %v832_v14  ;;  %1750 = vmatpush3.bf16.msra.mxu1 %v1816_v53  ;;  %v837_v14 = vld [vmem:[#allocation5 + $0x8] sm:$0xff] }
 0x2ff   : > { %v830_v20 = vmul.f32 1.442695, %v817_v19  ;;  %v855_v31 = vsel %vm715_vm1, %v1829_v29, 0.0  ;;  %v949_v32 = vpack.c.bf16 %v1829_v29, %v1823_v60  ;;  %1751 = vmatprep.subr.bf16.mxu1 %v1817_v54 }
 0x300   : > { %856 = vadd.xlane.f32.xlu0 %v855_v31  ;;  %v810_v22 = vpop.permute.xlu1 %809 }
 0x301   : > { %1834 = vpow2.f32 %v830_v20  ;;  %v819_v33 = vsub.f32 %v2062_v24, %v810_v22  ;;  %1737 = vmatprep.mubr.msk.bf16.mxu0 %vm715_vm1, %v949_v32  ;;  %v838_v20 = vld [vmem:[#allocation5 + $0x10] sm:$0xff]  ;;  %v840_v32 = vld [vmem:[#allocation5 + $0x20] sm:$0xff] }
 0x302   : > { %1738 = vmatmul.mubr.msk.bf16.vlgmr.msra.gmra.mrb[8].mxu0 %vm715_vm1, %v950_v5  ;;  %1752 = vmatpush3.bf16.msra.mxu1 %v1817_v54  ;;  %v1821_v54 = vld [vmem:[%s2278_s4 + $0x78] sm:$0xff]  }
 0x303   : > { %v834_v34 = vmul.f32 1.442695, %v819_v33 }
 0x304   : > { %859 = vadd.xlane.f32.xlu0 %v858_v36 }
 0x305   : > { %1836 = vpow2.f32 %v834_v34  ;;  %v841_v34 = vld [vmem:[#allocation5 + $0x28] sm:$0xff] }
 0x306   : > { %1838 = vpow2.f32 %v758_v13 }
 0x307   : > { %v1831_v30 = vpop.eup %1830  ;;  %1840 = vpow2.f32 %v756_v1 }
 0x308   : > { %v864_v41 = vsel %vm715_vm1, %v1831_v30, 0.0  ;;  %v1833_v43 = vpop.eup %1832  ;;  %1842 = vpow2.f32 %v760_v4 }
 0x309   : > { %865 = vadd.xlane.f32.xlu0 %v864_v41  ;;  %v870_v51 = vsel %vm715_vm1, %v1833_v43, 0.0  ;;  %1844 = vpow2.f32 %v762_v15 }
 0x30a   : > { %1846 = vpow2.f32 %v764_v47 }
 0x30b   : > { %v1835_v49 = vpop.eup %1834  ;;  %1848 = vpow2.f32 %v766_v38  ;;  %v1818_v38 = vld [vmem:[%s2278_s4 + $0x60] sm:$0xff]  }
 0x30c   : > { %v867_v56 = vsel %vm715_vm1, %v1835_v49, 0.0  ;;  %v951_v24 = vpack.c.bf16 %v1835_v49, %v1831_v30  ;;  %1850 = vpow2.f32 %v768_v2  ;;  %1753 = vmatprep.subr.bf16.mxu1 %v1818_v38 }
 0x30d   : > { %871 = vadd.xlane.f32.xlu0 %v870_v51  ;;  %868 = vadd.xlane.f32.xlu1 %v867_v56  ;;  %1852 = vpow2.f32 %v770_v17 }
 0x30e   : > { %1741 = vmatprep.mubr.msk.bf16.mxu0 %vm715_vm1, %v951_v24  ;;  %v843_v24 = vld [vmem:[#allocation5 + $0x38] sm:$0xff]  ;;  %1754 = vmatpush3.bf16.msra.mxu1 %v1818_v38 }
 0x30f   : > { %v1837_v60 = vpop.eup %1836 }
 0x310   : > { %v873_v12 = vsel %vm715_vm1, %v1837_v60, 0.0  ;;  %v952_v62 = vpack.c.bf16 %v1837_v60, %v1833_v43  ;;  %v1839_v37 = vpop.eup %1838 }
 0x311   : > { %874 = vadd.xlane.f32.xlu1 %v873_v12  ;;  %v1841_v42 = vpop.eup %1840  ;;  %v845_v19 = vmul.f32 %v1839_v37, %v837_v14 }
 0x312   : > { %1742 = vmatmul.mubr.msk.bf16.gmra.mrb[12].mxu0 %vm715_vm1, %v952_v62  ;;  %v1843_v44 = vpop.eup %1842  ;;  %v844_v57 = vmul.f32 %v1841_v42, %v836_v55 }
 0x313   : > { %v1845_v46 = vpop.eup %1844  ;;  %v846_v59 = vmul.f32 %v1843_v44, %v838_v20 }
 0x314   : > { %v1847_v45 = vpop.eup %1846  ;;  %v847_v5 = vmul.f32 %v1845_v46, %v839_v63 }
 0x315   : > { %v1849_v48 = vpop.eup %1848  ;;  %v848_v33 = vmul.f32 %v1847_v45, %v840_v32 }
 0x316   : > { %v1851_v61 = vpop.eup %1850  ;;  %v849_v43 = vmul.f32 %v1849_v48, %v841_v34 }
 0x317   : > { %v850_v41 = vmul.f32 %v1851_v61, %v842_v9  ;;  %v1853_v49 = vpop.eup %1852 }
 0x318   : > { %v851_v13 = vmul.f32 %v1853_v49, %v843_v24 }
 0x322   : > { %908 = vperm.xlu1 %1797, %v1839_v37  }
 0x323   : > { %903 = vperm.xlu0 %1796, %v1841_v42   ;;  %v1819_v42 = vld [vmem:[%s2278_s4 + $0x68] sm:$0xff]  }
 0x324   : > { %1755 = vmatprep.subr.bf16.mxu1 %v1819_v42 }
 0x325   : > { %1756 = vmatpush3.bf16.msra.mxu1 %v1819_v42 }
 0x326   : > { %913 = vperm.xlu1 %1797, %v1843_v44  }
 0x327   : > { %918 = vperm.xlu0 %1796, %v1845_v46  }
 0x32a   : > { %923 = vperm.xlu1 %1797, %v1847_v45  }
 0x32b   : > { %928 = vperm.xlu0 %1796, %v1849_v48   ;;  %v1820_v48 = vld [vmem:[%s2278_s4 + $0x70] sm:$0xff]  }
 0x32c   : > { %1757 = vmatprep.subr.bf16.mxu1 %v1820_v48 }
 0x32d   : > { %1758 = vmatpush3.bf16.msra.mxu1 %v1820_v48 }
 0x32e   : > { %1759 = vmatprep.subr.bf16.mxu1 %v1821_v54 }
 0x331   : > { %1760 = vmatpush3.bf16.msra.mxu1 %v1821_v54 }
 0x386   : > { %v854_v58 = vpop.xlane.xlu1 %853 }
 0x387   : > { %v876_v0 = vadd.f32 %v854_v58, %v844_v57 }
 0x389   : > { %885 = vst.msk [vmem:[#allocation5] sm:$0xff] %vm392_vm0, %v876_v0 }
 0x38a   : > { %v863_v16 = vpop.xlane.xlu1 %862 }
 0x38b   : > { %v879_v18 = vadd.f32 %v863_v16, %v847_v5 }
 0x38d   : > { %888 = vst.msk [vmem:[#allocation5 + $0x18] sm:$0xff] %vm392_vm0, %v879_v18  ;;  %v857_v29 = vpop.xlane.xlu0 %856 }
 0x38e   : > { %v877_v31 = vadd.f32 %v857_v29, %v845_v19 }
 0x390   : > { %886 = vst.msk [vmem:[#allocation5 + $0x8] sm:$0xff] %vm392_vm0, %v877_v31  ;;  %v1097_v1 = vld [vmem:[#allocation5] sm:$0xff] }
 0x391   : > { %v860_v3 = vpop.xlane.xlu0 %859 }
 0x392   : > { %v878_v6 = vadd.f32 %v860_v3, %v846_v59 }
 0x394   : > { %887 = vst.msk [vmem:[#allocation5 + $0x10] sm:$0xff] %vm392_vm0, %v878_v6  ;;  %v1100_v22 = vld [vmem:[#allocation5 + $0x18] sm:$0xff] }
 0x395   : > { %1854 = vrcp.f32 %v1100_v22 }
 0x396   : > { %v866_v7 = vpop.xlane.xlu0 %865 }
 0x397   : > { %v880_v36 = vadd.f32 %v866_v7, %v848_v33  ;;  %v1098_v30 = vld [vmem:[#allocation5 + $0x8] sm:$0xff] }
 0x398   : > { %1856 = vrcp.f32 %v1098_v30 }
 0x399   : > { %889 = vst.msk [vmem:[#allocation5 + $0x20] sm:$0xff] %vm392_vm0, %v880_v36 }
 0x39a   : > { %v872_v51 = vpop.xlane.xlu0 %871  ;;  %v869_v56 = vpop.xlane.xlu1 %868 }
 0x39b   : > { %v882_v60 = vadd.f32 %v872_v51, %v850_v41  ;;  %v881_v12 = vadd.f32 %v869_v56, %v849_v43  ;;  %v1099_v62 = vld [vmem:[#allocation5 + $0x10] sm:$0xff] }
 0x39c   : > { %1858 = vrcp.f32 %v1099_v62 }
 0x39d   : > { %891 = vst.msk [vmem:[#allocation5 + $0x30] sm:$0xff] %vm392_vm0, %v882_v60  ;;  %890 = vst.msk [vmem:[#allocation5 + $0x28] sm:$0xff] %vm392_vm0, %v881_v12  ;;  %1860 = vrcp.f32 %v1097_v1 }
 0x39e   : > { %v875_v4 = vpop.xlane.xlu1 %874 }
 0x39f   : > { %v1855_v15 = vpop.eup %1854  ;;  %v883_v47 = vadd.f32 %v875_v4, %v851_v13 }
 0x3a0   : > { %1130 = vperm.xlu0 %1796, %v1855_v15   ;;  %v1101_v46 = vld [vmem:[#allocation5 + $0x20] sm:$0xff] }
 0x3a1   : > { %892 = vst.msk [vmem:[#allocation5 + $0x38] sm:$0xff] %vm392_vm0, %v883_v47 }
 0x3a2   : > { %v1857_v37 = vpop.eup %1856  ;;  %v904_v29 = vpop.permute.xlu0 %903 }
 0x3a3   : > { %v909_v31 = vpop.permute.xlu1 %908  ;;  %v941_v36 = vmul.f32 0.0, %v904_v29 }
 0x3a4   : > { %1120 = vperm.xlu0 %1796, %v1857_v37   ;;  %v1102_v44 = vld [vmem:[#allocation5 + $0x28] sm:$0xff]  ;;  %v1103_v52 = vld [vmem:[#allocation5 + $0x30] sm:$0xff]  ;;  %v942_v30 = vmul.f32 0.0, %v909_v31 }
 0x3a5   : > { %1862 = vrcp.f32 %v1102_v44 }
 0x3a6   : > { %v1859_v45 = vpop.eup %1858  ;;  %1864 = vrcp.f32 %v1101_v46  ;;  %v919_v20 = vpop.permute.xlu0 %918 }
 0x3a7   : > { %1125 = vperm.xlu1 %1797, %v1859_v45   ;;  %v1861_v53 = vpop.eup %1860  ;;  %v914_v3 = vpop.permute.xlu1 %913  ;;  %v944_v22 = vmul.f32 0.0, %v919_v20 }
 0x3a8   : > { %938 = vperm.xlu0 %1796, %v1853_v49   ;;  %v1104_v50 = vld [vmem:[#allocation5 + $0x38] sm:$0xff]  ;;  %v943_v33 = vmul.f32 0.0, %v914_v3 }
 0x3a9   : > { %1866 = vrcp.f32 %v1104_v50 }
 0x3aa   : > { %1868 = vrcp.f32 %v1103_v52  ;;  %v929_v59 = vpop.permute.xlu0 %928 }
 0x3ab   : > { %1115 = vperm.xlu1 %1797, %v1861_v53   ;;  %v924_v32 = vpop.permute.xlu1 %923  ;;  %v946_v4 = vmul.f32 0.0, %v929_v59 }
 0x3ac   : > { %v945_v15 = vmul.f32 0.0, %v924_v32 }
 0x3af   : > { %v1863_v55 = vpop.eup %1862  ;;  %933 = vperm.xlu1 %1797, %v1851_v61  }
 0x3b0   : > { %1140 = vperm.xlu0 %1796, %v1863_v55   ;;  %v1865_v57 = vpop.eup %1864 }
 0x3b3   : > { %v1867_v58 = vpop.eup %1866  ;;  %1135 = vperm.xlu1 %1797, %v1865_v57  }
 0x3b4   : > { %1150 = vperm.xlu0 %1796, %v1867_v58   ;;  %v1869_v63 = vpop.eup %1868 }
 0x3b7   : > { %1145 = vperm.xlu1 %1797, %v1869_v63  }
 0x3d5   : > { %v1739_v0 = vpop.f32.mrb[8].mxu0 }
 0x3d6   : > { %v1031_v2 = vpop.f32.mrb[9].mxu0  ;;  %v1064_v61 = vadd.f32 %v1739_v0, %v943_v33  ;;  %v1557_v0 = vld [vmem:[%s2279_s5 + $0x1] ss:$0 sm:$0xff] }
 0x3d7   : > { %v1740_v5 = vpop.f32.mrb[10].mxu0  ;;  %v1062_v49 = vadd.f32 %v1031_v2, %v941_v36 }
 0x3d8   : > { %v1034_v14 = vpop.f32.mrb[11].mxu0  ;;  %v1065_v7 = vadd.f32 %v1740_v5, %v944_v22 }
 0x3d9   : > { %v1063_v51 = vadd.f32 %v1034_v14, %v942_v30 }
 0x3e5   : > { %v1743_v16 = vpop.f32.mrb[12].mxu0 }
 0x3e6   : > { %v1047_v18 = vpop.f32.mrb[13].mxu0 }
 0x3e7   : > { %v1744_v17 = vpop.f32.mrb[14].mxu0  ;;  %v1066_v38 = vadd.f32 %v1047_v18, %v945_v15 }
 0x3e8   : > { %v1050_v19 = vpop.f32.mrb[15].mxu0 }
 0x3e9   : > { %v1067_v37 = vadd.f32 %v1050_v19, %v946_v4 }
 0x41f   : > { %v1131_v6 = vpop.permute.xlu0 %1130 }
 0x420   : > { %v1156_v41 = vmul.f32 %v1131_v6, %v1065_v7 }
 0x423   : > { %v1121_v9 = vpop.permute.xlu0 %1120 }
 0x424   : > { %v1154_v60 = vmul.f32 %v1121_v9, %v1063_v51 }
 0x426   : > { %v1126_v34 = vpop.permute.xlu1 %1125 }
 0x427   : > { %v1155_v43 = vmul.f32 %v1126_v34, %v1064_v61  ;;  %v939_v12 = vpop.permute.xlu0 %938 }
 0x428   : > { %v948_v42 = vmul.f32 0.0, %v939_v12 }
 0x429   : > { %v1162_v56 = vpack.c.bf16 %v1156_v41, %v1155_v43 }
 0x42a   : > { %v1116_v24 = vpop.permute.xlu1 %1115  ;;  %v1069_v53 = vadd.f32 %v1744_v17, %v948_v42 }
 0x42b   : > { %v1153_v62 = vmul.f32 %v1116_v24, %v1062_v49 }
 0x42d   : > { %v1161_v13 = vpack.c.bf16 %v1154_v60, %v1153_v62 }
 0x42e   : > { %v934_v1 = vpop.permute.xlu1 %933 }
 0x42f   : > { %v1141_v47 = vpop.permute.xlu0 %1140  ;;  %1761 = vmatprep.mubr.bf16.mxu1 %v1161_v13  ;;  %v947_v44 = vmul.f32 0.0, %v934_v1 }
 0x430   : > { %1762 = vmatmul.mubr.bf16.vlgmr.msra.gmra.mrb[8].mxu1 %v1162_v56  ;;  %v1158_v45 = vmul.f32 %v1141_v47, %v1067_v37 }
 0x431   : > { %v1068_v54 = vadd.f32 %v1743_v16, %v947_v44 }
 0x432   : > { %v1136_v46 = vpop.permute.xlu1 %1135 }
 0x433   : > { %v1157_v48 = vmul.f32 %v1136_v46, %v1066_v38  ;;  %v1151_v50 = vpop.permute.xlu0 %1150 }
 0x434   : > { %v1160_v57 = vmul.f32 %v1151_v50, %v1069_v53 }
 0x435   : > { %v1163_v52 = vpack.c.bf16 %v1158_v45, %v1157_v48 }
 0x436   : > { %v1146_v55 = vpop.permute.xlu1 %1145 }
 0x437   : > { %v1159_v58 = vmul.f32 %v1146_v55, %v1068_v54  ;;  %1765 = vmatprep.mubr.bf16.mxu1 %v1163_v52 }
 0x439   : > { %v1164_v63 = vpack.c.bf16 %v1160_v57, %v1159_v58 }
 0x43b   : > { %1766 = vmatmul.mubr.bf16.gmra.mrb[12].mxu1 %v1164_v63 }
 0x503   : > { %v1763_v2 = vpop.f32.mrb[8].mxu1 }
 0x504   : > { %v1281_v5 = vadd.f32 %v1763_v2, %v1557_v0  ;;  %v1272_v14 = vpop.f32.mrb[9].mxu1 }
 0x505   : > { %v1273_v18 = vadd.f32 %v1557_v0, %v1272_v14  ;;  %v1764_v19 = vpop.f32.mrb[10].mxu1 }
 0x506   : > { %v1284_v29 = vadd.f32 %v1764_v19, %v1557_v0  ;;  %v1275_v20 = vpop.f32.mrb[11].mxu1  ;;  %v1321_v16 = vadd.f32 %v1594_v25, %v1281_v5 }
 0x507   : > { %v1276_v17 = vadd.f32 %v1557_v0, %v1275_v20  ;;  %v1319_v59 = vadd.f32 %v1590_v10, %v1273_v18 }
 0x508   : > { %v1322_v31 = vadd.f32 %v1595_v26, %v1284_v29 }
 0x509   : > { %v1320_v3 = vadd.f32 %v1591_v11, %v1276_v17 }
 0x50a   : > { %v1628_v6 = vpack.c.bf16 %v1322_v31, %v1321_v16 }
 0x50b   : > { %v1623_v32 = vpack.c.bf16 %v1320_v3, %v1319_v59 }
 0x50c   : > { %1646 = vst [vmem:[%s385_s13 + $0x8] sm:$0xff] %v1628_v6  }
 0x50d   : > { %1624 = vst [vmem:[%s385_s13] sm:$0xff] %v1623_v32  }
 0x50e   : > { %v1767_v22 = vpop.f32.mrb[12].mxu1 }
 0x50f   : > { %v1297_v33 = vadd.f32 %v1767_v22, %v1557_v0  ;;  %v1288_v25 = vpop.f32.mrb[13].mxu1 }
 0x510   : > { %v1289_v61 = vadd.f32 %v1557_v0, %v1288_v25  ;;  %v1768_v21 = vpop.f32.mrb[14].mxu1 }
 0x511   : > { %v1300_v26 = vadd.f32 %v1768_v21, %v1557_v0  ;;  %v1291_v7 = vpop.f32.mrb[15].mxu1  ;;  %v1325_v10 = vadd.f32 %v1602_v39, %v1297_v33 }
 0x512   : > { %v1292_v9 = vadd.f32 %v1557_v0, %v1291_v7  ;;  %v1323_v8 = vadd.f32 %v1598_v27, %v1289_v61 }
 0x513   : > { %v1326_v34 = vadd.f32 %v1603_v40, %v1300_v26 }
 0x514   : > { %v1324_v11 = vadd.f32 %v1599_v28, %v1292_v9 }
 0x515   : > { %v1638_v36 = vpack.c.bf16 %v1326_v34, %v1325_v10 }
 0x516   : > { %v1633_v30 = vpack.c.bf16 %v1324_v11, %v1323_v8 }
 0x517   : > { %1648 = vst [vmem:[%s385_s13 + $0x18] sm:$0xff] %v1638_v36  }
 0x518   : > { %1647 = vst [vmem:[%s385_s13 + $0x10] sm:$0xff] %v1633_v30  }
 0x519 PF: > { %s16_s23 = sadd.s32 1, %s1892_s23   ;;  %s2281_s21 = smov %s1888_s22 }
 0x51a   : > { %p13_p5 = scmp.ge.s32.totalorder %s16_s23, 4   ;;  %s2282_s22 = smov %s2284_s24 }
 0x51c   :  { %15 = sbr.rel (!%p13_p5) target bundleno = 2 (0x2), region = 93 }

// kernel: transform_forward.6
= control target key start
LH: loop header
LB: loop body
LE: loop exit
PB: predicated region body
PF: predicated region fallthrough
CT: control target
= control target key end

     0   :  { %s2928_s21 = smov 0   ;;  %s2930_s22 = smov 0   ;;  %s3649_s0 = inlined_call_operand.vmem [shape: bf16[2,256,128], index: 0, kind: input, shape index: {}]   ;;  %s3650_s1 = inlined_call_operand.vmem [shape: bf16[2,288,128], index: 1, kind: input, shape index: {}]   ;;  %s3651_s2 = inlined_call_operand.vmem [shape: bf16[2,288,128], index: 2, kind: input, shape index: {}]   ;;  %s3652_s3 = inlined_call_operand.vmem [shape: f32[2,2,128], index: 3, kind: input, shape index: {}]   ;;  %s3653_s4 = inlined_call_operand.vmem [shape: bf16[2,128,128], index: 4, kind: input, shape index: {}]   ;;  %s3654_s5 = inlined_call_operand.vmem [shape: f32[2,1,128], index: 5, kind: input, shape index: {}]   ;;  %s3655_s6 = inlined_call_operand.vmem [shape: bf16[2,256,128], index: 6, kind: output, shape index: {}]  }
   0x1   :  { %3656 = sst [smem:[#allocation8_spill]] %s3649_s0  ;;  %s2932_s23 = smov 0  }
   0x2   :  { %s2934_s24 = smov 0   ;;  %s2936_s25 = smov 0  }
   0x3   :  { %s2938_s26 = smov 0   ;;  %s2940_s27 = smov 0  }
   0x4 LB: > { %s28_s28 = sadd.s32 1, %s2875_s24  ;;  %s31_s29 = sadd.s32 1, %s2879_s25  ;;  %s2887_s27 = sphi %s2940_s27, %s16_s27   ;;  %s2883_s26 = sphi %s2938_s26, %s3667_s26   ;;  %s2879_s25 = sphi %s2936_s25, %s3666_s25   ;;  %s2875_s24 = sphi %s2934_s24, %s3665_s24   ;;  %s2871_s23 = sphi %s2932_s23, %s3664_s23   ;;  %s2867_s22 = sphi %s2930_s22, %s3663_s22   ;;  %s2863_s21 = sphi %s2928_s21, %s3662_s21  }
   0x5   : > { %p29_p0 = scmp.ge.s32.totalorder %s28_s28, 3  ;;  %p2206_p1 = scmp.ge.s32.totalorder %s2887_s27, 1 }
   0x6   : > { %p283_p2 = scmp.lt.s32.totalorder %s2887_s27, 13  ;;  %s35_s30 = sadd.s32 1, %s2883_s26 }
   0x7   : > { %s3669_s28 = smov (%p29_p0, %s28_s28), 0  ;;  %s3671_s29 = smov (!%p29_p0, %s31_s29), %s2879_s25 }
   0x8   : > { %p284_p3 = pnand %p2206_p1, %p283_p2  ;;  %p33_p4 = scmp.ge.s32.totalorder %s3671_s29, 2 }
   0x9   : > { %s2207_s7 = sshll.u32 (!%p284_p3), %s2867_s22, 4  ;;  %p344_p6 = scmp.lt.s32.totalorder (!%p284_p3), %s2871_s23, 1 }
   0xa   : > { %s3673_s29 = smov (%p33_p4, %s3671_s29), 0  ;;  %s3675_s30 = smov (!%p33_p4, %s35_s30), %s2883_s26 }
   0xb   : > { %3657 = sst [smem:[#allocation6_spill]] %s3673_s29  ;;  %p37_p5 = scmp.ge.s32.totalorder %s3675_s30, 2 }
   0xc   : > { %287 = sbr.rel (%p284_p3) target bundleno = 1450 (0x5aa), region = 44  ;;  %p346_p7 = scmp.lt.s32.totalorder (!%p284_p3), %s2207_s7, 31 }
   0xd   : > { %s3677_s30 = smov (%p37_p5, %s3675_s30), 0  ;;  %s353_s8 = smul.u32 (!%p284_p3), 12, %s2863_s21 }
   0xe   : > { %3658 = sst [smem:[#allocation7_spill]] %s3677_s30  ;;  %s3659_s0 = sld [smem:[#allocation8_spill]] (!%p284_p3) }
   0xf   : > { %p356_p8 = scmp.lt.s32.totalorder (!%p284_p3), %s353_s8, 35  ;;  %p2216_p9 = scmp.ne.s32.totalorder (!%p284_p3), %s2863_s21, 0 }
  0x13   : > { %s3679_s23 = smov (!%p344_p6, %s2871_s23), 1  ;;  %s3681_s7 = smov (!%p346_p7, %s2207_s7), 31 }
  0x14   : > { %s2208_s9 = sshll.u32 %s3679_s23, 5  ;;  %s2644_s11 = smul.u32 36, %s3679_s23  ;;  %vm392_vm0 = vcmask (!%p2216_p9), 7168   ;;  %v2705_v0 = vld [vmem:[%s3653_s4] sm:$0xff] (!%p2216_p9)   ;;  %v474_v1 = vlaneseq (!%p2216_p9)  ;;  %v2889_v2 = vmov (!%p2216_p9), -inf   ;;  %v2890_v3 = vmov (!%p2216_p9), 0.0  }
  0x15   : > { %s349_s10 = sadd.s32 %s2208_s9, %s3681_s7  ;;  %s2212_s13 = sshll.u32 %s3679_s23, 1  ;;  %393 = vst.msk [vmem:[#allocation4] sm:$0xff] (!%p2216_p9), %vm392_vm0, %v2889_v2  ;;  %394 = vst.msk [vmem:[#allocation4 + $0x8] sm:$0xff] (!%p2216_p9), %vm392_vm0, %v2889_v2  ;;  %2492 = vmatprep.subr.bf16.mxu0 (!%p2216_p9), %v2705_v0  ;;  %2612 = vmatprep.subr.bf16.mxu1 (!%p2216_p9), %v2705_v0  ;;  %v2706_v4 = vld [vmem:[%s3653_s4 + $0x8] sm:$0xff] (!%p2216_p9)   ;;  %v2707_v6 = vld [vmem:[%s3653_s4 + $0x10] sm:$0xff] (!%p2216_p9)  }
  0x16   : > { %s2209_s12 = sshll.u32 %s349_s10, 2  ;;  %s2981_s19 = scalar_lea.vmem %s3652_s3, %s2212_s13  ;;  %395 = vst.msk [vmem:[#allocation4 + $0x10] sm:$0xff] (!%p2216_p9), %vm392_vm0, %v2889_v2  ;;  %396 = vst.msk [vmem:[#allocation4 + $0x18] sm:$0xff] (!%p2216_p9), %vm392_vm0, %v2889_v2  ;;  %v475_v5 = vshrl.u32 (!%p2216_p9), %v474_v1, 7  ;;  %2493 = vmatpush3.bf16.msra.mxu0 (!%p2216_p9), %v2705_v0  ;;  %2620 = vmatpush3.bf16.msra.mxu1 (!%p2216_p9), %v2705_v0  ;;  %v2708_v9 = vld [vmem:[%s3653_s4 + $0x18] sm:$0xff] (!%p2216_p9)   ;;  %v2709_v21 = vld [vmem:[%s3653_s4 + $0x20] sm:$0xff] (!%p2216_p9)  }
  0x17   : > { %s2976_s16 = scalar_lea.vmem %s3659_s0, %s2209_s12  ;;  %s3683_s8 = smov (!%p356_p8, %s353_s8), 35  ;;  %397 = vst.msk [vmem:[#allocation4 + $0x20] sm:$0xff] (!%p2216_p9), %vm392_vm0, %v2889_v2  ;;  %398 = vst.msk [vmem:[#allocation4 + $0x28] sm:$0xff] (!%p2216_p9), %vm392_vm0, %v2889_v2  ;;  %2494 = vmatprep.subr.bf16.mxu0 (!%p2216_p9), %v2706_v4  ;;  %2613 = vmatprep.subr.bf16.mxu1 (!%p2216_p9), %v2706_v4  ;;  %v473_v11 = vld [vmem:[%s2981_s19] sm:$0x3] (!%p2216_p9)  ;;  %v2710_v32 = vld [vmem:[%s3653_s4 + $0x28] sm:$0xff] (!%p2216_p9)  }
  0x18   : > { %s2986_s30 = scalar_lea.vmem %s3655_s6, %s2209_s12  ;;  %s359_s7 = sadd.s32 %s2644_s11, %s3683_s8  ;;  %399 = vst.msk [vmem:[#allocation4 + $0x30] sm:$0xff] (!%p2216_p9), %vm392_vm0, %v2889_v2  ;;  %400 = vst.msk [vmem:[#allocation4 + $0x38] sm:$0xff] (!%p2216_p9), %vm392_vm0, %v2889_v2  ;;  %v476_v7 = vsub.s32 (!%p2216_p9), 0, %v475_v5  ;;  %v496_v8 = vsub.s32 (!%p2216_p9), 1, %v475_v5  ;;  %v2308_v10 = vld [vmem:[%s2976_s16] sm:$0xff] (!%p2216_p9)   ;;  %v2411_v26 = vld [vmem:[%s2976_s16 + $0x8] sm:$0xff] (!%p2216_p9)  }
  0x19   : > { %s2210_s9 = sshll.u32 %s359_s7, 2  ;;  %391 = sbr.rel (%p2216_p9) target bundleno = 281 (0x119), region = 48  ;;  %401 = vst.msk [vmem:[#allocation4 + $0x40] sm:$0xff] (!%p2216_p9), %vm392_vm0, %v2889_v2  ;;  %402 = vst.msk [vmem:[#allocation4 + $0x48] sm:$0xff] (!%p2216_p9), %vm392_vm0, %v2889_v2  ;;  %v2309_v12 = vunpack.c.l.bf16 (!%p2216_p9), %v2308_v10  ;;  %v2310_v13 = vunpack.c.h.bf16 (!%p2216_p9), %v2308_v10  ;;  %v2414_v16 = vld [vmem:[%s2976_s16 + $0x20] sm:$0xff] (!%p2216_p9)   ;;  %v2415_v29 = vld [vmem:[%s2976_s16 + $0x28] sm:$0xff] (!%p2216_p9)   ;;  %v2313_v34 = vunpack.c.l.bf16 (!%p2216_p9), %v2411_v26  ;;  %v2314_v36 = vunpack.c.h.bf16 (!%p2216_p9), %v2411_v26 }
  0x1a   : > { %s2991_s29 = scalar_lea.vmem %s3650_s1, %s2210_s9  ;;  %s2996_s0 = scalar_lea.vmem %s3651_s2, %s2210_s9  ;;  %403 = vst.msk [vmem:[#allocation4 + $0x50] sm:$0xff] (!%p2216_p9), %vm392_vm0, %v2889_v2  ;;  %404 = vst.msk [vmem:[#allocation4 + $0x58] sm:$0xff] (!%p2216_p9), %vm392_vm0, %v2889_v2  ;;  %2495 = vmatpush3.bf16.msra.mxu0 (!%p2216_p9), %v2706_v4  ;;  %2621 = vmatpush3.bf16.msra.mxu1 (!%p2216_p9), %v2706_v4  ;;  %v3045_v14 = vrot.slane (!%p2216_p9), %v473_v11, %v476_v7  ;;  %v3047_v15 = vrot.slane (!%p2216_p9), %v473_v11, %v496_v8  ;;  %v2325_v17 = vunpack.c.l.bf16 (!%p2216_p9), %v2414_v16  ;;  %v2412_v31 = vld [vmem:[%s2976_s16 + $0x10] sm:$0xff] (!%p2216_p9)   ;;  %v2413_v49 = vld [vmem:[%s2976_s16 + $0x18] sm:$0xff] (!%p2216_p9)  }
  0x1b   : > { %405 = vst.msk [vmem:[#allocation4 + $0x60] sm:$0xff] (!%p2216_p9), %vm392_vm0, %v2889_v2  ;;  %406 = vst.msk [vmem:[#allocation4 + $0x68] sm:$0xff] (!%p2216_p9), %vm392_vm0, %v2889_v2  ;;  %2496 = vmatprep.subr.bf16.mxu0 (!%p2216_p9), %v2707_v6  ;;  %2614 = vmatprep.subr.bf16.mxu1 (!%p2216_p9), %v2707_v6  ;;  %v2326_v18 = vunpack.c.h.bf16 (!%p2216_p9), %v2414_v16  ;;  %v2416_v35 = vld [vmem:[%s2976_s16 + $0x30] sm:$0xff] (!%p2216_p9)   ;;  %v2329_v37 = vunpack.c.l.bf16 (!%p2216_p9), %v2415_v29  ;;  %v2330_v38 = vunpack.c.h.bf16 (!%p2216_p9), %v2415_v29  ;;  %v2317_v39 = vunpack.c.l.bf16 (!%p2216_p9), %v2412_v31  ;;  %v2417_v53 = vld [vmem:[%s2976_s16 + $0x38] sm:$0xff] (!%p2216_p9)  }
  0x1c   : > { %407 = vst.msk [vmem:[#allocation4 + $0x70] sm:$0xff] (!%p2216_p9), %vm392_vm0, %v2889_v2  ;;  %408 = vst.msk [vmem:[#allocation4 + $0x78] sm:$0xff] (!%p2216_p9), %vm392_vm0, %v2889_v2  ;;  %v478_v19 = vsub.f32 (!%p2216_p9), %v2309_v12, %v3045_v14  ;;  %v479_v20 = vsub.f32 (!%p2216_p9), %v2310_v13, %v3045_v14  ;;  %v486_v22 = vsub.f32 (!%p2216_p9), %v2325_v17, %v3045_v14  ;;  %v2318_v40 = vunpack.c.h.bf16 (!%p2216_p9), %v2412_v31  ;;  %v2711_v43 = vld [vmem:[%s3653_s4 + $0x30] sm:$0xff] (!%p2216_p9)   ;;  %v2712_v54 = vld [vmem:[%s3653_s4 + $0x38] sm:$0xff] (!%p2216_p9)  }
  0x1d   : > { %409 = vst.msk [vmem:[#allocation5] sm:$0xff] (!%p2216_p9), %vm392_vm0, %v2890_v3  ;;  %410 = vst.msk [vmem:[#allocation5 + $0x8] sm:$0xff] (!%p2216_p9), %vm392_vm0, %v2890_v3  ;;  %v487_v23 = vsub.f32 (!%p2216_p9), %v2326_v18, %v3045_v14  ;;  %v2333_v41 = vunpack.c.l.bf16 (!%p2216_p9), %v2416_v35  ;;  %v2334_v42 = vunpack.c.h.bf16 (!%p2216_p9), %v2416_v35  ;;  %v480_v44 = vsub.f32 (!%p2216_p9), %v2313_v34, %v3045_v14 }
  0x1e   : > { %411 = vst.msk [vmem:[#allocation5 + $0x10] sm:$0xff] (!%p2216_p9), %vm392_vm0, %v2890_v3  ;;  %412 = vst.msk [vmem:[#allocation5 + $0x18] sm:$0xff] (!%p2216_p9), %vm392_vm0, %v2890_v3  ;;  %2497 = vmatpush3.bf16.msra.mxu0 (!%p2216_p9), %v2707_v6  ;;  %2622 = vmatpush3.bf16.msra.mxu1 (!%p2216_p9), %v2707_v6  ;;  %v498_v24 = vmul.f32 (!%p2216_p9), %v3047_v15, %v478_v19  ;;  %v499_v25 = vmul.f32 (!%p2216_p9), %v3047_v15, %v479_v20  ;;  %v2321_v59 = vunpack.c.l.bf16 (!%p2216_p9), %v2413_v49  ;;  %v2217_v19 = vld [vmem:[%s3654_s5] ss:$0 sm:$0xff] (!%p2216_p9) }
  0x1f   : > { %413 = vst.msk [vmem:[#allocation5 + $0x20] sm:$0xff] (!%p2216_p9), %vm392_vm0, %v2890_v3  ;;  %414 = vst.msk [vmem:[#allocation5 + $0x28] sm:$0xff] (!%p2216_p9), %vm392_vm0, %v2890_v3  ;;  %2498 = vmatprep.subr.bf16.mxu0 (!%p2216_p9), %v2708_v9  ;;  %2615 = vmatprep.subr.bf16.mxu1 (!%p2216_p9), %v2708_v9  ;;  %v506_v27 = vmul.f32 (!%p2216_p9), %v3047_v15, %v486_v22  ;;  %v507_v28 = vmul.f32 (!%p2216_p9), %v3047_v15, %v487_v23  ;;  %v2322_v61 = vunpack.c.h.bf16 (!%p2216_p9), %v2413_v49 }
  0x20   : > { %415 = vst.msk [vmem:[#allocation5 + $0x30] sm:$0xff] %vm392_vm0, %v2890_v3  ;;  %416 = vst.msk [vmem:[#allocation5 + $0x38] sm:$0xff] %vm392_vm0, %v2890_v3  ;;  %v514_v30 = vpack.c.bf16 %v499_v25, %v498_v24  ;;  %v481_v45 = vsub.f32 %v2314_v36, %v3045_v14  ;;  %v488_v46 = vsub.f32 %v2329_v37, %v3045_v14  ;;  %v2337_v62 = vunpack.c.l.bf16 %v2417_v53 }
  0x21   : > { %417 = vst.msk [vmem:[#allocation5 + $0x40] sm:$0xff] %vm392_vm0, %v2890_v3  ;;  %418 = vst.msk [vmem:[#allocation5 + $0x48] sm:$0xff] %vm392_vm0, %v2890_v3  ;;  %v518_v33 = vpack.c.bf16 %v507_v28, %v506_v27  ;;  %v489_v47 = vsub.f32 %v2330_v38, %v3045_v14  ;;  %v482_v48 = vsub.f32 %v2317_v39, %v3045_v14  ;;  %v2338_v63 = vunpack.c.h.bf16 %v2417_v53 }
  0x22   : > { %419 = vst.msk [vmem:[#allocation5 + $0x50] sm:$0xff] %vm392_vm0, %v2890_v3  ;;  %420 = vst.msk [vmem:[#allocation5 + $0x58] sm:$0xff] %vm392_vm0, %v2890_v3  ;;  %2499 = vmatpush3.bf16.msra.mxu0 %v2708_v9  ;;  %2623 = vmatpush3.bf16.msra.mxu1 %v2708_v9  ;;  %v483_v50 = vsub.f32 %v2318_v40, %v3045_v14  ;;  %v490_v51 = vsub.f32 %v2333_v41, %v3045_v14 }
  0x23   : > { %421 = vst.msk [vmem:[#allocation5 + $0x60] sm:$0xff] %vm392_vm0, %v2890_v3  ;;  %422 = vst.msk [vmem:[#allocation5 + $0x68] sm:$0xff] %vm392_vm0, %v2890_v3  ;;  %2500 = vmatprep.subr.bf16.mxu0 %v2709_v21  ;;  %2616 = vmatprep.subr.bf16.mxu1 %v2709_v21  ;;  %v491_v52 = vsub.f32 %v2334_v42, %v3045_v14  ;;  %v500_v55 = vmul.f32 %v3047_v15, %v480_v44 }
  0x24   : > { %423 = vst.msk [vmem:[#allocation5 + $0x70] sm:$0xff] %vm392_vm0, %v2890_v3  ;;  %424 = vst.msk [vmem:[#allocation5 + $0x78] sm:$0xff] %vm392_vm0, %v2890_v3  ;;  %2508 = vmatprep.mubr.bf16.mxu0 %v514_v30  ;;  %2516 = vmatprep.mubr.bf16.mxu1 %v518_v33  ;;  %v501_v56 = vmul.f32 %v3047_v15, %v481_v45  ;;  %v508_v57 = vmul.f32 %v3047_v15, %v488_v46 }
  0x25   : > { %425 = vst [vmem:[#allocation3] sm:$0xff] %v2890_v3  ;;  %426 = vst [vmem:[#allocation3 + $0x8] sm:$0xff] %v2890_v3  ;;  %v509_v58 = vmul.f32 %v3047_v15, %v489_v47  ;;  %v502_v60 = vmul.f32 %v3047_v15, %v482_v48  ;;  %v503_v0 = vmul.f32 %v3047_v15, %v483_v50 }
  0x26   : > { %427 = vst [vmem:[#allocation3 + $0x10] sm:$0xff] %v2890_v3  ;;  %428 = vst [vmem:[#allocation3 + $0x18] sm:$0xff] %v2890_v3  ;;  %2501 = vmatpush3.bf16.msra.mxu0 %v2709_v21  ;;  %2624 = vmatpush3.bf16.msra.mxu1 %v2709_v21  ;;  %v510_v1 = vmul.f32 %v3047_v15, %v490_v51  ;;  %v511_v2 = vmul.f32 %v3047_v15, %v491_v52 }
  0x27   : > { %429 = vst [vmem:[#allocation3 + $0x20] sm:$0xff] %v2890_v3  ;;  %430 = vst [vmem:[#allocation3 + $0x28] sm:$0xff] %v2890_v3  ;;  %2502 = vmatprep.subr.bf16.mxu0 %v2710_v32  ;;  %2617 = vmatprep.subr.bf16.mxu1 %v2710_v32  ;;  %v484_v4 = vsub.f32 %v2321_v59, %v3045_v14  ;;  %v519_v5 = vpack.c.bf16 %v509_v58, %v508_v57 }
  0x28   : > { %431 = vst [vmem:[#allocation3 + $0x30] sm:$0xff] %v2890_v3  ;;  %432 = vst [vmem:[#allocation3 + $0x38] sm:$0xff] %v2890_v3  ;;  %v485_v6 = vsub.f32 %v2322_v61, %v3045_v14  ;;  %v492_v7 = vsub.f32 %v2337_v62, %v3045_v14  ;;  %v493_v8 = vsub.f32 %v2338_v63, %v3045_v14 }
  0x29   : > { %433 = vst [vmem:[#allocation3 + $0x40] sm:$0xff] %v2890_v3  ;;  %434 = vst [vmem:[#allocation3 + $0x48] sm:$0xff] %v2890_v3  ;;  %v516_v9 = vpack.c.bf16 %v503_v0, %v502_v60  ;;  %v520_v10 = vpack.c.bf16 %v511_v2, %v510_v1  ;;  %v504_v11 = vmul.f32 %v3047_v15, %v484_v4 }
  0x2a   : > { %435 = vst [vmem:[#allocation3 + $0x50] sm:$0xff] %v2890_v3  ;;  %436 = vst [vmem:[#allocation3 + $0x58] sm:$0xff] %v2890_v3  ;;  %2503 = vmatpush3.bf16.msra.mxu0 %v2710_v32  ;;  %2625 = vmatpush3.bf16.msra.mxu1 %v2710_v32  ;;  %v505_v12 = vmul.f32 %v3047_v15, %v485_v6  ;;  %v512_v13 = vmul.f32 %v3047_v15, %v492_v7 }
  0x2b   : > { %437 = vst [vmem:[#allocation3 + $0x60] sm:$0xff] %v2890_v3  ;;  %438 = vst [vmem:[#allocation3 + $0x68] sm:$0xff] %v2890_v3  ;;  %2504 = vmatprep.subr.bf16.mxu0 %v2711_v43  ;;  %2618 = vmatprep.subr.bf16.mxu1 %v2711_v43  ;;  %v513_v16 = vmul.f32 %v3047_v15, %v493_v8 }
  0x2c   : > { %439 = vst [vmem:[#allocation3 + $0x70] sm:$0xff] %v2890_v3  ;;  %440 = vst [vmem:[#allocation3 + $0x78] sm:$0xff] %v2890_v3  ;;  %v515_v3 = vpack.c.bf16 %v501_v56, %v500_v55  ;;  %v517_v17 = vpack.c.bf16 %v505_v12, %v504_v11 }
  0x2d   : > { %v521_v18 = vpack.c.bf16 %v513_v16, %v512_v13 }
  0x2e   : > { %2505 = vmatpush3.bf16.msra.mxu0 %v2711_v43  ;;  %2626 = vmatpush3.bf16.msra.mxu1 %v2711_v43 }
  0x2f   : > { %2506 = vmatprep.subr.bf16.mxu0 %v2712_v54  ;;  %2619 = vmatprep.subr.bf16.mxu1 %v2712_v54 }
  0x32   : > { %2507 = vmatpush3.bf16.msra.mxu0 %v2712_v54  ;;  %2627 = vmatpush3.bf16.msra.mxu1 %v2712_v54 }
  0x35   : > { %2509 = vmatmul.mubr.bf16.vlgmr.msra.gmra.mrb[0].mxu0 %v515_v3  ;;  %2517 = vmatmul.mubr.bf16.vlgmr.msra.gmra.mrb[0].mxu1 %v519_v5 }
  0x36   : > { %2512 = vmatprep.mubr.bf16.mxu0 %v516_v9  ;;  %2520 = vmatprep.mubr.bf16.mxu1 %v520_v10 }
  0x3d   : > { %2513 = vmatmul.mubr.bf16.gmra.mrb[4].mxu0 %v517_v17  ;;  %2521 = vmatmul.mubr.bf16.gmra.mrb[4].mxu1 %v521_v18 }
 0x108   : > { %v2510_v14 = vpop.f32.mrb[0].mxu0  ;;  %v2518_v20 = vpop.f32.mrb[0].mxu1 }
 0x109   : > { %v627_v21 = vpop.f32.mrb[1].mxu0  ;;  %v659_v22 = vpop.f32.mrb[1].mxu1  ;;  %v636_v25 = vadd.f32 %v2510_v14, %v2217_v19  ;;  %v668_v26 = vadd.f32 %v2518_v20, %v2217_v19 }
 0x10a   : > { %v2511_v23 = vpop.f32.mrb[2].mxu0  ;;  %v2519_v24 = vpop.f32.mrb[2].mxu1  ;;  %v628_v30 = vadd.f32 %v2217_v19, %v627_v21  ;;  %v660_v31 = vadd.f32 %v2217_v19, %v659_v22 }
 0x10b   : > { %v639_v27 = vadd.f32 %v2511_v23, %v2217_v19  ;;  %v671_v15 = vadd.f32 %v2519_v24, %v2217_v19  ;;  %v630_v28 = vpop.f32.mrb[3].mxu0  ;;  %v662_v29 = vpop.f32.mrb[3].mxu1 }
 0x10c   : > { %v631_v32 = vadd.f32 %v2217_v19, %v630_v28  ;;  %v663_v33 = vadd.f32 %v2217_v19, %v662_v29 }
 0x10d   : > { %v691_v34 = vpack.c.bf16 %v639_v27, %v636_v25  ;;  %v695_v35 = vpack.c.bf16 %v671_v15, %v668_v26 }
 0x10e   : > { %v690_v36 = vpack.c.bf16 %v631_v32, %v628_v30  ;;  %v694_v37 = vpack.c.bf16 %v663_v33, %v660_v31 }
 0x10f   : > { %699 = vst [vmem:[#allocation2 + $0x8] sm:$0xff] %v691_v34  ;;  %703 = vst [vmem:[#allocation2 + $0x28] sm:$0xff] %v695_v35 }
 0x110   : > { %698 = vst [vmem:[#allocation2] sm:$0xff] %v690_v36  ;;  %702 = vst [vmem:[#allocation2 + $0x20] sm:$0xff] %v694_v37  ;;  %v2514_v38 = vpop.f32.mrb[4].mxu0  ;;  %v2522_v39 = vpop.f32.mrb[4].mxu1 }
 0x111   : > { %v643_v40 = vpop.f32.mrb[5].mxu0  ;;  %v675_v41 = vpop.f32.mrb[5].mxu1  ;;  %v652_v44 = vadd.f32 %v2514_v38, %v2217_v19  ;;  %v684_v45 = vadd.f32 %v2522_v39, %v2217_v19 }
 0x112   : > { %v2515_v42 = vpop.f32.mrb[6].mxu0  ;;  %v2523_v43 = vpop.f32.mrb[6].mxu1  ;;  %v644_v50 = vadd.f32 %v2217_v19, %v643_v40  ;;  %v676_v51 = vadd.f32 %v2217_v19, %v675_v41 }
 0x113   : > { %v655_v46 = vadd.f32 %v2515_v42, %v2217_v19  ;;  %v687_v47 = vadd.f32 %v2523_v43, %v2217_v19  ;;  %v646_v48 = vpop.f32.mrb[7].mxu0  ;;  %v678_v49 = vpop.f32.mrb[7].mxu1 }
 0x114   : > { %v647_v52 = vadd.f32 %v2217_v19, %v646_v48  ;;  %v679_v53 = vadd.f32 %v2217_v19, %v678_v49 }
 0x115   : > { %v693_v54 = vpack.c.bf16 %v655_v46, %v652_v44  ;;  %v697_v55 = vpack.c.bf16 %v687_v47, %v684_v45 }
 0x116   : > { %v692_v56 = vpack.c.bf16 %v647_v52, %v644_v50  ;;  %v696_v57 = vpack.c.bf16 %v679_v53, %v676_v51 }
 0x117   : > { %701 = vst [vmem:[#allocation2 + $0x18] sm:$0xff] %v693_v54  ;;  %705 = vst [vmem:[#allocation2 + $0x38] sm:$0xff] %v697_v55 }
 0x118   : > { %700 = vst [vmem:[#allocation2 + $0x10] sm:$0xff] %v692_v56  ;;  %704 = vst [vmem:[#allocation2 + $0x30] sm:$0xff] %v696_v57 }
 0x119 PF: > { %v2715_v58 = vld [vmem:[%s2991_s29] sm:$0xff]   ;;  %v2716_v59 = vld [vmem:[%s2991_s29 + $0x8] sm:$0xff]   ;;  %v2717_v61 = vld [vmem:[%s2991_s29 + $0x10] sm:$0xff]   ;;  %v860_v8 = vlaneseq  ;;  %vm897_vm2 = vcmask 785408   ;;  %v2891_v41 = vmov 0   ;;  %vm1250_vm3 = vcmask 7168  }
 0x11a   : > { %2524 = vmatprep.subr.bf16.mxu0 %v2715_v58  ;;  %v706_v60 = vld [vmem:[#allocation2] sm:$0xff]  ;;  %v2718_v62 = vld [vmem:[%s2991_s29 + $0x18] sm:$0xff]   ;;  %v2720_v0 = vld [vmem:[%s2991_s29 + $0x28] sm:$0xff]   ;;  %2714 = vset.pattern.permute.xlu1 %v2891_v41  ;;  %p2246_p10 = scmp.ne.s32.totalorder %s2863_s21, 2 }
 0x11b   : > { %2525 = vmatpush3.bf16.xpose.msra.mxu0 %v2715_v58  ;;  %2536 = vmatprep.mubr.bf16.mxu0 %v706_v60  ;;  %v2719_v63 = vld [vmem:[%s2991_s29 + $0x20] sm:$0xff]   ;;  %v707_v1 = vld [vmem:[#allocation2 + $0x8] sm:$0xff]  ;;  %s859_s29 = smul.u32 96, %s2863_s21  ;;  %v861_v9 = vand.u32 127, %v860_v8 }
 0x11c   : > { %2526 = vmatprep.subr.bf16.mxu0 %v2716_v59  ;;  %v710_v4 = vld [vmem:[#allocation2 + $0x20] sm:$0xff]  ;;  %v711_v5 = vld [vmem:[#allocation2 + $0x28] sm:$0xff]  ;;  %2713 = vset.pattern.permute.xlu0 %v2891_v41 }
 0x11d   : > { %v862_v10 = vstv %s859_s29 }
 0x11e   : > { %v709_v3 = vld [vmem:[#allocation2 + $0x18] sm:$0xff]  ;;  %v3110_v11 = vadd.s32 %v862_v10, %v861_v9  ;;  %v3239_v10 = vld [vmem:[#allocation4 + $0x20] sm:$0xff] }
 0x11f   : > { %v708_v2 = vld [vmem:[#allocation2 + $0x10] sm:$0xff]  ;;  %v713_v7 = vld [vmem:[#allocation2 + $0x38] sm:$0xff] }
 0x120   : > { %v712_v6 = vld [vmem:[#allocation2 + $0x30] sm:$0xff]  ;;  %vm864_vm1 = vcmp.lt.s32.totalorder %v3110_v11, 256 }
 0x123   : > { %2527 = vmatpush3.bf16.xpose.msra.mxu0 %v2716_v59 }
 0x124   : > { %2528 = vmatprep.subr.bf16.mxu0 %v2717_v61 }
 0x12b   : > { %2529 = vmatpush3.bf16.xpose.msra.mxu0 %v2717_v61  ;;  %v3209_v61 = vld [vmem:[#allocation4 + $0x10] sm:$0xff] }
 0x12c   : > { %2530 = vmatprep.subr.bf16.mxu0 %v2718_v62 }
 0x133   : > { %2531 = vmatpush3.bf16.xpose.msra.mxu0 %v2718_v62  ;;  %v3211_v62 = vld [vmem:[#allocation4] sm:$0xff] }
 0x134   : > { %2532 = vmatprep.subr.bf16.mxu0 %v2719_v63 }
 0x13b   : > { %2533 = vmatpush3.bf16.xpose.msra.mxu0 %v2719_v63 }
 0x13c   : > { %2534 = vmatprep.subr.bf16.mxu0 %v2720_v0 }
 0x143   : > { %2535 = vmatpush3.bf16.xpose.msra.mxu0 %v2720_v0 }
 0x14a   : > { %2537 = vmatmul.mubr.bf16.vlgmr.msra.gmra.mrb[0].mxu0 %v707_v1 }
 0x14b   : > { %2540 = vmatprep.mubr.bf16.mxu0 %v708_v2 }
 0x152   : > { %2541 = vmatmul.mubr.bf16.gmra.mrb[4].mxu0 %v709_v3  ;;  %v3219_v3 = vld [vmem:[#allocation4 + $0x18] sm:$0xff] }
 0x153   : > { %2544 = vmatprep.mubr.bf16.mxu0 %v710_v4  ;;  %v3224_v4 = vld [vmem:[#allocation4 + $0x8] sm:$0xff] }
 0x15a   : > { %2545 = vmatmul.mubr.bf16.gmra.mrb[8].mxu0 %v711_v5 }
 0x15b   : > { %2548 = vmatprep.mubr.bf16.mxu0 %v712_v6  ;;  %v2721_v6 = vld [vmem:[%s2996_s0] sm:$0xff]  }
 0x15c   : > { %2552 = vmatprep.subr.bf16.mxu1 %v2721_v6 }
 0x15d   : > { %2553 = vmatpush3.bf16.msra.mxu1 %v2721_v6  ;;  %v894_v6 = vld [vmem:[#allocation4 + $0x68] sm:$0xff] }
 0x162   : > { %2549 = vmatmul.mubr.bf16.gmra.mrb[12].mxu0 %v713_v7 }
 0x21d   : > { %v2538_v12 = vpop.f32.mrb[0].mxu0 }
 0x21e   : > { %v3115_v13 = vsel %vm864_vm1, %v2538_v12, -1e+30  ;;  %v796_v16 = vpop.f32.mrb[1].mxu0  ;;  %v3243_v12 = vld [vmem:[#allocation4 + $0x38] sm:$0xff] }
 0x21f   : > { %v3119_v17 = vsel %vm864_vm1, %v796_v16, -1e+30  ;;  %v2539_v18 = vpop.f32.mrb[2].mxu0  ;;  %v904_v14 = vsel %vm897_vm2, %v3115_v13, -inf  ;;  %v2722_v16 = vld [vmem:[%s2996_s0 + $0x8] sm:$0xff]  }
 0x220   : > { %v3125_v19 = vsel %vm864_vm1, %v2539_v18, -1e+30  ;;  %905 = vmax.xlane.f32.xlu1 %v904_v14  ;;  %v799_v20 = vpop.f32.mrb[3].mxu0  ;;  %v898_v21 = vsel %vm897_vm2, %v3119_v17, -inf  ;;  %2554 = vmatprep.subr.bf16.mxu1 %v2722_v16 }
 0x221   : > { %v3131_v22 = vsel %vm864_vm1, %v799_v20, -1e+30  ;;  %899 = vmax.xlane.f32.xlu0 %v898_v21  ;;  %v907_v23 = vsel %vm897_vm2, %v3125_v19, -inf  ;;  %2555 = vmatpush3.bf16.msra.mxu1 %v2722_v16 }
 0x222   : > { %v901_v24 = vsel %vm897_vm2, %v3131_v22, -inf }
 0x224   : > { %908 = vmax.xlane.f32.xlu1 %v907_v23  ;;  %v3253_v23 = vld [vmem:[#allocation4 + $0x30] sm:$0xff] }
 0x225   : > { %902 = vmax.xlane.f32.xlu0 %v901_v24  ;;  %v2542_v25 = vpop.f32.mrb[4].mxu0  ;;  %v3257_v24 = vld [vmem:[#allocation4 + $0x28] sm:$0xff] }
 0x226   : > { %v812_v26 = vpop.f32.mrb[5].mxu0  ;;  %v3149_v31 = vsel %vm864_vm1, %v2542_v25, -1e+30  ;;  %v2723_v25 = vld [vmem:[%s2996_s0 + $0x10] sm:$0xff]  }
 0x227   : > { %v3139_v27 = vsel %vm864_vm1, %v812_v26, -1e+30  ;;  %v2543_v15 = vpop.f32.mrb[6].mxu0  ;;  %v916_v34 = vsel %vm897_vm2, %v3149_v31, -inf  ;;  %2556 = vmatprep.subr.bf16.mxu1 %v2723_v25 }
 0x228   : > { %v3143_v28 = vsel %vm864_vm1, %v2543_v15, -1e+30  ;;  %v815_v29 = vpop.f32.mrb[7].mxu0  ;;  %v910_v30 = vsel %vm897_vm2, %v3139_v27, -inf  ;;  %2557 = vmatpush3.bf16.msra.mxu1 %v2723_v25 }
 0x229   : > { %911 = vmax.xlane.f32.xlu0 %v910_v30  ;;  %v919_v32 = vsel %vm897_vm2, %v3143_v28, -inf  ;;  %v3155_v33 = vsel %vm864_vm1, %v815_v29, -1e+30 }
 0x22a   : > { %920 = vmax.xlane.f32.xlu1 %v919_v32  ;;  %v913_v36 = vsel %vm897_vm2, %v3155_v33, -inf  ;;  %v3268_v32 = vld [vmem:[#allocation4 + $0x40] sm:$0xff] }
 0x22d   : > { %917 = vmax.xlane.f32.xlu0 %v916_v34  ;;  %v2546_v35 = vpop.f32.mrb[8].mxu0  ;;  %v3273_v34 = vld [vmem:[#allocation4 + $0x58] sm:$0xff] }
 0x22e   : > { %914 = vmax.xlane.f32.xlu1 %v913_v36  ;;  %v828_v37 = vpop.f32.mrb[9].mxu0  ;;  %v3163_v38 = vsel %vm864_vm1, %v2546_v35, -1e+30  ;;  %v2724_v35 = vld [vmem:[%s2996_s0 + $0x18] sm:$0xff]  }
 0x22f   : > { %v3167_v39 = vsel %vm864_vm1, %v828_v37, -1e+30  ;;  %v2547_v40 = vpop.f32.mrb[10].mxu0  ;;  %v928_v47 = vsel %vm897_vm2, %v3163_v38, -inf  ;;  %2558 = vmatprep.subr.bf16.mxu1 %v2724_v35 }
 0x230   : > { %v3171_v42 = vsel %vm864_vm1, %v2547_v40, -1e+30  ;;  %v922_v43 = vsel %vm897_vm2, %v3167_v39, -inf  ;;  %v831_v44 = vpop.f32.mrb[11].mxu0  ;;  %2559 = vmatpush3.bf16.msra.mxu1 %v2724_v35 }
 0x231   : > { %v931_v45 = vsel %vm897_vm2, %v3171_v42, -inf  ;;  %923 = vmax.xlane.f32.xlu0 %v922_v43  ;;  %v3179_v46 = vsel %vm864_vm1, %v831_v44, -1e+30  ;;  %v3284_v43 = vld [vmem:[#allocation4 + $0x50] sm:$0xff]  ;;  %v3289_v44 = vld [vmem:[#allocation4 + $0x48] sm:$0xff] }
 0x232   : > { %932 = vmax.xlane.f32.xlu1 %v931_v45  ;;  %v925_v48 = vsel %vm897_vm2, %v3179_v46, -inf  ;;  %v2725_v45 = vld [vmem:[%s2996_s0 + $0x20] sm:$0xff]  }
 0x233   : > { %2560 = vmatprep.subr.bf16.mxu1 %v2725_v45 }
 0x234   : > { %2561 = vmatpush3.bf16.msra.mxu1 %v2725_v45 }
 0x235   : > { %v2550_v49 = vpop.f32.mrb[12].mxu0  ;;  %929 = vmax.xlane.f32.xlu0 %v928_v47 }
 0x236   : > { %926 = vmax.xlane.f32.xlu1 %v925_v48  ;;  %v844_v50 = vpop.f32.mrb[13].mxu0  ;;  %v3187_v51 = vsel %vm864_vm1, %v2550_v49, -1e+30 }
 0x237   : > { %v3191_v52 = vsel %vm864_vm1, %v844_v50, -1e+30  ;;  %v2551_v53 = vpop.f32.mrb[14].mxu0  ;;  %v940_v59 = vsel %vm897_vm2, %v3187_v51, -inf }
 0x238   : > { %v3195_v54 = vsel %vm864_vm1, %v2551_v53, -1e+30  ;;  %v934_v55 = vsel %vm897_vm2, %v3191_v52, -inf  ;;  %v847_v56 = vpop.f32.mrb[15].mxu0 }
 0x239   : > { %v943_v57 = vsel %vm897_vm2, %v3195_v54, -inf  ;;  %935 = vmax.xlane.f32.xlu0 %v934_v55  ;;  %v3203_v58 = vsel %vm864_vm1, %v847_v56, -1e+30  ;;  %v3302_v55 = vld [vmem:[#allocation4 + $0x60] sm:$0xff]  ;;  %v3307_v56 = vld [vmem:[#allocation4 + $0x78] sm:$0xff] }
 0x23a   : > { %944 = vmax.xlane.f32.xlu1 %v943_v57  ;;  %v937_v60 = vsel %vm897_vm2, %v3203_v58, -inf  ;;  %v2726_v57 = vld [vmem:[%s2996_s0 + $0x28] sm:$0xff]  }
 0x23b   : > { %2562 = vmatprep.subr.bf16.mxu1 %v2726_v57 }
 0x23c   : > { %2563 = vmatpush3.bf16.msra.mxu1 %v2726_v57 }
 0x23d   : > { %941 = vmax.xlane.f32.xlu0 %v940_v59 }
 0x23e   : > { %938 = vmax.xlane.f32.xlu1 %v937_v60 }
 0x2ad   : > { %v906_v63 = vpop.xlane.xlu1 %905 }
 0x2ae   : > { %v3214_v0 = vmax.f32 %v3209_v61, %v906_v63  ;;  %v900_v1 = vpop.xlane.xlu0 %899 }
 0x2af   : > { %v3217_v2 = vmax.f32 %v3211_v62, %v900_v1 }
 0x2b0   : > { %1590 = vst.msk [vmem:[#allocation4 + $0x10] sm:$0xff] %vm1250_vm3, %v3214_v0  ;;  %1022 = vperm.xlu1 %2714, %v3214_v0  }
 0x2b1   : > { %1588 = vst.msk [vmem:[#allocation4] sm:$0xff] %vm1250_vm3, %v3217_v2  ;;  %v909_v5 = vpop.xlane.xlu1 %908  ;;  %1012 = vperm.xlu0 %2713, %v3217_v2   ;;  %v962_v48 = vsub.f32 %v3211_v62, %v3217_v2 }
 0x2b2   : > { %v3231_v7 = vmax.f32 %v3219_v3, %v909_v5  ;;  %v903_v8 = vpop.xlane.xlu0 %902  ;;  %v3321_v5 = vld [vmem:[#allocation4 + $0x70] sm:$0xff] }
 0x2b3   : > { %v3234_v9 = vmax.f32 %v3224_v4, %v903_v8  ;;  %v978_v60 = vmul.f32 1.442695, %v962_v48 }
 0x2b4   : > { %1591 = vst.msk [vmem:[#allocation4 + $0x18] sm:$0xff] %vm1250_vm3, %v3231_v7  ;;  %1027 = vperm.xlu1 %2714, %v3231_v7   ;;  %v965_v62 = vsub.f32 %v3219_v3, %v3231_v7 }
 0x2b5   : > { %1589 = vst.msk [vmem:[#allocation4 + $0x8] sm:$0xff] %vm1250_vm3, %v3234_v9  ;;  %v963_v3 = vsub.f32 %v3224_v4, %v3234_v9  ;;  %2727 = vpow2.f32 %v978_v60 }
 0x2b6   : > { %v912_v18 = vpop.xlane.xlu0 %911  ;;  %v984_v16 = vmul.f32 1.442695, %v965_v62 }
 0x2b7   : > { %v3247_v14 = vmax.f32 %v3239_v10, %v912_v18  ;;  %v921_v20 = vpop.xlane.xlu1 %920 }
 0x2b8   : > { %v3250_v21 = vmax.f32 %v3243_v12, %v921_v20  ;;  %1017 = vperm.xlu1 %2714, %v3234_v9   ;;  %v964_v9 = vsub.f32 %v3209_v61, %v3214_v0  ;;  %2729 = vpow2.f32 %v984_v16 }
 0x2b9   : > { %1592 = vst.msk [vmem:[#allocation4 + $0x20] sm:$0xff] %vm1250_vm3, %v3247_v14 }
 0x2ba   : > { %1595 = vst.msk [vmem:[#allocation4 + $0x38] sm:$0xff] %vm1250_vm3, %v3250_v21  ;;  %v918_v26 = vpop.xlane.xlu0 %917  ;;  %v982_v35 = vmul.f32 1.442695, %v964_v9 }
 0x2bb   : > { %v3263_v15 = vmax.f32 %v3253_v23, %v918_v26  ;;  %v915_v29 = vpop.xlane.xlu1 %914 }
 0x2bc   : > { %v3266_v30 = vmax.f32 %v3257_v24, %v915_v29  ;;  %v980_v29 = vmul.f32 1.442695, %v963_v3 }
 0x2bd   : > { %1594 = vst.msk [vmem:[#allocation4 + $0x30] sm:$0xff] %vm1250_vm3, %v3263_v15  ;;  %1042 = vperm.xlu1 %2714, %v3263_v15  }
 0x2be   : > { %1593 = vst.msk [vmem:[#allocation4 + $0x28] sm:$0xff] %vm1250_vm3, %v3266_v30  ;;  %v924_v36 = vpop.xlane.xlu0 %923  ;;  %v967_v18 = vsub.f32 %v3257_v24, %v3266_v30  ;;  %v969_v24 = vsub.f32 %v3243_v12, %v3250_v21  ;;  %2731 = vpow2.f32 %v980_v29 }
 0x2bf   : > { %v933_v37 = vpop.xlane.xlu1 %932  ;;  %v3279_v40 = vmax.f32 %v3268_v32, %v924_v36  ;;  %v966_v36 = vsub.f32 %v3239_v10, %v3247_v14  ;;  %v3354_v0 = vpop.eup %2727 }
 0x2c0   : > { %v3282_v41 = vmax.f32 %v3273_v34, %v933_v37  ;;  %v992_v37 = vmul.f32 1.442695, %v969_v24 }
 0x2c1   : > { %1596 = vst.msk [vmem:[#allocation4 + $0x40] sm:$0xff] %vm1250_vm3, %v3279_v40  ;;  %1032 = vperm.xlu1 %2714, %v3247_v14   ;;  %v986_v12 = vmul.f32 1.442695, %v966_v36 }
 0x2c2   : > { %1599 = vst.msk [vmem:[#allocation4 + $0x58] sm:$0xff] %vm1250_vm3, %v3282_v41  ;;  %v930_v47 = vpop.xlane.xlu0 %929  ;;  %v973_v61 = vsub.f32 %v3273_v34, %v3282_v41  ;;  %v3362_v45 = vpop.eup %2729 }
 0x2c3   : > { %v927_v49 = vpop.xlane.xlu1 %926  ;;  %v3297_v50 = vmax.f32 %v3284_v43, %v930_v47 }
 0x2c4   : > { %v3300_v53 = vmax.f32 %v3289_v44, %v927_v49  ;;  %v1000_v10 = vmul.f32 1.442695, %v973_v61 }
 0x2c5   : > { %1598 = vst.msk [vmem:[#allocation4 + $0x50] sm:$0xff] %vm1250_vm3, %v3297_v50  ;;  %1037 = vperm.xlu1 %2714, %v3266_v30   ;;  %v988_v30 = vmul.f32 1.442695, %v967_v18 }
 0x2c6   : > { %1597 = vst.msk [vmem:[#allocation4 + $0x48] sm:$0xff] %vm1250_vm3, %v3300_v53  ;;  %1057 = vperm.xlu0 %2713, %v3300_v53   ;;  %v936_v59 = vpop.xlane.xlu0 %935  ;;  %v971_v14 = vsub.f32 %v3289_v44, %v3300_v53  ;;  %v970_v44 = vsub.f32 %v3268_v32, %v3279_v40 }
 0x2c7   : > { %v945_v63 = vpop.xlane.xlu1 %944  ;;  %v3316_v1 = vmax.f32 %v3302_v55, %v936_v59  ;;  %2733 = vpow2.f32 %v988_v30 }
 0x2c8   : > { %v3319_v2 = vmax.f32 %v3307_v56, %v945_v63  ;;  %2735 = vpow2.f32 %v982_v35  ;;  %v3368_v47 = vpop.eup %2731  ;;  %v994_v57 = vmul.f32 1.442695, %v970_v44 }
 0x2c9   : > { %1600 = vst.msk [vmem:[#allocation4 + $0x60] sm:$0xff] %vm1250_vm3, %v3316_v1  ;;  %1047 = vperm.xlu1 %2714, %v3250_v21   ;;  %v968_v21 = vsub.f32 %v3253_v23, %v3263_v15  ;;  %2737 = vpow2.f32 %v992_v37  ;;  %v996_v23 = vmul.f32 1.442695, %v971_v14  ;;  %v974_v59 = vsub.f32 %v3302_v55, %v3316_v1 }
 0x2ca   : > { %v977_v7 = vsub.f32 %v3307_v56, %v3319_v2  ;;  %1603 = vst.msk [vmem:[#allocation4 + $0x78] sm:$0xff] %vm1250_vm3, %v3319_v2  ;;  %1067 = vperm.xlu0 %2713, %v3282_v41   ;;  %v942_v8 = vpop.xlane.xlu0 %941  ;;  %2739 = vpow2.f32 %v986_v12  ;;  %v972_v41 = vsub.f32 %v3284_v43, %v3297_v50 }
 0x2cb   : > { %v939_v20 = vpop.xlane.xlu1 %938  ;;  %v3336_v25 = vmax.f32 %v3321_v5, %v942_v8  ;;  %v990_v34 = vmul.f32 1.442695, %v968_v21  ;;  %2741 = vpow2.f32 %v1000_v10  ;;  %v1002_v60 = vmul.f32 1.442695, %v974_v59 }
 0x2cc   : > { %v959_v26 = vmax.f32 %v894_v6, %v939_v20  ;;  %v998_v49 = vmul.f32 1.442695, %v972_v41 }
 0x2cd   : > { %v976_v4 = vsub.f32 %v3321_v5, %v3336_v25  ;;  %1602 = vst.msk [vmem:[#allocation4 + $0x70] sm:$0xff] %vm1250_vm3, %v3336_v25  ;;  %1052 = vperm.xlu1 %2714, %v3279_v40   ;;  %2743 = vpow2.f32 %v990_v34 }
 0x2ce   : > { %1601 = vst.msk [vmem:[#allocation4 + $0x68] sm:$0xff] %vm1250_vm3, %v959_v26  ;;  %1077 = vperm.xlu0 %2713, %v959_v26   ;;  %v975_v15 = vsub.f32 %v894_v6, %v959_v26  ;;  %2745 = vpow2.f32 %v996_v23 }
 0x2cf   : > { %2747 = vpow2.f32 %v998_v49  ;;  %v1006_v11 = vmul.f32 1.442695, %v976_v4 }
 0x2d0   : > { %v1004_v43 = vmul.f32 1.442695, %v975_v15 }
 0x2d1   : > { %1062 = vperm.xlu1 %2714, %v3297_v50   ;;  %v3370_v48 = vpop.eup %2733 }
 0x2d2   : > { %1087 = vperm.xlu0 %2713, %v3319_v2   ;;  %v3376_v50 = vpop.eup %2735  ;;  %2749 = vpow2.f32 %v1004_v43 }
 0x2d3   : > { %v3378_v53 = vpop.eup %2737  ;;  %2751 = vpow2.f32 %v994_v57 }
 0x2d4   : > { %v3384_v32 = vpop.eup %2739  ;;  %2753 = vpow2.f32 %v1002_v60 }
 0x2d5   : > { %1072 = vperm.xlu1 %2714, %v3316_v1   ;;  %v3386_v40 = vpop.eup %2741 }
 0x2d6   : > { %1285 = vperm.xlu0 %2713, %v3354_v0  }
 0x2d7   : > { %v3390_v62 = vpop.eup %2743 }
 0x2d8   : > { %v3392_v63 = vpop.eup %2745 }
 0x2d9   : > { %1082 = vperm.xlu1 %2714, %v3336_v25   ;;  %v3396_v55 = vpop.eup %2747 }
 0x2da   : > { %1300 = vperm.xlu0 %2713, %v3362_v45  }
 0x2dc   : > { %v3398_v1 = vpop.eup %2749 }
 0x2dd   : > { %1290 = vperm.xlu1 %2714, %v3368_v47   ;;  %v3402_v6 = vpop.eup %2751 }
 0x2de   : > { %1310 = vperm.xlu0 %2713, %v3370_v48   ;;  %v3405_v3 = vpop.eup %2753 }
 0x2e1   : > { %1295 = vperm.xlu1 %2714, %v3376_v50  }
 0x2e2   : > { %1320 = vperm.xlu0 %2713, %v3378_v53  }
 0x2e5   : > { %1305 = vperm.xlu1 %2714, %v3384_v32  }
 0x2e6   : > { %1340 = vperm.xlu0 %2713, %v3386_v40  }
 0x2e9   : > { %1315 = vperm.xlu1 %2714, %v3390_v62  }
 0x2ea   : > { %1330 = vperm.xlu0 %2713, %v3392_v63  }
 0x2ed   : > { %1335 = vperm.xlu1 %2714, %v3396_v55  }
 0x2ee   : > { %1350 = vperm.xlu0 %2713, %v3398_v1  }
 0x2f1   : > { %1325 = vperm.xlu1 %2714, %v3402_v6  }
 0x2f5   : > { %1345 = vperm.xlu1 %2714, %v3405_v3  }
 0x32f   : > { %v1023_v8 = vpop.permute.xlu1 %1022 }
 0x330   : > { %v1092_v16 = vsub.f32 %v3115_v13, %v1023_v8  ;;  %v1013_v18 = vpop.permute.xlu0 %1012 }
 0x331   : > { %v1090_v20 = vsub.f32 %v3119_v17, %v1013_v18 }
 0x332   : > { %v1110_v26 = vmul.f32 1.442695, %v1092_v16 }
 0x333   : > { %v1106_v9 = vmul.f32 1.442695, %v1090_v20  ;;  %v1028_v29 = vpop.permute.xlu1 %1027 }
 0x334   : > { %2755 = vpow2.f32 %v1110_v26  ;;  %v1093_v24 = vsub.f32 %v3125_v19, %v1028_v29 }
 0x335   : > { %2757 = vpow2.f32 %v1106_v9 }
 0x336   : > { %v1112_v30 = vmul.f32 1.442695, %v1093_v24 }
 0x337   : > { %v1018_v35 = vpop.permute.xlu1 %1017 }
 0x338   : > { %2759 = vpow2.f32 %v1112_v30  ;;  %v1091_v36 = vsub.f32 %v3131_v22, %v1018_v35 }
 0x33a   : > { %v1108_v37 = vmul.f32 1.442695, %v1091_v36 }
 0x33c   : > { %2761 = vpow2.f32 %v1108_v37  ;;  %v1043_v61 = vpop.permute.xlu1 %1042 }
 0x33d   : > { %v1096_v13 = vsub.f32 %v3149_v31, %v1043_v61 }
 0x33e   : > { %v2756_v12 = vpop.eup %2755 }
 0x33f   : > { %v2758_v21 = vpop.eup %2757  ;;  %v1118_v17 = vmul.f32 1.442695, %v1096_v13  ;;  %v1140_v10 = vsel %vm864_vm1, %v2756_v12, 0.0 }
 0x340   : > { %v1033_v14 = vpop.permute.xlu1 %1032  ;;  %v1192_v19 = vsel %vm897_vm2, %v1140_v10, 0.0  ;;  %v1138_v34 = vsel %vm864_vm1, %v2758_v21, 0.0 }
 0x341   : > { %2763 = vpow2.f32 %v1118_v17  ;;  %v1094_v22 = vsub.f32 %v3139_v27, %v1033_v14  ;;  %1193 = vadd.xlane.f32.xlu0 %v1192_v19  ;;  %v1186_v41 = vsel %vm897_vm2, %v1138_v34, 0.0 }
 0x342   : > { %v2760_v23 = vpop.eup %2759  ;;  %1187 = vadd.xlane.f32.xlu1 %v1186_v41 }
 0x343   : > { %v1114_v31 = vmul.f32 1.442695, %v1094_v22  ;;  %v1141_v15 = vsel %vm864_vm1, %v2760_v23, 0.0 }
 0x344   : > { %v1038_v44 = vpop.permute.xlu1 %1037  ;;  %v1195_v49 = vsel %vm897_vm2, %v1141_v15, 0.0  ;;  %v1380_v26 = vpack.c.bf16 %v1141_v15, %v1140_v10 }
 0x345   : > { %2765 = vpow2.f32 %v1114_v31  ;;  %v1095_v43 = vsub.f32 %v3155_v33, %v1038_v44  ;;  %v1058_v57 = vpop.permute.xlu0 %1057 }
 0x346   : > { %v2762_v59 = vpop.eup %2761  ;;  %1196 = vadd.xlane.f32.xlu1 %v1195_v49  ;;  %v1099_v27 = vsub.f32 %v3179_v46, %v1058_v57 }
 0x347   : > { %v1116_v60 = vmul.f32 1.442695, %v1095_v43  ;;  %v1139_v8 = vsel %vm864_vm1, %v2762_v59, 0.0 }
 0x348   : > { %v1048_v16 = vpop.permute.xlu1 %1047  ;;  %v1189_v18 = vsel %vm897_vm2, %v1139_v8, 0.0  ;;  %v1379_v20 = vpack.c.bf16 %v1139_v8, %v1138_v34  ;;  %v1124_v30 = vmul.f32 1.442695, %v1099_v27 }
 0x349   : > { %2767 = vpow2.f32 %v1116_v60  ;;  %v1097_v9 = vsub.f32 %v3143_v28, %v1048_v16  ;;  %v1068_v29 = vpop.permute.xlu0 %1067  ;;  %1190 = vadd.xlane.f32.xlu0 %v1189_v18 }
 0x34a   : > { %v1101_v33 = vsub.f32 %v3171_v42, %v1068_v29  ;;  %2564 = vmatprep.mubr.msk.bf16.mxu1 %vm897_vm2, %v1379_v20 }
 0x34b   : > { %v2764_v24 = vpop.eup %2763  ;;  %v1120_v46 = vmul.f32 1.442695, %v1097_v9  ;;  %2565 = vmatmul.mubr.msk.bf16.vlgmr.msra.gmra.mrb[0].mxu1 %vm897_vm2, %v1380_v26 }
 0x34c   : > { %v1128_v35 = vmul.f32 1.442695, %v1101_v33  ;;  %v1053_v36 = vpop.permute.xlu1 %1052  ;;  %v1144_v37 = vsel %vm864_vm1, %v2764_v24, 0.0 }
 0x34d   : > { %2769 = vpow2.f32 %v1120_v46  ;;  %v1098_v61 = vsub.f32 %v3167_v39, %v1053_v36  ;;  %v1078_v28 = vpop.permute.xlu0 %1077  ;;  %v1204_v13 = vsel %vm897_vm2, %v1144_v37, 0.0 }
 0x34e   : > { %1205 = vadd.xlane.f32.xlu0 %v1204_v13  ;;  %2771 = vpow2.f32 %v1124_v30  ;;  %v1103_v21 = vsub.f32 %v3203_v58, %v1078_v28 }
 0x34f   : > { %v2766_v42 = vpop.eup %2765  ;;  %v1122_v12 = vmul.f32 1.442695, %v1098_v61  ;;  %2773 = vpow2.f32 %v1128_v35 }
 0x350   : > { %v1063_v17 = vpop.permute.xlu1 %1062  ;;  %v1142_v10 = vsel %vm864_vm1, %v2766_v42, 0.0  ;;  %v1132_v41 = vmul.f32 1.442695, %v1103_v21 }
 0x351   : > { %2775 = vpow2.f32 %v1122_v12  ;;  %v1100_v14 = vsub.f32 %v3163_v38, %v1063_v17  ;;  %v1088_v19 = vpop.permute.xlu0 %1087  ;;  %v1198_v39 = vsel %vm897_vm2, %v1142_v10, 0.0 }
 0x352   : > { %v1105_v34 = vsub.f32 %v3195_v54, %v1088_v19  ;;  %1199 = vadd.xlane.f32.xlu0 %v1198_v39 }
 0x353   : > { %v2768_v22 = vpop.eup %2767  ;;  %v1126_v23 = vmul.f32 1.442695, %v1100_v14 }
 0x354   : > { %v1136_v31 = vmul.f32 1.442695, %v1105_v34  ;;  %v1143_v58 = vsel %vm864_vm1, %v2768_v22, 0.0  ;;  %v1073_v15 = vpop.permute.xlu1 %1072 }
 0x355   : > { %2777 = vpow2.f32 %v1126_v23  ;;  %v1381_v44 = vpack.c.bf16 %v1143_v58, %v1142_v10  ;;  %v1102_v49 = vsub.f32 %v3191_v52, %v1073_v15  ;;  %v1201_v9 = vsel %vm897_vm2, %v1143_v58, 0.0  ;;  %v3492_v15 = vpop.permute.xlu0 %1285 }
 0x356   : > { %2779 = vpow2.f32 %v1132_v41  ;;  %v1008_v23 = vmul.f32 1.442695, %v977_v7 }
 0x357   : > { %v2770_v43 = vpop.eup %2769  ;;  %v1130_v38 = vmul.f32 1.442695, %v1102_v49  ;;  %2568 = vmatprep.mubr.msk.bf16.mxu1 %vm897_vm2, %v1381_v44  ;;  %2781 = vpow2.f32 %v1136_v31 }
 0x358   : > { %v1083_v54 = vpop.permute.xlu1 %1082  ;;  %v1145_v57 = vsel %vm864_vm1, %v2770_v43, 0.0  ;;  %v2772_v59 = vpop.eup %2771 }
 0x359   : > { %2783 = vpow2.f32 %v1130_v38  ;;  %v1104_v60 = vsub.f32 %v3187_v51, %v1083_v54  ;;  %v1207_v27 = vsel %vm897_vm2, %v1145_v57, 0.0  ;;  %v1382_v8 = vpack.c.bf16 %v1145_v57, %v1144_v37  ;;  %v2774_v16 = vpop.eup %2773  ;;  %v3496_v5 = vpop.permute.xlu0 %1300 }
 0x35a   : > { %1208 = vadd.xlane.f32.xlu1 %v1207_v27  ;;  %v1147_v26 = vsel %vm864_vm1, %v2772_v59, 0.0  ;;  %v1149_v51 = vsel %vm864_vm1, %v2774_v16, 0.0  ;;  %v1156_v59 = vld [vmem:[#allocation5 + $0x10] sm:$0xff]  ;;  %v1154_v27 = vld [vmem:[#allocation5] sm:$0xff] }
 0x35b   : > { %v2776_v52 = vpop.eup %2775  ;;  %v1134_v18 = vmul.f32 1.442695, %v1104_v60  ;;  %2569 = vmatmul.mubr.msk.bf16.gmra.mrb[4].mxu1 %vm897_vm2, %v1382_v8  ;;  %v1219_v46 = vsel %vm897_vm2, %v1149_v51, 0.0  ;;  %v1213_v42 = vsel %vm897_vm2, %v1147_v26, 0.0  ;;  %v1172_v8 = vmul.f32 %v3376_v50, %v1156_v59 }
 0x35c   : > { %v1146_v20 = vsel %vm864_vm1, %v2776_v52, 0.0  ;;  %v3494_v44 = vpop.permute.xlu1 %1290  ;;  %v1170_v52 = vmul.f32 %v3354_v0, %v1154_v27  ;;  %v1160_v0 = vld [vmem:[#allocation5 + $0x30] sm:$0xff] }
 0x35d   : > { %2785 = vpow2.f32 %v1134_v18  ;;  %v1383_v29 = vpack.c.bf16 %v1147_v26, %v1146_v20  ;;  %v1210_v12 = vsel %vm897_vm2, %v1146_v20, 0.0  ;;  %v3500_v4 = vpop.permute.xlu0 %1310  ;;  %v1157_v26 = vld [vmem:[#allocation5 + $0x18] sm:$0xff] }
 0x35e   : > { %1202 = vadd.xlane.f32.xlu1 %v1201_v9  ;;  %2787 = vpow2.f32 %v1006_v11  ;;  %v1163_v11 = vld [vmem:[#allocation5 + $0x48] sm:$0xff] }
 0x35f   : > { %v2778_v33 = vpop.eup %2777  ;;  %2572 = vmatprep.mubr.msk.bf16.mxu1 %vm897_vm2, %v1383_v29  ;;  %2789 = vpow2.f32 %v1008_v23  ;;  %v1173_v29 = vmul.f32 %v3362_v45, %v1157_v26  ;;  %v1179_v27 = vmul.f32 %v3392_v63, %v1163_v11 }
 0x360   : > { %v1148_v24 = vsel %vm864_vm1, %v2778_v33, 0.0  ;;  %v2780_v30 = vpop.eup %2779  ;;  %v3498_v25 = vpop.permute.xlu1 %1295 }
 0x361   : > { %v1216_v35 = vsel %vm897_vm2, %v1148_v24, 0.0  ;;  %v1384_v36 = vpack.c.bf16 %v1149_v51, %v1148_v24  ;;  %v2782_v37 = vpop.eup %2781  ;;  %v1151_v13 = vsel %vm864_vm1, %v2780_v30, 0.0  ;;  %v3504_v2 = vpop.permute.xlu0 %1320  ;;  %v1155_v51 = vld [vmem:[#allocation5 + $0x8] sm:$0xff] }
 0x362   : > { %1220 = vadd.xlane.f32.xlu1 %v1219_v46  ;;  %1217 = vadd.xlane.f32.xlu0 %v1216_v35  ;;  %v1153_v17 = vsel %vm864_vm1, %v2782_v37, 0.0  ;;  %v1225_v22 = vsel %vm897_vm2, %v1151_v13, 0.0  ;;  %v1171_v30 = vmul.f32 %v3368_v47, %v1155_v51  ;;  %v1176_v35 = vmul.f32 %v3390_v62, %v1160_v0  ;;  %v1158_v37 = vld [vmem:[#allocation5 + $0x20] sm:$0xff]  ;;  %v1161_v47 = vld [vmem:[#allocation5 + $0x38] sm:$0xff] }
 0x363   : > { %v2784_v61 = vpop.eup %2783  ;;  %2573 = vmatmul.mubr.msk.bf16.gmra.mrb[8].mxu1 %vm897_vm2, %v1384_v36  ;;  %v1231_v19 = vsel %vm897_vm2, %v1153_v17, 0.0  ;;  %v1174_v45 = vmul.f32 %v3384_v32, %v1158_v37  ;;  %v1166_v51 = vld [vmem:[#allocation5 + $0x60] sm:$0xff]  ;;  %v1268_v37 = vld [vmem:[#allocation3 + $0x8] sm:$0xff] }
 0x364   : > { %v1150_v28 = vsel %vm864_vm1, %v2784_v61, 0.0  ;;  %v3502_v56 = vpop.permute.xlu1 %1305 }
 0x365   : > { %v1385_v21 = vpack.c.bf16 %v1151_v13, %v1150_v28  ;;  %v1222_v41 = vsel %vm897_vm2, %v1150_v28, 0.0  ;;  %v3508_v49 = vpop.permute.xlu0 %1340 }
 0x366   : > { %1214 = vadd.xlane.f32.xlu1 %v1213_v42  ;;  %1211 = vadd.xlane.f32.xlu0 %v1210_v12  ;;  %v1177_v42 = vmul.f32 %v3378_v53, %v1161_v47  ;;  %v1162_v53 = vld [vmem:[#allocation5 + $0x40] sm:$0xff]  ;;  %v1364_v47 = vmul.f32 %v3494_v44, %v1268_v37 }
 0x367   : > { %v2786_v10 = vpop.eup %2785  ;;  %2576 = vmatprep.mubr.msk.bf16.mxu1 %vm897_vm2, %v1385_v21  ;;  %v1159_v21 = vld [vmem:[#allocation5 + $0x28] sm:$0xff] }
 0x368   : > { %v1152_v14 = vsel %vm864_vm1, %v2786_v10, 0.0  ;;  %v3486_v31 = vpop.eup %2787  ;;  %v3506_v7 = vpop.permute.xlu1 %1315  ;;  %v1175_v62 = vmul.f32 %v3370_v48, %v1159_v21  ;;  %v1178_v48 = vmul.f32 %v3402_v6, %v1162_v53  ;;  %v1167_v6 = vld [vmem:[#allocation5 + $0x68] sm:$0xff] }
 0x369   : > { %v1228_v39 = vsel %vm897_vm2, %v1152_v14, 0.0  ;;  %v1386_v34 = vpack.c.bf16 %v1153_v17, %v1152_v14  ;;  %v3489_v58 = vpop.eup %2789  ;;  %v3512_v38 = vpop.permute.xlu0 %1330  ;;  %v1164_v14 = vld [vmem:[#allocation5 + $0x50] sm:$0xff] }
 0x36a   : > { %1232 = vadd.xlane.f32.xlu1 %v1231_v19  ;;  %1229 = vadd.xlane.f32.xlu0 %v1228_v39  ;;  %v1165_v19 = vld [vmem:[#allocation5 + $0x58] sm:$0xff]  ;;  %v1180_v32 = vmul.f32 %v3396_v55, %v1164_v14 }
 0x36b   : > { %2577 = vmatmul.mubr.msk.bf16.gmra.mrb[12].mxu1 %vm897_vm2, %v1386_v34  ;;  %v1181_v34 = vmul.f32 %v3386_v40, %v1165_v19  ;;  %v1169_v55 = vld [vmem:[#allocation5 + $0x78] sm:$0xff] }
 0x36c   : > { %v3510_v43 = vpop.permute.xlu1 %1335  ;;  %v1185_v26 = vmul.f32 %v3489_v58, %v1169_v55  ;;  %v1274_v14 = vld [vmem:[#allocation3 + $0x38] sm:$0xff] }
 0x36d   : > { %v3516_v57 = vpop.permute.xlu0 %1350  ;;  %v1370_v44 = vmul.f32 %v3504_v2, %v1274_v14 }
 0x36e   : > { %1226 = vadd.xlane.f32.xlu1 %v1225_v22  ;;  %1223 = vadd.xlane.f32.xlu0 %v1222_v41 }
 0x370   : > { %v3514_v54 = vpop.permute.xlu1 %1325 }
 0x374   : > { %v3518_v60 = vpop.permute.xlu1 %1345 }
 0x37f   : > { %1355 = vperm.xlu1 %2714, %v3486_v31  }
 0x384   : > { %1360 = vperm.xlu0 %2713, %v3489_v58   ;;  %v1269_v58 = vld [vmem:[#allocation3 + $0x10] sm:$0xff] }
 0x3ce   : > { %v1194_v16 = vpop.xlane.xlu0 %1193 }
 0x3cf   : > { %v1236_v18 = vadd.f32 %v1194_v16, %v1172_v8  ;;  %v1188_v20 = vpop.xlane.xlu1 %1187 }
 0x3d0   : > { %v1234_v9 = vadd.f32 %v1188_v20, %v1170_v52  ;;  %v1168_v52 = vld [vmem:[#allocation5 + $0x70] sm:$0xff] }
 0x3d1   : > { %1253 = vst.msk [vmem:[#allocation5 + $0x10] sm:$0xff] %vm1250_vm3, %v1236_v18  ;;  %v1184_v20 = vmul.f32 %v3486_v31, %v1168_v52 }
 0x3d2   : > { %1251 = vst.msk [vmem:[#allocation5] sm:$0xff] %vm1250_vm3, %v1234_v9 }
 0x3d3   : > { %v1197_v33 = vpop.xlane.xlu1 %1196 }
 0x3d4   : > { %v1237_v24 = vadd.f32 %v1197_v33, %v1173_v29 }
 0x3d6   : > { %1254 = vst.msk [vmem:[#allocation5 + $0x18] sm:$0xff] %vm1250_vm3, %v1237_v24  ;;  %v1191_v50 = vpop.xlane.xlu0 %1190  ;;  %v1182_v24 = vmul.f32 %v3405_v3, %v1166_v51 }
 0x3d7   : > { %v1235_v46 = vadd.f32 %v1191_v50, %v1171_v30  ;;  %v1183_v30 = vmul.f32 %v3398_v1, %v1167_v6 }
 0x3d9   : > { %1252 = vst.msk [vmem:[#allocation5 + $0x8] sm:$0xff] %vm1250_vm3, %v1235_v46 }
 0x3db   : > { %v1206_v36 = vpop.xlane.xlu0 %1205 }
 0x3dc   : > { %v1240_v61 = vadd.f32 %v1206_v36, %v1176_v35  ;;  %v1267_v35 = vld [vmem:[#allocation3] sm:$0xff]  ;;  %v1270_v36 = vld [vmem:[#allocation3 + $0x18] sm:$0xff] }
 0x3dd   : > { %v1366_v3 = vmul.f32 %v3496_v5, %v1270_v36 }
 0x3de   : > { %1257 = vst.msk [vmem:[#allocation5 + $0x30] sm:$0xff] %vm1250_vm3, %v1240_v61  ;;  %v1365_v61 = vmul.f32 %v3498_v25, %v1269_v58  ;;  %v1271_v25 = vld [vmem:[#allocation3 + $0x20] sm:$0xff] }
 0x3df   : > { %v1200_v28 = vpop.xlane.xlu0 %1199  ;;  %v1367_v5 = vmul.f32 %v3502_v56, %v1271_v25  ;;  %v1276_v56 = vld [vmem:[#allocation3 + $0x48] sm:$0xff] }
 0x3e0   : > { %v1238_v13 = vadd.f32 %v1200_v28, %v1174_v45  ;;  %v1363_v45 = vmul.f32 %v3492_v15, %v1267_v35  ;;  %v1272_v15 = vld [vmem:[#allocation3 + $0x28] sm:$0xff] }
 0x3e2   : > { %1255 = vst.msk [vmem:[#allocation5 + $0x20] sm:$0xff] %vm1250_vm3, %v1238_v13 }
 0x3e7   : > { %v1209_v12 = vpop.xlane.xlu1 %1208 }
 0x3e8   : > { %v1241_v17 = vadd.f32 %v1209_v12, %v1177_v42 }
 0x3e9   : > { %v1628_v14 = vld [vmem:[#allocation5 + $0x20] sm:$0xff] (!%p2246_p10) }
 0x3ea   : > { %1258 = vst.msk [vmem:[#allocation5 + $0x38] sm:$0xff] %vm1250_vm3, %v1241_v17 }
 0x3eb   : > { %v1203_v10 = vpop.xlane.xlu1 %1202 }
 0x3ec   : > { %v1239_v39 = vadd.f32 %v1203_v10, %v1175_v62  ;;  %v1273_v10 = vld [vmem:[#allocation3 + $0x30] sm:$0xff] }
 0x3ed   : > { %v1369_v19 = vmul.f32 %v3506_v7, %v1273_v10  ;;  %v1278_v7 = vld [vmem:[#allocation3 + $0x58] sm:$0xff] }
 0x3ee   : > { %1256 = vst.msk [vmem:[#allocation5 + $0x28] sm:$0xff] %vm1250_vm3, %v1239_v39 }
 0x3ef   : > { %v1218_v22 = vpop.xlane.xlu0 %1217  ;;  %v1221_v41 = vpop.xlane.xlu1 %1220 }
 0x3f0   : > { %v1244_v23 = vadd.f32 %v1218_v22, %v1180_v32  ;;  %v1245_v59 = vadd.f32 %v1221_v41, %v1181_v34  ;;  %v1368_v22 = vmul.f32 %v3500_v4, %v1272_v15  ;;  %v1374_v4 = vmul.f32 %v3508_v49, %v1278_v7 }
 0x3f2   : > { %1261 = vst.msk [vmem:[#allocation5 + $0x50] sm:$0xff] %vm1250_vm3, %v1244_v23  ;;  %1262 = vst.msk [vmem:[#allocation5 + $0x58] sm:$0xff] %vm1250_vm3, %v1245_v59  ;;  %v1277_v59 = vld [vmem:[#allocation3 + $0x50] sm:$0xff] }
 0x3f3   : > { %v1212_v8 = vpop.xlane.xlu0 %1211  ;;  %v1215_v16 = vpop.xlane.xlu1 %1214 }
 0x3f4   : > { %v1242_v18 = vadd.f32 %v1212_v8, %v1178_v48  ;;  %v1243_v40 = vadd.f32 %v1215_v16, %v1179_v27  ;;  %v1275_v27 = vld [vmem:[#allocation3 + $0x40] sm:$0xff]  ;;  %v1373_v8 = vmul.f32 %v3510_v43, %v1277_v59  ;;  %v1282_v43 = vld [vmem:[#allocation3 + $0x78] sm:$0xff] }
 0x3f5   : > { %v1371_v2 = vmul.f32 %v3514_v54, %v1275_v27  ;;  %v1629_v10 = vld [vmem:[#allocation5 + $0x28] sm:$0xff] (!%p2246_p10) }
 0x3f6   : > { %1259 = vst.msk [vmem:[#allocation5 + $0x40] sm:$0xff] %vm1250_vm3, %v1242_v18  ;;  %1260 = vst.msk [vmem:[#allocation5 + $0x48] sm:$0xff] %vm1250_vm3, %v1243_v40  ;;  %v1372_v18 = vmul.f32 %v3512_v38, %v1276_v56  ;;  %v2799_v56 = vld [vmem:[%s3653_s4 + $0x70] sm:$0xff] (!%p2246_p10)  }
 0x3f7   : > { %v1230_v9 = vpop.xlane.xlu0 %1229  ;;  %v1233_v29 = vpop.xlane.xlu1 %1232 }
 0x3f8   : > { %v1248_v33 = vadd.f32 %v1230_v9, %v1184_v20  ;;  %v1249_v63 = vadd.f32 %v1233_v29, %v1185_v26  ;;  %v1281_v29 = vld [vmem:[#allocation3 + $0x70] sm:$0xff] }
 0x3fa   : > { %1265 = vst.msk [vmem:[#allocation5 + $0x70] sm:$0xff] %vm1250_vm3, %v1248_v33  ;;  %1266 = vst.msk [vmem:[#allocation5 + $0x78] sm:$0xff] %vm1250_vm3, %v1249_v63  ;;  %v1279_v33 = vld [vmem:[#allocation3 + $0x60] sm:$0xff]  ;;  %v1280_v63 = vld [vmem:[#allocation3 + $0x68] sm:$0xff] }
 0x3fb   : > { %v1224_v50 = vpop.xlane.xlu0 %1223  ;;  %v1227_v46 = vpop.xlane.xlu1 %1226 }
 0x3fc   : > { %v1246_v0 = vadd.f32 %v1224_v50, %v1182_v24  ;;  %v1247_v31 = vadd.f32 %v1227_v46, %v1183_v30  ;;  %v1375_v24 = vmul.f32 %v3518_v60, %v1279_v33  ;;  %v1624_v60 = vld [vmem:[#allocation5] sm:$0xff] (!%p2246_p10) }
 0x3fe   : > { %1263 = vst.msk [vmem:[#allocation5 + $0x60] sm:$0xff] %vm1250_vm3, %v1246_v0  ;;  %1264 = vst.msk [vmem:[#allocation5 + $0x68] sm:$0xff] %vm1250_vm3, %v1247_v31  ;;  %v1376_v0 = vmul.f32 %v3516_v57, %v1280_v63  ;;  %v1625_v57 = vld [vmem:[#allocation5 + $0x8] sm:$0xff] (!%p2246_p10) }
 0x3ff   : > { %v1356_v51 = vpop.permute.xlu1 %1355 }
 0x400   : > { %v1377_v49 = vmul.f32 %v1356_v51, %v1281_v29 }
 0x401   : > { %v1639_v59 = vld [vmem:[#allocation5 + $0x78] sm:$0xff] (!%p2246_p10)  ;;  %v1638_v27 = vld [vmem:[#allocation5 + $0x70] sm:$0xff] (!%p2246_p10) }
 0x403   : > { %v1361_v54 = vpop.permute.xlu0 %1360 }
 0x404   : > { %v1378_v38 = vmul.f32 %v1361_v54, %v1282_v43 }
 0x41e   : > { %v2566_v28 = vpop.f32.mrb[0].mxu1 }
 0x41f   : > { %v1558_v1 = vadd.f32 %v2566_v28, %v1365_v61  ;;  %v1493_v13 = vpop.f32.mrb[1].mxu1  ;;  %v1632_v61 = vld [vmem:[#allocation5 + $0x40] sm:$0xff] (!%p2246_p10)  ;;  %v2892_v28 = vmov (!%p2246_p10), 0  }
 0x420   : > { %v1556_v42 = vadd.f32 %v1493_v13, %v1363_v45  ;;  %v2567_v12 = vpop.f32.mrb[2].mxu1  ;;  %v1633_v45 = vld [vmem:[#allocation5 + $0x48] sm:$0xff] (!%p2246_p10)  ;;  %2792 = vset.pattern.permute.xlu1 (!%p2246_p10), %v2892_v28  ;;  %2791 = vset.pattern.permute.xlu0 (!%p2246_p10), %v2892_v28  ;;  %2801 = vrcp.f32 (!%p2246_p10), %v1632_v61  ;;  %v2793_v13 = vld [vmem:[%s3653_s4 + $0x40] sm:$0xff] (!%p2246_p10)  }
 0x421   : > { %1574 = vst [vmem:[#allocation3 + $0x10] sm:$0xff] %v1558_v1  ;;  %v1559_v21 = vadd.f32 %v2567_v12, %v1366_v3  ;;  %v1496_v17 = vpop.f32.mrb[3].mxu1  ;;  %2803 = vrcp.f32 (!%p2246_p10), %v1624_v60  ;;  %v1627_v3 = vld [vmem:[#allocation5 + $0x18] sm:$0xff] (!%p2246_p10)  ;;  %v1626_v1 = vld [vmem:[#allocation5 + $0x10] sm:$0xff] (!%p2246_p10)  ;;  %2580 = vmatprep.subr.bf16.mxu0 (!%p2246_p10), %v2793_v13  ;;  %2628 = vmatprep.subr.bf16.mxu1 (!%p2246_p10), %v2793_v13 }
 0x422   : > { %1572 = vst [vmem:[#allocation3] sm:$0xff] %v1556_v42  ;;  %v1557_v62 = vadd.f32 %v1496_v17, %v1364_v47  ;;  %2805 = vrcp.f32 (!%p2246_p10), %v1633_v45  ;;  %v2794_v47 = vld [vmem:[%s3653_s4 + $0x48] sm:$0xff] (!%p2246_p10)   ;;  %v1635_v42 = vld [vmem:[#allocation5 + $0x58] sm:$0xff] (!%p2246_p10)  ;;  %v1634_v12 = vld [vmem:[#allocation5 + $0x50] sm:$0xff] (!%p2246_p10)  ;;  %2581 = vmatpush3.bf16.msra.mxu0 (!%p2246_p10), %v2793_v13  ;;  %2636 = vmatpush3.bf16.msra.mxu1 (!%p2246_p10), %v2793_v13 }
 0x423   : > { %1575 = vst [vmem:[#allocation3 + $0x18] sm:$0xff] %v1559_v21  ;;  %2807 = vrcp.f32 (!%p2246_p10), %v1625_v57  ;;  %2582 = vmatprep.subr.bf16.mxu0 (!%p2246_p10), %v2794_v47  ;;  %2629 = vmatprep.subr.bf16.mxu1 (!%p2246_p10), %v2794_v47  ;;  %v2795_v21 = vld [vmem:[%s3653_s4 + $0x50] sm:$0xff] (!%p2246_p10)  }
 0x424   : > { %1573 = vst [vmem:[#allocation3 + $0x8] sm:$0xff] %v1557_v62  ;;  %2809 = vrcp.f32 (!%p2246_p10), %v1627_v3 }
 0x425   : > { %2811 = vrcp.f32 (!%p2246_p10), %v1626_v1 }
 0x426   : > { %2813 = vrcp.f32 (!%p2246_p10), %v1635_v42  ;;  %2583 = vmatpush3.bf16.msra.mxu0 (!%p2246_p10), %v2794_v47  ;;  %2637 = vmatpush3.bf16.msra.mxu1 (!%p2246_p10), %v2794_v47 }
 0x427   : > { %2815 = vrcp.f32 (!%p2246_p10), %v1634_v12  ;;  %2584 = vmatprep.subr.bf16.mxu0 (!%p2246_p10), %v2795_v21  ;;  %2630 = vmatprep.subr.bf16.mxu1 (!%p2246_p10), %v2795_v21 }
 0x428   : > { %2817 = vrcp.f32 (!%p2246_p10), %v1629_v10 }
 0x429   : > { %2819 = vrcp.f32 (!%p2246_p10), %v1628_v14  ;;  %v1608_v29 = vld [vmem:[#allocation3] sm:$0xff] (!%p2246_p10) }
 0x42a   : > { %v2802_v17 = vpop.eup (!%p2246_p10), %2801  ;;  %2585 = vmatpush3.bf16.msra.mxu0 (!%p2246_p10), %v2795_v21  ;;  %2638 = vmatpush3.bf16.msra.mxu1 (!%p2246_p10), %v2795_v21 }
 0x42b   : > { %v2804_v62 = vpop.eup (!%p2246_p10), %2803  ;;  %1698 = vperm.xlu1 (!%p2246_p10), %2792, %v2802_v17   ;;  %v1609_v51 = vld [vmem:[#allocation3 + $0x8] sm:$0xff] (!%p2246_p10) }
 0x42c   : > { %v2806_v25 = vpop.eup (!%p2246_p10), %2805  ;;  %1658 = vperm.xlu0 (!%p2246_p10), %2791, %v2804_v62  }
 0x42d   : > { %v2808_v15 = vpop.eup (!%p2246_p10), %2807 }
 0x42e   : > { %v2570_v39 = vpop.f32.mrb[4].mxu1 }
 0x42f   : > { %v1562_v32 = vadd.f32 %v2570_v39, %v1369_v19  ;;  %v1509_v34 = vpop.f32.mrb[5].mxu1  ;;  %v2796_v19 = vld [vmem:[%s3653_s4 + $0x58] sm:$0xff] (!%p2246_p10)   ;;  %1703 = vperm.xlu1 (!%p2246_p10), %2792, %v2806_v25   ;;  %v2810_v39 = vpop.eup (!%p2246_p10), %2809 }
 0x430   : > { %v1560_v41 = vadd.f32 %v1509_v34, %v1367_v5  ;;  %v2571_v53 = vpop.f32.mrb[6].mxu1  ;;  %v1637_v5 = vld [vmem:[#allocation5 + $0x68] sm:$0xff] (!%p2246_p10)  ;;  %1663 = vperm.xlu0 (!%p2246_p10), %2791, %v2808_v15   ;;  %2586 = vmatprep.subr.bf16.mxu0 (!%p2246_p10), %v2796_v19  ;;  %v2797_v34 = vld [vmem:[%s3653_s4 + $0x60] sm:$0xff] (!%p2246_p10)  }
 0x431   : > { %1578 = vst [vmem:[#allocation3 + $0x30] sm:$0xff] %v1562_v32  ;;  %v1563_v11 = vadd.f32 %v2571_v53, %v1370_v44  ;;  %v1512_v23 = vpop.f32.mrb[7].mxu1  ;;  %v1636_v44 = vld [vmem:[#allocation5 + $0x60] sm:$0xff] (!%p2246_p10)  ;;  %v2812_v32 = vpop.eup (!%p2246_p10), %2811  ;;  %2821 = vrcp.f32 (!%p2246_p10), %v1637_v5  ;;  %2631 = vmatprep.subr.bf16.mxu1 (!%p2246_p10), %v2796_v19  ;;  %v1630_v53 = vld [vmem:[#allocation5 + $0x30] sm:$0xff] (!%p2246_p10)  ;;  %2587 = vmatpush3.bf16.msra.mxu0 (!%p2246_p10), %v2796_v19 }
 0x432   : > { %1576 = vst [vmem:[#allocation3 + $0x20] sm:$0xff] %v1560_v41  ;;  %v1561_v48 = vadd.f32 %v1512_v23, %v1368_v22  ;;  %2823 = vrcp.f32 (!%p2246_p10), %v1636_v44  ;;  %v1631_v22 = vld [vmem:[#allocation5 + $0x38] sm:$0xff] (!%p2246_p10)  ;;  %v2814_v41 = vpop.eup (!%p2246_p10), %2813  ;;  %2588 = vmatprep.subr.bf16.mxu0 (!%p2246_p10), %v2797_v34  ;;  %2639 = vmatpush3.bf16.msra.mxu1 (!%p2246_p10), %v2796_v19  ;;  %v2798_v23 = vld [vmem:[%s3653_s4 + $0x68] sm:$0xff] (!%p2246_p10)  }
 0x433   : > { %1579 = vst [vmem:[#allocation3 + $0x38] sm:$0xff] %v1563_v11  ;;  %1673 = vperm.xlu1 (!%p2246_p10), %2792, %v2810_v39   ;;  %v2816_v11 = vpop.eup (!%p2246_p10), %2815  ;;  %2825 = vrcp.f32 (!%p2246_p10), %v1631_v22  ;;  %2632 = vmatprep.subr.bf16.mxu1 (!%p2246_p10), %v2797_v34 }
 0x434   : > { %1577 = vst [vmem:[#allocation3 + $0x28] sm:$0xff] %v1561_v48  ;;  %1668 = vperm.xlu0 (!%p2246_p10), %2791, %v2812_v32   ;;  %2827 = vrcp.f32 (!%p2246_p10), %v1630_v53  ;;  %v2818_v48 = vpop.eup (!%p2246_p10), %2817 }
 0x435   : > { %2589 = vmatpush3.bf16.msra.mxu0 (!%p2246_p10), %v2797_v34  ;;  %v2820_v7 = vpop.eup (!%p2246_p10), %2819  ;;  %2829 = vrcp.f32 (!%p2246_p10), %v1639_v59 }
 0x436   : > { %v2574_v16 = vpop.f32.mrb[8].mxu1  ;;  %2590 = vmatprep.subr.bf16.mxu0 (!%p2246_p10), %v2798_v23  ;;  %2640 = vmatpush3.bf16.msra.mxu1 (!%p2246_p10), %v2797_v34  ;;  %2831 = vrcp.f32 (!%p2246_p10), %v1638_v27 }
 0x437   : > { %v1566_v52 = vadd.f32 %v2574_v16, %v1373_v8  ;;  %v1525_v55 = vpop.f32.mrb[9].mxu1  ;;  %1713 = vperm.xlu1 (!%p2246_p10), %2792, %v2814_v41   ;;  %2633 = vmatprep.subr.bf16.mxu1 (!%p2246_p10), %v2798_v23  ;;  %v2800_v16 = vld [vmem:[%s3653_s4 + $0x78] sm:$0xff] (!%p2246_p10)  }
 0x438   : > { %v1564_v40 = vadd.f32 %v1525_v55, %v1371_v2  ;;  %v2575_v20 = vpop.f32.mrb[10].mxu1  ;;  %1708 = vperm.xlu0 (!%p2246_p10), %2791, %v2816_v11   ;;  %v1614_v5 = vld [vmem:[#allocation3 + $0x30] sm:$0xff] (!%p2246_p10) }
 0x439   : > { %1582 = vst [vmem:[#allocation3 + $0x50] sm:$0xff] %v1566_v52  ;;  %v1567_v26 = vadd.f32 %v2575_v20, %v1374_v4  ;;  %v1528_v9 = vpop.f32.mrb[11].mxu1  ;;  %2591 = vmatpush3.bf16.msra.mxu0 (!%p2246_p10), %v2798_v23  ;;  %v1612_v3 = vld [vmem:[#allocation3 + $0x20] sm:$0xff] (!%p2246_p10) }
 0x43a   : > { %1580 = vst [vmem:[#allocation3 + $0x40] sm:$0xff] %v1564_v40  ;;  %v1565_v6 = vadd.f32 %v1528_v9, %v1372_v18  ;;  %2592 = vmatprep.subr.bf16.mxu0 (!%p2246_p10), %v2799_v56  ;;  %2641 = vmatpush3.bf16.msra.mxu1 (!%p2246_p10), %v2798_v23  ;;  %v1615_v19 = vld [vmem:[#allocation3 + $0x38] sm:$0xff] (!%p2246_p10) }
 0x43b   : > { %1583 = vst [vmem:[#allocation3 + $0x58] sm:$0xff] %v1567_v26  ;;  %1683 = vperm.xlu1 (!%p2246_p10), %2792, %v2818_v48   ;;  %v2822_v8 = vpop.eup (!%p2246_p10), %2821  ;;  %2634 = vmatprep.subr.bf16.mxu1 (!%p2246_p10), %v2799_v56  ;;  %v1613_v57 = vld [vmem:[#allocation3 + $0x28] sm:$0xff] (!%p2246_p10) }
 0x43c   : > { %1581 = vst [vmem:[#allocation3 + $0x48] sm:$0xff] %v1565_v6  ;;  %1678 = vperm.xlu0 (!%p2246_p10), %2791, %v2820_v7   ;;  %v2824_v2 = vpop.eup (!%p2246_p10), %2823 }
 0x43d   : > { %v2826_v4 = vpop.eup (!%p2246_p10), %2825  ;;  %2593 = vmatpush3.bf16.msra.mxu0 (!%p2246_p10), %v2799_v56 }
 0x43e   : > { %v2578_v30 = vpop.f32.mrb[12].mxu1  ;;  %1607 = sbr.rel (%p2246_p10) target bundleno = 1450 (0x5aa), region = 52  ;;  %v2828_v52 = vpop.eup (!%p2246_p10), %2827  ;;  %2594 = vmatprep.subr.bf16.mxu0 (!%p2246_p10), %v2800_v16  ;;  %2642 = vmatpush3.bf16.msra.mxu1 (!%p2246_p10), %v2799_v56  ;;  %v3594_v56 = vld [vmem:[%s3654_s5 + $0x1] ss:$0 sm:$0xff] (!%p2246_p10) }
 0x43f   : > { %v1570_v50 = vadd.f32 %v2578_v30, %v1377_v49  ;;  %v1541_v46 = vpop.f32.mrb[13].mxu1  ;;  %1723 = vperm.xlu1 (!%p2246_p10), %2792, %v2822_v8   ;;  %2635 = vmatprep.subr.bf16.mxu1 (!%p2246_p10), %v2800_v16  ;;  %v2830_v55 = vpop.eup (!%p2246_p10), %2829  ;;  %v1610_v30 = vld [vmem:[#allocation3 + $0x10] sm:$0xff] (!%p2246_p10)  ;;  %v2418_v8 = vld [vmem:[%s2976_s16 + $0x8] sm:$0xff] (!%p2246_p10)  }
 0x440   : > { %v1568_v31 = vadd.f32 %v1541_v46, %v1375_v24  ;;  %v2579_v58 = vpop.f32.mrb[14].mxu1  ;;  %1718 = vperm.xlu0 (!%p2246_p10), %2791, %v2824_v2   ;;  %v2832_v18 = vpop.eup (!%p2246_p10), %2831  ;;  %v1611_v24 = vld [vmem:[#allocation3 + $0x18] sm:$0xff] (!%p2246_p10)  ;;  %v2340_v2 = vld [vmem:[%s2976_s16] sm:$0xff] (!%p2246_p10)  }
 0x441   : > { %1586 = vst [vmem:[#allocation3 + $0x70] sm:$0xff] %v1570_v50  ;;  %v1571_v35 = vadd.f32 %v2579_v58, %v1378_v38  ;;  %v1544_v36 = vpop.f32.mrb[15].mxu1  ;;  %2595 = vmatpush3.bf16.msra.mxu0 (!%p2246_p10), %v2800_v16  ;;  %v1616_v26 = vld [vmem:[#allocation3 + $0x40] sm:$0xff] (!%p2246_p10) }
 0x442   : > { %1584 = vst [vmem:[#allocation3 + $0x60] sm:$0xff] %v1568_v31  ;;  %v1569_v37 = vadd.f32 %v1544_v36, %v1376_v0  ;;  %2643 = vmatpush3.bf16.msra.mxu1 (!%p2246_p10), %v2800_v16  ;;  %v1618_v36 = vld [vmem:[#allocation3 + $0x50] sm:$0xff] (!%p2246_p10) }
 0x443   : > { %1587 = vst [vmem:[#allocation3 + $0x78] sm:$0xff] %v1571_v35  ;;  %1693 = vperm.xlu1 (!%p2246_p10), %2792, %v2826_v4   ;;  %v1617_v9 = vld [vmem:[#allocation3 + $0x48] sm:$0xff] (!%p2246_p10)  ;;  %v1619_v35 = vld [vmem:[#allocation3 + $0x58] sm:$0xff] (!%p2246_p10) }
 0x444   : > { %1585 = vst [vmem:[#allocation3 + $0x68] sm:$0xff] %v1569_v37  ;;  %1688 = vperm.xlu0 (!%p2246_p10), %2791, %v2828_v52   ;;  %v2345_v52 = vunpack.c.l.bf16 (!%p2246_p10), %v2418_v8 }
 0x447   : > { %1733 = vperm.xlu1 %2792, %v2830_v55  }
 0x448   : > { %1728 = vperm.xlu0 %2791, %v2832_v18   ;;  %v1622_v53 = vld [vmem:[#allocation3 + $0x70] sm:$0xff]  ;;  %v2346_v18 = vunpack.c.h.bf16 %v2418_v8 }
 0x449   : > { %v1620_v17 = vld [vmem:[#allocation3 + $0x60] sm:$0xff] }
 0x44a   : > { %v1623_v41 = vld [vmem:[#allocation3 + $0x78] sm:$0xff] }
 0x44b   : > { %v1621_v21 = vld [vmem:[#allocation3 + $0x68] sm:$0xff] }
 0x4aa   : > { %v1699_v40 = vpop.permute.xlu1 %1698 }
 0x4ab   : > { %v1659_v20 = vpop.permute.xlu0 %1658  ;;  %v1744_v33 = vmul.f32 %v1699_v40, %v1616_v26  ;;  %v2422_v40 = vld [vmem:[%s2976_s16 + $0x28] sm:$0xff]  }
 0x4ac   : > { %v1736_v63 = vmul.f32 %v1659_v20, %v1608_v29  ;;  %v2421_v20 = vld [vmem:[%s2976_s16 + $0x20] sm:$0xff]  }
 0x4ae   : > { %v1704_v6 = vpop.permute.xlu1 %1703 }
 0x4af   : > { %v1745_v43 = vmul.f32 %v1704_v6, %v1617_v9  ;;  %v1664_v54 = vpop.permute.xlu0 %1663  ;;  %v2341_v9 = vunpack.c.l.bf16 %v2340_v2 }
 0x4b0   : > { %v1737_v49 = vmul.f32 %v1664_v54, %v1609_v51  ;;  %v2342_v51 = vunpack.c.h.bf16 %v2340_v2 }
 0x4b1   : > { %v1756_v38 = vpack.c.bf16 %v1745_v43, %v1744_v33 }
 0x4b2   : > { %v1674_v50 = vpop.permute.xlu1 %1673  ;;  %v1752_v46 = vpack.c.bf16 %v1737_v49, %v1736_v63  ;;  %v2361_v63 = vunpack.c.l.bf16 %v2422_v40  ;;  %v2357_v49 = vunpack.c.l.bf16 %v2421_v20 }
 0x4b3   : > { %v1739_v0 = vmul.f32 %v1674_v50, %v1611_v24  ;;  %v1669_v31 = vpop.permute.xlu0 %1668  ;;  %2604 = vmatprep.mubr.bf16.mxu1 %v1756_v38 }
 0x4b4   : > { %v1738_v58 = vmul.f32 %v1669_v31, %v1610_v30  ;;  %2596 = vmatprep.mubr.bf16.mxu0 %v1752_v46  ;;  %v2362_v46 = vunpack.c.h.bf16 %v2422_v40 }
 0x4b6   : > { %v1753_v37 = vpack.c.bf16 %v1739_v0, %v1738_v58  ;;  %v1714_v61 = vpop.permute.xlu1 %1713 }
 0x4b7   : > { %v1747_v60 = vmul.f32 %v1714_v61, %v1619_v35  ;;  %v1709_v45 = vpop.permute.xlu0 %1708 }
 0x4b8   : > { %v1746_v28 = vmul.f32 %v1709_v45, %v1618_v36  ;;  %2597 = vmatmul.mubr.bf16.vlgmr.msra.gmra.mrb[0].mxu0 %v1753_v37  ;;  %v2358_v36 = vunpack.c.h.bf16 %v2421_v20 }
 0x4ba   : > { %v1757_v1 = vpack.c.bf16 %v1747_v60, %v1746_v28  ;;  %v1684_v13 = vpop.permute.xlu1 %1683 }
 0x4bb   : > { %v1741_v47 = vmul.f32 %v1684_v13, %v1613_v57  ;;  %v1679_v42 = vpop.permute.xlu0 %1678 }
 0x4bc   : > { %v1740_v12 = vmul.f32 %v1679_v42, %v1612_v3  ;;  %2605 = vmatmul.mubr.bf16.vlgmr.msra.gmra.mrb[0].mxu1 %v1757_v1 }
 0x4be   : > { %v1754_v62 = vpack.c.bf16 %v1741_v47, %v1740_v12  ;;  %v1724_v10 = vpop.permute.xlu1 %1723  ;;  %v2420_v12 = vld [vmem:[%s2976_s16 + $0x18] sm:$0xff]  }
 0x4bf   : > { %v1749_v25 = vmul.f32 %v1724_v10, %v1621_v21  ;;  %v1719_v14 = vpop.permute.xlu0 %1718  ;;  %v2419_v21 = vld [vmem:[%s2976_s16 + $0x10] sm:$0xff]   ;;  %v2353_v10 = vunpack.c.l.bf16 %v2420_v12 }
 0x4c0   : > { %v1748_v15 = vmul.f32 %v1719_v14, %v1620_v17  ;;  %2600 = vmatprep.mubr.bf16.mxu0 %v1754_v62  ;;  %v2354_v14 = vunpack.c.h.bf16 %v2420_v12 }
 0x4c2   : > { %v1758_v39 = vpack.c.bf16 %v1749_v25, %v1748_v15  ;;  %v1694_v44 = vpop.permute.xlu1 %1693  ;;  %v2424_v15 = vld [vmem:[%s2976_s16 + $0x38] sm:$0xff]  }
 0x4c3   : > { %v1743_v32 = vmul.f32 %v1694_v44, %v1615_v19  ;;  %v1689_v34 = vpop.permute.xlu0 %1688  ;;  %v2423_v19 = vld [vmem:[%s2976_s16 + $0x30] sm:$0xff]   ;;  %v2370_v8 = vunpack.c.h.bf16 %v2424_v15 }
 0x4c4   : > { %v1742_v22 = vmul.f32 %v1689_v34, %v1614_v5  ;;  %2608 = vmatprep.mubr.bf16.mxu1 %v1758_v39  ;;  %v2349_v39 = vunpack.c.l.bf16 %v2419_v21 }
 0x4c6   : > { %v1755_v11 = vpack.c.bf16 %v1743_v32, %v1742_v22  ;;  %v1734_v23 = vpop.permute.xlu1 %1733  ;;  %v2350_v32 = vunpack.c.h.bf16 %v2419_v21 }
 0x4c7   : > { %v1751_v59 = vmul.f32 %v1734_v23, %v1623_v41  ;;  %v1729_v48 = vpop.permute.xlu0 %1728  ;;  %v2365_v23 = vunpack.c.l.bf16 %v2423_v19 }
 0x4c8   : > { %v1750_v27 = vmul.f32 %v1729_v48, %v1622_v53  ;;  %2601 = vmatmul.mubr.bf16.gmra.mrb[4].mxu0 %v1755_v11  ;;  %v2369_v11 = vunpack.c.l.bf16 %v2424_v15 }
 0x4ca   : > { %v1759_v7 = vpack.c.bf16 %v1751_v59, %v1750_v27 }
 0x4cc   : > { %2609 = vmatmul.mubr.bf16.gmra.mrb[4].mxu1 %v1759_v7 }
 0x58b   : > { %v2598_v16 = vpop.f32.mrb[0].mxu0 }
 0x58c   : > { %v1876_v4 = vadd.f32 %v2598_v16, %v3594_v56  ;;  %v1867_v55 = vpop.f32.mrb[1].mxu0 }
 0x58d   : > { %v1868_v26 = vadd.f32 %v3594_v56, %v1867_v55  ;;  %v2599_v29 = vpop.f32.mrb[2].mxu0  ;;  %v2366_v55 = vunpack.c.h.bf16 %v2423_v19 }
 0x58e   : > { %v1879_v6 = vadd.f32 %v2599_v29, %v3594_v56  ;;  %v1870_v33 = vpop.f32.mrb[3].mxu0  ;;  %v1964_v24 = vadd.f32 %v2345_v52, %v1876_v4 }
 0x58f   : > { %v1871_v43 = vadd.f32 %v3594_v56, %v1870_v33  ;;  %v2606_v54 = vpop.f32.mrb[0].mxu1  ;;  %v1962_v0 = vadd.f32 %v2341_v9, %v1868_v26 }
 0x590   : > { %v1965_v30 = vadd.f32 %v2346_v18, %v1879_v6  ;;  %v1908_v38 = vadd.f32 %v2606_v54, %v3594_v56  ;;  %v1899_v50 = vpop.f32.mrb[1].mxu1 }
 0x591   : > { %v1963_v31 = vadd.f32 %v2342_v51, %v1871_v43  ;;  %v1900_v58 = vadd.f32 %v3594_v56, %v1899_v50  ;;  %v2607_v35 = vpop.f32.mrb[2].mxu1 }
 0x592   : > { %v2379_v37 = vpack.c.bf16 %v1965_v30, %v1964_v24  ;;  %v1911_v61 = vadd.f32 %v2607_v35, %v3594_v56  ;;  %v1902_v60 = vpop.f32.mrb[3].mxu1  ;;  %v1972_v57 = vadd.f32 %v2361_v63, %v1908_v38 }
 0x593   : > { %v2374_v45 = vpack.c.bf16 %v1963_v31, %v1962_v0  ;;  %v1903_v28 = vadd.f32 %v3594_v56, %v1902_v60  ;;  %v1970_v1 = vadd.f32 %v2357_v49, %v1900_v58 }
 0x594   : > { %2425 = vst [vmem:[%s2986_s30 + $0x8] sm:$0xff] %v2379_v37   ;;  %v1973_v3 = vadd.f32 %v2362_v46, %v1911_v61 }
 0x595   : > { %2375 = vst [vmem:[%s2986_s30] sm:$0xff] %v2374_v45   ;;  %v1971_v13 = vadd.f32 %v2358_v36, %v1903_v28 }
 0x596   : > { %v2399_v47 = vpack.c.bf16 %v1973_v3, %v1972_v57 }
 0x597   : > { %v2394_v42 = vpack.c.bf16 %v1971_v13, %v1970_v1 }
 0x598   : > { %2429 = vst [vmem:[%s2986_s30 + $0x28] sm:$0xff] %v2399_v47  }
 0x599   : > { %2428 = vst [vmem:[%s2986_s30 + $0x20] sm:$0xff] %v2394_v42  }
 0x59b   : > { %v2602_v17 = vpop.f32.mrb[4].mxu0 }
 0x59c   : > { %v1892_v62 = vadd.f32 %v2602_v17, %v3594_v56  ;;  %v1883_v25 = vpop.f32.mrb[5].mxu0 }
 0x59d   : > { %v1884_v5 = vadd.f32 %v3594_v56, %v1883_v25  ;;  %v2603_v44 = vpop.f32.mrb[6].mxu0 }
 0x59e   : > { %v1895_v34 = vadd.f32 %v2603_v44, %v3594_v56  ;;  %v1886_v22 = vpop.f32.mrb[7].mxu0  ;;  %v1968_v59 = vadd.f32 %v2353_v10, %v1892_v62 }
 0x59f   : > { %v1887_v41 = vadd.f32 %v3594_v56, %v1886_v22  ;;  %v2610_v53 = vpop.f32.mrb[4].mxu1  ;;  %v1966_v2 = vadd.f32 %v2349_v39, %v1884_v5 }
 0x5a0   : > { %v1969_v48 = vadd.f32 %v2354_v14, %v1895_v34  ;;  %v1924_v27 = vadd.f32 %v2610_v53, %v3594_v56  ;;  %v1915_v7 = vpop.f32.mrb[5].mxu1 }
 0x5a1   : > { %v1967_v16 = vadd.f32 %v2350_v32, %v1887_v41  ;;  %v1916_v4 = vadd.f32 %v3594_v56, %v1915_v7  ;;  %v2611_v52 = vpop.f32.mrb[6].mxu1 }
 0x5a2   : > { %v2389_v18 = vpack.c.bf16 %v1969_v48, %v1968_v59  ;;  %v1927_v40 = vadd.f32 %v2611_v52, %v3594_v56  ;;  %v1918_v20 = vpop.f32.mrb[7].mxu1  ;;  %v1976_v29 = vadd.f32 %v2369_v11, %v1924_v27 }
 0x5a3   : > { %v2384_v26 = vpack.c.bf16 %v1967_v16, %v1966_v2  ;;  %v1919_v9 = vadd.f32 %v3594_v56, %v1918_v20  ;;  %v1974_v6 = vadd.f32 %v2365_v23, %v1916_v4 }
 0x5a4   : > { %2427 = vst [vmem:[%s2986_s30 + $0x18] sm:$0xff] %v2389_v18   ;;  %v1977_v51 = vadd.f32 %v2370_v8, %v1927_v40 }
 0x5a5   : > { %2426 = vst [vmem:[%s2986_s30 + $0x10] sm:$0xff] %v2384_v26   ;;  %v1975_v33 = vadd.f32 %v2366_v55, %v1919_v9 }
 0x5a6   : > { %v2409_v43 = vpack.c.bf16 %v1977_v51, %v1976_v29 }
 0x5a7   : > { %v2404_v54 = vpack.c.bf16 %v1975_v33, %v1974_v6 }
 0x5a8   : > { %2431 = vst [vmem:[%s2986_s30 + $0x38] sm:$0xff] %v2409_v43  }
 0x5a9   : > { %2430 = vst [vmem:[%s2986_s30 + $0x30] sm:$0xff] %v2404_v54  }
 0x5aa PF: > { %s16_s27 = sadd.s32 1, %s2887_s27   ;;  %s3660_s16 = sld [smem:[#allocation6_spill]] }
 0x5ab   : > { %p13_p11 = scmp.ge.s32.totalorder %s16_s27, 14   ;;  %s3661_s0 = sld [smem:[#allocation7_spill]] }
 0x5ac   : > { %s3662_s21 = smov %s2875_s24  ;;  %s3663_s22 = smov %s2879_s25 }
 0x5ad   : > { %s3664_s23 = smov %s2883_s26  ;;  %s3665_s24 = smov %s3669_s28 }
 0x5ae   :  { %15 = sbr.rel (!%p13_p11) target bundleno = 4 (0x4), region = 93 }
 0x5b0   : > { %s3666_s25 = smov %s3660_s16 }
 0x5b1   : > { %s3667_s26 = smov %s3661_s0 }

// kernel: transform_forward.9
= control target key start
LH: loop header
LB: loop body
LE: loop exit
PB: predicated region body
PF: predicated region fallthrough
CT: control target
= control target key end

     0   :  { %s4721_s21 = smov 0   ;;  %s4723_s22 = smov 0   ;;  %s5896_s0 = inlined_call_operand.vmem [shape: bf16[2,16,16,128], index: 0, kind: input, shape index: {}, may-alias: {0,1,2}]   ;;  %s5897_s1 = inlined_call_operand.vmem [shape: bf16[2,16,16,128], index: 1, kind: input, shape index: {}, may-alias: {0,1,2}]   ;;  %s5898_s2 = inlined_call_operand.vmem [shape: bf16[2,16,16,128], index: 2, kind: input, shape index: {}, may-alias: {0,1,2}]   ;;  %s5899_s3 = inlined_call_operand.vmem [shape: bf16[2,8,2048], index: 3, kind: input, shape index: {}]   ;;  %s5900_s4 = inlined_call_operand.vmem [shape: bf16[9,128,128], index: 4, kind: input, shape index: {}]   ;;  %s5901_s5 = inlined_call_operand.vmem [shape: f32[1,128], index: 5, kind: input, shape index: {}]   ;;  %s5902_s6 = inlined_call_operand.vmem [shape: f32[2,16,16,128], index: 6, kind: output, shape index: {}]  }
   0x1   :  { %s4725_s23 = smov 0   ;;  %s4727_s24 = smov 0  }
   0x2   :  { %s4729_s25 = smov 0  }
   0x3 LB: > { %s25_s26 = sadd.s32 1, %s4671_s23  ;;  %s28_s27 = sadd.s32 1, %s4675_s24  ;;  %s4679_s25 = sphi %s4729_s25, %s16_s25   ;;  %s4675_s24 = sphi %s4727_s24, %s5913_s24   ;;  %s4671_s23 = sphi %s4725_s23, %s5912_s23   ;;  %s4667_s22 = sphi %s4723_s22, %s5911_s22   ;;  %s4663_s21 = sphi %s4721_s21, %s5910_s21  }
   0x4   : > { %p26_p0 = scmp.ge.s32.totalorder %s25_s26, 4  ;;  %p3765_p1 = scmp.ge.s32.totalorder %s4679_s25, 1 }
   0x5   : > { %p320_p2 = scmp.lt.s32.totalorder %s4679_s25, 9 }
   0x6   : > { %s5915_s26 = smov (%p26_p0, %s25_s26), 0  ;;  %s5917_s27 = smov (!%p26_p0, %s28_s27), %s4675_s24 }
   0x7   : > { %p321_p3 = pnand %p3765_p1, %p320_p2  ;;  %p30_p4 = scmp.ge.s32.totalorder %s5917_s27, 2 }
   0x8   : > { %p395_p5 = scmp.lt.s32.totalorder (!%p321_p3), %s4667_s22, 1  ;;  %s4751_s28 = sshll.u32 (!%p321_p3), %s4663_s21, 2  ;;  %v486_v0 = vlaneseq (!%p321_p3)  ;;  %v4681_v1 = vmov (!%p321_p3), 0   ;;  %vm560_vm0 = vcmask (!%p321_p3), 1043456   ;;  %vm556_vm5 = vcmask (!%p321_p3), 64512   ;;  %v4569_v48 = vld [vmem:[%s5900_s4] sm:$0xff] (!%p321_p3)  }
   0x9   : > { %s5919_s27 = smov (%p30_p4, %s5917_s27), 0  ;;  %324 = sbr.rel (%p321_p3) target bundleno = 740 (0x2e4), region = 44 }
   0xa   : > { %641 = vmatprep.mubr.bf16.mxu0 (!%p321_p3), %v4681_v1  ;;  %682 = vmatprep.mubr.bf16.mxu1 (!%p321_p3), %v4681_v1  ;;  %v491_v2 = vstv (!%p321_p3), %s4751_s28  ;;  %v4758_v3 = vshrl.u32 (!%p321_p3), %v486_v0, 7  ;;  %v489_v4 = vand.u32 (!%p321_p3), 127, %v486_v0  ;;  %v5903_v38 = vmov (!%p321_p3), 0.0   ;;  %v4570_v49 = vld [vmem:[%s5900_s4 + $0x8] sm:$0xff] (!%p321_p3)   ;;  %v4571_v50 = vld [vmem:[%s5900_s4 + $0x40] sm:$0xff] (!%p321_p3)   ;;  %v4572_v51 = vld [vmem:[%s5900_s4 + $0x10] sm:$0xff] (!%p321_p3)  }
   0xb   : > { %v4573_v52 = vld [vmem:[%s5900_s4 + $0x48] sm:$0xff] (!%p321_p3)   ;;  %v4574_v53 = vld [vmem:[%s5900_s4 + $0x18] sm:$0xff] (!%p321_p3)   ;;  %v4575_v54 = vld [vmem:[%s5900_s4 + $0x50] sm:$0xff] (!%p321_p3)   ;;  %vm4683_vm7 = vmmov (!%p321_p3), 0   ;;  %s425_s7 = ssub.s32 (!%p321_p3), 11, %s4751_s28  ;;  %p397_p6 = scmp.lt.s32.totalorder (!%p321_p3), %s4751_s28, 15 }
   0xc   : > { %v492_v5 = vadd.s32 (!%p321_p3), %v491_v2, %v4758_v3  ;;  %v501_v6 = vadd.s32 (!%p321_p3), 1, %v489_v4  ;;  %v499_v11 = vmul.u32 (!%p321_p3), 16, %v489_v4  ;;  %v4576_v55 = vld [vmem:[%s5900_s4 + $0x20] sm:$0xff] (!%p321_p3)   ;;  %v4577_v56 = vld [vmem:[%s5900_s4 + $0x58] sm:$0xff] (!%p321_p3)   ;;  %v4578_v57 = vld [vmem:[%s5900_s4 + $0x28] sm:$0xff] (!%p321_p3)   ;;  %s426_s9 = sshra.s32 (!%p321_p3), %s425_s7, 31 }
   0xd   : > { %v4579_v58 = vld [vmem:[%s5900_s4 + $0x60] sm:$0xff] (!%p321_p3)   ;;  %v4580_v59 = vld [vmem:[%s5900_s4 + $0x30] sm:$0xff] (!%p321_p3)   ;;  %v4581_v60 = vld [vmem:[%s5900_s4 + $0x68] sm:$0xff] (!%p321_p3)   ;;  %s427_s11 = sadd.s32 (!%p321_p3), %s426_s9, %s425_s7  ;;  %v4684_v0 = vmov (!%p321_p3), 1983009808   ;;  %vm1230_vm8 = vcmask (!%p321_p3), 1040384  }
   0xe   : > { %v3786_v10 = vadd.s32 (!%p321_p3), 4294967295, %v492_v5  ;;  %v502_v24 = vmul.u32 (!%p321_p3), 16, %v501_v6  ;;  %v4582_v61 = vld [vmem:[%s5900_s4 + $0x38] sm:$0xff] (!%p321_p3)   ;;  %v4583_v62 = vld [vmem:[%s5900_s4 + $0x70] sm:$0xff] (!%p321_p3)   ;;  %s428_s13 = sxor.u32 (!%p321_p3), %s427_s11, %s426_s9  ;;  %v4685_v4 = vmov (!%p321_p3), 1934713408  }
   0xf   : > { %v4584_v63 = vld [vmem:[%s5900_s4 + $0x78] sm:$0xff] (!%p321_p3)   ;;  %s429_s15 = ssub.s32 (!%p321_p3), 15, %s428_s13  ;;  %v1004_v5 = vunpack.c.l.s4 (!%p321_p3), %v4685_v4  ;;  %vm1847_vm9 = vsmask.f32 (!%p321_p3), 7424  ;;  %vm2154_vm10 = vcmask (!%p321_p3), 1046528   ;;  %vm2642_vm11 = vcmask (!%p321_p3), 1045504  }
  0x10   : > { %s5921_s22 = smov (!%p395_p5, %s4667_s22), 1  ;;  %vm494_vm1 = vcmp.lt.s32.totalorder %v3786_v10, 0  ;;  %vm495_vm2 = vcmp.gt.s32.totalorder %v3786_v10, 15  ;;  %p432_p8 = scmp.lt.s32.totalorder %s429_s15, 15  ;;  %vm2466_vm12 = vsmask.f32 6400 }
  0x11   : > { %s4023_s29 = sshll.u32 %s5921_s22, 6  ;;  %v496_v23 = vsel %vm495_vm2, 14, %v3786_v10  ;;  %s3768_s17 = sshll.u32 %s5921_s22, 5  ;;  %vm2954_vm13 = vsmask.f32 5376  ;;  %vm3130_vm14 = vcmask 1044480  }
  0x12   : > { %s4765_s8 = scalar_lea.vmem %s5899_s3, %s4023_s29  ;;  %v497_v25 = vsel %vm494_vm1, 1, %v496_v23  ;;  %s5927_s15 = smov (!%p432_p8, %s429_s15), 15 }
  0x13   : > { %v508_v7 = vld [vmem:[%s4765_s8] sm:$0xff]  ;;  %v509_v8 = vld [vmem:[%s4765_s8 + $0x8] sm:$0xff]  ;;  %v510_v9 = vld [vmem:[%s4765_s8 + $0x10] sm:$0xff]  ;;  %v498_v29 = vmul.u32 8, %v497_v25  ;;  %s3776_s19 = sshll.u32 %s5927_s15, 1 }
  0x14   : > { %v3789_v12 = vcombine.high %v508_v7, %v508_v7  ;;  %v3791_v13 = vcombine.high %v509_v8, %v509_v8  ;;  %v3788_v14 = vcombine.low %v508_v7, %v508_v7  ;;  %v3790_v15 = vcombine.low %v509_v8, %v509_v8  ;;  %v511_v16 = vld [vmem:[%s4765_s8 + $0x18] sm:$0xff]  ;;  %v512_v19 = vld [vmem:[%s4765_s8 + $0x20] sm:$0xff]  ;;  %v513_v20 = vld [vmem:[%s4765_s8 + $0x28] sm:$0xff] }
  0x15   : > { %v3793_v17 = vcombine.high %v510_v9, %v510_v9  ;;  %v3795_v18 = vcombine.high %v511_v16, %v511_v16  ;;  %v3792_v26 = vcombine.low %v510_v9, %v510_v9  ;;  %v3794_v27 = vcombine.low %v511_v16, %v511_v16  ;;  %v514_v28 = vld [vmem:[%s4765_s8 + $0x30] sm:$0xff]  ;;  %v515_v32 = vld [vmem:[%s4765_s8 + $0x38] sm:$0xff]  ;;  %s3771_s8 = sadd.s32 4294967295, %s4751_s28  ;;  %s5923_s28 = smov (!%p397_p6, %s4751_s28), 15 }
  0x16   : > { %3804 = vmatprep.subr.msk.bf16.mxu0 %vm560_vm0, %v3789_v12  ;;  %3806 = vmatprep.subr.msk.bf16.mxu1 %vm560_vm0, %v3791_v13  ;;  %v562_v21 = vsel %vm560_vm0, %v3788_v14, 0  ;;  %v568_v22 = vsel %vm560_vm0, %v3790_v15, 0  ;;  %v3796_v30 = vcombine.low %v512_v19, %v512_v19  ;;  %v3798_v31 = vcombine.low %v513_v20, %v513_v20  ;;  %s407_s10 = sshra.s32 %s3771_s8, 31  ;;  %s3767_s16 = sshll.u32 %s5923_s28, 1 }
  0x17   : > { %610 = vmatpush1.bf16.msra.mxu0 %v562_v21  ;;  %651 = vmatpush1.bf16.msra.mxu1 %v568_v22  ;;  %vm500_vm3 = vcmp.le.s32.totalorder %v499_v11, %v498_v29  ;;  %vm503_vm4 = vcmp.lt.s32.totalorder %v498_v29, %v502_v24  ;;  %v574_v33 = vsel %vm560_vm0, %v3792_v26, 0  ;;  %v580_v34 = vsel %vm560_vm0, %v3794_v27, 0  ;;  %s408_s12 = sadd.s32 %s3771_s8, %s407_s10  ;;  %s4884_s20 = sadd.s32 %s3768_s17, %s3767_s16 }
  0x18   : > { %3808 = vmatprep.subr.msk.bf16.mxu0 %vm560_vm0, %v3793_v17  ;;  %3810 = vmatprep.subr.msk.bf16.mxu1 %vm560_vm0, %v3795_v18  ;;  %vm504_vm6 = vmand %vm500_vm3, %vm503_vm4  ;;  %v586_v35 = vsel %vm560_vm0, %v3796_v30, 0  ;;  %v3800_v36 = vcombine.low %v514_v28, %v514_v28  ;;  %v3802_v37 = vcombine.low %v515_v32, %v515_v32  ;;  %v592_v40 = vsel %vm560_vm0, %v3798_v31, 0  ;;  %s409_s14 = sxor.u32 %s408_s12, %s407_s10  ;;  %s436_s28 = sadd.s32 %s3776_s19, %s3768_s17 }
  0x19   : > { %v3787_v39 = vsel %vm504_vm6, 1.0, %v5903_v38  ;;  %v3797_v44 = vcombine.high %v512_v19, %v512_v19  ;;  %v3799_v45 = vcombine.high %v513_v20, %v513_v20  ;;  %v3801_v46 = vcombine.high %v514_v28, %v514_v28  ;;  %p412_p7 = scmp.lt.s32.totalorder %s409_s14, 15  ;;  %s3769_s21 = sshll.u32 %s4884_s20, 2 }
  0x1a   : > { %v507_v41 = vpack.c.bf16 %v3787_v39, %v3787_v39  ;;  %v598_v42 = vsel %vm560_vm0, %v3800_v36, 0  ;;  %v604_v43 = vsel %vm560_vm0, %v3802_v37, 0  ;;  %v3803_v47 = vcombine.high %v515_v32, %v515_v32  ;;  %s3778_s30 = sshll.u32 %s436_s28, 2  ;;  %s403_s9 = scalar_lea.vmem %s5896_s0, %s3769_s21 }
  0x1b   : > { %s5925_s14 = smov (!%p412_p7, %s409_s14), 15  ;;  %v1005_v7 = vunpack.c.0.s8 %v1004_v5  ;;  %s438_s15 = scalar_lea.vmem %s5898_s2, %s3778_s30  ;;  %v4915_v39 = vld [vmem:[%s403_s9] sm:$0xff]  }
  0x1c   : > { %3805 = vmatmul.mubr.msk.bf16.vlgmr.msra.gmra.mrb[0].mxu0 %vm556_vm5, %v507_v41  ;;  %3807 = vmatmul.mubr.msk.bf16.vlgmr.msra.gmra.mrb[0].mxu1 %vm556_vm5, %v507_v41  ;;  %s3772_s18 = sshll.u32 %s5925_s14, 1  ;;  %s3784_s21 = sshll.u32 %s4884_s20, 3 }
  0x1d   : > { %692 = vmatpush1.bf16.msra.mxu0 %v574_v33  ;;  %733 = vmatpush1.bf16.msra.mxu1 %v580_v34  ;;  %s416_s22 = sadd.s32 %s3772_s18, %s3768_s17  ;;  %v4889_v22 = vsub.s32 %v1005_v7, %v4758_v3  ;;  %s5834_s7 = scalar_lea.vmem %s5902_s6, %s3784_s21 }
  0x1e   : > { %723 = vmatprep.mubr.bf16.mxu0 %v4681_v1  ;;  %764 = vmatprep.mubr.bf16.mxu1 %v4681_v1  ;;  %s3774_s29 = sshll.u32 %s416_s22, 2 }
  0x1f   : > { %3812 = vmatprep.subr.msk.bf16.mxu0 %vm560_vm0, %v3797_v44  ;;  %3814 = vmatprep.subr.msk.bf16.mxu1 %vm560_vm0, %v3799_v45  ;;  %s418_s12 = scalar_lea.vmem %s5897_s1, %s3774_s29 }
  0x24   : > { %3809 = vmatmul.mubr.msk.bf16.vlgmr.msra.gmra.mrb[4].mxu0 %vm556_vm5, %v507_v41  ;;  %3811 = vmatmul.mubr.msk.bf16.vlgmr.msra.gmra.mrb[4].mxu1 %vm556_vm5, %v507_v41 }
  0x25   : > { %774 = vmatpush1.bf16.msra.mxu0 %v586_v35  ;;  %815 = vmatpush1.bf16.msra.mxu1 %v592_v40  ;;  %v4917_v40 = vld [vmem:[%s403_s9 + $0x8] sm:$0xff]  }
  0x26   : > { %805 = vmatprep.mubr.bf16.mxu0 %v4681_v1  ;;  %846 = vmatprep.mubr.bf16.mxu1 %v4681_v1 }
  0x27   : > { %3816 = vmatprep.subr.msk.bf16.mxu0 %vm560_vm0, %v3801_v46  ;;  %3818 = vmatprep.subr.msk.bf16.mxu1 %vm560_vm0, %v3803_v47 }
  0x2c   : > { %3813 = vmatmul.mubr.msk.bf16.vlgmr.msra.gmra.mrb[8].mxu0 %vm556_vm5, %v507_v41  ;;  %3815 = vmatmul.mubr.msk.bf16.vlgmr.msra.gmra.mrb[8].mxu1 %vm556_vm5, %v507_v41 }
  0x2d   : > { %856 = vmatpush1.bf16.msra.mxu0 %v598_v42  ;;  %897 = vmatpush1.bf16.msra.mxu1 %v604_v43 }
  0x2e   : > { %887 = vmatprep.mubr.bf16.mxu0 %v4681_v1  ;;  %928 = vmatprep.mubr.bf16.mxu1 %v4681_v1  ;;  %v940_v1 = vunpack.c.l.s4 %v4684_v0 }
  0x2f   : > { %4204 = vmatprep.subr.bf16.mxu1 %v5903_v38  ;;  %4168 = vmatprep.subr.bf16.mxu0 %v5903_v38 }
  0x30   : > { %v941_v2 = vunpack.c.0.s8 %v940_v1 }
  0x32   : > { %v4882_v6 = vsub.s32 %v941_v2, %v4758_v3 }
  0x34   : > { %3817 = vmatmul.mubr.msk.bf16.vlgmr.msra.gmra.mrb[12].mxu0 %vm556_vm5, %v507_v41  ;;  %3819 = vmatmul.mubr.msk.bf16.vlgmr.msra.gmra.mrb[12].mxu1 %vm556_vm5, %v507_v41  ;;  %v4919_v41 = vld [vmem:[%s403_s9 + $0x10] sm:$0xff]  }
  0x35   : > { %4205 = vmatpush3.bf16.msra.mxu1 %v4569_v48  ;;  %4169 = vmatpush3.bf16.msra.mxu0 %v4571_v50  ;;  %v4923_v50 = vld [vmem:[%s418_s12] sm:$0xff]  }
  0x36   : > { %4206 = vmatprep.subr.bf16.mxu1 %v5903_v38  ;;  %4170 = vmatprep.subr.bf16.mxu0 %v5903_v38 }
  0x37   : > { %4220 = vmatprep.mubr.msk.bf16.mxu1 %vm4683_vm7, %v5903_v38  ;;  %4184 = vmatprep.mubr.msk.bf16.mxu0 %vm4683_vm7, %v5903_v38 }
  0x39   : > { %4207 = vmatpush3.bf16.msra.mxu1 %v4570_v49  ;;  %4171 = vmatpush3.bf16.msra.mxu0 %v4573_v52  ;;  %v4927_v52 = vld [vmem:[%s438_s15] sm:$0xff]  }
  0x3a   : > { %4208 = vmatprep.subr.bf16.mxu1 %v5903_v38  ;;  %4172 = vmatprep.subr.bf16.mxu0 %v5903_v38  ;;  %v4046_v0 = vunpack.c.l.bf16 %v4927_v52 }
  0x3d   : > { %4209 = vmatpush3.bf16.msra.mxu1 %v4572_v51  ;;  %4173 = vmatpush3.bf16.msra.mxu0 %v4575_v54  ;;  %v4925_v51 = vld [vmem:[%s403_s9 + $0x18] sm:$0xff]  }
  0x3e   : > { %4210 = vmatprep.subr.bf16.mxu1 %v5903_v38  ;;  %4174 = vmatprep.subr.bf16.mxu0 %v5903_v38 }
  0x41   : > { %4211 = vmatpush3.bf16.msra.mxu1 %v4574_v53  ;;  %4175 = vmatpush3.bf16.msra.mxu0 %v4577_v56  ;;  %v4034_v56 = vunpack.c.l.bf16 %v4917_v40 }
  0x42   : > { %4212 = vmatprep.subr.bf16.mxu1 %v5903_v38  ;;  %4176 = vmatprep.subr.bf16.mxu0 %v5903_v38 }
  0x45   : > { %4213 = vmatpush3.bf16.msra.mxu1 %v4576_v55  ;;  %4177 = vmatpush3.bf16.msra.mxu0 %v4579_v58  ;;  %v4030_v55 = vunpack.c.l.bf16 %v4915_v39 }
  0x46   : > { %4214 = vmatprep.subr.bf16.mxu1 %v5903_v38  ;;  %4178 = vmatprep.subr.bf16.mxu0 %v5903_v38 }
  0x49   : > { %4215 = vmatpush3.bf16.msra.mxu1 %v4578_v57  ;;  %4179 = vmatpush3.bf16.msra.mxu0 %v4581_v60  ;;  %v4038_v57 = vunpack.c.l.bf16 %v4919_v41 }
  0x4a   : > { %4216 = vmatprep.subr.bf16.mxu1 %v5903_v38  ;;  %4180 = vmatprep.subr.bf16.mxu0 %v5903_v38 }
  0x4d   : > { %4217 = vmatpush3.bf16.msra.mxu1 %v4580_v59  ;;  %4181 = vmatpush3.bf16.msra.mxu0 %v4583_v62  ;;  %v4026_v62 = vunpack.c.l.bf16 %v4923_v50 }
  0x4e   : > { %4218 = vmatprep.subr.bf16.mxu1 %v5903_v38  ;;  %4182 = vmatprep.subr.bf16.mxu0 %v5903_v38 }
  0x51   : > { %4219 = vmatpush3.bf16.msra.mxu1 %v4582_v61  ;;  %4183 = vmatpush3.bf16.msra.mxu0 %v4584_v63  ;;  %v4042_v63 = vunpack.c.l.bf16 %v4925_v51 }
  0x52   : > { %4276 = vmatprep.subr.bf16.mxu1 %v5903_v38  ;;  %4240 = vmatprep.subr.bf16.mxu0 %v5903_v38 }
  0xef   : > { %v643_v8 = vpop.f32.mrb[0].mxu0  ;;  %v684_v9 = vpop.f32.mrb[0].mxu1 }
  0xf0   : > { %v937_v10 = vcombine.low %v643_v8, %v684_v9  ;;  %v938_v11 = vcombine.high %v643_v8, %v684_v9  ;;  %v645_v12 = vpop.f32.mrb[1].mxu0  ;;  %v686_v13 = vpop.f32.mrb[1].mxu1 }
  0xf1   : > { %v953_v14 = vcombine.low %v645_v12, %v686_v13  ;;  %v954_v15 = vcombine.high %v645_v12, %v686_v13  ;;  %v647_v16 = vpop.f32.mrb[2].mxu0  ;;  %v688_v17 = vpop.f32.mrb[2].mxu1  ;;  %v4027_v13 = vunpack.c.h.bf16 %v4923_v50 }
  0xf2   : > { %v945_v18 = vrot.slane %v937_v10, %v4882_v6  ;;  %v952_v19 = vrot.slane %v938_v11, %v4882_v6  ;;  %v648_v20 = vpop.f32.mrb[3].mxu0  ;;  %v689_v21 = vpop.f32.mrb[3].mxu1 }
  0xf3   : > { %v961_v23 = vrot.slane %v953_v14, %v4882_v6  ;;  %v968_v24 = vrot.slane %v954_v15, %v4882_v6  ;;  %v4031_v14 = vunpack.c.h.bf16 %v4915_v39 }
  0xf5   : > { %v1001_v25 = vcombine.low %v945_v18, %v961_v23  ;;  %v1002_v26 = vcombine.high %v945_v18, %v961_v23  ;;  %v1017_v27 = vcombine.low %v952_v19, %v968_v24  ;;  %v1018_v28 = vcombine.high %v952_v19, %v968_v24 }
  0xf7   : > { %v4898_v29 = vrot.slane %v1001_v25, %v4889_v22  ;;  %v4901_v3 = vrot.slane %v1002_v26, %v4889_v22  ;;  %v4904_v30 = vrot.slane %v1017_v27, %v4889_v22  ;;  %v4907_v31 = vrot.slane %v1018_v28, %v4889_v22  ;;  %v725_v32 = vpop.f32.mrb[4].mxu0  ;;  %v766_v33 = vpop.f32.mrb[4].mxu1 }
  0xf8   : > { %v969_v34 = vcombine.low %v725_v32, %v766_v33  ;;  %v970_v35 = vcombine.high %v725_v32, %v766_v33  ;;  %v727_v36 = vpop.f32.mrb[5].mxu0  ;;  %v768_v37 = vpop.f32.mrb[5].mxu1  ;;  %v4035_v27 = vunpack.c.h.bf16 %v4917_v40 }
  0xf9   : > { %v985_v42 = vcombine.low %v727_v36, %v768_v37  ;;  %v986_v43 = vcombine.high %v727_v36, %v768_v37  ;;  %v729_v44 = vpop.f32.mrb[6].mxu0  ;;  %v770_v45 = vpop.f32.mrb[6].mxu1 }
  0xfa   : > { %v977_v46 = vrot.slane %v969_v34, %v4882_v6  ;;  %v984_v47 = vrot.slane %v970_v35, %v4882_v6  ;;  %v730_v48 = vpop.f32.mrb[7].mxu0  ;;  %v771_v49 = vpop.f32.mrb[7].mxu1 }
  0xfb   : > { %v993_v53 = vrot.slane %v985_v42, %v4882_v6  ;;  %v1000_v54 = vrot.slane %v986_v43, %v4882_v6  ;;  %v4047_v42 = vunpack.c.h.bf16 %v4927_v52 }
  0xfd   : > { %v1033_v58 = vcombine.low %v977_v46, %v993_v53  ;;  %v1034_v59 = vcombine.high %v977_v46, %v993_v53  ;;  %v1049_v60 = vcombine.low %v984_v47, %v1000_v54  ;;  %v1050_v61 = vcombine.high %v984_v47, %v1000_v54 }
  0xff   : > { %v1041_v1 = vrot.slane %v1033_v58, %v4889_v22  ;;  %v1048_v2 = vrot.slane %v1034_v59, %v4889_v22  ;;  %v1057_v4 = vrot.slane %v1049_v60, %v4889_v22  ;;  %v1064_v5 = vrot.slane %v1050_v61, %v4889_v22  ;;  %v4941_v7 = vpop.f32.mrb[8].mxu0  ;;  %v4943_v8 = vpop.f32.mrb[8].mxu1 }
 0x100   : > { %v1072_v9 = vcombine.low %v4941_v7, %v4943_v8  ;;  %v1073_v10 = vcombine.high %v4941_v7, %v4943_v8  ;;  %v4949_v11 = vpop.f32.mrb[9].mxu0  ;;  %v4951_v12 = vpop.f32.mrb[9].mxu1 }
 0x101   : > { %v1065_v15 = vcombine.low %v4898_v29, %v1041_v1  ;;  %v1066_v16 = vcombine.high %v4898_v29, %v1041_v1  ;;  %v1067_v17 = vcombine.low %v4901_v3, %v1048_v2  ;;  %v1068_v18 = vcombine.high %v4901_v3, %v1048_v2  ;;  %v811_v19 = vpop.f32.mrb[10].mxu0  ;;  %v852_v20 = vpop.f32.mrb[10].mxu1 }
 0x102   : > { %v1069_v21 = vcombine.low %v4904_v30, %v1057_v4  ;;  %v1070_v23 = vcombine.high %v4904_v30, %v1057_v4  ;;  %v1071_v24 = vcombine.low %v4907_v31, %v1064_v5  ;;  %v812_v25 = vpop.f32.mrb[11].mxu0  ;;  %v853_v26 = vpop.f32.mrb[11].mxu1  ;;  %v4039_v3 = vunpack.c.h.bf16 %v4919_v41 }
 0x103   : > { %v4963_v28 = vadd.f32 %v4030_v55, %v1066_v16  ;;  %v4965_v32 = vadd.f32 %v4034_v56, %v1067_v17  ;;  %v4967_v29 = vadd.f32 %v4038_v57, %v1068_v18  ;;  %v4043_v30 = vunpack.c.h.bf16 %v4925_v51 }
 0x104   : > { %v4970_v33 = vadd.f32 %v4042_v63, %v1069_v21  ;;  %v4972_v34 = vadd.f32 %v4046_v0, %v1070_v23  ;;  %v1202_v35 = vadd.f32 %v4046_v0, %v1071_v24  ;;  %v4979_v43 = vadd.f32 %v4026_v62, %v1065_v15 }
 0x105   : > { %v1211_v31 = vrot.slane %v4963_v28, 1  ;;  %v1212_v36 = vrot.slane %v4965_v32, 1  ;;  %v1213_v37 = vrot.slane %v4967_v29, 1  ;;  %v1234_v47 = vrot.slane %v4963_v28, 7 }
 0x106   : > { %v1214_v44 = vrot.slane %v4970_v33, 1  ;;  %v1215_v45 = vrot.slane %v4972_v34, 1  ;;  %v1216_v46 = vrot.slane %v1202_v35, 1  ;;  %v1237_v48 = vrot.slane %v4965_v32, 7 }
 0x107   : > { %v1240_v49 = vrot.slane %v4967_v29, 7  ;;  %v1243_v53 = vrot.slane %v4970_v33, 7  ;;  %v4987_v54 = vpop.f32.mrb[12].mxu0  ;;  %v4989_v55 = vpop.f32.mrb[12].mxu1  ;;  %v1246_v56 = vrot.slane %v4972_v34, 7  ;;  %v1249_v57 = vrot.slane %v1202_v35, 7 }
 0x108   : > { %v1088_v58 = vcombine.low %v4949_v11, %v4951_v12  ;;  %v1089_v59 = vcombine.high %v4949_v11, %v4951_v12  ;;  %v4996_v60 = vpop.f32.mrb[13].mxu0  ;;  %v4998_v61 = vpop.f32.mrb[13].mxu1  ;;  %v1276_v62 = vsel %vm1230_vm8, %v1211_v31, %v1234_v47  ;;  %v1277_v63 = vsel %vm1230_vm8, %v1212_v36, %v1237_v48 }
 0x109   : > { %v1278_v0 = vsel %vm1230_vm8, %v1213_v37, %v1240_v49  ;;  %v1279_v1 = vsel %vm1230_vm8, %v1214_v44, %v1243_v53  ;;  %v893_v2 = vpop.f32.mrb[14].mxu0  ;;  %v934_v4 = vpop.f32.mrb[14].mxu1  ;;  %v1280_v5 = vsel %vm1230_vm8, %v1215_v45, %v1246_v56  ;;  %v1281_v11 = vsel %vm1230_vm8, %v1216_v46, %v1249_v57 }
 0x10a   : > { %v1342_v12 = vcombine.high %v1276_v62, %v1276_v62  ;;  %v5017_v15 = vrot.slane %v1276_v62, %v4882_v6  ;;  %v894_v16 = vpop.f32.mrb[15].mxu0  ;;  %v935_v17 = vpop.f32.mrb[15].mxu1  ;;  %v1383_v18 = vcombine.high %v1277_v63, %v1277_v63  ;;  %v1390_v19 = vrot.slane %v1277_v63, %v4882_v6 }
 0x10b   : > { %v1424_v20 = vcombine.high %v1278_v0, %v1278_v0  ;;  %v5021_v21 = vrot.slane %v1278_v0, %v4882_v6  ;;  %v1465_v25 = vcombine.high %v1279_v1, %v1279_v1  ;;  %v1472_v26 = vrot.slane %v1279_v1, %v4882_v6 }
 0x10c   : > { %v5024_v23 = vrot.slane %v1342_v12, %v4882_v6  ;;  %v1357_v24 = vcombine.high %v5017_v15, %v5017_v15  ;;  %v1397_v35 = vrot.slane %v1383_v18, %v4882_v6  ;;  %v1398_v31 = vcombine.high %v1390_v19, %v1390_v19 }
 0x10d   : > { %v5031_v36 = vrot.slane %v1424_v20, %v4882_v6  ;;  %v1439_v37 = vcombine.high %v5021_v21, %v5021_v21  ;;  %v1479_v44 = vrot.slane %v1465_v25, %v4882_v6  ;;  %v1480_v45 = vcombine.high %v1472_v26, %v1472_v26 }
 0x10e   : > { %v1506_v46 = vcombine.high %v1280_v5, %v1280_v5  ;;  %v5037_v57 = vrot.slane %v1280_v5, %v4882_v6  ;;  %v1399_v62 = vcombine.high %v1397_v35, %v1397_v35  ;;  %v1553_v63 = vrot.slane %v1281_v11, %v4882_v6 }
 0x10f   : > { %v5041_v0 = vcombine.low %v1357_v24, %v5024_v23  ;;  %v5043_v1 = vcombine.low %v1390_v19, %v1398_v31  ;;  %v1481_v2 = vcombine.high %v1479_v44, %v1479_v44  ;;  %v5046_v4 = vcombine.low %v1439_v37, %v5031_v36 }
 0x110   : > { %v1080_v12 = vrot.slane %v1072_v9, %v4882_v6  ;;  %v1087_v5 = vrot.slane %v1073_v10, %v4882_v6  ;;  %v1210_v11 = vrot.slane %v4979_v43, 1  ;;  %v5905_v16 = vrot.slane %v4979_v43, 7 }
 0x111   : > { %v5059_v17 = vrot.slane %v1506_v46, %v4882_v6  ;;  %v1521_v18 = vcombine.high %v5037_v57, %v5037_v57  ;;  %v1554_v19 = vcombine.high %v1553_v63, %v1553_v63  ;;  %v1708_v9 = vcombine.low %v1472_v26, %v1480_v45 }
 0x112   : > { %v1709_v24 = vcombine.low %v1479_v44, %v1481_v2  ;;  %v1638_v7 = vrot.slane %v5043_v1, %v4882_v6  ;;  %v5067_v8 = vcombine.low %v1397_v35, %v1399_v62  ;;  %v1096_v10 = vrot.slane %v1088_v58, %v4882_v6 }
 0x113   : > { %v1103_v25 = vrot.slane %v1089_v59, %v4882_v6  ;;  %v1682_v31 = vrot.slane %v5046_v4, %v4882_v6  ;;  %v1104_v46 = vcombine.low %v4987_v54, %v4989_v55  ;;  %v1105_v26 = vcombine.high %v4987_v54, %v4989_v55 }
 0x114   : > { %v1723_v37 = vrot.slane %v1709_v24, %v4882_v6  ;;  %v1136_v44 = vcombine.low %v1080_v12, %v1096_v10  ;;  %v1137_v45 = vcombine.high %v1080_v12, %v1096_v10  ;;  %v1120_v35 = vcombine.low %v4996_v60, %v4998_v61 }
 0x115   : > { %v1152_v2 = vcombine.low %v1087_v5, %v1103_v25  ;;  %v1716_v58 = vrot.slane %v1708_v9, %v4882_v6  ;;  %v1112_v59 = vrot.slane %v1104_v46, %v4882_v6  ;;  %v1119_v62 = vrot.slane %v1105_v26, %v4882_v6 }
 0x116   : > { %v1121_v24 = vcombine.high %v4996_v60, %v4998_v61  ;;  %v1144_v38 = vrot.slane %v1136_v44, %v4889_v22  ;;  %v1151_v20 = vrot.slane %v1137_v45, %v4889_v22  ;;  %v1128_v55 = vrot.slane %v1120_v35, %v4882_v6 }
 0x117   : > { %v1159_v54 = vrot.slane %v1152_v2, %v4889_v22  ;;  %v1648_v12 = vrot.slane %v5067_v8, %v4882_v6  ;;  %v5092_v5 = vcombine.low %v1521_v18, %v5059_v17  ;;  %v5094_v9 = vcombine.low %v1553_v63, %v1554_v19 }
 0x118   : > { %v1135_v10 = vrot.slane %v1121_v24, %v4882_v6  ;;  %v5097_v25 = vcombine.low %v1716_v58, %v1723_v37  ;;  %v1160_v60 = vcombine.low %v1112_v59, %v1128_v55  ;;  %v1161_v61 = vcombine.high %v1112_v59, %v1128_v55 }
 0x119   : > { %v1275_v46 = vsel %vm1230_vm8, %v1210_v11, %v5905_v16  ;;  %v1358_v44 = vcombine.high %v5024_v23, %v5024_v23  ;;  %v1440_v37 = vcombine.high %v5031_v36, %v5031_v36  ;;  %v1757_v59 = vrot.slane %v5092_v5, %v4882_v6  ;;  %v4588_v5 = vld [vmem:[%s5900_s4 + $0xc8] sm:$0xff]  }
 0x11a   : > { %v1176_v26 = vcombine.low %v1119_v62, %v1135_v10  ;;  %v1301_v45 = vcombine.high %v1275_v46, %v1275_v46  ;;  %v1308_v18 = vrot.slane %v1275_v46, %v4882_v6  ;;  %v1168_v63 = vrot.slane %v1160_v60, %v4889_v22 }
 0x11b   : > { %v1175_v19 = vrot.slane %v1161_v61, %v4889_v22  ;;  %v1791_v16 = vrot.slane %v5094_v9, %v4882_v6  ;;  %v4592_v9 = vld [vmem:[%s5900_s4 + $0x98] sm:$0xff]  }
 0x11c   : > { %v1183_v35 = vrot.slane %v1176_v26, %v4889_v22  ;;  %v1315_v11 = vrot.slane %v1301_v45, %v4882_v6  ;;  %v1316_v58 = vcombine.high %v1308_v18, %v1308_v18  ;;  %v1184_v62 = vcombine.low %v1144_v38, %v1168_v63 }
 0x11d   : > { %v1185_v24 = vcombine.high %v1144_v38, %v1168_v63  ;;  %v1186_v55 = vcombine.low %v1151_v20, %v1175_v19  ;;  %v1187_v10 = vcombine.high %v1151_v20, %v1175_v19 }
 0x11e   : > { %v1188_v60 = vcombine.low %v1159_v54, %v1183_v35  ;;  %v1189_v61 = vcombine.high %v1159_v54, %v1183_v35  ;;  %v1317_v46 = vcombine.high %v1315_v11, %v1315_v11  ;;  %v5119_v2 = vadd.f32 %v4027_v13, %v1184_v62 }
 0x11f   : > { %v1193_v22 = vadd.f32 %v4031_v14, %v1185_v24  ;;  %v1195_v26 = vadd.f32 %v4035_v27, %v1186_v55  ;;  %v1197_v38 = vadd.f32 %v4039_v3, %v1187_v10  ;;  %v5131_v45 = vcombine.low %v1308_v18, %v1316_v58 }
 0x120   : > { %v1199_v20 = vadd.f32 %v4043_v30, %v1188_v60  ;;  %v1201_v54 = vadd.f32 %v4047_v42, %v1189_v61  ;;  %v5133_v50 = vcombine.low %v1315_v11, %v1317_v46  ;;  %v1232_v13 = vrot.slane %v5119_v2, 7 }
 0x121   : > { %v1235_v39 = vrot.slane %v1193_v22, 7  ;;  %v1238_v14 = vrot.slane %v1195_v26, 7  ;;  %v1241_v63 = vrot.slane %v1197_v38, 7  ;;  %v1263_v41 = vrot.slane %v5119_v2, 5 }
 0x122   : > { %v1244_v40 = vrot.slane %v1199_v20, 7  ;;  %v1247_v27 = vrot.slane %v1201_v54, 7  ;;  %v1264_v3 = vrot.slane %v1193_v22, 5  ;;  %v1265_v42 = vrot.slane %v1195_v26, 5 }
 0x123   : > { %v1236_v51 = vsel %vm1230_vm8, %v1234_v47, %v1235_v39  ;;  %v1239_v52 = vsel %vm1230_vm8, %v1237_v48, %v1238_v14  ;;  %v1242_v30 = vsel %vm1230_vm8, %v1240_v49, %v1241_v63  ;;  %v1266_v28 = vrot.slane %v1197_v38, 5 }
 0x124   : > { %v1245_v18 = vsel %vm1230_vm8, %v1243_v53, %v1244_v40  ;;  %v1248_v19 = vsel %vm1230_vm8, %v1246_v56, %v1247_v27  ;;  %v1267_v35 = vrot.slane %v1199_v20, 5  ;;  %v1268_v47 = vrot.slane %v1201_v54, 5 }
 0x125   : > { %v1282_v32 = vsel %vm1230_vm8, %v1232_v13, %v1263_v41  ;;  %v1283_v29 = vsel %vm1230_vm8, %v1235_v39, %v1264_v3  ;;  %v1563_v48 = vrot.slane %v5131_v45, %v4882_v6  ;;  %v1284_v33 = vsel %vm1230_vm8, %v1238_v14, %v1265_v42 }
 0x126   : > { %v1285_v49 = vsel %vm1230_vm8, %v1241_v63, %v1266_v28  ;;  %v1286_v34 = vsel %vm1230_vm8, %v1244_v40, %v1267_v35  ;;  %v1359_v53 = vcombine.high %v1236_v51, %v1236_v51  ;;  %v1287_v56 = vsel %vm1230_vm8, %v1247_v27, %v1268_v47 }
 0x127   : > { %v1341_v11 = vrot.slane %v1282_v32, %v4882_v6  ;;  %v1366_v58 = vrot.slane %v1236_v51, %v4882_v6  ;;  %v1400_v62 = vcombine.high %v1239_v52, %v1239_v52  ;;  %v1382_v55 = vrot.slane %v1283_v29, %v4882_v6 }
 0x128   : > { %v1373_v24 = vrot.slane %v1359_v53, %v4882_v6  ;;  %v1407_v10 = vrot.slane %v1239_v52, %v4882_v6  ;;  %v1441_v60 = vcombine.high %v1242_v30, %v1242_v30  ;;  %v1423_v22 = vrot.slane %v1284_v33, %v4882_v6 }
 0x129   : > { %v1374_v61 = vcombine.high %v1366_v58, %v1366_v58  ;;  %v1414_v46 = vrot.slane %v1400_v62, %v4882_v6  ;;  %v1448_v26 = vrot.slane %v1242_v30, %v4882_v6  ;;  %v1464_v54 = vrot.slane %v1285_v49, %v4882_v6 }
 0x12a   : > { %v1375_v38 = vcombine.high %v1373_v24, %v1373_v24  ;;  %v1455_v20 = vrot.slane %v1441_v60, %v4882_v6  ;;  %v1482_v39 = vcombine.high %v1245_v18, %v1245_v18  ;;  %v1415_v14 = vcombine.high %v1407_v10, %v1407_v10 }
 0x12b   : > { %v1416_v63 = vcombine.high %v1414_v46, %v1414_v46  ;;  %v1456_v40 = vcombine.high %v1448_v26, %v1448_v26  ;;  %v1489_v27 = vrot.slane %v1245_v18, %v4882_v6  ;;  %v1505_v3 = vrot.slane %v1286_v34, %v4882_v6 }
 0x12c   : > { %v1496_v41 = vrot.slane %v1482_v39, %v4882_v6  ;;  %v1523_v51 = vcombine.high %v1248_v19, %v1248_v19  ;;  %v5176_v52 = vrot.slane %v1248_v19, %v4882_v6  ;;  %v1457_v30 = vcombine.high %v1455_v20, %v1455_v20 }
 0x12d   : > { %v1497_v42 = vcombine.high %v1489_v27, %v1489_v27  ;;  %v1589_v28 = vcombine.low %v1341_v11, %v5017_v15  ;;  %v1606_v35 = vcombine.low %v1358_v44, %v1366_v58  ;;  %v1546_v18 = vrot.slane %v1287_v56, %v4882_v6 }
 0x12e   : > { %v1498_v47 = vcombine.high %v1496_v41, %v1496_v41  ;;  %v5183_v32 = vrot.slane %v1523_v51, %v4882_v6  ;;  %v1607_v29 = vcombine.low %v1374_v61, %v1373_v24  ;;  %v1538_v33 = vcombine.high %v5176_v52, %v5176_v52 }
 0x12f   : > { %v1597_v19 = vrot.slane %v1589_v28, %v4882_v6  ;;  %v1623_v49 = vcombine.low %v1375_v38, %v1382_v55  ;;  %v1641_v34 = vcombine.low %v1407_v10, %v1415_v14  ;;  %v1614_v23 = vrot.slane %v1606_v35, %v4882_v6 }
 0x130   : > { %v1539_v15 = vcombine.high %v5183_v32, %v5183_v32  ;;  %v1657_v44 = vcombine.low %v1414_v46, %v1416_v63  ;;  %v1658_v53 = vcombine.low %v1423_v22, %v5021_v21  ;;  %v1675_v58 = vcombine.low %v1440_v37, %v1448_v26 }
 0x131   : > { %v1631_v11 = vrot.slane %v1623_v49, %v4882_v6  ;;  %v1655_v56 = vrot.slane %v1641_v34, %v4882_v6  ;;  %v1691_v62 = vcombine.low %v1456_v40, %v1455_v20  ;;  %v1621_v24 = vrot.slane %v1607_v29, %v4882_v6 }
 0x132   : > { %v1665_v55 = vrot.slane %v1657_v44, %v4882_v6  ;;  %v1672_v10 = vrot.slane %v1658_v53, %v4882_v6  ;;  %v1692_v60 = vcombine.low %v1457_v30, %v1464_v54  ;;  %v1689_v46 = vrot.slane %v1675_v58, %v4882_v6 }
 0x133   : > { %v1639_v21 = vcombine.low %v1631_v11, %v1638_v7  ;;  %v1656_v61 = vcombine.low %v1648_v12, %v1655_v56  ;;  %v5208_v36 = vcombine.low %v1489_v27, %v1497_v42  ;;  %v1699_v22 = vrot.slane %v1691_v62, %v4882_v6 }
 0x134   : > { %v1673_v37 = vcombine.low %v1665_v55, %v1672_v10  ;;  %v1706_v26 = vrot.slane %v1692_v60, %v4882_v6  ;;  %v5213_v38 = vcombine.low %v1505_v3, %v5037_v57  ;;  %v1690_v1 = vcombine.low %v1682_v31, %v1689_v46 }
 0x135   : > { %v5906_v7 = vcombine.high %v5059_v17, %v5059_v17  ;;  %v5224_v12 = vcombine.low %v1539_v15, %v1546_v18  ;;  %v5226_v20 = vpack.c.bf16 %v1656_v61, %v1639_v21  ;;  %v5907_v57 = vrot.slane %v4979_v43, 7 }
 0x136   : > { %v1707_v54 = vcombine.low %v1699_v22, %v1706_v26  ;;  %v1570_v4 = vrot.slane %v5133_v50, %v4882_v6  ;;  %v5908_v17 = vrot.slane %v5041_v0, %v4882_v6  ;;  %v5238_v14 = vpack.c.bf16 %v1690_v1, %v1673_v37 }
 0x137   : > { %v5222_v8 = vcombine.low %v5906_v7, %v5176_v52  ;;  %v1233_v39 = vsel %vm1230_vm8, %v5907_v57, %v1232_v13  ;;  %v1622_v27 = vcombine.low %v1614_v23, %v1621_v24  ;;  %v1726_v3 = vcombine.low %v1496_v41, %v1498_v47  ;;  %v4586_v7 = vld [vmem:[%s5900_s4 + $0xc0] sm:$0xff]  }
 0x138   : > { %v1605_v31 = vcombine.low %v1597_v19, %v5908_v17  ;;  %v1318_v63 = vcombine.high %v1233_v39, %v1233_v39  ;;  %v1325_v40 = vrot.slane %v1233_v39, %v4882_v6  ;;  %v5242_v2 = vpack.c.bf16 %v5097_v25, %v1707_v54 }
 0x139   : > { %v1571_v43 = vcombine.low %v1563_v48, %v1570_v4  ;;  %v5248_v50 = vshll.u32 %v5226_v20, 16  ;;  %v5254_v30 = vshll.u32 %v5238_v14, 16  ;;  %v5258_v25 = vshrl.u32 %v5226_v20, 16 }
 0x13a   : > { %v1332_v0 = vrot.slane %v1318_v63, %v4882_v6  ;;  %v1333_v13 = vcombine.high %v1325_v40, %v1325_v40  ;;  %v5251_v51 = vpack.c.bf16 %v1622_v27, %v1605_v31  ;;  %v5261_v42 = vshrl.u32 %v5238_v14, 16 }
 0x13b   : > { %v1866_v41 = vrot.slane %v5248_v50, 1  ;;  %v5264_v45 = vshll.u32 %v5242_v2, 16  ;;  %v1874_v29 = vrot.slane %v5254_v30, 1  ;;  %v5272_v49 = vshrl.u32 %v5242_v2, 16 }
 0x13c   : > { %v1334_v48 = vcombine.high %v1332_v0, %v1332_v0  ;;  %v1572_v28 = vcombine.low %v1325_v40, %v1333_v13  ;;  %v1856_v35 = vshll.u32 %v5251_v51, 16  ;;  %v1860_v47 = vshrl.u32 %v5251_v51, 16 }
 0x13d   : > { %v1870_v18 = vor.u32 %v5258_v25, %v1866_v41  ;;  %v1882_v19 = vrot.slane %v5264_v45, 1  ;;  %v2156_v44 = vrot.slane %v5251_v51, 1  ;;  %v1878_v58 = vor.u32 %v5261_v42, %v1874_v29 }
 0x13e   : > { %v1573_v34 = vcombine.low %v1332_v0, %v1334_v48  ;;  %v1580_v15 = vrot.slane %v1572_v28, %v4882_v6  ;;  %v5275_v23 = vrot.slane %v1856_v35, 1  ;;  %v2468_v53 = vrot.slane %v1856_v35, 2 }
 0x13f   : > { %v2467_v11 = vrot.slane %v1860_v47, 1  ;;  %v5279_v56 = vsel %vm1847_vm9, %v1870_v18, %v1874_v29  ;;  %v2158_v55 = vrot.slane %v5226_v20, 1  ;;  %v2160_v10 = vrot.slane %v5238_v14, 1 }
 0x140   : > { %v1587_v62 = vrot.slane %v1573_v34, %v4882_v6  ;;  %v1862_v24 = vor.u32 %v1860_v47, %v5275_v23  ;;  %v5289_v60 = vsel %vm1847_vm9, %v1878_v58, %v1882_v19  ;;  %v5292_v21 = vrot.slane %v5242_v2, 1 }
 0x141   : > { %v1733_v61 = vrot.slane %v5208_v36, %v4882_v6  ;;  %v1740_v46 = vrot.slane %v1726_v3, %v4882_v6  ;;  %v5301_v26 = vsel %vm2154_vm10, %v2156_v44, %v2158_v55  ;;  %v5304_v1 = vsel %vm2154_vm10, %v2158_v55, %v2160_v10  ;;  %v4585_v55 = vld [vmem:[%s5900_s4 + $0x80] sm:$0xff]  }
 0x142   : > { %v1588_v37 = vcombine.low %v1580_v15, %v1587_v62  ;;  %v5298_v22 = vsel %vm1847_vm9, %v1862_v24, %v1866_v41  ;;  %v5311_v54 = vsel %vm2154_vm10, %v2160_v10, %v5292_v21  ;;  %v1750_v57 = vrot.slane %v5213_v38, %v4882_v6 }
 0x143   : > { %v1741_v36 = vcombine.low %v1733_v61, %v1740_v46  ;;  %v2643_v39 = vrot.slane %v5251_v51, 2  ;;  %v2644_v17 = vrot.slane %v5226_v20, 2  ;;  %v2469_v31 = vor.u32 %v2468_v53, %v2467_v11 }
 0x144   : > { %v1807_v4 = vpack.c.bf16 %v1588_v37, %v1571_v43  ;;  %v2470_v63 = vrot.slane %v5258_v25, 1  ;;  %v1758_v40 = vcombine.low %v1750_v57, %v1757_v59  ;;  %v2471_v27 = vrot.slane %v5248_v50, 2 }
 0x145   : > { %v2646_v3 = vrot.slane %v5238_v14, 2  ;;  %v2474_v0 = vrot.slane %v5261_v42, 1  ;;  %v5325_v43 = vsel %vm2642_vm11, %v2643_v39, %v2644_v17  ;;  %v5909_v48 = vmov 0.0   ;;  %v4590_v39 = vld [vmem:[%s5900_s4 + $0xd0] sm:$0xff]  }
 0x146   : > { %4221 = vmatmul.mubr.bf16.vlgmr.msra.gmra.mrb[16].mxu1 %v1807_v4  ;;  %v1849_v38 = vshrl.u32 %v1807_v4, 16  ;;  %v1851_v13 = vshll.u32 %v1807_v4, 16  ;;  %v2155_v41 = vrot.slane %v1807_v4, 1  ;;  %v5332_v59 = vpack.c.bf16 %v1758_v40, %v1741_v36 }
 0x147   : > { %4224 = vmatprep.mubr.msk.bf16.mxu1 %vm4683_vm7, %v5909_v48  ;;  %4277 = vmatpush3.bf16.msra.mxu1 %v4586_v7  ;;  %v2472_v28 = vor.u32 %v2471_v27, %v2470_v63  ;;  %v5335_v35 = vsel %vm2642_vm11, %v2644_v17, %v2646_v3  ;;  %v2475_v47 = vrot.slane %v5254_v30, 2  ;;  %v2648_v34 = vrot.slane %v5242_v2, 2 }
 0x148   : > { %v1853_v18 = vrot.slane %v1851_v13, 1  ;;  %4278 = vmatprep.subr.bf16.mxu1 %v5909_v48  ;;  %v5340_v29 = vsel %vm2154_vm10, %v2155_v41, %v2156_v44  ;;  %v2478_v15 = vrot.slane %v5272_v49, 1  ;;  %v2316_v53 = vrot.slane %v5332_v59, 1 }
 0x149   : > { %v5346_v11 = vsel %vm2466_vm12, %v2469_v31, %v2472_v28  ;;  %v2476_v58 = vor.u32 %v2475_v47, %v2474_v0  ;;  %v2479_v62 = vrot.slane %v5264_v45, 2  ;;  %v5353_v44 = vsel %vm2642_vm11, %v2646_v3, %v2648_v34  ;;  %v4587_v3 = vld [vmem:[%s5900_s4 + $0x88] sm:$0xff]  }
 0x14a   : > { %v1854_v24 = vor.u32 %v1853_v18, %v1849_v38  ;;  %v5356_v10 = vrot.slane %v5332_v59, 2  ;;  %v2483_v61 = vshrl.u32 %v5332_v59, 16  ;;  %v5363_v46 = vsel %vm2154_vm10, %v5292_v21, %v2316_v53 }
 0x14b   : > { %4279 = vmatpush3.bf16.msra.mxu1 %v4588_v5  ;;  %v5366_v37 = vsel %vm2466_vm12, %v2472_v28, %v2476_v58  ;;  %v2480_v7 = vor.u32 %v2479_v62, %v2478_v15  ;;  %v2486_v36 = vshll.u32 %v5332_v59, 16  ;;  %v2955_v31 = vrot.slane %v5258_v25, 2  ;;  %v4589_v15 = vld [vmem:[%s5900_s4 + $0x90] sm:$0xff]  }
 0x14c   : > { %v1859_v57 = vsel %vm1847_vm9, %v1854_v24, %v5275_v23  ;;  %4280 = vmatprep.subr.bf16.mxu1 %v5909_v48  ;;  %v5377_v4 = vsel %vm2642_vm11, %v2648_v34, %v5356_v10  ;;  %v2485_v17 = vrot.slane %v2483_v61, 1  ;;  %v2956_v23 = vrot.slane %v5248_v50, 3 }
 0x14d   : > { %4185 = vmatmul.mubr.bf16.vlgmr.msra.gmra.mrb[16].mxu0 %v1859_v57  ;;  %v5381_v63 = vsel %vm2466_vm12, %v2476_v58, %v2480_v7  ;;  %v2488_v40 = vrot.slane %v2486_v36, 2  ;;  %v2958_v27 = vrot.slane %v5261_v42, 2  ;;  %v2959_v0 = vrot.slane %v5254_v30, 3  ;;  %v4591_v30 = vld [vmem:[%s5900_s4 + $0xd8] sm:$0xff]  }
 0x14e   : > { %4241 = vmatpush3.bf16.msra.mxu0 %v4585_v55  ;;  %4225 = vmatmul.mubr.bf16.gmra.mrb[20].mxu1 %v5251_v51  ;;  %v2962_v25 = vrot.slane %v5272_v49, 2  ;;  %v2963_v38 = vrot.slane %v5264_v45, 3  ;;  %v2966_v13 = vrot.slane %v2483_v61, 2  ;;  %v2957_v42 = vor.u32 %v2956_v23, %v2955_v31  ;;  %v4604_v45 = vld [vmem:[%s5900_s4 + $0x148] sm:$0xff]  }
 0x14f   : > { %4242 = vmatprep.subr.bf16.mxu0 %v5909_v48  ;;  %4188 = vmatprep.mubr.msk.bf16.mxu0 %vm4683_vm7, %v5909_v48  ;;  %v5395_v50 = vor.u32 %v2488_v40, %v2485_v17  ;;  %v2967_v51 = vrot.slane %v2486_v36, 3  ;;  %v1760_v41 = vcombine.low %v1538_v33, %v5183_v32  ;;  %v2960_v5 = vor.u32 %v2959_v0, %v2958_v27  ;;  %v4593_v36 = vld [vmem:[%s5900_s4 + $0xe0] sm:$0xff]  }
 0x150   : > { %4228 = vmatprep.mubr.msk.bf16.mxu1 %vm4683_vm7, %v5909_v48  ;;  %4281 = vmatpush3.bf16.msra.mxu1 %v4590_v39  ;;  %v2964_v28 = vor.u32 %v2963_v38, %v2962_v25  ;;  %v1767_v47 = vrot.slane %v5222_v8, %v4882_v6  ;;  %v3136_v18 = vrot.slane %v5332_v59, 3  ;;  %v1784_v34 = vrot.slane %v5224_v12, %v4882_v6  ;;  %v4594_v38 = vld [vmem:[%s5900_s4 + $0xa0] sm:$0xff]   ;;  %v4620_v59 = vld [vmem:[%s5900_s4 + $0x1c8] sm:$0xff]  }
 0x151   : > { %4282 = vmatprep.subr.bf16.mxu1 %v5909_v48  ;;  %v5412_v52 = vsel %vm2466_vm12, %v2480_v7, %v5395_v50  ;;  %v2968_v32 = vor.u32 %v2967_v51, %v2966_v13  ;;  %v1774_v33 = vrot.slane %v1760_v41, %v4882_v6  ;;  %v5421_v8 = vsel %vm2954_vm13, %v2957_v42, %v2960_v5  ;;  %v4597_v42 = vld [vmem:[%s5900_s4 + $0xf0] sm:$0xff]   ;;  %v4596_v41 = vld [vmem:[%s5900_s4 + $0xa8] sm:$0xff]  }
 0x152   : > { %4243 = vmatpush3.bf16.msra.mxu0 %v4587_v3  ;;  %v5424_v58 = vsel %vm2954_vm13, %v2960_v5, %v2964_v28  ;;  %v3131_v62 = vrot.slane %v5226_v20, 3  ;;  %v3132_v24 = vrot.slane %v5238_v14, 3  ;;  %v1792_v61 = vcombine.low %v1784_v34, %v1791_v16  ;;  %v4603_v5 = vld [vmem:[%s5900_s4 + $0x108] sm:$0xff]  }
 0x153   : > { %4244 = vmatprep.subr.bf16.mxu0 %v5909_v48  ;;  %v5430_v55 = vsel %vm2954_vm13, %v2964_v28, %v2968_v32  ;;  %v1775_v12 = vcombine.low %v1767_v47, %v1774_v33  ;;  %v3134_v7 = vrot.slane %v5242_v2, 3  ;;  %v4605_v28 = vld [vmem:[%s5900_s4 + $0x110] sm:$0xff]   ;;  %v4609_v47 = vld [vmem:[%s5900_s4 + $0x160] sm:$0xff]   ;;  %v4612_v34 = vld [vmem:[%s5900_s4 + $0x128] sm:$0xff]  }
 0x154   : > { %4283 = vmatpush3.bf16.msra.mxu1 %v4591_v30  ;;  %v5440_v57 = vsel %vm3130_vm14, %v3131_v62, %v3132_v24  ;;  %v4600_v30 = vld [vmem:[%s5900_s4 + $0xb8] sm:$0xff]   ;;  %v4613_v33 = vld [vmem:[%s5900_s4 + $0x170] sm:$0xff]  }
 0x155   : > { %4189 = vmatmul.mubr.bf16.gmra.mrb[20].mxu0 %v5298_v22  ;;  %4284 = vmatprep.subr.bf16.mxu1 %v5909_v48  ;;  %v5444_v39 = vpack.c.bf16 %v1792_v61, %v1775_v12  ;;  %v5447_v17 = vsel %vm3130_vm14, %v3132_v24, %v3134_v7  ;;  %v5450_v16 = vsel %vm3130_vm14, %v3134_v7, %v3136_v18  ;;  %v4621_v62 = vld [vmem:[%s5900_s4 + $0x190] sm:$0xff]   ;;  %v4625_v24 = vld [vmem:[%s5900_s4 + $0x1e0] sm:$0xff]   ;;  %v4624_v12 = vld [vmem:[%s5900_s4 + $0x198] sm:$0xff]  }
 0x156   : > { %4229 = vmatmul.mubr.bf16.gmra.mrb[24].mxu1 %v5226_v20  ;;  %4245 = vmatpush3.bf16.msra.mxu0 %v4589_v15  ;;  %v4595_v20 = vld [vmem:[%s5900_s4 + $0xe8] sm:$0xff]   ;;  %v4616_v15 = vld [vmem:[%s5900_s4 + $0x138] sm:$0xff]   ;;  %v4626_v61 = vld [vmem:[%s5900_s4 + $0x1a0] sm:$0xff]  }
 0x157   : > { %4246 = vmatprep.subr.bf16.mxu0 %v5909_v48  ;;  %4192 = vmatprep.mubr.msk.bf16.mxu0 %vm4683_vm7, %v5909_v48  ;;  %v2971_v22 = vshrl.u32 %v5444_v39, 16  ;;  %v2974_v31 = vshll.u32 %v5444_v39, 16  ;;  %v2804_v40 = vrot.slane %v5444_v39, 2  ;;  %v3138_v23 = vrot.slane %v5444_v39, 3  ;;  %v4629_v7 = vld [vmem:[%s5900_s4 + $0x1f0] sm:$0xff]  }
 0x158   : > { %4232 = vmatprep.mubr.msk.bf16.mxu1 %vm4683_vm7, %v5909_v48  ;;  %4285 = vmatpush3.bf16.msra.mxu1 %v4593_v36  ;;  %v4628_v36 = vld [vmem:[%s5900_s4 + $0x1a8] sm:$0xff]  }
 0x159   : > { %4286 = vmatprep.subr.bf16.mxu1 %v5909_v48  ;;  %v2973_v27 = vrot.slane %v2971_v22, 2  ;;  %v2976_v3 = vrot.slane %v2974_v31, 3  ;;  %v5473_v0 = vsel %vm2642_vm11, %v5356_v10, %v2804_v40  ;;  %v5478_v25 = vsel %vm3130_vm14, %v3136_v18, %v3138_v23  ;;  %v4608_v18 = vld [vmem:[%s5900_s4 + $0x118] sm:$0xff]  }
 0x15a   : > { %4247 = vmatpush3.bf16.msra.mxu0 %v4592_v9  ;;  %v4630_v9 = vld [vmem:[%s5900_s4 + $0x1b0] sm:$0xff]   ;;  %v4632_v22 = vld [vmem:[%s5900_s4 + $0x1b8] sm:$0xff]  }
 0x15b   : > { %4248 = vmatprep.subr.bf16.mxu0 %v5909_v48  ;;  %v5484_v13 = vor.u32 %v2976_v3, %v2973_v27 }
 0x15c   : > { %4287 = vmatpush3.bf16.msra.mxu1 %v4595_v20 }
 0x15d   : > { %4193 = vmatmul.mubr.bf16.gmra.mrb[24].mxu0 %v5279_v56  ;;  %4288 = vmatprep.subr.bf16.mxu1 %v5909_v48  ;;  %v5493_v51 = vsel %vm2954_vm13, %v2968_v32, %v5484_v13  ;;  %v4599_v56 = vld [vmem:[%s5900_s4 + $0xf8] sm:$0xff]   ;;  %v4610_v32 = vld [vmem:[%s5900_s4 + $0x120] sm:$0xff]  }
 0x15e   : > { %4233 = vmatmul.mubr.bf16.gmra.mrb[28].mxu1 %v5238_v14  ;;  %4249 = vmatpush3.bf16.msra.mxu0 %v4594_v38  ;;  %v4598_v14 = vld [vmem:[%s5900_s4 + $0xb0] sm:$0xff]  }
 0x15f   : > { %4196 = vmatprep.mubr.msk.bf16.mxu0 %vm4683_vm7, %v5909_v48  ;;  %4236 = vmatprep.mubr.msk.bf16.mxu1 %vm4683_vm7, %v5909_v48 }
 0x160   : > { %4250 = vmatprep.subr.bf16.mxu0 %v5909_v48  ;;  %4289 = vmatpush3.bf16.msra.mxu1 %v4597_v42 }
 0x161   : > { %4290 = vmatprep.subr.bf16.mxu1 %v5909_v48 }
 0x162   : > { %4251 = vmatpush3.bf16.msra.mxu0 %v4596_v41 }
 0x163   : > { %4252 = vmatprep.subr.bf16.mxu0 %v5909_v48 }
 0x164   : > { %4291 = vmatpush3.bf16.msra.mxu1 %v4599_v56 }
 0x165   : > { %4197 = vmatmul.mubr.bf16.gmra.mrb[28].mxu0 %v5289_v60  ;;  %4348 = vmatprep.subr.bf16.mxu1 %v5909_v48  ;;  %v1886_v60 = vor.u32 %v5272_v49, %v1882_v19  ;;  %v4601_v19 = vld [vmem:[%s5900_s4 + $0x100] sm:$0xff]   ;;  %v4606_v49 = vld [vmem:[%s5900_s4 + $0x150] sm:$0xff]  }
 0x166   : > { %4237 = vmatmul.mubr.bf16.gmra.mrb[32].mxu1 %v5242_v2  ;;  %4253 = vmatpush3.bf16.msra.mxu0 %v4598_v14  ;;  %v4602_v2 = vld [vmem:[%s5900_s4 + $0x140] sm:$0xff]  }
 0x167   : > { %4200 = vmatprep.mubr.msk.bf16.mxu0 %vm4683_vm7, %v5909_v48  ;;  %4292 = vmatprep.mubr.msk.bf16.mxu1 %vm4683_vm7, %v5909_v48 }
 0x168   : > { %4254 = vmatprep.subr.bf16.mxu0 %v5909_v48 }
 0x16a   : > { %4255 = vmatpush3.bf16.msra.mxu0 %v4600_v30 }
 0x16b   : > { %4312 = vmatprep.subr.bf16.mxu0 %v5909_v48 }
 0x16d   : > { %4201 = vmatmul.mubr.bf16.gmra.mrb[32].mxu0 %v1886_v60 }
 0x16e   : > { %4293 = vmatmul.mubr.bf16.vlgmr.msra.gmra.mrb[36].mxu1 %v5301_v26  ;;  %4256 = vmatprep.mubr.msk.bf16.mxu0 %vm4683_vm7, %v5909_v48 }
 0x16f   : > { %4296 = vmatprep.mubr.msk.bf16.mxu1 %vm4683_vm7, %v5909_v48  ;;  %4349 = vmatpush3.bf16.msra.mxu1 %v4602_v2 }
 0x170   : > { %4350 = vmatprep.subr.bf16.mxu1 %v5909_v48 }
 0x173   : > { %4351 = vmatpush3.bf16.msra.mxu1 %v4604_v45 }
 0x174   : > { %4352 = vmatprep.subr.bf16.mxu1 %v5909_v48 }
 0x175   : > { %4257 = vmatmul.mubr.bf16.vlgmr.msra.gmra.mrb[36].mxu0 %v5340_v29  ;;  %v4607_v29 = vld [vmem:[%s5900_s4 + $0x158] sm:$0xff]  }
 0x176   : > { %4313 = vmatpush3.bf16.msra.mxu0 %v4601_v19  ;;  %4297 = vmatmul.mubr.bf16.gmra.mrb[40].mxu1 %v5304_v1 }
 0x177   : > { %4314 = vmatprep.subr.bf16.mxu0 %v5909_v48  ;;  %4260 = vmatprep.mubr.msk.bf16.mxu0 %vm4683_vm7, %v5909_v48 }
 0x178   : > { %4300 = vmatprep.mubr.msk.bf16.mxu1 %vm4683_vm7, %v5909_v48  ;;  %4353 = vmatpush3.bf16.msra.mxu1 %v4606_v49 }
 0x179   : > { %4354 = vmatprep.subr.bf16.mxu1 %v5909_v48 }
 0x17a   : > { %4315 = vmatpush3.bf16.msra.mxu0 %v4603_v5 }
 0x17b   : > { %4316 = vmatprep.subr.bf16.mxu0 %v5909_v48 }
 0x17c   : > { %4355 = vmatpush3.bf16.msra.mxu1 %v4607_v29 }
 0x17d   : > { %4261 = vmatmul.mubr.bf16.gmra.mrb[40].mxu0 %v5301_v26  ;;  %4356 = vmatprep.subr.bf16.mxu1 %v5909_v48  ;;  %v4611_v26 = vld [vmem:[%s5900_s4 + $0x168] sm:$0xff]  }
 0x17e   : > { %4301 = vmatmul.mubr.bf16.gmra.mrb[44].mxu1 %v5311_v54  ;;  %4317 = vmatpush3.bf16.msra.mxu0 %v4605_v28 }
 0x17f   : > { %4318 = vmatprep.subr.bf16.mxu0 %v5909_v48  ;;  %4264 = vmatprep.mubr.msk.bf16.mxu0 %vm4683_vm7, %v5909_v48 }
 0x180   : > { %4304 = vmatprep.mubr.msk.bf16.mxu1 %vm4683_vm7, %v5909_v48  ;;  %4357 = vmatpush3.bf16.msra.mxu1 %v4609_v47 }
 0x181   : > { %4358 = vmatprep.subr.bf16.mxu1 %v5909_v48 }
 0x182   : > { %4319 = vmatpush3.bf16.msra.mxu0 %v4608_v18 }
 0x183   : > { %4320 = vmatprep.subr.bf16.mxu0 %v5909_v48 }
 0x184   : > { %4359 = vmatpush3.bf16.msra.mxu1 %v4611_v26 }
 0x185   : > { %4265 = vmatmul.mubr.bf16.gmra.mrb[44].mxu0 %v5304_v1  ;;  %4360 = vmatprep.subr.bf16.mxu1 %v5909_v48  ;;  %v4615_v1 = vld [vmem:[%s5900_s4 + $0x178] sm:$0xff]  }
 0x186   : > { %4305 = vmatmul.mubr.bf16.gmra.mrb[48].mxu1 %v5363_v46  ;;  %4321 = vmatpush3.bf16.msra.mxu0 %v4610_v32  ;;  %v4614_v46 = vld [vmem:[%s5900_s4 + $0x130] sm:$0xff]  }
 0x187   : > { %4268 = vmatprep.mubr.msk.bf16.mxu0 %vm4683_vm7, %v5909_v48  ;;  %4308 = vmatprep.mubr.msk.bf16.mxu1 %vm4683_vm7, %v5909_v48 }
 0x188   : > { %4322 = vmatprep.subr.bf16.mxu0 %v5909_v48  ;;  %4361 = vmatpush3.bf16.msra.mxu1 %v4613_v33 }
 0x189   : > { %4362 = vmatprep.subr.bf16.mxu1 %v5909_v48 }
 0x18a   : > { %4323 = vmatpush3.bf16.msra.mxu0 %v4612_v34 }
 0x18b   : > { %4324 = vmatprep.subr.bf16.mxu0 %v5909_v48 }
 0x18c   : > { %4363 = vmatpush3.bf16.msra.mxu1 %v4615_v1 }
 0x18d   : > { %4269 = vmatmul.mubr.bf16.gmra.mrb[48].mxu0 %v5311_v54  ;;  %4420 = vmatprep.subr.bf16.mxu1 %v5909_v48  ;;  %v4618_v54 = vld [vmem:[%s5900_s4 + $0x1c0] sm:$0xff]  }
 0x18e   : > { %4309 = vmatmul.mubr.bf16.gmra.mrb[52].mxu1 %v2316_v53  ;;  %4325 = vmatpush3.bf16.msra.mxu0 %v4614_v46  ;;  %v4617_v53 = vld [vmem:[%s5900_s4 + $0x180] sm:$0xff]  }
 0x18f   : > { %4272 = vmatprep.mubr.msk.bf16.mxu0 %vm4683_vm7, %v5909_v48  ;;  %4364 = vmatprep.mubr.msk.bf16.mxu1 %vm4683_vm7, %v5909_v48 }
 0x190   : > { %4326 = vmatprep.subr.bf16.mxu0 %v5909_v48 }
 0x192   : > { %4327 = vmatpush3.bf16.msra.mxu0 %v4616_v15 }
 0x193   : > { %4384 = vmatprep.subr.bf16.mxu0 %v5909_v48 }
 0x195   : > { %4273 = vmatmul.mubr.bf16.gmra.mrb[52].mxu0 %v5292_v21  ;;  %v4622_v21 = vld [vmem:[%s5900_s4 + $0x1d0] sm:$0xff]  }
 0x196   : > { %4365 = vmatmul.mubr.bf16.vlgmr.msra.gmra.mrb[56].mxu1 %v5325_v43  ;;  %4328 = vmatprep.mubr.msk.bf16.mxu0 %vm4683_vm7, %v5909_v48  ;;  %v4619_v43 = vld [vmem:[%s5900_s4 + $0x188] sm:$0xff]  }
 0x197   : > { %4368 = vmatprep.mubr.msk.bf16.mxu1 %vm4683_vm7, %v5909_v48  ;;  %4421 = vmatpush3.bf16.msra.mxu1 %v4618_v54 }
 0x198   : > { %4422 = vmatprep.subr.bf16.mxu1 %v5909_v48 }
 0x19b   : > { %4423 = vmatpush3.bf16.msra.mxu1 %v4620_v59 }
 0x19c   : > { %4424 = vmatprep.subr.bf16.mxu1 %v5909_v48 }
 0x19d   : > { %4329 = vmatmul.mubr.bf16.vlgmr.msra.gmra.mrb[56].mxu0 %v5346_v11  ;;  %v4623_v11 = vld [vmem:[%s5900_s4 + $0x1d8] sm:$0xff]  }
 0x19e   : > { %4385 = vmatpush3.bf16.msra.mxu0 %v4617_v53  ;;  %4369 = vmatmul.mubr.bf16.gmra.mrb[60].mxu1 %v5335_v35 }
 0x19f   : > { %4386 = vmatprep.subr.bf16.mxu0 %v5909_v48  ;;  %4332 = vmatprep.mubr.msk.bf16.mxu0 %vm4683_vm7, %v5909_v48 }
 0x1a0   : > { %4372 = vmatprep.mubr.msk.bf16.mxu1 %vm4683_vm7, %v5909_v48  ;;  %4425 = vmatpush3.bf16.msra.mxu1 %v4622_v21 }
 0x1a1   : > { %4426 = vmatprep.subr.bf16.mxu1 %v5909_v48 }
 0x1a2   : > { %4387 = vmatpush3.bf16.msra.mxu0 %v4619_v43 }
 0x1a3   : > { %4388 = vmatprep.subr.bf16.mxu0 %v5909_v48 }
 0x1a4   : > { %4427 = vmatpush3.bf16.msra.mxu1 %v4623_v11 }
 0x1a5   : > { %4333 = vmatmul.mubr.bf16.gmra.mrb[60].mxu0 %v5366_v37  ;;  %4428 = vmatprep.subr.bf16.mxu1 %v5909_v48  ;;  %v4627_v37 = vld [vmem:[%s5900_s4 + $0x1e8] sm:$0xff]  }
 0x1a6   : > { %4373 = vmatmul.mubr.bf16.gmra.mrb[64].mxu1 %v5353_v44  ;;  %4389 = vmatpush3.bf16.msra.mxu0 %v4621_v62 }
 0x1a7   : > { %4390 = vmatprep.subr.bf16.mxu0 %v5909_v48  ;;  %4336 = vmatprep.mubr.msk.bf16.mxu0 %vm4683_vm7, %v5909_v48 }
 0x1a8   : > { %4376 = vmatprep.mubr.msk.bf16.mxu1 %vm4683_vm7, %v5909_v48  ;;  %4429 = vmatpush3.bf16.msra.mxu1 %v4625_v24 }
 0x1a9   : > { %4430 = vmatprep.subr.bf16.mxu1 %v5909_v48 }
 0x1aa   : > { %4391 = vmatpush3.bf16.msra.mxu0 %v4624_v12 }
 0x1ab   : > { %4392 = vmatprep.subr.bf16.mxu0 %v5909_v48 }
 0x1ac   : > { %4431 = vmatpush3.bf16.msra.mxu1 %v4627_v37 }
 0x1ad   : > { %4337 = vmatmul.mubr.bf16.gmra.mrb[64].mxu0 %v5381_v63  ;;  %4432 = vmatprep.subr.bf16.mxu1 %v5909_v48  ;;  %v4631_v63 = vld [vmem:[%s5900_s4 + $0x1f8] sm:$0xff]  }
 0x1ae   : > { %4377 = vmatmul.mubr.bf16.gmra.mrb[68].mxu1 %v5377_v4  ;;  %4393 = vmatpush3.bf16.msra.mxu0 %v4626_v61 }
 0x1af   : > { %4340 = vmatprep.mubr.msk.bf16.mxu0 %vm4683_vm7, %v5909_v48  ;;  %4380 = vmatprep.mubr.msk.bf16.mxu1 %vm4683_vm7, %v5909_v48 }
 0x1b0   : > { %4394 = vmatprep.subr.bf16.mxu0 %v5909_v48  ;;  %4433 = vmatpush3.bf16.msra.mxu1 %v4629_v7 }
 0x1b1   : > { %4434 = vmatprep.subr.bf16.mxu1 %v5909_v48 }
 0x1b2   : > { %4395 = vmatpush3.bf16.msra.mxu0 %v4628_v36 }
 0x1b3   : > { %4396 = vmatprep.subr.bf16.mxu0 %v5909_v48 }
 0x1b4   : > { %4435 = vmatpush3.bf16.msra.mxu1 %v4631_v63 }
 0x1b5   : > { %4341 = vmatmul.mubr.bf16.gmra.mrb[68].mxu0 %v5412_v52  ;;  %4492 = vmatprep.subr.bf16.mxu1 %v5909_v48  ;;  %v4634_v52 = vld [vmem:[%s5900_s4 + $0x208] sm:$0xff]  }
 0x1b6   : > { %4381 = vmatmul.mubr.bf16.gmra.mrb[72].mxu1 %v5356_v10  ;;  %4397 = vmatpush3.bf16.msra.mxu0 %v4630_v9  ;;  %v4633_v10 = vld [vmem:[%s5900_s4 + $0x200] sm:$0xff]  }
 0x1b7   : > { %4344 = vmatprep.mubr.msk.bf16.mxu0 %vm4683_vm7, %v5909_v48  ;;  %4436 = vmatprep.mubr.msk.bf16.mxu1 %vm4683_vm7, %v5909_v48 }
 0x1b8   : > { %4398 = vmatprep.subr.bf16.mxu0 %v5909_v48 }
 0x1ba   : > { %4399 = vmatpush3.bf16.msra.mxu0 %v4632_v22 }
 0x1bb   : > { %4456 = vmatprep.subr.bf16.mxu0 %v5909_v48 }
 0x1bd   : > { %4345 = vmatmul.mubr.bf16.gmra.mrb[72].mxu0 %v5395_v50  ;;  %v4635_v50 = vld [vmem:[%s5900_s4 + $0x210] sm:$0xff]  }
 0x1be   : > { %4437 = vmatmul.mubr.bf16.vlgmr.msra.gmra.mrb[76].mxu1 %v5421_v8  ;;  %4400 = vmatprep.mubr.msk.bf16.mxu0 %vm4683_vm7, %v5909_v48  ;;  %v4636_v8 = vld [vmem:[%s5900_s4 + $0x218] sm:$0xff]  }
 0x1bf   : > { %4440 = vmatprep.mubr.msk.bf16.mxu1 %vm4683_vm7, %v5909_v48  ;;  %4500 = vmatpush3.bf16.msra.mxu1 %v4633_v10 }
 0x1c0   : > { %4493 = vmatprep.subr.bf16.mxu1 %v5909_v48 }
 0x1c3   : > { %4501 = vmatpush3.bf16.msra.mxu1 %v4634_v52 }
 0x1c4   : > { %4494 = vmatprep.subr.bf16.mxu1 %v5909_v48 }
 0x1c5   : > { %4401 = vmatmul.mubr.bf16.vlgmr.msra.gmra.mrb[76].mxu0 %v5335_v35  ;;  %v4637_v35 = vld [vmem:[%s5900_s4 + $0x220] sm:$0xff]  }
 0x1c6   : > { %4457 = vmatpush3.bf16.msra.mxu0 %v4633_v10  ;;  %4441 = vmatmul.mubr.bf16.gmra.mrb[80].mxu1 %v5424_v58  ;;  %v4638_v58 = vld [vmem:[%s5900_s4 + $0x228] sm:$0xff]  }
 0x1c7   : > { %4458 = vmatprep.subr.bf16.mxu0 %v5909_v48  ;;  %4404 = vmatprep.mubr.msk.bf16.mxu0 %vm4683_vm7, %v5909_v48 }
 0x1c8   : > { %4444 = vmatprep.mubr.msk.bf16.mxu1 %vm4683_vm7, %v5909_v48  ;;  %4502 = vmatpush3.bf16.msra.mxu1 %v4635_v50 }
 0x1c9   : > { %4495 = vmatprep.subr.bf16.mxu1 %v5909_v48 }
 0x1ca   : > { %4459 = vmatpush3.bf16.msra.mxu0 %v4634_v52 }
 0x1cb   : > { %4460 = vmatprep.subr.bf16.mxu0 %v5909_v48 }
 0x1cc   : > { %4503 = vmatpush3.bf16.msra.mxu1 %v4636_v8 }
 0x1cd   : > { %4405 = vmatmul.mubr.bf16.gmra.mrb[80].mxu0 %v5353_v44  ;;  %4496 = vmatprep.subr.bf16.mxu1 %v5909_v48  ;;  %v4639_v44 = vld [vmem:[%s5900_s4 + $0x230] sm:$0xff]  }
 0x1ce   : > { %4445 = vmatmul.mubr.bf16.gmra.mrb[84].mxu1 %v5430_v55  ;;  %4461 = vmatpush3.bf16.msra.mxu0 %v4635_v50  ;;  %v4640_v55 = vld [vmem:[%s5900_s4 + $0x238] sm:$0xff]  }
 0x1cf   : > { %4462 = vmatprep.subr.bf16.mxu0 %v5909_v48  ;;  %4408 = vmatprep.mubr.msk.bf16.mxu0 %vm4683_vm7, %v5909_v48 }
 0x1d0   : > { %4448 = vmatprep.mubr.msk.bf16.mxu1 %vm4683_vm7, %v5909_v48  ;;  %4504 = vmatpush3.bf16.msra.mxu1 %v4637_v35 }
 0x1d1   : > { %4497 = vmatprep.subr.bf16.mxu1 %v5909_v48 }
 0x1d2   : > { %4463 = vmatpush3.bf16.msra.mxu0 %v4636_v8 }
 0x1d3   : > { %4464 = vmatprep.subr.bf16.mxu0 %v5909_v48 }
 0x1d4   : > { %4505 = vmatpush3.bf16.msra.mxu1 %v4638_v58 }
 0x1d5   : > { %4409 = vmatmul.mubr.bf16.gmra.mrb[84].mxu0 %v5377_v4  ;;  %4498 = vmatprep.subr.bf16.mxu1 %v5909_v48 }
 0x1d6   : > { %4449 = vmatmul.mubr.bf16.gmra.mrb[88].mxu1 %v5493_v51  ;;  %4465 = vmatpush3.bf16.msra.mxu0 %v4637_v35 }
 0x1d7   : > { %4412 = vmatprep.mubr.msk.bf16.mxu0 %vm4683_vm7, %v5909_v48  ;;  %4452 = vmatprep.mubr.msk.bf16.mxu1 %vm4683_vm7, %v5909_v48 }
 0x1d8   : > { %4466 = vmatprep.subr.bf16.mxu0 %v5909_v48  ;;  %4506 = vmatpush3.bf16.msra.mxu1 %v4639_v44 }
 0x1d9   : > { %4499 = vmatprep.subr.bf16.mxu1 %v5909_v48 }
 0x1da   : > { %4467 = vmatpush3.bf16.msra.mxu0 %v4638_v58 }
 0x1db   : > { %4468 = vmatprep.subr.bf16.mxu0 %v5909_v48 }
 0x1dc   : > { %4507 = vmatpush3.bf16.msra.mxu1 %v4640_v55 }
 0x1dd   : > { %4413 = vmatmul.mubr.bf16.gmra.mrb[88].mxu0 %v5473_v0 }
 0x1de   : > { %4453 = vmatmul.mubr.bf16.gmra.mrb[92].mxu1 %v5484_v13  ;;  %4469 = vmatpush3.bf16.msra.mxu0 %v4639_v44 }
 0x1df   : > { %4416 = vmatprep.mubr.msk.bf16.mxu0 %vm4683_vm7, %v5909_v48  ;;  %4484 = vmatprep.mubr.msk.bf16.mxu1 %vm4683_vm7, %v5909_v48 }
 0x1e0   : > { %4470 = vmatprep.subr.bf16.mxu0 %v5909_v48 }
 0x1e2   : > { %4471 = vmatpush3.bf16.msra.mxu0 %v4640_v55 }
 0x1e5   : > { %4417 = vmatmul.mubr.bf16.gmra.mrb[92].mxu0 %v2804_v40 }
 0x1e6   : > { %4485 = vmatmul.mubr.bf16.vlgmr.msra.gmra.mrb[96].mxu1 %v5478_v25  ;;  %4472 = vmatprep.mubr.msk.bf16.mxu0 %vm4683_vm7, %v5909_v48 }
 0x1e7   : > { %4488 = vmatprep.mubr.msk.bf16.mxu1 %vm4683_vm7, %v5909_v48 }
 0x1ed   : > { %4473 = vmatmul.mubr.bf16.vlgmr.msra.gmra.mrb[96].mxu0 %v5440_v57 }
 0x1ee   : > { %4489 = vmatmul.mubr.bf16.gmra.mrb[100].mxu1 %v3138_v23  ;;  %4476 = vmatprep.mubr.msk.bf16.mxu0 %vm4683_vm7, %v5909_v48 }
 0x1f5   : > { %4477 = vmatmul.mubr.bf16.gmra.mrb[100].mxu0 %v5447_v17 }
 0x1f6   : > { %4480 = vmatprep.mubr.msk.bf16.mxu0 %vm4683_vm7, %v5909_v48 }
 0x1fd   : > { %4481 = vmatmul.mubr.bf16.gmra.mrb[104].mxu0 %v5450_v16 }
 0x219   : > { %v2094_v4 = vpop.f32.mrb[16].mxu1 }
 0x21a   : > { %v4222_v31 = vpop.f32.mrb[17].mxu1 }
 0x21b   : > { %v2097_v40 = vpop.f32.mrb[18].mxu1 }
 0x21c   : > { %v4223_v20 = vpop.f32.mrb[19].mxu1 }
 0x220   : > { %v1974_v27 = vpop.f32.mrb[16].mxu0 }
 0x221   : > { %v2095_v3 = vadd.f32 %v2094_v4, %v1974_v27  ;;  %v4186_v57 = vpop.f32.mrb[17].mxu0  ;;  %v2102_v0 = vpop.f32.mrb[20].mxu1 }
 0x222   : > { %v1977_v39 = vpop.f32.mrb[18].mxu0  ;;  %v4226_v23 = vpop.f32.mrb[21].mxu1 }
 0x223   : > { %v2098_v25 = vadd.f32 %v2097_v40, %v1977_v39  ;;  %v4187_v38 = vpop.f32.mrb[19].mxu0  ;;  %v2105_v13 = vpop.f32.mrb[22].mxu1 }
 0x224   : > { %v4227_v42 = vpop.f32.mrb[23].mxu1 }
 0x228   : > { %v1982_v17 = vpop.f32.mrb[20].mxu0 }
 0x229   : > { %v2103_v51 = vadd.f32 %v2102_v0, %v1982_v17  ;;  %v4190_v41 = vpop.f32.mrb[21].mxu0  ;;  %v2110_v48 = vpop.f32.mrb[24].mxu1 }
 0x22a   : > { %v1985_v56 = vpop.f32.mrb[22].mxu0  ;;  %v4230_v16 = vpop.f32.mrb[25].mxu1 }
 0x22b   : > { %v2106_v14 = vadd.f32 %v2105_v13, %v1985_v56  ;;  %v4191_v30 = vpop.f32.mrb[23].mxu0  ;;  %v2113_v60 = vpop.f32.mrb[26].mxu1 }
 0x22c   : > { %v4231_v2 = vpop.f32.mrb[27].mxu1 }
 0x230   : > { %v1990_v45 = vpop.f32.mrb[24].mxu0 }
 0x231   : > { %v2111_v19 = vadd.f32 %v2110_v48, %v1990_v45  ;;  %v4194_v49 = vpop.f32.mrb[25].mxu0  ;;  %v2118_v5 = vpop.f32.mrb[28].mxu1 }
 0x232   : > { %v1993_v29 = vpop.f32.mrb[26].mxu0  ;;  %v4234_v28 = vpop.f32.mrb[29].mxu1 }
 0x233   : > { %v2114_v47 = vadd.f32 %v2113_v60, %v1993_v29  ;;  %v4195_v18 = vpop.f32.mrb[27].mxu0  ;;  %v2121_v26 = vpop.f32.mrb[30].mxu1 }
 0x234   : > { %v4235_v32 = vpop.f32.mrb[31].mxu1 }
 0x238   : > { %v1998_v33 = vpop.f32.mrb[28].mxu0 }
 0x239   : > { %v2119_v34 = vadd.f32 %v2118_v5, %v1998_v33  ;;  %v4198_v1 = vpop.f32.mrb[29].mxu0  ;;  %v2126_v46 = vpop.f32.mrb[32].mxu1 }
 0x23a   : > { %v2001_v15 = vpop.f32.mrb[30].mxu0  ;;  %v4238_v54 = vpop.f32.mrb[33].mxu1 }
 0x23b   : > { %v2122_v59 = vadd.f32 %v2121_v26, %v2001_v15  ;;  %v4199_v53 = vpop.f32.mrb[31].mxu0  ;;  %v2129_v21 = vpop.f32.mrb[34].mxu1 }
 0x23c   : > { %v4239_v43 = vpop.f32.mrb[35].mxu1 }
 0x240   : > { %v2006_v11 = vpop.f32.mrb[32].mxu0 }
 0x241   : > { %v2127_v62 = vadd.f32 %v2126_v46, %v2006_v11  ;;  %v4202_v24 = vpop.f32.mrb[33].mxu0  ;;  %v2402_v12 = vpop.f32.mrb[36].mxu1 }
 0x242   : > { %v2009_v37 = vpop.f32.mrb[34].mxu0  ;;  %v4294_v61 = vpop.f32.mrb[37].mxu1 }
 0x243   : > { %v4203_v7 = vpop.f32.mrb[35].mxu0  ;;  %v2405_v36 = vpop.f32.mrb[38].mxu1 }
 0x244   : > { %v4295_v63 = vpop.f32.mrb[39].mxu1 }
 0x248   : > { %v2251_v9 = vpop.f32.mrb[36].mxu0 }
 0x249   : > { %v2289_v22 = vadd.f32 %v2251_v9, %v2095_v3  ;;  %v4258_v10 = vpop.f32.mrb[37].mxu0  ;;  %v2410_v52 = vpop.f32.mrb[40].mxu1 }
 0x24a   : > { %v2254_v50 = vpop.f32.mrb[38].mxu0  ;;  %v4298_v8 = vpop.f32.mrb[41].mxu1 }
 0x24b   : > { %v2290_v35 = vadd.f32 %v2254_v50, %v2098_v25  ;;  %v4259_v58 = vpop.f32.mrb[39].mxu0  ;;  %v2413_v44 = vpop.f32.mrb[42].mxu1  ;;  %v2440_v55 = vadd.f32 %v2402_v12, %v2289_v22 }
 0x24c   : > { %v4299_v4 = vpop.f32.mrb[43].mxu1 }
 0x24d   : > { %v2441_v31 = vadd.f32 %v2405_v36, %v2290_v35 }
 0x250   : > { %v2259_v40 = vpop.f32.mrb[40].mxu0 }
 0x251   : > { %v2291_v20 = vadd.f32 %v2259_v40, %v2103_v51  ;;  %v4262_v27 = vpop.f32.mrb[41].mxu0  ;;  %v2418_v57 = vpop.f32.mrb[44].mxu1 }
 0x252   : > { %v2262_v0 = vpop.f32.mrb[42].mxu0  ;;  %v4302_v39 = vpop.f32.mrb[45].mxu1 }
 0x253   : > { %v2292_v23 = vadd.f32 %v2262_v0, %v2106_v14  ;;  %v4263_v38 = vpop.f32.mrb[43].mxu0  ;;  %v2421_v13 = vpop.f32.mrb[46].mxu1  ;;  %v2442_v3 = vadd.f32 %v2410_v52, %v2291_v20 }
 0x254   : > { %v4303_v42 = vpop.f32.mrb[47].mxu1 }
 0x255   : > { %v2443_v17 = vadd.f32 %v2413_v44, %v2292_v23 }
 0x258   : > { %v2267_v41 = vpop.f32.mrb[44].mxu0 }
 0x259   : > { %v2293_v48 = vadd.f32 %v2267_v41, %v2111_v19  ;;  %v4266_v25 = vpop.f32.mrb[45].mxu0  ;;  %v2426_v56 = vpop.f32.mrb[48].mxu1 }
 0x25a   : > { %v2270_v16 = vpop.f32.mrb[46].mxu0  ;;  %v4306_v30 = vpop.f32.mrb[49].mxu1 }
 0x25b   : > { %v2294_v60 = vadd.f32 %v2270_v16, %v2114_v47  ;;  %v4267_v2 = vpop.f32.mrb[47].mxu0  ;;  %v2429_v45 = vpop.f32.mrb[50].mxu1  ;;  %v2444_v51 = vadd.f32 %v2418_v57, %v2293_v48 }
 0x25c   : > { %v4307_v49 = vpop.f32.mrb[51].mxu1 }
 0x25d   : > { %v2445_v5 = vadd.f32 %v2421_v13, %v2294_v60 }
 0x260   : > { %v2275_v29 = vpop.f32.mrb[48].mxu0 }
 0x261   : > { %v2295_v28 = vadd.f32 %v2275_v29, %v2119_v34  ;;  %v4270_v14 = vpop.f32.mrb[49].mxu0  ;;  %v2434_v18 = vpop.f32.mrb[52].mxu1 }
 0x262   : > { %v2278_v26 = vpop.f32.mrb[50].mxu0  ;;  %v4310_v32 = vpop.f32.mrb[53].mxu1 }
 0x263   : > { %v2296_v33 = vadd.f32 %v2278_v26, %v2122_v59  ;;  %v4271_v1 = vpop.f32.mrb[51].mxu0  ;;  %v2437_v46 = vpop.f32.mrb[54].mxu1  ;;  %v2446_v19 = vadd.f32 %v2426_v56, %v2295_v28 }
 0x264   : > { %v4311_v15 = vpop.f32.mrb[55].mxu1 }
 0x265   : > { %v2447_v54 = vadd.f32 %v2429_v45, %v2296_v33 }
 0x268   : > { %v2283_v53 = vpop.f32.mrb[52].mxu0 }
 0x269   : > { %v2297_v21 = vadd.f32 %v2283_v53, %v2127_v62  ;;  %v4274_v47 = vpop.f32.mrb[53].mxu0  ;;  %v2739_v43 = vpop.f32.mrb[56].mxu1 }
 0x26a   : > { %v2286_v11 = vpop.f32.mrb[54].mxu0  ;;  %v4366_v24 = vpop.f32.mrb[57].mxu1 }
 0x26b   : > { %v4275_v12 = vpop.f32.mrb[55].mxu0  ;;  %v2742_v37 = vpop.f32.mrb[58].mxu1  ;;  %v2448_v61 = vadd.f32 %v2434_v18, %v2297_v21 }
 0x26c   : > { %v4367_v34 = vpop.f32.mrb[59].mxu1 }
 0x270   : > { %v2578_v7 = vpop.f32.mrb[56].mxu0 }
 0x271   : > { %v2616_v36 = vadd.f32 %v2578_v7, %v2440_v55  ;;  %v4330_v63 = vpop.f32.mrb[57].mxu0  ;;  %v2747_v9 = vpop.f32.mrb[60].mxu1 }
 0x272   : > { %v2581_v59 = vpop.f32.mrb[58].mxu0  ;;  %v4370_v22 = vpop.f32.mrb[61].mxu1 }
 0x273   : > { %v2617_v10 = vadd.f32 %v2581_v59, %v2441_v31  ;;  %v4331_v52 = vpop.f32.mrb[59].mxu0  ;;  %v2750_v50 = vpop.f32.mrb[62].mxu1  ;;  %v2777_v8 = vadd.f32 %v2739_v43, %v2616_v36 }
 0x274   : > { %v4371_v35 = vpop.f32.mrb[63].mxu1 }
 0x275   : > { %v2778_v62 = vadd.f32 %v2742_v37, %v2617_v10 }
 0x278   : > { %v2586_v58 = vpop.f32.mrb[60].mxu0 }
 0x279   : > { %v2618_v44 = vadd.f32 %v2586_v58, %v2442_v3  ;;  %v4334_v4 = vpop.f32.mrb[61].mxu0  ;;  %v2755_v40 = vpop.f32.mrb[64].mxu1 }
 0x27a   : > { %v2589_v20 = vpop.f32.mrb[62].mxu0  ;;  %v4374_v27 = vpop.f32.mrb[65].mxu1 }
 0x27b   : > { %v2619_v57 = vadd.f32 %v2589_v20, %v2443_v17  ;;  %v4335_v0 = vpop.f32.mrb[63].mxu0  ;;  %v2758_v39 = vpop.f32.mrb[66].mxu1  ;;  %v2779_v55 = vadd.f32 %v2747_v9, %v2618_v44 }
 0x27c   : > { %v4375_v23 = vpop.f32.mrb[67].mxu1 }
 0x27d   : > { %v2780_v38 = vadd.f32 %v2750_v50, %v2619_v57 }
 0x280   : > { %v2594_v13 = vpop.f32.mrb[64].mxu0 }
 0x281   : > { %v2620_v42 = vadd.f32 %v2594_v13, %v2444_v51  ;;  %v4338_v31 = vpop.f32.mrb[65].mxu0  ;;  %v2763_v41 = vpop.f32.mrb[68].mxu1 }
 0x282   : > { %v2597_v48 = vpop.f32.mrb[66].mxu0  ;;  %v4378_v25 = vpop.f32.mrb[69].mxu1 }
 0x283   : > { %v2621_v56 = vadd.f32 %v2597_v48, %v2445_v5  ;;  %v4339_v16 = vpop.f32.mrb[67].mxu0  ;;  %v2766_v30 = vpop.f32.mrb[70].mxu1  ;;  %v2781_v3 = vadd.f32 %v2755_v40, %v2620_v42 }
 0x284   : > { %v4379_v60 = vpop.f32.mrb[71].mxu1 }
 0x285   : > { %v2782_v2 = vadd.f32 %v2758_v39, %v2621_v56 }
 0x288   : > { %v2602_v45 = vpop.f32.mrb[68].mxu0 }
 0x289   : > { %v2622_v49 = vadd.f32 %v2602_v45, %v2446_v19  ;;  %v4342_v17 = vpop.f32.mrb[69].mxu0  ;;  %v2771_v29 = vpop.f32.mrb[72].mxu1 }
 0x28a   : > { %v2605_v28 = vpop.f32.mrb[70].mxu0  ;;  %v4382_v14 = vpop.f32.mrb[73].mxu1 }
 0x28b   : > { %v2623_v18 = vadd.f32 %v2605_v28, %v2447_v54  ;;  %v4343_v26 = vpop.f32.mrb[71].mxu0  ;;  %v2774_v32 = vpop.f32.mrb[74].mxu1  ;;  %v2783_v51 = vadd.f32 %v2763_v41, %v2622_v49 }
 0x28c   : > { %v4383_v33 = vpop.f32.mrb[75].mxu1 }
 0x28d   : > { %v2784_v1 = vadd.f32 %v2766_v30, %v2623_v18 }
 0x290   : > { %v2610_v46 = vpop.f32.mrb[72].mxu0 }
 0x291   : > { %v2624_v15 = vadd.f32 %v2610_v46, %v2448_v61  ;;  %v4346_v5 = vpop.f32.mrb[73].mxu0  ;;  %v3066_v53 = vpop.f32.mrb[76].mxu1 }
 0x292   : > { %v2613_v21 = vpop.f32.mrb[74].mxu0  ;;  %v4438_v47 = vpop.f32.mrb[77].mxu1 }
 0x293   : > { %v4347_v43 = vpop.f32.mrb[75].mxu0  ;;  %v3069_v11 = vpop.f32.mrb[78].mxu1  ;;  %v2785_v24 = vadd.f32 %v2771_v29, %v2624_v15  ;;  %v5812_v15 = vld [vmem:[%s5901_s5] ss:$0 sm:$0xff] }
 0x294   : > { %v4439_v19 = vpop.f32.mrb[79].mxu1 }
 0x298   : > { %v2890_v12 = vpop.f32.mrb[76].mxu0 }
 0x299   : > { %v2928_v37 = vadd.f32 %v2890_v12, %v2777_v8  ;;  %v4402_v34 = vpop.f32.mrb[77].mxu0  ;;  %v3074_v7 = vpop.f32.mrb[80].mxu1 }
 0x29a   : > { %v2893_v54 = vpop.f32.mrb[78].mxu0  ;;  %v4442_v36 = vpop.f32.mrb[81].mxu1 }
 0x29b   : > { %v2929_v63 = vadd.f32 %v2893_v54, %v2778_v62  ;;  %v4403_v9 = vpop.f32.mrb[79].mxu0  ;;  %v3077_v59 = vpop.f32.mrb[82].mxu1  ;;  %v3104_v22 = vadd.f32 %v3066_v53, %v2928_v37 }
 0x29c   : > { %v4443_v10 = vpop.f32.mrb[83].mxu1 }
 0x29d   : > { %v5799_v61 = vadd.f32 %v3069_v11, %v2929_v63 }
 0x2a0   : > { %v2898_v52 = vpop.f32.mrb[80].mxu0 }
 0x2a1   : > { %v2930_v50 = vadd.f32 %v2898_v52, %v2779_v55  ;;  %v4406_v35 = vpop.f32.mrb[81].mxu0  ;;  %v3082_v58 = vpop.f32.mrb[84].mxu1 }
 0x2a2   : > { %v2901_v44 = vpop.f32.mrb[82].mxu0  ;;  %v4446_v4 = vpop.f32.mrb[85].mxu1 }
 0x2a3   : > { %v2931_v40 = vadd.f32 %v2901_v44, %v2780_v38  ;;  %v4407_v20 = vpop.f32.mrb[83].mxu0  ;;  %v3085_v8 = vpop.f32.mrb[86].mxu1  ;;  %v5801_v27 = vadd.f32 %v3074_v7, %v2930_v50 }
 0x2a4   : > { %v4447_v57 = vpop.f32.mrb[87].mxu1 }
 0x2a5   : > { %v5803_v0 = vadd.f32 %v3077_v59, %v2931_v40 }
 0x2a8   : > { %v2906_v62 = vpop.f32.mrb[84].mxu0 }
 0x2a9   : > { %v2932_v39 = vadd.f32 %v2906_v62, %v2781_v3  ;;  %v4410_v23 = vpop.f32.mrb[85].mxu0  ;;  %v3090_v13 = vpop.f32.mrb[88].mxu1 }
 0x2aa   : > { %v2909_v42 = vpop.f32.mrb[86].mxu0  ;;  %v4450_v31 = vpop.f32.mrb[89].mxu1 }
 0x2ab   : > { %v2933_v41 = vadd.f32 %v2909_v42, %v2782_v2  ;;  %v4411_v55 = vpop.f32.mrb[87].mxu0  ;;  %v3093_v48 = vpop.f32.mrb[90].mxu1  ;;  %v5805_v25 = vadd.f32 %v3082_v58, %v2932_v39 }
 0x2ac   : > { %v4451_v56 = vpop.f32.mrb[91].mxu1 }
 0x2ad   : > { %v5807_v38 = vadd.f32 %v3085_v8, %v2933_v41 }
 0x2b0   : > { %v2914_v16 = vpop.f32.mrb[88].mxu0 }
 0x2b1   : > { %v2934_v30 = vadd.f32 %v2914_v16, %v2783_v51  ;;  %v4414_v60 = vpop.f32.mrb[89].mxu0  ;;  %v3098_v45 = vpop.f32.mrb[92].mxu1 }
 0x2b2   : > { %v2917_v49 = vpop.f32.mrb[90].mxu0  ;;  %v4454_v17 = vpop.f32.mrb[93].mxu1 }
 0x2b3   : > { %v2935_v29 = vadd.f32 %v2917_v49, %v2784_v1  ;;  %v4415_v3 = vpop.f32.mrb[91].mxu0  ;;  %v3101_v28 = vpop.f32.mrb[94].mxu1  ;;  %v3110_v14 = vadd.f32 %v3090_v13, %v2934_v30 }
 0x2b4   : > { %v4455_v18 = vpop.f32.mrb[95].mxu1 }
 0x2b5   : > { %v3111_v26 = vadd.f32 %v3093_v48, %v2935_v29 }
 0x2b8   : > { %v2922_v2 = vpop.f32.mrb[92].mxu0 }
 0x2b9   : > { %v2936_v32 = vadd.f32 %v2922_v2, %v2785_v24  ;;  %v4418_v33 = vpop.f32.mrb[93].mxu0  ;;  %v3251_v46 = vpop.f32.mrb[96].mxu1 }
 0x2ba   : > { %v3271_v51 = vadd.f32 %v3251_v46, %v3110_v14  ;;  %v2925_v5 = vpop.f32.mrb[94].mxu0  ;;  %v4486_v53 = vpop.f32.mrb[97].mxu1 }
 0x2bb   : > { %v4419_v21 = vpop.f32.mrb[95].mxu0  ;;  %v3254_v47 = vpop.f32.mrb[98].mxu1  ;;  %v3112_v1 = vadd.f32 %v3098_v45, %v2936_v32 }
 0x2bc   : > { %v5815_v43 = vadd.f32 %v5812_v15, %v3271_v51  ;;  %v3272_v11 = vadd.f32 %v3254_v47, %v3111_v26  ;;  %v4487_v19 = vpop.f32.mrb[99].mxu1 }
 0x2be   : > { %v3400_v24 = vcombine.high %v5815_v43, %v5815_v43  ;;  %v3288_v12 = vadd.f32 %v5812_v15, %v3272_v11 }
 0x2c0   : > { %v3414_v37 = vrot.slane %v3400_v24, %v4882_v6  ;;  %v3417_v34 = vcombine.high %v3288_v12, %v3288_v12  ;;  %v3424_v7 = vrot.slane %v3288_v12, %v4882_v6  ;;  %v3227_v54 = vpop.f32.mrb[96].mxu0 }
 0x2c1   : > { %v3265_v36 = vadd.f32 %v3227_v54, %v3104_v22  ;;  %v4474_v63 = vpop.f32.mrb[97].mxu0  ;;  %v3259_v9 = vpop.f32.mrb[100].mxu1 }
 0x2c2   : > { %v3416_v59 = vcombine.high %v3414_v37, %v3414_v37  ;;  %v3431_v10 = vrot.slane %v3417_v34, %v4882_v6  ;;  %v3432_v52 = vcombine.high %v3424_v7, %v3424_v7  ;;  %v3230_v50 = vpop.f32.mrb[98].mxu0  ;;  %v4490_v35 = vpop.f32.mrb[101].mxu1  ;;  %v3273_v44 = vadd.f32 %v3259_v9, %v3112_v1 }
 0x2c3   : > { %v3281_v58 = vadd.f32 %v5812_v15, %v3265_v36  ;;  %v3266_v4 = vadd.f32 %v3230_v50, %v5799_v61  ;;  %v4475_v40 = vpop.f32.mrb[99].mxu0  ;;  %v3262_v20 = vpop.f32.mrb[102].mxu1 }
 0x2c4   : > { %v3552_v8 = vcombine.low %v3416_v59, %v3424_v7  ;;  %v3553_v57 = vcombine.low %v3432_v52, %v3431_v10  ;;  %v4491_v62 = vpop.f32.mrb[103].mxu1  ;;  %v3289_v23 = vadd.f32 %v5812_v15, %v3273_v44  ;;  %v3433_v16 = vcombine.high %v3431_v10, %v3431_v10 }
 0x2c5   : > { %v3299_v22 = vcombine.high %v3281_v58, %v3281_v58  ;;  %v3306_v39 = vrot.slane %v3281_v58, %v4882_v6  ;;  %v3282_v13 = vadd.f32 %v5812_v15, %v3266_v4  ;;  %v3407_v4 = vrot.slane %v5815_v43, %v4882_v6 }
 0x2c6   : > { %v3560_v42 = vrot.slane %v3552_v8, %v4882_v6  ;;  %v3567_v31 = vrot.slane %v3553_v57, %v4882_v6  ;;  %v3434_v55 = vcombine.high %v3289_v23, %v3289_v23  ;;  %v3441_v48 = vrot.slane %v3289_v23, %v4882_v6 }
 0x2c7   : > { %v3313_v61 = vrot.slane %v3299_v22, %v4882_v6  ;;  %v3314_v41 = vcombine.high %v3306_v39, %v3306_v39  ;;  %v3316_v30 = vcombine.high %v3282_v13, %v3282_v13  ;;  %v3323_v60 = vrot.slane %v3282_v13, %v4882_v6 }
 0x2c8   : > { %v3568_v56 = vcombine.low %v3560_v42, %v3567_v31  ;;  %v3235_v45 = vpop.f32.mrb[100].mxu0  ;;  %v3448_v29 = vrot.slane %v3434_v55, %v4882_v6  ;;  %v3449_v3 = vcombine.high %v3441_v48, %v3441_v48  ;;  %v3569_v14 = vcombine.low %v3433_v16, %v3441_v48 }
 0x2c9   : > { %v3315_v49 = vcombine.high %v3313_v61, %v3313_v61  ;;  %v3450_v17 = vcombine.low %v3306_v39, %v3314_v41  ;;  %v4478_v28 = vpop.f32.mrb[101].mxu0  ;;  %v3330_v18 = vrot.slane %v3316_v30, %v4882_v6  ;;  %v3331_v26 = vcombine.high %v3323_v60, %v3323_v60 }
 0x2ca   : > { %3600 = vst [vmem:[%s5834_s7 + $0x30] sm:$0xff] %v3568_v56  ;;  %v3267_v2 = vadd.f32 %v3235_v45, %v5801_v27  ;;  %v3238_v32 = vpop.f32.mrb[102].mxu0  ;;  %v3570_v46 = vcombine.low %v3449_v3, %v3448_v29  ;;  %v3577_v19 = vrot.slane %v3569_v14, %v4882_v6  ;;  %v3415_v43 = vcombine.high %v3407_v4, %v3407_v4 }
 0x2cb   : > { %v3451_v33 = vcombine.low %v3313_v61, %v3315_v49  ;;  %v3268_v51 = vadd.f32 %v3238_v32, %v5803_v0  ;;  %v4479_v5 = vpop.f32.mrb[103].mxu0  ;;  %v3458_v53 = vrot.slane %v3450_v17, %v4882_v6  ;;  %v3332_v21 = vcombine.high %v3330_v18, %v3330_v18 }
 0x2cc   : > { %v3467_v47 = vcombine.low %v3323_v60, %v3331_v26  ;;  %v3283_v1 = vadd.f32 %v5812_v15, %v3267_v2  ;;  %v3584_v27 = vrot.slane %v3570_v46, %v4882_v6  ;;  %v3536_v29 = vcombine.low %v3407_v4, %v3415_v43 }
 0x2cd   : > { %v3465_v11 = vrot.slane %v3451_v33, %v4882_v6  ;;  %v3284_v24 = vadd.f32 %v5812_v15, %v3268_v51  ;;  %v3468_v12 = vcombine.low %v3330_v18, %v3332_v21 }
 0x2ce   : > { %v3333_v37 = vcombine.high %v3283_v1, %v3283_v1  ;;  %v3340_v0 = vrot.slane %v3283_v1, %v4882_v6  ;;  %v3585_v7 = vcombine.low %v3577_v19, %v3584_v27  ;;  %v3475_v63 = vrot.slane %v3467_v47, %v4882_v6 }
 0x2cf   : > { %v3466_v34 = vcombine.low %v3458_v53, %v3465_v11  ;;  %v3350_v54 = vcombine.high %v3284_v24, %v3284_v24  ;;  %v3357_v36 = vrot.slane %v3284_v24, %v4882_v6  ;;  %v3482_v9 = vrot.slane %v3468_v12, %v4882_v6 }
 0x2d0   : > { %v3347_v59 = vrot.slane %v3333_v37, %v4882_v6  ;;  %v3348_v10 = vcombine.high %v3340_v0, %v3340_v0  ;;  %v3243_v52 = vpop.f32.mrb[104].mxu0  ;;  %3601 = vst [vmem:[%s5834_s7 + $0x38] sm:$0xff] %v3585_v7  ;;  %v3550_v33 = vrot.slane %v3536_v29, %v4882_v6 }
 0x2d1   : > { %3594 = vst [vmem:[%s5834_s7] sm:$0xff] %v3466_v34  ;;  %v3364_v50 = vrot.slane %v3350_v54, %v4882_v6  ;;  %v3365_v35 = vcombine.high %v3357_v36, %v3357_v36  ;;  %v3269_v58 = vadd.f32 %v3243_v52, %v5805_v25  ;;  %v4482_v44 = vpop.f32.mrb[105].mxu0  ;;  %v3483_v40 = vcombine.low %v3475_v63, %v3482_v9 }
 0x2d2   : > { %v3484_v20 = vcombine.low %v3348_v10, %v3347_v59  ;;  %v3349_v8 = vcombine.high %v3347_v59, %v3347_v59  ;;  %v3246_v57 = vpop.f32.mrb[106].mxu0 }
 0x2d3   : > { %v3285_v62 = vadd.f32 %v5812_v15, %v3269_v58  ;;  %v3270_v22 = vadd.f32 %v3246_v57, %v5807_v38  ;;  %v4483_v39 = vpop.f32.mrb[107].mxu0  ;;  %3595 = vst [vmem:[%s5834_s7 + $0x8] sm:$0xff] %v3483_v40  ;;  %v3501_v13 = vcombine.low %v3365_v35, %v3364_v50  ;;  %v3366_v42 = vcombine.high %v3364_v50, %v3364_v50 }
 0x2d4   : > { %v3485_v23 = vcombine.low %v3349_v8, %v3357_v36  ;;  %v3492_v41 = vrot.slane %v3484_v20, %v4882_v6 }
 0x2d5   : > { %v3367_v31 = vcombine.high %v3285_v62, %v3285_v62  ;;  %v3374_v25 = vrot.slane %v3285_v62, %v4882_v6  ;;  %v3286_v61 = vadd.f32 %v5812_v15, %v3270_v22  ;;  %v3509_v60 = vrot.slane %v3501_v13, %v4882_v6 }
 0x2d6   : > { %v3499_v55 = vrot.slane %v3485_v23, %v4882_v6 }
 0x2d7   : > { %v3381_v48 = vrot.slane %v3367_v31, %v4882_v6  ;;  %v3502_v56 = vcombine.low %v3366_v42, %v3374_v25  ;;  %v3383_v38 = vcombine.high %v3286_v61, %v3286_v61  ;;  %v3390_v16 = vrot.slane %v3286_v61, %v4882_v6 }
 0x2d8   : > { %v3500_v30 = vcombine.low %v3492_v41, %v3499_v55 }
 0x2d9   : > { %v3382_v45 = vcombine.high %v3381_v48, %v3381_v48  ;;  %v3516_v49 = vrot.slane %v3502_v56, %v4882_v6  ;;  %v3397_v15 = vrot.slane %v3383_v38, %v4882_v6  ;;  %v3398_v17 = vcombine.high %v3390_v16, %v3390_v16 }
 0x2da   : > { %3596 = vst [vmem:[%s5834_s7 + $0x10] sm:$0xff] %v3500_v30 }
 0x2db   : > { %v3517_v3 = vcombine.low %v3509_v60, %v3516_v49  ;;  %v3518_v28 = vcombine.low %v3381_v48, %v3382_v45  ;;  %v3399_v14 = vcombine.high %v3397_v15, %v3397_v15  ;;  %v3519_v18 = vcombine.low %v3390_v16, %v3398_v17 }
 0x2dd   : > { %v3526_v26 = vrot.slane %v3518_v28, %v4882_v6  ;;  %3597 = vst [vmem:[%s5834_s7 + $0x18] sm:$0xff] %v3517_v3  ;;  %v3533_v2 = vrot.slane %v3519_v18, %v4882_v6  ;;  %v3535_v32 = vcombine.low %v3397_v15, %v3399_v14 }
 0x2df   : > { %v3534_v46 = vcombine.low %v3526_v26, %v3533_v2  ;;  %v3543_v51 = vrot.slane %v3535_v32, %v4882_v6 }
 0x2e1   : > { %v3551_v5 = vcombine.low %v3543_v51, %v3550_v33  ;;  %3598 = vst [vmem:[%s5834_s7 + $0x20] sm:$0xff] %v3534_v46 }
 0x2e3   : > { %3599 = vst [vmem:[%s5834_s7 + $0x28] sm:$0xff] %v3551_v5 }
 0x2e4 PF: > { %s16_s25 = sadd.s32 1, %s4679_s25   ;;  %s5910_s21 = smov %s4671_s23 }
 0x2e5   : > { %p13_p9 = scmp.ge.s32.totalorder %s16_s25, 10   ;;  %s5911_s22 = smov %s4675_s24 }
 0x2e6   : > { %s5912_s23 = smov %s5915_s26  ;;  %s5913_s24 = smov %s5919_s27 }
 0x2e7   :  { %15 = sbr.rel (!%p13_p9) target bundleno = 3 (0x3), region = 91 }

</bundles_post_ra>
